<compile_context>
chip_gen: v7x
topology: tpu7x:2x2x1
jax: 0.10.0
libtpu: 0.0.40
codegen_flags: <defaults>
</compile_context>

<pallas_src>
import jax
import jax.numpy as jnp
from jax import lax
from jax.experimental import pallas as pl
from jax.experimental.pallas import tpu as pltpu

LANES = 128
_EPS = 1e-5


def _tpu_vmem_bytes():
    try:
        return int(pltpu.get_tpu_info().vmem_capacity_bytes)
    except Exception:
        return 128 * 1024 * 1024


_VMEM_PHYS = _tpu_vmem_bytes()
# Scoped VMEM budget: leave headroom below physical (v7x: 64 MiB -> 48 MiB;
# v5e/v6e: 128 MiB -> 96 MiB).
_VMEM_LIMIT = max(32 * 1024 * 1024, min((_VMEM_PHYS * 3) // 4, 100 * 1024 * 1024))
_BIG_VMEM = _VMEM_PHYS >= 96 * 1024 * 1024
_TARGET_TILE_H = 16 if _BIG_VMEM else 8      # rows per conv band
_BN_TILE_M = 2048 if _BIG_VMEM else 1024     # rows per bn/relu elementwise tile


def _round_up(x, m):
    return (x + m - 1) // m * m


def _pad_last(x, target):
    pad = target - x.shape[-1]
    if pad == 0:
        return x
    cfg = [(0, 0)] * (x.ndim - 1) + [(0, pad)]
    return jnp.pad(x, cfg)


def _largest_divisor_leq(n, target):
    for t in range(min(target, n), 0, -1):
        if n % t == 0:
            return t
    return 1


# --------------------------------------------------------------------------
# Kernel 1: ConvTranspose2d(k=2, stride=2), TILE_H1 rows per grid step,
# single matmul against the (c1p, 4*c1p) concatenated tap weight.
# Output layout (N, H1, 2, W1, 2*C) reshapes to NHWC (N, 2H1, 2W1, C) for free.
# --------------------------------------------------------------------------
def _make_convt_kernel(tile_h, w1, c1p):
    def kernel(x_ref, w_ref, b_ref, o_ref):
        x = x_ref[0].reshape(tile_h * w1, c1p)                    # (M, C)
        y = jnp.dot(x, w_ref[...], preferred_element_type=jnp.float32) + b_ref[...]
        y = y.reshape(tile_h, w1, 4 * c1p)                        # taps kh-major
        o_ref[0, :, 0, :, :] = y[:, :, :2 * c1p]                  # kh = 0
        o_ref[0, :, 1, :, :] = y[:, :, 2 * c1p:]                  # kh = 1
    return kernel


def conv_transpose_2x2_s2(x1p, w, b, c1p):
    """x1p: (N, H1, W1, C1p) channel-padded NHWC. w: (Cin, Cout, 2, 2) torch layout."""
    N, H1, W1, _ = x1p.shape
    cin, cout = w.shape[0], w.shape[1]
    taps = []
    for kh in range(2):
        for kw in range(2):
            taps.append(jnp.pad(w[:, :, kh, kw], ((0, c1p - cin), (0, c1p - cout))))
    wcat = jnp.concatenate(taps, axis=1)                          # (c1p, 4*c1p)
    b4 = jnp.tile(jnp.pad(b, (0, c1p - cout)), 4).reshape(1, 4 * c1p)

    tile_h = _largest_divisor_leq(H1, _TARGET_TILE_H)
    out = pl.pallas_call(
        _make_convt_kernel(tile_h, W1, c1p),
        grid=(N, H1 // tile_h),
        in_specs=[
            pl.BlockSpec((1, tile_h, W1, c1p), lambda n, h: (n, h, 0, 0)),
            pl.BlockSpec((c1p, 4 * c1p), lambda n, h: (0, 0)),
            pl.BlockSpec((1, 4 * c1p), lambda n, h: (0, 0)),
        ],
        out_specs=pl.BlockSpec((1, tile_h, 2, W1, 2 * c1p),
                               lambda n, h: (n, h, 0, 0, 0)),
        out_shape=jax.ShapeDtypeStruct((N, H1, 2, W1, 2 * c1p), jnp.float32),
        compiler_params=pltpu.CompilerParams(
            dimension_semantics=("parallel", "parallel"),
            vmem_limit_bytes=_VMEM_LIMIT),
    )(x1p, wcat, b4)
    # (N,H1,2,W1,2,C) -> (N,2H1,2W1,C): contiguous merges, no transpose pass.
    return out.reshape(N, H1, 2, W1, 2, c1p).reshape(N, 2 * H1, 2 * W1, c1p)


# --------------------------------------------------------------------------
# Kernel 2: 3x3 conv (+bias) over a TILE_H-row band per grid step.
# Multi-source (fused channel concat), optional fused pre-BN+ReLU(+pad mask) on
# the inputs (used by conv2), and per-band sum / sum-of-squares BN partials.
# --------------------------------------------------------------------------
def _make_conv3x3_kernel(tile_h, w_out, wp2, c_pads, cout_p, h_real, with_prebn):
    nsrc = len(c_pads)

    def kernel(*refs):
        i = 0
        x_refs = refs[i:i + 3 * nsrc]; i += 3 * nsrc              # per src: A, B0, B1
        pre_refs = ()
        if with_prebn:
            pre_refs = refs[i:i + 2 * nsrc]; i += 2 * nsrc        # per src: scale, shift
        w_refs = refs[i:i + nsrc]; i += nsrc
        b_ref = refs[i]; i += 1
        y_ref, s_ref = refs[i], refs[i + 1]; i += 2
        band_refs = refs[i:i + nsrc]                              # VMEM scratch bands

        h = pl.program_id(1)

        if with_prebn:
            col = lax.broadcasted_iota(jnp.int32, (1, wp2, 1), 1)
            col_ok = jnp.logical_and(col >= 1, col <= wp2 - 2)

        # Assemble the (tile_h+2)-row halo band per source; apply the previous
        # layer's folded BatchNorm (scale*x+shift -> ReLU) and re-zero the
        # spatial padding positions when requested.
        for s in range(nsrc):
            a = x_refs[3 * s][0]                                  # (tile_h, wp2, cp)
            b0 = x_refs[3 * s + 1][0]                             # (1, wp2, cp)
            b1 = x_refs[3 * s + 2][0]                             # (1, wp2, cp)
            if with_prebn:
                cp = c_pads[s]
                sc = pre_refs[2 * s][...].reshape(1, 1, cp)
                sh = pre_refs[2 * s + 1][...].reshape(1, 1, cp)
                ra = lax.broadcasted_iota(jnp.int32, (tile_h, 1, 1), 0) + h * tile_h
                a_ok = jnp.logical_and(jnp.logical_and(ra >= 1, ra <= h_real), col_ok)
                r0 = (h + 1) * tile_h
                r1 = r0 + 1
                b0_ok = jnp.logical_and(
                    jnp.logical_and(r0 >= 1, r0 <= h_real), col_ok)
                b1_ok = jnp.logical_and(
                    jnp.logical_and(r1 >= 1, r1 <= h_real), col_ok)
                a = jnp.where(a_ok, jnp.maximum(a * sc + sh, 0.0), 0.0)
                b0 = jnp.where(b0_ok, jnp.maximum(b0 * sc + sh, 0.0), 0.0)
                b1 = jnp.where(b1_ok, jnp.maximum(b1 * sc + sh, 0.0), 0.0)
            band_refs[s][0:tile_h] = a
            band_refs[s][tile_h:tile_h + 1] = b0
            band_refs[s][tile_h + 1:tile_h + 2] = b1

        acc = jnp.zeros((tile_h * w_out, cout_p), jnp.float32) + b_ref[...]
        for s in range(nsrc):
            cp = c_pads[s]
            band = band_refs[s]
            w_ref = w_refs[s]
            for kh in range(3):
                for kw in range(3):
                    patch = band[kh:kh + tile_h, kw:kw + w_out, :]
                    patch = patch.reshape(tile_h * w_out, cp)
                    wmat = w_ref[(kh * 3 + kw) * cp:(kh * 3 + kw + 1) * cp, :]
                    acc += jnp.dot(patch, wmat,
                                   preferred_element_type=jnp.float32)

        y_ref[...] = acc.reshape(1, tile_h, w_out, cout_p)
        s_ref[0, 0, 0:1, :] = jnp.sum(acc, axis=0, keepdims=True)
        s_ref[0, 0, 1:2, :] = jnp.sum(acc * acc, axis=0, keepdims=True)

    return kernel


def conv3x3_bn_stats(xs, ws, bias_p, cout_p, tile_h, prebn=None):
    """xs: list of spatially (+1 halo) and channel padded NHWC inputs
    (N, H+2, W+2, Cp_s).  ws[s]: (9*Cp_s, cout_p).  prebn: None, or per-source
    (scale, shift) applied (affine -> ReLU -> halo re-zero) before the conv.
    Returns pre-BN conv output (N, H, W, cout_p) and per-band stats
    (N, H//tile_h, 2, cout_p)."""
    N, hp2, wp2, _ = xs[0].shape
    H, W = hp2 - 2, wp2 - 2
    c_pads = tuple(int(x.shape[-1]) for x in xs)
    n_hb = H // tile_h
    with_prebn = prebn is not None

    in_specs, args = [], []
    for x, cp in zip(xs, c_pads):
        # A: tile_h rows starting at h*tile_h; B0/B1: the two halo rows below.
        in_specs.append(pl.BlockSpec((1, tile_h, wp2, cp),
                                     lambda n, h: (n, h, 0, 0)))
        args.append(x)
        in_specs.append(pl.BlockSpec((1, 1, wp2, cp),
                                     lambda n, h: (n, (h + 1) * tile_h, 0, 0)))
        args.append(x)
        in_specs.append(pl.BlockSpec((1, 1, wp2, cp),
                                     lambda n, h: (n, (h + 1) * tile_h + 1, 0, 0)))
        args.append(x)
    if with_prebn:
        for (sc, sh), cp in zip(prebn, c_pads):
            in_specs.append(pl.BlockSpec((1, cp), lambda n, h: (0, 0)))
            args.append(sc.reshape(1, cp))
            in_specs.append(pl.BlockSpec((1, cp), lambda n, h: (0, 0)))
            args.append(sh.reshape(1, cp))
    for w in ws:
        in_specs.append(pl.BlockSpec(w.shape, lambda n, h: (0, 0)))
        args.append(w)
    in_specs.append(pl.BlockSpec((1, cout_p), lambda n, h: (0, 0)))
    args.append(bias_p.reshape(1, cout_p))

    scratch = [pltpu.VMEM((tile_h + 2, wp2, cp), jnp.float32) for cp in c_pads]

    y, stats = pl.pallas_call(
        _make_conv3x3_kernel(tile_h, W, wp2, c_pads, cout_p, H, with_prebn),
        grid=(N, n_hb),
        in_specs=in_specs,
        out_specs=[
            pl.BlockSpec((1, tile_h, W, cout_p), lambda n, h: (n, h, 0, 0)),
            pl.BlockSpec((1, 1, 2, cout_p), lambda n, h: (n, h, 0, 0)),
        ],
        out_shape=(
            jax.ShapeDtypeStruct((N, H, W, cout_p), jnp.float32),
            jax.ShapeDtypeStruct((N, n_hb, 2, cout_p), jnp.float32),
        ),
        scratch_shapes=scratch,
        compiler_params=pltpu.CompilerParams(
            dimension_semantics=("parallel", "parallel"),
            vmem_limit_bytes=_VMEM_LIMIT),
    )(*args)
    return y, stats


# --------------------------------------------------------------------------
# Kernel 3: apply folded BN scale/shift + ReLU, tiled over M rows
# (used only for the final output; conv1's BN/ReLU is fused into conv2).
# --------------------------------------------------------------------------
def _bn_relu_kernel(y_ref, sc_ref, sh_ref, o_ref):
    o_ref[...] = jnp.maximum(y_ref[...] * sc_ref[...] + sh_ref[...], 0.0)


def bn_relu_apply(y, scale, shift, tile_m):
    N, H, W, C = y.shape
    M = N * H * W
    tm = min(tile_m, M)
    y2 = y.reshape(M, C)
    out = pl.pallas_call(
        _bn_relu_kernel,
        grid=(pl.cdiv(M, tm),),
        in_specs=[
            pl.BlockSpec((tm, C), lambda i: (i, 0)),
            pl.BlockSpec((1, C), lambda i: (0, 0)),
            pl.BlockSpec((1, C), lambda i: (0, 0)),
        ],
        out_specs=pl.BlockSpec((tm, C), lambda i: (i, 0)),
        out_shape=jax.ShapeDtypeStruct((M, C), jnp.float32),
        compiler_params=pltpu.CompilerParams(
            dimension_semantics=("parallel",),
            vmem_limit_bytes=_VMEM_LIMIT),
    )(y2, scale.reshape(1, C), shift.reshape(1, C))
    return out.reshape(N, H, W, C)


# --------------------------------------------------------------------------
# Small JAX helpers: stats finalize (fold BN into scale/shift), weight prep.
# --------------------------------------------------------------------------
def _bn_scale_shift(stats, count, gamma, beta, cp, eps=_EPS):
    s = jnp.sum(stats[:, :, 0, :], axis=(0, 1))
    sq = jnp.sum(stats[:, :, 1, :], axis=(0, 1))
    mean = s / count
    var = jnp.maximum(sq / count - mean * mean, 0.0)      # biased variance
    g = jnp.pad(gamma, (0, cp - gamma.shape[0]))
    b = jnp.pad(beta, (0, cp - beta.shape[0]))
    scale = g * lax.rsqrt(var + eps)
    shift = b - mean * scale
    return scale, shift


def _prep_conv_w(w_oihw, cin_p, cout_p):
    cout, cin, kh, kw = w_oihw.shape
    w = jnp.transpose(w_oihw, (2, 3, 1, 0))               # (kh, kw, ci, co)
    w = jnp.pad(w, ((0, 0), (0, 0), (0, cin_p - cin), (0, cout_p - cout)))
    return w.reshape(kh * kw * cin_p, cout_p)


# --------------------------------------------------------------------------
# Full `up` forward (NCHW in / NCHW out, like PyTorch)
# --------------------------------------------------------------------------
def up_forward(x1_nchw, x2_nchw, p):
    N, c1, H1, W1 = x1_nchw.shape
    c2 = x2_nchw.shape[1]
    cout = p["c1_w"].shape[0]
    c1p = _round_up(c1, LANES)
    c2p = _round_up(c2, LANES)
    cout_p = _round_up(cout, LANES)

    x1 = _pad_last(jnp.transpose(x1_nchw, (0, 2, 3, 1)), c1p)   # NHWC, lane-dense
    x2 = _pad_last(jnp.transpose(x2_nchw, (0, 2, 3, 1)), c2p)

    # upsample: ConvTranspose2d(in_ch//2, in_ch//2, 2, stride=2)
    x1u = conv_transpose_2x2_s2(x1, p["up_w"], p["up_b"], c1p)  # (N, 2H1, 2W1, c1p)

    H2, W2 = x2.shape[1], x2.shape[2]
    dY = H2 - x1u.shape[1]
    dX = W2 - x1u.shape[2]
    # Fold F.pad(diff) and the first conv's spatial pad=1 into one pad.
    # TODO(synk): fold these zero-pads into the conv kernel with masked
    # boundary loads to drop the extra HBM round trips.
    x1u_sp = jnp.pad(x1u, ((0, 0),
                           (1 + dY // 2, 1 + dY - dY // 2),
                           (1 + dX // 2, 1 + dX - dX // 2),
                           (0, 0)))
    x2_sp = jnp.pad(x2, ((0, 0), (1, 1), (1, 1), (0, 0)))

    tile_h = _largest_divisor_leq(H2, _TARGET_TILE_H)

    # conv1 (+ fused concat: x2 channels first, then upsampled x1)
    wa = _prep_conv_w(p["c1_w"][:, :c2, :, :], c2p, cout_p)
    wb = _prep_conv_w(p["c1_w"][:, c2:, :, :], c1p, cout_p)
    b1 = jnp.pad(p["c1_b"], (0, cout_p - cout))
    y1, st1 = conv3x3_bn_stats([x2_sp, x1u_sp], [wa, wb], b1, cout_p, tile_h)
    sc1, sh1 = _bn_scale_shift(st1, N * H2 * W2, p["bn1_g"], p["bn1_b"], cout_p)

    # conv2, with BN1+ReLU fused into the input load (no separate a1 pass).
    y1_sp = jnp.pad(y1, ((0, 0), (1, 1), (1, 1), (0, 0)))
    w2 = _prep_conv_w(p["c2_w"], cout_p, cout_p)
    b2 = jnp.pad(p["c2_b"], (0, cout_p - cout))
    y2, st2 = conv3x3_bn_stats([y1_sp], [w2], b2, cout_p, tile_h,
                               prebn=[(sc1, sh1)])
    sc2, sh2 = _bn_scale_shift(st2, N * H2 * W2, p["bn2_g"], p["bn2_b"], cout_p)
    a2 = bn_relu_apply(y2, sc2, sh2, _BN_TILE_M)

    out = a2[..., :cout]                       # drop lane-padding channels
    return jnp.transpose(out, (0, 3, 1, 2))    # -> NCHW


# --------------------------------------------------------------------------
# Pure-JAX reference (independent path) for correctness checking
# --------------------------------------------------------------------------
def _ref_bn_relu(x_nchw, g, b, eps=_EPS):
    mean = jnp.mean(x_nchw, axis=(0, 2, 3), keepdims=True)
    var = jnp.mean((x_nchw - mean) ** 2, axis=(0, 2, 3), keepdims=True)
    y = (x_nchw - mean) / jnp.sqrt(var + eps)
    y = y * g[None, :, None, None] + b[None, :, None, None]
    return jnp.maximum(y, 0.0)


def _ref_conv3x3(x_nchw, w, b):
    y = lax.conv_general_dilated(
        x_nchw, w, window_strides=(1, 1), padding=((1, 1), (1, 1)),
        dimension_numbers=("NCHW", "OIHW", "NCHW"))
    return y + b[None, :, None, None]


def ref_up_forward(x1, x2, p):
    N, C, H, W = x1.shape
    Cout = p["up_w"].shape[1]
    t = jnp.einsum("nchw,cokl->nohkwl", x1, p["up_w"])     # (N,Co,H,2,W,2)
    x1u = t.reshape(N, Cout, 2 * H, 2 * W) + p["up_b"][None, :, None, None]
    diffY = x2.shape[2] - x1u.shape[2]
    diffX = x2.shape[3] - x1u.shape[3]
    x1u = jnp.pad(x1u, ((0, 0), (0, 0),
                        (diffY // 2, diffY - diffY // 2),
                        (diffX // 2, diffX - diffX // 2)))
    x = jnp.concatenate([x2, x1u], axis=1)
    x = _ref_bn_relu(_ref_conv3x3(x, p["c1_w"], p["c1_b"]), p["bn1_g"], p["bn1_b"])
    x = _ref_bn_relu(_ref_conv3x3(x, p["c2_w"], p["c2_b"]), p["bn2_g"], p["bn2_b"])
    return x


# --------------------------------------------------------------------------
if __name__ == "__main__":
    in_ch, out_ch = 8, 4            # up(in_ch=8, out_ch=4, bilinear=False)
    c_half = in_ch // 2
    N, H1, W1 = 2, 8, 8             # x1 spatial; x2 is 2x that

    key = jax.random.PRNGKey(0)
    ks = jax.random.split(key, 12)

    params = {
        # ConvTranspose2d(c_half, c_half, 2, stride=2): weight (Cin, Cout, 2, 2)
        "up_w": 0.2 * jax.random.normal(ks[0], (c_half, c_half, 2, 2), jnp.float32),
        "up_b": 0.1 * jax.random.normal(ks[1], (c_half,), jnp.float32),
        # Conv2d(in_ch, out_ch, 3, padding=1): weight (Cout, Cin, 3, 3)
        "c1_w": 0.2 * jax.random.normal(ks[2], (out_ch, in_ch, 3, 3), jnp.float32),
        "c1_b": 0.1 * jax.random.normal(ks[3], (out_ch,), jnp.float32),
        "bn1_g": 1.0 + 0.1 * jax.random.normal(ks[4], (out_ch,), jnp.float32),
        "bn1_b": 0.1 * jax.random.normal(ks[5], (out_ch,), jnp.float32),
        # Conv2d(out_ch, out_ch, 3, padding=1)
        "c2_w": 0.2 * jax.random.normal(ks[6], (out_ch, out_ch, 3, 3), jnp.float32),
        "c2_b": 0.1 * jax.random.normal(ks[7], (out_ch,), jnp.float32),
        "bn2_g": 1.0 + 0.1 * jax.random.normal(ks[8], (out_ch,), jnp.float32),
        "bn2_b": 0.1 * jax.random.normal(ks[9], (out_ch,), jnp.float32),
    }

    x1 = jax.random.normal(ks[10], (N, c_half, H1, W1), jnp.float32)          # NCHW
    x2 = jax.random.normal(ks[11], (N, c_half, 2 * H1, 2 * W1), jnp.float32)  # NCHW

    fwd = jax.jit(up_forward)
    out = fwd(x1, x2, params)
    jax.block_until_ready(out)

    ref = ref_up_forward(x1, x2, params)
    assert out.shape == (N, out_ch, 2 * H1, 2 * W1), out.shape
    err = float(jnp.max(jnp.abs(out - ref)))
    assert jnp.allclose(out, ref, atol=1e-3, rtol=1e-3), err

    print("KERNEL_OK")
</pallas_src>

<mosaic_0001>
module attributes {stable_mosaic.version = 11 : i64} {
  func.func @kernel(%arg0: i32, %arg1: i32, %arg2: memref<1x8x8x128xf32, #tpu.memory_space<vmem>>, %arg3: memref<128x512xf32, #tpu.memory_space<vmem>>, %arg4: memref<1x512xf32, #tpu.memory_space<vmem>>, %arg5: memref<1x8x2x8x256xf32, #tpu.memory_space<vmem>>) attributes {dimension_semantics = [#tpu.dimension_semantics<parallel>, #tpu.dimension_semantics<parallel>], iteration_bounds = array<i64: 2, 1>, scalar_prefetch = 0 : i64, scratch_operands = 0 : i64, tpu.core_type = #tpu.core_type<tc>, window_params = [{transform_indices = @transform_0, window_bounds = array<i64: 1, 8, 8, 128>}, {pipeline_mode = #tpu.pipeline_mode<synchronous>, transform_indices = @transform_1, window_bounds = array<i64: 128, 512>}, {pipeline_mode = #tpu.pipeline_mode<synchronous>, transform_indices = @transform_2, window_bounds = array<i64: 1, 512>}, {transform_indices = @transform_3, window_bounds = array<i64: 1, 8, 2, 8, 256>}]} {
    %c0 = arith.constant 0 : index
    %c0_0 = arith.constant 0 : index
    %c0_1 = arith.constant 0 : index
    %c0_2 = arith.constant 0 : index
    %0 = vector.load %arg2[%c0, %c0_0, %c0_1, %c0_2] : memref<1x8x8x128xf32, #tpu.memory_space<vmem>>, vector<1x8x8x128xf32>
    %1 = vector.shape_cast %0 : vector<1x8x8x128xf32> to vector<8x8x128xf32>
    %2 = vector.shape_cast %1 : vector<8x8x128xf32> to vector<64x128xf32>
    %c0_3 = arith.constant 0 : index
    %c0_4 = arith.constant 0 : index
    %3 = vector.load %arg3[%c0_3, %c0_4] : memref<128x512xf32, #tpu.memory_space<vmem>>, vector<128x512xf32>
    %cst = arith.constant dense<0.000000e+00> : vector<64x512xf32>
    %4 = tpu.matmul %2, %3, %cst {dimension_numbers = #tpu.dot_dimension_numbers<[1], [0], [0], [1], [0, 0, 1, 1], [], []>} : vector<64x128xf32>, vector<128x512xf32>, vector<64x512xf32> -> vector<64x512xf32>
    %c0_5 = arith.constant 0 : index
    %c0_6 = arith.constant 0 : index
    %5 = vector.load %arg4[%c0_5, %c0_6] : memref<1x512xf32, #tpu.memory_space<vmem>>, vector<1x512xf32>
    %6 = vector.broadcast %5 : vector<1x512xf32> to vector<64x512xf32>
    %7 = arith.addf %4, %6 : vector<64x512xf32>
    %8 = vector.shape_cast %7 : vector<64x512xf32> to vector<8x8x512xf32>
    %9 = vector.extract_strided_slice %8 {offsets = [0, 0, 0], sizes = [8, 8, 256], strides = [1, 1, 1]} : vector<8x8x512xf32> to vector<8x8x256xf32>
    %c0_7 = arith.constant 0 : index
    %c0_8 = arith.constant 0 : index
    %c0_9 = arith.constant 0 : index
    %c0_10 = arith.constant 0 : index
    %c0_11 = arith.constant 0 : index
    %10 = vector.load %arg5[%c0_7, %c0_8, %c0_9, %c0_10, %c0_11] : memref<1x8x2x8x256xf32, #tpu.memory_space<vmem>>, vector<1x8x1x8x256xf32>
    %11 = vector.shape_cast %10 : vector<1x8x1x8x256xf32> to vector<8x8x256xf32>
    %12 = vector.shape_cast %9 : vector<8x8x256xf32> to vector<1x8x1x8x256xf32>
    tpu.vector_store %arg5[%c0_7, %c0_8, %c0_9, %c0_10, %c0_11], %12 {strides = array<i32>} : memref<1x8x2x8x256xf32, #tpu.memory_space<vmem>>, vector<1x8x1x8x256xf32>,
    %13 = vector.extract_strided_slice %8 {offsets = [0, 0, 256], sizes = [8, 8, 256], strides = [1, 1, 1]} : vector<8x8x512xf32> to vector<8x8x256xf32>
    %c0_12 = arith.constant 0 : index
    %c0_13 = arith.constant 0 : index
    %c1 = arith.constant 1 : index
    %c0_14 = arith.constant 0 : index
    %c0_15 = arith.constant 0 : index
    %14 = vector.load %arg5[%c0_12, %c0_13, %c1, %c0_14, %c0_15] : memref<1x8x2x8x256xf32, #tpu.memory_space<vmem>>, vector<1x8x1x8x256xf32>
    %15 = vector.shape_cast %14 : vector<1x8x1x8x256xf32> to vector<8x8x256xf32>
    %16 = vector.shape_cast %13 : vector<8x8x256xf32> to vector<1x8x1x8x256xf32>
    tpu.vector_store %arg5[%c0_12, %c0_13, %c1, %c0_14, %c0_15], %16 {strides = array<i32>} : memref<1x8x2x8x256xf32, #tpu.memory_space<vmem>>, vector<1x8x1x8x256xf32>,
    return
  }
  func.func @transform_0(%arg0: i32, %arg1: i32) -> (i32, i32, i32, i32) {
    %c0_i32 = arith.constant 0 : i32
    %c0_i32_0 = arith.constant 0 : i32
    %c0_i32_1 = arith.constant 0 : i32
    return %arg0, %arg1, %c0_i32, %c0_i32_0 : i32, i32, i32, i32
  }
  func.func @transform_1(%arg0: i32, %arg1: i32) -> (i32, i32) {
    %c0_i32 = arith.constant 0 : i32
    %c0_i32_0 = arith.constant 0 : i32
    %c0_i32_1 = arith.constant 0 : i32
    return %c0_i32, %c0_i32_0 : i32, i32
  }
  func.func @transform_2(%arg0: i32, %arg1: i32) -> (i32, i32) {
    %c0_i32 = arith.constant 0 : i32
    %c0_i32_0 = arith.constant 0 : i32
    %c0_i32_1 = arith.constant 0 : i32
    return %c0_i32, %c0_i32_0 : i32, i32
  }
  func.func @transform_3(%arg0: i32, %arg1: i32) -> (i32, i32, i32, i32, i32) {
    %c0_i32 = arith.constant 0 : i32
    %c0_i32_0 = arith.constant 0 : i32
    %c0_i32_1 = arith.constant 0 : i32
    %c0_i32_2 = arith.constant 0 : i32
    return %arg0, %arg1, %c0_i32, %c0_i32_0, %c0_i32_1 : i32, i32, i32, i32, i32
  }
}

module attributes {stable_mosaic.version = 11 : i64} {
  func.func @kernel(%arg0: i32, %arg1: i32, %arg2: memref<1x16x18x128xf32, #tpu.memory_space<vmem>>, %arg3: memref<1x1x18x128xf32, #tpu.memory_space<vmem>>, %arg4: memref<1x1x18x128xf32, #tpu.memory_space<vmem>>, %arg5: memref<1x16x18x128xf32, #tpu.memory_space<vmem>>, %arg6: memref<1x1x18x128xf32, #tpu.memory_space<vmem>>, %arg7: memref<1x1x18x128xf32, #tpu.memory_space<vmem>>, %arg8: memref<1152x128xf32, #tpu.memory_space<vmem>>, %arg9: memref<1152x128xf32, #tpu.memory_space<vmem>>, %arg10: memref<1x128xf32, #tpu.memory_space<vmem>>, %arg11: memref<1x16x16x128xf32, #tpu.memory_space<vmem>>, %arg12: memref<1x1x2x128xf32, #tpu.memory_space<vmem>>, %arg13: memref<18x18x128xf32, #tpu.memory_space<vmem>>, %arg14: memref<18x18x128xf32, #tpu.memory_space<vmem>>) attributes {dimension_semantics = [#tpu.dimension_semantics<parallel>, #tpu.dimension_semantics<parallel>], iteration_bounds = array<i64: 2, 1>, scalar_prefetch = 0 : i64, scratch_operands = 2 : i64, tpu.core_type = #tpu.core_type<tc>, window_params = [{transform_indices = @transform_0, window_bounds = array<i64: 1, 16, 18, 128>}, {transform_indices = @transform_1, window_bounds = array<i64: 1, 1, 18, 128>}, {transform_indices = @transform_2, window_bounds = array<i64: 1, 1, 18, 128>}, {transform_indices = @transform_3, window_bounds = array<i64: 1, 16, 18, 128>}, {transform_indices = @transform_4, window_bounds = array<i64: 1, 1, 18, 128>}, {transform_indices = @transform_5, window_bounds = array<i64: 1, 1, 18, 128>}, {pipeline_mode = #tpu.pipeline_mode<synchronous>, transform_indices = @transform_6, window_bounds = array<i64: 1152, 128>}, {pipeline_mode = #tpu.pipeline_mode<synchronous>, transform_indices = @transform_7, window_bounds = array<i64: 1152, 128>}, {pipeline_mode = #tpu.pipeline_mode<synchronous>, transform_indices = @transform_8, window_bounds = array<i64: 1, 128>}, {transform_indices = @transform_9, window_bounds = array<i64: 1, 16, 16, 128>}, {transform_indices = @transform_10, window_bounds = array<i64: 1, 1, 2, 128>}]} {
    %c0 = arith.constant 0 : index
    %c0_0 = arith.constant 0 : index
    %c0_1 = arith.constant 0 : index
    %c0_2 = arith.constant 0 : index
    %0 = vector.load %arg2[%c0, %c0_0, %c0_1, %c0_2] : memref<1x16x18x128xf32, #tpu.memory_space<vmem>>, vector<1x16x18x128xf32>
    %1 = vector.shape_cast %0 : vector<1x16x18x128xf32> to vector<16x18x128xf32>
    %c0_3 = arith.constant 0 : index
    %c0_4 = arith.constant 0 : index
    %c0_5 = arith.constant 0 : index
    %c0_6 = arith.constant 0 : index
    %2 = vector.load %arg3[%c0_3, %c0_4, %c0_5, %c0_6] : memref<1x1x18x128xf32, #tpu.memory_space<vmem>>, vector<1x1x18x128xf32>
    %3 = vector.shape_cast %2 : vector<1x1x18x128xf32> to vector<1x18x128xf32>
    %c0_7 = arith.constant 0 : index
    %c0_8 = arith.constant 0 : index
    %c0_9 = arith.constant 0 : index
    %c0_10 = arith.constant 0 : index
    %4 = vector.load %arg4[%c0_7, %c0_8, %c0_9, %c0_10] : memref<1x1x18x128xf32, #tpu.memory_space<vmem>>, vector<1x1x18x128xf32>
    %5 = vector.shape_cast %4 : vector<1x1x18x128xf32> to vector<1x18x128xf32>
    %c0_11 = arith.constant 0 : index
    %c0_12 = arith.constant 0 : index
    %c0_13 = arith.constant 0 : index
    %6 = vector.load %arg13[%c0_11, %c0_12, %c0_13] : memref<18x18x128xf32, #tpu.memory_space<vmem>>, vector<16x18x128xf32>
    tpu.vector_store %arg13[%c0_11, %c0_12, %c0_13], %1 {strides = array<i32>} : memref<18x18x128xf32, #tpu.memory_space<vmem>>, vector<16x18x128xf32>,
    %c16 = arith.constant 16 : index
    %c0_14 = arith.constant 0 : index
    %c0_15 = arith.constant 0 : index
    %7 = vector.load %arg13[%c16, %c0_14, %c0_15] : memref<18x18x128xf32, #tpu.memory_space<vmem>>, vector<1x18x128xf32>
    tpu.vector_store %arg13[%c16, %c0_14, %c0_15], %3 {strides = array<i32>} : memref<18x18x128xf32, #tpu.memory_space<vmem>>, vector<1x18x128xf32>,
    %c17 = arith.constant 17 : index
    %c0_16 = arith.constant 0 : index
    %c0_17 = arith.constant 0 : index
    %8 = vector.load %arg13[%c17, %c0_16, %c0_17] : memref<18x18x128xf32, #tpu.memory_space<vmem>>, vector<1x18x128xf32>
    tpu.vector_store %arg13[%c17, %c0_16, %c0_17], %5 {strides = array<i32>} : memref<18x18x128xf32, #tpu.memory_space<vmem>>, vector<1x18x128xf32>,
    %c0_18 = arith.constant 0 : index
    %c0_19 = arith.constant 0 : index
    %c0_20 = arith.constant 0 : index
    %c0_21 = arith.constant 0 : index
    %9 = vector.load %arg5[%c0_18, %c0_19, %c0_20, %c0_21] : memref<1x16x18x128xf32, #tpu.memory_space<vmem>>, vector<1x16x18x128xf32>
    %10 = vector.shape_cast %9 : vector<1x16x18x128xf32> to vector<16x18x128xf32>
    %c0_22 = arith.constant 0 : index
    %c0_23 = arith.constant 0 : index
    %c0_24 = arith.constant 0 : index
    %c0_25 = arith.constant 0 : index
    %11 = vector.load %arg6[%c0_22, %c0_23, %c0_24, %c0_25] : memref<1x1x18x128xf32, #tpu.memory_space<vmem>>, vector<1x1x18x128xf32>
    %12 = vector.shape_cast %11 : vector<1x1x18x128xf32> to vector<1x18x128xf32>
    %c0_26 = arith.constant 0 : index
    %c0_27 = arith.constant 0 : index
    %c0_28 = arith.constant 0 : index
    %c0_29 = arith.constant 0 : index
    %13 = vector.load %arg7[%c0_26, %c0_27, %c0_28, %c0_29] : memref<1x1x18x128xf32, #tpu.memory_space<vmem>>, vector<1x1x18x128xf32>
    %14 = vector.shape_cast %13 : vector<1x1x18x128xf32> to vector<1x18x128xf32>
    %c0_30 = arith.constant 0 : index
    %c0_31 = arith.constant 0 : index
    %c0_32 = arith.constant 0 : index
    %15 = vector.load %arg14[%c0_30, %c0_31, %c0_32] : memref<18x18x128xf32, #tpu.memory_space<vmem>>, vector<16x18x128xf32>
    tpu.vector_store %arg14[%c0_30, %c0_31, %c0_32], %10 {strides = array<i32>} : memref<18x18x128xf32, #tpu.memory_space<vmem>>, vector<16x18x128xf32>,
    %c16_33 = arith.constant 16 : index
    %c0_34 = arith.constant 0 : index
    %c0_35 = arith.constant 0 : index
    %16 = vector.load %arg14[%c16_33, %c0_34, %c0_35] : memref<18x18x128xf32, #tpu.memory_space<vmem>>, vector<1x18x128xf32>
    tpu.vector_store %arg14[%c16_33, %c0_34, %c0_35], %12 {strides = array<i32>} : memref<18x18x128xf32, #tpu.memory_space<vmem>>, vector<1x18x128xf32>,
    %c17_36 = arith.constant 17 : index
    %c0_37 = arith.constant 0 : index
    %c0_38 = arith.constant 0 : index
    %17 = vector.load %arg14[%c17_36, %c0_37, %c0_38] : memref<18x18x128xf32, #tpu.memory_space<vmem>>, vector<1x18x128xf32>
    tpu.vector_store %arg14[%c17_36, %c0_37, %c0_38], %14 {strides = array<i32>} : memref<18x18x128xf32, #tpu.memory_space<vmem>>, vector<1x18x128xf32>,
    %cst = arith.constant 0.000000e+00 : f32
    %18 = vector.broadcast %cst : f32 to vector<256x128xf32>
    %c0_39 = arith.constant 0 : index
    %c0_40 = arith.constant 0 : index
    %19 = vector.load %arg10[%c0_39, %c0_40] : memref<1x128xf32, #tpu.memory_space<vmem>>, vector<1x128xf32>
    %20 = vector.broadcast %19 : vector<1x128xf32> to vector<256x128xf32>
    %21 = arith.addf %18, %20 : vector<256x128xf32>
    %c0_41 = arith.constant 0 : index
    %c0_42 = arith.constant 0 : index
    %c0_43 = arith.constant 0 : index
    %22 = vector.load %arg13[%c0_41, %c0_42, %c0_43] : memref<18x18x128xf32, #tpu.memory_space<vmem>>, vector<16x16x128xf32>
    %23 = vector.shape_cast %22 : vector<16x16x128xf32> to vector<256x128xf32>
    %c0_44 = arith.constant 0 : index
    %c0_45 = arith.constant 0 : index
    %24 = vector.load %arg8[%c0_44, %c0_45] : memref<1152x128xf32, #tpu.memory_space<vmem>>, vector<128x128xf32>
    %cst_46 = arith.constant dense<0.000000e+00> : vector<256x128xf32>
    %25 = tpu.matmul %23, %24, %cst_46 {dimension_numbers = #tpu.dot_dimension_numbers<[1], [0], [0], [1], [0, 0, 1, 1], [], []>} : vector<256x128xf32>, vector<128x128xf32>, vector<256x128xf32> -> vector<256x128xf32>
    %26 = arith.addf %21, %25 : vector<256x128xf32>
    %c0_47 = arith.constant 0 : index
    %c1 = arith.constant 1 : index
    %c0_48 = arith.constant 0 : index
    %27 = vector.load %arg13[%c0_47, %c1, %c0_48] : memref<18x18x128xf32, #tpu.memory_space<vmem>>, vector<16x16x128xf32>
    %28 = vector.shape_cast %27 : vector<16x16x128xf32> to vector<256x128xf32>
    %c128 = arith.constant 128 : index
    %c0_49 = arith.constant 0 : index
    %29 = vector.load %arg8[%c128, %c0_49] : memref<1152x128xf32, #tpu.memory_space<vmem>>, vector<128x128xf32>
    %cst_50 = arith.constant dense<0.000000e+00> : vector<256x128xf32>
    %30 = tpu.matmul %28, %29, %cst_50 {dimension_numbers = #tpu.dot_dimension_numbers<[1], [0], [0], [1], [0, 0, 1, 1], [], []>} : vector<256x128xf32>, vector<128x128xf32>, vector<256x128xf32> -> vector<256x128xf32>
    %31 = arith.addf %26, %30 : vector<256x128xf32>
    %c0_51 = arith.constant 0 : index
    %c2 = arith.constant 2 : index
    %c0_52 = arith.constant 0 : index
    %32 = vector.load %arg13[%c0_51, %c2, %c0_52] : memref<18x18x128xf32, #tpu.memory_space<vmem>>, vector<16x16x128xf32>
    %33 = vector.shape_cast %32 : vector<16x16x128xf32> to vector<256x128xf32>
    %c256 = arith.constant 256 : index
    %c0_53 = arith.constant 0 : index
    %34 = vector.load %arg8[%c256, %c0_53] : memref<1152x128xf32, #tpu.memory_space<vmem>>, vector<128x128xf32>
    %cst_54 = arith.constant dense<0.000000e+00> : vector<256x128xf32>
    %35 = tpu.matmul %33, %34, %cst_54 {dimension_numbers = #tpu.dot_dimension_numbers<[1], [0], [0], [1], [0, 0, 1, 1], [], []>} : vector<256x128xf32>, vector<128x128xf32>, vector<256x128xf32> -> vector<256x128xf32>
    %36 = arith.addf %31, %35 : vector<256x128xf32>
    %c1_55 = arith.constant 1 : index
    %c0_56 = arith.constant 0 : index
    %c0_57 = arith.constant 0 : index
    %37 = vector.load %arg13[%c1_55, %c0_56, %c0_57] : memref<18x18x128xf32, #tpu.memory_space<vmem>>, vector<16x16x128xf32>
    %38 = vector.shape_cast %37 : vector<16x16x128xf32> to vector<256x128xf32>
    %c384 = arith.constant 384 : index
    %c0_58 = arith.constant 0 : index
    %39 = vector.load %arg8[%c384, %c0_58] : memref<1152x128xf32, #tpu.memory_space<vmem>>, vector<128x128xf32>
    %cst_59 = arith.constant dense<0.000000e+00> : vector<256x128xf32>
    %40 = tpu.matmul %38, %39, %cst_59 {dimension_numbers = #tpu.dot_dimension_numbers<[1], [0], [0], [1], [0, 0, 1, 1], [], []>} : vector<256x128xf32>, vector<128x128xf32>, vector<256x128xf32> -> vector<256x128xf32>
    %41 = arith.addf %36, %40 : vector<256x128xf32>
    %c1_60 = arith.constant 1 : index
    %c1_61 = arith.constant 1 : index
    %c0_62 = arith.constant 0 : index
    %42 = vector.load %arg13[%c1_60, %c1_61, %c0_62] : memref<18x18x128xf32, #tpu.memory_space<vmem>>, vector<16x16x128xf32>
    %43 = vector.shape_cast %42 : vector<16x16x128xf32> to vector<256x128xf32>
    %c512 = arith.constant 512 : index
    %c0_63 = arith.constant 0 : index
    %44 = vector.load %arg8[%c512, %c0_63] : memref<1152x128xf32, #tpu.memory_space<vmem>>, vector<128x128xf32>
    %cst_64 = arith.constant dense<0.000000e+00> : vector<256x128xf32>
    %45 = tpu.matmul %43, %44, %cst_64 {dimension_numbers = #tpu.dot_dimension_numbers<[1], [0], [0], [1], [0, 0, 1, 1], [], []>} : vector<256x128xf32>, vector<128x128xf32>, vector<256x128xf32> -> vector<256x128xf32>
    %46 = arith.addf %41, %45 : vector<256x128xf32>
    %c1_65 = arith.constant 1 : index
    %c2_66 = arith.constant 2 : index
    %c0_67 = arith.constant 0 : index
    %47 = vector.load %arg13[%c1_65, %c2_66, %c0_67] : memref<18x18x128xf32, #tpu.memory_space<vmem>>, vector<16x16x128xf32>
    %48 = vector.shape_cast %47 : vector<16x16x128xf32> to vector<256x128xf32>
    %c640 = arith.constant 640 : index
    %c0_68 = arith.constant 0 : index
    %49 = vector.load %arg8[%c640, %c0_68] : memref<1152x128xf32, #tpu.memory_space<vmem>>, vector<128x128xf32>
    %cst_69 = arith.constant dense<0.000000e+00> : vector<256x128xf32>
    %50 = tpu.matmul %48, %49, %cst_69 {dimension_numbers = #tpu.dot_dimension_numbers<[1], [0], [0], [1], [0, 0, 1, 1], [], []>} : vector<256x128xf32>, vector<128x128xf32>, vector<256x128xf32> -> vector<256x128xf32>
    %51 = arith.addf %46, %50 : vector<256x128xf32>
    %c2_70 = arith.constant 2 : index
    %c0_71 = arith.constant 0 : index
    %c0_72 = arith.constant 0 : index
    %52 = vector.load %arg13[%c2_70, %c0_71, %c0_72] : memref<18x18x128xf32, #tpu.memory_space<vmem>>, vector<16x16x128xf32>
    %53 = vector.shape_cast %52 : vector<16x16x128xf32> to vector<256x128xf32>
    %c768 = arith.constant 768 : index
    %c0_73 = arith.constant 0 : index
    %54 = vector.load %arg8[%c768, %c0_73] : memref<1152x128xf32, #tpu.memory_space<vmem>>, vector<128x128xf32>
    %cst_74 = arith.constant dense<0.000000e+00> : vector<256x128xf32>
    %55 = tpu.matmul %53, %54, %cst_74 {dimension_numbers = #tpu.dot_dimension_numbers<[1], [0], [0], [1], [0, 0, 1, 1], [], []>} : vector<256x128xf32>, vector<128x128xf32>, vector<256x128xf32> -> vector<256x128xf32>
    %56 = arith.addf %51, %55 : vector<256x128xf32>
    %c2_75 = arith.constant 2 : index
    %c1_76 = arith.constant 1 : index
    %c0_77 = arith.constant 0 : index
    %57 = vector.load %arg13[%c2_75, %c1_76, %c0_77] : memref<18x18x128xf32, #tpu.memory_space<vmem>>, vector<16x16x128xf32>
    %58 = vector.shape_cast %57 : vector<16x16x128xf32> to vector<256x128xf32>
    %c896 = arith.constant 896 : index
    %c0_78 = arith.constant 0 : index
    %59 = vector.load %arg8[%c896, %c0_78] : memref<1152x128xf32, #tpu.memory_space<vmem>>, vector<128x128xf32>
    %cst_79 = arith.constant dense<0.000000e+00> : vector<256x128xf32>
    %60 = tpu.matmul %58, %59, %cst_79 {dimension_numbers = #tpu.dot_dimension_numbers<[1], [0], [0], [1], [0, 0, 1, 1], [], []>} : vector<256x128xf32>, vector<128x128xf32>, vector<256x128xf32> -> vector<256x128xf32>
    %61 = arith.addf %56, %60 : vector<256x128xf32>
    %c2_80 = arith.constant 2 : index
    %c2_81 = arith.constant 2 : index
    %c0_82 = arith.constant 0 : index
    %62 = vector.load %arg13[%c2_80, %c2_81, %c0_82] : memref<18x18x128xf32, #tpu.memory_space<vmem>>, vector<16x16x128xf32>
    %63 = vector.shape_cast %62 : vector<16x16x128xf32> to vector<256x128xf32>
    %c1024 = arith.constant 1024 : index
    %c0_83 = arith.constant 0 : index
    %64 = vector.load %arg8[%c1024, %c0_83] : memref<1152x128xf32, #tpu.memory_space<vmem>>, vector<128x128xf32>
    %cst_84 = arith.constant dense<0.000000e+00> : vector<256x128xf32>
    %65 = tpu.matmul %63, %64, %cst_84 {dimension_numbers = #tpu.dot_dimension_numbers<[1], [0], [0], [1], [0, 0, 1, 1], [], []>} : vector<256x128xf32>, vector<128x128xf32>, vector<256x128xf32> -> vector<256x128xf32>
    %66 = arith.addf %61, %65 : vector<256x128xf32>
    %c0_85 = arith.constant 0 : index
    %c0_86 = arith.constant 0 : index
    %c0_87 = arith.constant 0 : index
    %67 = vector.load %arg14[%c0_85, %c0_86, %c0_87] : memref<18x18x128xf32, #tpu.memory_space<vmem>>, vector<16x16x128xf32>
    %68 = vector.shape_cast %67 : vector<16x16x128xf32> to vector<256x128xf32>
    %c0_88 = arith.constant 0 : index
    %c0_89 = arith.constant 0 : index
    %69 = vector.load %arg9[%c0_88, %c0_89] : memref<1152x128xf32, #tpu.memory_space<vmem>>, vector<128x128xf32>
    %cst_90 = arith.constant dense<0.000000e+00> : vector<256x128xf32>
    %70 = tpu.matmul %68, %69, %cst_90 {dimension_numbers = #tpu.dot_dimension_numbers<[1], [0], [0], [1], [0, 0, 1, 1], [], []>} : vector<256x128xf32>, vector<128x128xf32>, vector<256x128xf32> -> vector<256x128xf32>
    %71 = arith.addf %66, %70 : vector<256x128xf32>
    %c0_91 = arith.constant 0 : index
    %c1_92 = arith.constant 1 : index
    %c0_93 = arith.constant 0 : index
    %72 = vector.load %arg14[%c0_91, %c1_92, %c0_93] : memref<18x18x128xf32, #tpu.memory_space<vmem>>, vector<16x16x128xf32>
    %73 = vector.shape_cast %72 : vector<16x16x128xf32> to vector<256x128xf32>
    %c128_94 = arith.constant 128 : index
    %c0_95 = arith.constant 0 : index
    %74 = vector.load %arg9[%c128_94, %c0_95] : memref<1152x128xf32, #tpu.memory_space<vmem>>, vector<128x128xf32>
    %cst_96 = arith.constant dense<0.000000e+00> : vector<256x128xf32>
    %75 = tpu.matmul %73, %74, %cst_96 {dimension_numbers = #tpu.dot_dimension_numbers<[1], [0], [0], [1], [0, 0, 1, 1], [], []>} : vector<256x128xf32>, vector<128x128xf32>, vector<256x128xf32> -> vector<256x128xf32>
    %76 = arith.addf %71, %75 : vector<256x128xf32>
    %c0_97 = arith.constant 0 : index
    %c2_98 = arith.constant 2 : index
    %c0_99 = arith.constant 0 : index
    %77 = vector.load %arg14[%c0_97, %c2_98, %c0_99] : memref<18x18x128xf32, #tpu.memory_space<vmem>>, vector<16x16x128xf32>
    %78 = vector.shape_cast %77 : vector<16x16x128xf32> to vector<256x128xf32>
    %c256_100 = arith.constant 256 : index
    %c0_101 = arith.constant 0 : index
    %79 = vector.load %arg9[%c256_100, %c0_101] : memref<1152x128xf32, #tpu.memory_space<vmem>>, vector<128x128xf32>
    %cst_102 = arith.constant dense<0.000000e+00> : vector<256x128xf32>
    %80 = tpu.matmul %78, %79, %cst_102 {dimension_numbers = #tpu.dot_dimension_numbers<[1], [0], [0], [1], [0, 0, 1, 1], [], []>} : vector<256x128xf32>, vector<128x128xf32>, vector<256x128xf32> -> vector<256x128xf32>
    %81 = arith.addf %76, %80 : vector<256x128xf32>
    %c1_103 = arith.constant 1 : index
    %c0_104 = arith.constant 0 : index
    %c0_105 = arith.constant 0 : index
    %82 = vector.load %arg14[%c1_103, %c0_104, %c0_105] : memref<18x18x128xf32, #tpu.memory_space<vmem>>, vector<16x16x128xf32>
    %83 = vector.shape_cast %82 : vector<16x16x128xf32> to vector<256x128xf32>
    %c384_106 = arith.constant 384 : index
    %c0_107 = arith.constant 0 : index
    %84 = vector.load %arg9[%c384_106, %c0_107] : memref<1152x128xf32, #tpu.memory_space<vmem>>, vector<128x128xf32>
    %cst_108 = arith.constant dense<0.000000e+00> : vector<256x128xf32>
    %85 = tpu.matmul %83, %84, %cst_108 {dimension_numbers = #tpu.dot_dimension_numbers<[1], [0], [0], [1], [0, 0, 1, 1], [], []>} : vector<256x128xf32>, vector<128x128xf32>, vector<256x128xf32> -> vector<256x128xf32>
    %86 = arith.addf %81, %85 : vector<256x128xf32>
    %c1_109 = arith.constant 1 : index
    %c1_110 = arith.constant 1 : index
    %c0_111 = arith.constant 0 : index
    %87 = vector.load %arg14[%c1_109, %c1_110, %c0_111] : memref<18x18x128xf32, #tpu.memory_space<vmem>>, vector<16x16x128xf32>
    %88 = vector.shape_cast %87 : vector<16x16x128xf32> to vector<256x128xf32>
    %c512_112 = arith.constant 512 : index
    %c0_113 = arith.constant 0 : index
    %89 = vector.load %arg9[%c512_112, %c0_113] : memref<1152x128xf32, #tpu.memory_space<vmem>>, vector<128x128xf32>
    %cst_114 = arith.constant dense<0.000000e+00> : vector<256x128xf32>
    %90 = tpu.matmul %88, %89, %cst_114 {dimension_numbers = #tpu.dot_dimension_numbers<[1], [0], [0], [1], [0, 0, 1, 1], [], []>} : vector<256x128xf32>, vector<128x128xf32>, vector<256x128xf32> -> vector<256x128xf32>
    %91 = arith.addf %86, %90 : vector<256x128xf32>
    %c1_115 = arith.constant 1 : index
    %c2_116 = arith.constant 2 : index
    %c0_117 = arith.constant 0 : index
    %92 = vector.load %arg14[%c1_115, %c2_116, %c0_117] : memref<18x18x128xf32, #tpu.memory_space<vmem>>, vector<16x16x128xf32>
    %93 = vector.shape_cast %92 : vector<16x16x128xf32> to vector<256x128xf32>
    %c640_118 = arith.constant 640 : index
    %c0_119 = arith.constant 0 : index
    %94 = vector.load %arg9[%c640_118, %c0_119] : memref<1152x128xf32, #tpu.memory_space<vmem>>, vector<128x128xf32>
    %cst_120 = arith.constant dense<0.000000e+00> : vector<256x128xf32>
    %95 = tpu.matmul %93, %94, %cst_120 {dimension_numbers = #tpu.dot_dimension_numbers<[1], [0], [0], [1], [0, 0, 1, 1], [], []>} : vector<256x128xf32>, vector<128x128xf32>, vector<256x128xf32> -> vector<256x128xf32>
    %96 = arith.addf %91, %95 : vector<256x128xf32>
    %c2_121 = arith.constant 2 : index
    %c0_122 = arith.constant 0 : index
    %c0_123 = arith.constant 0 : index
    %97 = vector.load %arg14[%c2_121, %c0_122, %c0_123] : memref<18x18x128xf32, #tpu.memory_space<vmem>>, vector<16x16x128xf32>
    %98 = vector.shape_cast %97 : vector<16x16x128xf32> to vector<256x128xf32>
    %c768_124 = arith.constant 768 : index
    %c0_125 = arith.constant 0 : index
    %99 = vector.load %arg9[%c768_124, %c0_125] : memref<1152x128xf32, #tpu.memory_space<vmem>>, vector<128x128xf32>
    %cst_126 = arith.constant dense<0.000000e+00> : vector<256x128xf32>
    %100 = tpu.matmul %98, %99, %cst_126 {dimension_numbers = #tpu.dot_dimension_numbers<[1], [0], [0], [1], [0, 0, 1, 1], [], []>} : vector<256x128xf32>, vector<128x128xf32>, vector<256x128xf32> -> vector<256x128xf32>
    %101 = arith.addf %96, %100 : vector<256x128xf32>
    %c2_127 = arith.constant 2 : index
    %c1_128 = arith.constant 1 : index
    %c0_129 = arith.constant 0 : index
    %102 = vector.load %arg14[%c2_127, %c1_128, %c0_129] : memref<18x18x128xf32, #tpu.memory_space<vmem>>, vector<16x16x128xf32>
    %103 = vector.shape_cast %102 : vector<16x16x128xf32> to vector<256x128xf32>
    %c896_130 = arith.constant 896 : index
    %c0_131 = arith.constant 0 : index
    %104 = vector.load %arg9[%c896_130, %c0_131] : memref<1152x128xf32, #tpu.memory_space<vmem>>, vector<128x128xf32>
    %cst_132 = arith.constant dense<0.000000e+00> : vector<256x128xf32>
    %105 = tpu.matmul %103, %104, %cst_132 {dimension_numbers = #tpu.dot_dimension_numbers<[1], [0], [0], [1], [0, 0, 1, 1], [], []>} : vector<256x128xf32>, vector<128x128xf32>, vector<256x128xf32> -> vector<256x128xf32>
    %106 = arith.addf %101, %105 : vector<256x128xf32>
    %c2_133 = arith.constant 2 : index
    %c2_134 = arith.constant 2 : index
    %c0_135 = arith.constant 0 : index
    %107 = vector.load %arg14[%c2_133, %c2_134, %c0_135] : memref<18x18x128xf32, #tpu.memory_space<vmem>>, vector<16x16x128xf32>
    %108 = vector.shape_cast %107 : vector<16x16x128xf32> to vector<256x128xf32>
    %c1024_136 = arith.constant 1024 : index
    %c0_137 = arith.constant 0 : index
    %109 = vector.load %arg9[%c1024_136, %c0_137] : memref<1152x128xf32, #tpu.memory_space<vmem>>, vector<128x128xf32>
    %cst_138 = arith.constant dense<0.000000e+00> : vector<256x128xf32>
    %110 = tpu.matmul %108, %109, %cst_138 {dimension_numbers = #tpu.dot_dimension_numbers<[1], [0], [0], [1], [0, 0, 1, 1], [], []>} : vector<256x128xf32>, vector<128x128xf32>, vector<256x128xf32> -> vector<256x128xf32>
    %111 = arith.addf %106, %110 : vector<256x128xf32>
    %112 = vector.shape_cast %111 : vector<256x128xf32> to vector<1x16x16x128xf32>
    %c0_139 = arith.constant 0 : index
    %c0_140 = arith.constant 0 : index
    %c0_141 = arith.constant 0 : index
    %c0_142 = arith.constant 0 : index
    %113 = vector.load %arg11[%c0_139, %c0_140, %c0_141, %c0_142] : memref<1x16x16x128xf32, #tpu.memory_space<vmem>>, vector<1x16x16x128xf32>
    tpu.vector_store %arg11[%c0_139, %c0_140, %c0_141, %c0_142], %112 {strides = array<i32>} : memref<1x16x16x128xf32, #tpu.memory_space<vmem>>, vector<1x16x16x128xf32>,
    %cst_143 = arith.constant dense<0.000000e+00> : vector<128xf32>
    %114 = vector.multi_reduction <add>, %111, %cst_143 [0] : vector<256x128xf32> to vector<128xf32>
    %115 = vector.shape_cast %114 : vector<128xf32> to vector<1x128xf32>
    %c0_144 = arith.constant 0 : index
    %c0_145 = arith.constant 0 : index
    %c0_146 = arith.constant 0 : index
    %c0_147 = arith.constant 0 : index
    %116 = vector.load %arg12[%c0_144, %c0_145, %c0_146, %c0_147] : memref<1x1x2x128xf32, #tpu.memory_space<vmem>>, vector<1x1x1x128xf32>
    %117 = vector.shape_cast %116 : vector<1x1x1x128xf32> to vector<1x128xf32>
    %118 = vector.shape_cast %115 : vector<1x128xf32> to vector<1x1x1x128xf32>
    tpu.vector_store %arg12[%c0_144, %c0_145, %c0_146, %c0_147], %118 {strides = array<i32>} : memref<1x1x2x128xf32, #tpu.memory_space<vmem>>, vector<1x1x1x128xf32>,
    %119 = arith.mulf %111, %111 : vector<256x128xf32>
    %cst_148 = arith.constant dense<0.000000e+00> : vector<128xf32>
    %120 = vector.multi_reduction <add>, %119, %cst_148 [0] : vector<256x128xf32> to vector<128xf32>
    %121 = vector.shape_cast %120 : vector<128xf32> to vector<1x128xf32>
    %c0_149 = arith.constant 0 : index
    %c0_150 = arith.constant 0 : index
    %c1_151 = arith.constant 1 : index
    %c0_152 = arith.constant 0 : index
    %122 = vector.load %arg12[%c0_149, %c0_150, %c1_151, %c0_152] : memref<1x1x2x128xf32, #tpu.memory_space<vmem>>, vector<1x1x1x128xf32>
    %123 = vector.shape_cast %122 : vector<1x1x1x128xf32> to vector<1x128xf32>
    %124 = vector.shape_cast %121 : vector<1x128xf32> to vector<1x1x1x128xf32>
    tpu.vector_store %arg12[%c0_149, %c0_150, %c1_151, %c0_152], %124 {strides = array<i32>} : memref<1x1x2x128xf32, #tpu.memory_space<vmem>>, vector<1x1x1x128xf32>,
    return
  }
  func.func @transform_0(%arg0: i32, %arg1: i32) -> (i32, i32, i32, i32) {
    %c0_i32 = arith.constant 0 : i32
    %c0_i32_0 = arith.constant 0 : i32
    %c0_i32_1 = arith.constant 0 : i32
    return %arg0, %arg1, %c0_i32, %c0_i32_0 : i32, i32, i32, i32
  }
  func.func @transform_1(%arg0: i32, %arg1: i32) -> (i32, i32, i32, i32) {
    %c1_i32 = arith.constant 1 : i32
    %0 = arith.addi %arg1, %c1_i32 : i32
    %c16_i32 = arith.constant 16 : i32
    %1 = arith.muli %0, %c16_i32 : i32
    %c0_i32 = arith.constant 0 : i32
    %c0_i32_0 = arith.constant 0 : i32
    %c0_i32_1 = arith.constant 0 : i32
    return %arg0, %1, %c0_i32, %c0_i32_0 : i32, i32, i32, i32
  }
  func.func @transform_2(%arg0: i32, %arg1: i32) -> (i32, i32, i32, i32) {
    %c1_i32 = arith.constant 1 : i32
    %0 = arith.addi %arg1, %c1_i32 : i32
    %c16_i32 = arith.constant 16 : i32
    %1 = arith.muli %0, %c16_i32 : i32
    %c1_i32_0 = arith.constant 1 : i32
    %2 = arith.addi %1, %c1_i32_0 : i32
    %c0_i32 = arith.constant 0 : i32
    %c0_i32_1 = arith.constant 0 : i32
    %c0_i32_2 = arith.constant 0 : i32
    return %arg0, %2, %c0_i32, %c0_i32_1 : i32, i32, i32, i32
  }
  func.func @transform_3(%arg0: i32, %arg1: i32) -> (i32, i32, i32, i32) {
    %c0_i32 = arith.constant 0 : i32
    %c0_i32_0 = arith.constant 0 : i32
    %c0_i32_1 = arith.constant 0 : i32
    return %arg0, %arg1, %c0_i32, %c0_i32_0 : i32, i32, i32, i32
  }
  func.func @transform_4(%arg0: i32, %arg1: i32) -> (i32, i32, i32, i32) {
    %c1_i32 = arith.constant 1 : i32
    %0 = arith.addi %arg1, %c1_i32 : i32
    %c16_i32 = arith.constant 16 : i32
    %1 = arith.muli %0, %c16_i32 : i32
    %c0_i32 = arith.constant 0 : i32
    %c0_i32_0 = arith.constant 0 : i32
    %c0_i32_1 = arith.constant 0 : i32
    return %arg0, %1, %c0_i32, %c0_i32_0 : i32, i32, i32, i32
  }
  func.func @transform_5(%arg0: i32, %arg1: i32) -> (i32, i32, i32, i32) {
    %c1_i32 = arith.constant 1 : i32
    %0 = arith.addi %arg1, %c1_i32 : i32
    %c16_i32 = arith.constant 16 : i32
    %1 = arith.muli %0, %c16_i32 : i32
    %c1_i32_0 = arith.constant 1 : i32
    %2 = arith.addi %1, %c1_i32_0 : i32
    %c0_i32 = arith.constant 0 : i32
    %c0_i32_1 = arith.constant 0 : i32
    %c0_i32_2 = arith.constant 0 : i32
    return %arg0, %2, %c0_i32, %c0_i32_1 : i32, i32, i32, i32
  }
  func.func @transform_6(%arg0: i32, %arg1: i32) -> (i32, i32) {
    %c0_i32 = arith.constant 0 : i32
    %c0_i32_0 = arith.constant 0 : i32
    %c0_i32_1 = arith.constant 0 : i32
    return %c0_i32, %c0_i32_0 : i32, i32
  }
  func.func @transform_7(%arg0: i32, %arg1: i32) -> (i32, i32) {
    %c0_i32 = arith.constant 0 : i32
    %c0_i32_0 = arith.constant 0 : i32
    %c0_i32_1 = arith.constant 0 : i32
    return %c0_i32, %c0_i32_0 : i32, i32
  }
  func.func @transform_8(%arg0: i32, %arg1: i32) -> (i32, i32) {
    %c0_i32 = arith.constant 0 : i32
    %c0_i32_0 = arith.constant 0 : i32
    %c0_i32_1 = arith.constant 0 : i32
    return %c0_i32, %c0_i32_0 : i32, i32
  }
  func.func @transform_9(%arg0: i32, %arg1: i32) -> (i32, i32, i32, i32) {
    %c0_i32 = arith.constant 0 : i32
    %c0_i32_0 = arith.constant 0 : i32
    %c0_i32_1 = arith.constant 0 : i32
    return %arg0, %arg1, %c0_i32, %c0_i32_0 : i32, i32, i32, i32
  }
  func.func @transform_10(%arg0: i32, %arg1: i32) -> (i32, i32, i32, i32) {
    %c0_i32 = arith.constant 0 : i32
    %c0_i32_0 = arith.constant 0 : i32
    %c0_i32_1 = arith.constant 0 : i32
    return %arg0, %arg1, %c0_i32, %c0_i32_0 : i32, i32, i32, i32
  }
}

module attributes {stable_mosaic.version = 11 : i64} {
  func.func @kernel(%arg0: i32, %arg1: i32, %arg2: memref<1x16x18x128xf32, #tpu.memory_space<vmem>>, %arg3: memref<1x1x18x128xf32, #tpu.memory_space<vmem>>, %arg4: memref<1x1x18x128xf32, #tpu.memory_space<vmem>>, %arg5: memref<1x128xf32, #tpu.memory_space<vmem>>, %arg6: memref<1x128xf32, #tpu.memory_space<vmem>>, %arg7: memref<1152x128xf32, #tpu.memory_space<vmem>>, %arg8: memref<1x128xf32, #tpu.memory_space<vmem>>, %arg9: memref<1x16x16x128xf32, #tpu.memory_space<vmem>>, %arg10: memref<1x1x2x128xf32, #tpu.memory_space<vmem>>, %arg11: memref<18x18x128xf32, #tpu.memory_space<vmem>>) attributes {dimension_semantics = [#tpu.dimension_semantics<parallel>, #tpu.dimension_semantics<parallel>], iteration_bounds = array<i64: 2, 1>, scalar_prefetch = 0 : i64, scratch_operands = 1 : i64, tpu.core_type = #tpu.core_type<tc>, window_params = [{transform_indices = @transform_0, window_bounds = array<i64: 1, 16, 18, 128>}, {transform_indices = @transform_1, window_bounds = array<i64: 1, 1, 18, 128>}, {transform_indices = @transform_2, window_bounds = array<i64: 1, 1, 18, 128>}, {pipeline_mode = #tpu.pipeline_mode<synchronous>, transform_indices = @transform_3, window_bounds = array<i64: 1, 128>}, {pipeline_mode = #tpu.pipeline_mode<synchronous>, transform_indices = @transform_4, window_bounds = array<i64: 1, 128>}, {pipeline_mode = #tpu.pipeline_mode<synchronous>, transform_indices = @transform_5, window_bounds = array<i64: 1152, 128>}, {pipeline_mode = #tpu.pipeline_mode<synchronous>, transform_indices = @transform_6, window_bounds = array<i64: 1, 128>}, {transform_indices = @transform_7, window_bounds = array<i64: 1, 16, 16, 128>}, {transform_indices = @transform_8, window_bounds = array<i64: 1, 1, 2, 128>}]} {
    %0 = tpu.iota {dimensions = array<i32: 1>} : vector<1x18x1xi32>
    %c1_i32 = arith.constant 1 : i32
    %1 = vector.broadcast %c1_i32 : i32 to vector<1x18x1xi32>
    %2 = arith.cmpi sge, %0, %1 : vector<1x18x1xi32>
    %c16_i32 = arith.constant 16 : i32
    %3 = vector.broadcast %c16_i32 : i32 to vector<1x18x1xi32>
    %4 = arith.cmpi sle, %0, %3 : vector<1x18x1xi32>
    %5 = arith.andi %2, %4 : vector<1x18x1xi1>
    %c0 = arith.constant 0 : index
    %c0_0 = arith.constant 0 : index
    %c0_1 = arith.constant 0 : index
    %c0_2 = arith.constant 0 : index
    %6 = vector.load %arg2[%c0, %c0_0, %c0_1, %c0_2] : memref<1x16x18x128xf32, #tpu.memory_space<vmem>>, vector<1x16x18x128xf32>
    %7 = vector.shape_cast %6 : vector<1x16x18x128xf32> to vector<16x18x128xf32>
    %c0_3 = arith.constant 0 : index
    %c0_4 = arith.constant 0 : index
    %c0_5 = arith.constant 0 : index
    %c0_6 = arith.constant 0 : index
    %8 = vector.load %arg3[%c0_3, %c0_4, %c0_5, %c0_6] : memref<1x1x18x128xf32, #tpu.memory_space<vmem>>, vector<1x1x18x128xf32>
    %9 = vector.shape_cast %8 : vector<1x1x18x128xf32> to vector<1x18x128xf32>
    %c0_7 = arith.constant 0 : index
    %c0_8 = arith.constant 0 : index
    %c0_9 = arith.constant 0 : index
    %c0_10 = arith.constant 0 : index
    %10 = vector.load %arg4[%c0_7, %c0_8, %c0_9, %c0_10] : memref<1x1x18x128xf32, #tpu.memory_space<vmem>>, vector<1x1x18x128xf32>
    %11 = vector.shape_cast %10 : vector<1x1x18x128xf32> to vector<1x18x128xf32>
    %c0_11 = arith.constant 0 : index
    %c0_12 = arith.constant 0 : index
    %12 = vector.load %arg5[%c0_11, %c0_12] : memref<1x128xf32, #tpu.memory_space<vmem>>, vector<1x128xf32>
    %13 = vector.shape_cast %12 : vector<1x128xf32> to vector<1x1x128xf32>
    %c0_13 = arith.constant 0 : index
    %c0_14 = arith.constant 0 : index
    %14 = vector.load %arg6[%c0_13, %c0_14] : memref<1x128xf32, #tpu.memory_space<vmem>>, vector<1x128xf32>
    %15 = vector.shape_cast %14 : vector<1x128xf32> to vector<1x1x128xf32>
    %16 = tpu.iota {dimensions = array<i32: 0>} : vector<16x1x1xi32>
    %c16_i32_15 = arith.constant 16 : i32
    %17 = arith.muli %arg1, %c16_i32_15 : i32
    %18 = vector.broadcast %17 : i32 to vector<16x1x1xi32>
    %19 = arith.addi %16, %18 : vector<16x1x1xi32>
    %c1_i32_16 = arith.constant 1 : i32
    %20 = vector.broadcast %c1_i32_16 : i32 to vector<16x1x1xi32>
    %21 = arith.cmpi sge, %19, %20 : vector<16x1x1xi32>
    %c16_i32_17 = arith.constant 16 : i32
    %22 = vector.broadcast %c16_i32_17 : i32 to vector<16x1x1xi32>
    %23 = arith.cmpi sle, %19, %22 : vector<16x1x1xi32>
    %24 = arith.andi %21, %23 : vector<16x1x1xi1>
    %25 = vector.broadcast %24 : vector<16x1x1xi1> to vector<16x18x1xi1>
    %26 = vector.broadcast %5 : vector<1x18x1xi1> to vector<16x18x1xi1>
    %27 = arith.andi %25, %26 : vector<16x18x1xi1>
    %c1_i32_18 = arith.constant 1 : i32
    %28 = arith.addi %arg1, %c1_i32_18 : i32
    %c16_i32_19 = arith.constant 16 : i32
    %29 = arith.muli %28, %c16_i32_19 : i32
    %c1_i32_20 = arith.constant 1 : i32
    %30 = arith.addi %29, %c1_i32_20 : i32
    %c1_i32_21 = arith.constant 1 : i32
    %31 = arith.cmpi sge, %29, %c1_i32_21 : i32
    %c16_i32_22 = arith.constant 16 : i32
    %32 = arith.cmpi sle, %29, %c16_i32_22 : i32
    %33 = arith.andi %31, %32 : i1
    %34 = vector.broadcast %33 : i1 to vector<1x18x1xi1>
    %35 = arith.andi %34, %5 : vector<1x18x1xi1>
    %c1_i32_23 = arith.constant 1 : i32
    %36 = arith.cmpi sge, %30, %c1_i32_23 : i32
    %c16_i32_24 = arith.constant 16 : i32
    %37 = arith.cmpi sle, %30, %c16_i32_24 : i32
    %38 = arith.andi %36, %37 : i1
    %39 = vector.broadcast %38 : i1 to vector<1x18x1xi1>
    %40 = arith.andi %39, %5 : vector<1x18x1xi1>
    %41 = vector.broadcast %13 : vector<1x1x128xf32> to vector<16x18x128xf32>
    %42 = arith.mulf %7, %41 : vector<16x18x128xf32>
    %43 = vector.broadcast %15 : vector<1x1x128xf32> to vector<16x18x128xf32>
    %44 = arith.addf %42, %43 : vector<16x18x128xf32>
    %cst = arith.constant 0.000000e+00 : f32
    %45 = vector.broadcast %cst : f32 to vector<16x18x128xf32>
    %46 = arith.maximumf %44, %45 : vector<16x18x128xf32>
    %cst_25 = arith.constant 0.000000e+00 : f32
    %47 = vector.shape_cast %27 : vector<16x18x1xi1> to vector<16x18x1xi1>
    %48 = vector.broadcast %47 : vector<16x18x1xi1> to vector<16x18x128xi1>
    %49 = vector.broadcast %cst_25 : f32 to vector<16x18x128xf32>
    %50 = arith.select %48, %46, %49 : vector<16x18x128xi1>, vector<16x18x128xf32>
    %51 = vector.broadcast %13 : vector<1x1x128xf32> to vector<1x18x128xf32>
    %52 = arith.mulf %9, %51 : vector<1x18x128xf32>
    %53 = vector.broadcast %15 : vector<1x1x128xf32> to vector<1x18x128xf32>
    %54 = arith.addf %52, %53 : vector<1x18x128xf32>
    %cst_26 = arith.constant 0.000000e+00 : f32
    %55 = vector.broadcast %cst_26 : f32 to vector<1x18x128xf32>
    %56 = arith.maximumf %54, %55 : vector<1x18x128xf32>
    %cst_27 = arith.constant 0.000000e+00 : f32
    %57 = vector.shape_cast %35 : vector<1x18x1xi1> to vector<1x18x1xi1>
    %58 = vector.broadcast %57 : vector<1x18x1xi1> to vector<1x18x128xi1>
    %59 = vector.broadcast %cst_27 : f32 to vector<1x18x128xf32>
    %60 = arith.select %58, %56, %59 : vector<1x18x128xi1>, vector<1x18x128xf32>
    %61 = vector.broadcast %13 : vector<1x1x128xf32> to vector<1x18x128xf32>
    %62 = arith.mulf %11, %61 : vector<1x18x128xf32>
    %63 = vector.broadcast %15 : vector<1x1x128xf32> to vector<1x18x128xf32>
    %64 = arith.addf %62, %63 : vector<1x18x128xf32>
    %cst_28 = arith.constant 0.000000e+00 : f32
    %65 = vector.broadcast %cst_28 : f32 to vector<1x18x128xf32>
    %66 = arith.maximumf %64, %65 : vector<1x18x128xf32>
    %cst_29 = arith.constant 0.000000e+00 : f32
    %67 = vector.shape_cast %40 : vector<1x18x1xi1> to vector<1x18x1xi1>
    %68 = vector.broadcast %67 : vector<1x18x1xi1> to vector<1x18x128xi1>
    %69 = vector.broadcast %cst_29 : f32 to vector<1x18x128xf32>
    %70 = arith.select %68, %66, %69 : vector<1x18x128xi1>, vector<1x18x128xf32>
    %c0_30 = arith.constant 0 : index
    %c0_31 = arith.constant 0 : index
    %c0_32 = arith.constant 0 : index
    %71 = vector.load %arg11[%c0_30, %c0_31, %c0_32] : memref<18x18x128xf32, #tpu.memory_space<vmem>>, vector<16x18x128xf32>
    tpu.vector_store %arg11[%c0_30, %c0_31, %c0_32], %50 {strides = array<i32>} : memref<18x18x128xf32, #tpu.memory_space<vmem>>, vector<16x18x128xf32>,
    %c16 = arith.constant 16 : index
    %c0_33 = arith.constant 0 : index
    %c0_34 = arith.constant 0 : index
    %72 = vector.load %arg11[%c16, %c0_33, %c0_34] : memref<18x18x128xf32, #tpu.memory_space<vmem>>, vector<1x18x128xf32>
    tpu.vector_store %arg11[%c16, %c0_33, %c0_34], %60 {strides = array<i32>} : memref<18x18x128xf32, #tpu.memory_space<vmem>>, vector<1x18x128xf32>,
    %c17 = arith.constant 17 : index
    %c0_35 = arith.constant 0 : index
    %c0_36 = arith.constant 0 : index
    %73 = vector.load %arg11[%c17, %c0_35, %c0_36] : memref<18x18x128xf32, #tpu.memory_space<vmem>>, vector<1x18x128xf32>
    tpu.vector_store %arg11[%c17, %c0_35, %c0_36], %70 {strides = array<i32>} : memref<18x18x128xf32, #tpu.memory_space<vmem>>, vector<1x18x128xf32>,
    %cst_37 = arith.constant 0.000000e+00 : f32
    %74 = vector.broadcast %cst_37 : f32 to vector<256x128xf32>
    %c0_38 = arith.constant 0 : index
    %c0_39 = arith.constant 0 : index
    %75 = vector.load %arg8[%c0_38, %c0_39] : memref<1x128xf32, #tpu.memory_space<vmem>>, vector<1x128xf32>
    %76 = vector.broadcast %75 : vector<1x128xf32> to vector<256x128xf32>
    %77 = arith.addf %74, %76 : vector<256x128xf32>
    %c0_40 = arith.constant 0 : index
    %c0_41 = arith.constant 0 : index
    %c0_42 = arith.constant 0 : index
    %78 = vector.load %arg11[%c0_40, %c0_41, %c0_42] : memref<18x18x128xf32, #tpu.memory_space<vmem>>, vector<16x16x128xf32>
    %79 = vector.shape_cast %78 : vector<16x16x128xf32> to vector<256x128xf32>
    %c0_43 = arith.constant 0 : index
    %c0_44 = arith.constant 0 : index
    %80 = vector.load %arg7[%c0_43, %c0_44] : memref<1152x128xf32, #tpu.memory_space<vmem>>, vector<128x128xf32>
    %cst_45 = arith.constant dense<0.000000e+00> : vector<256x128xf32>
    %81 = tpu.matmul %79, %80, %cst_45 {dimension_numbers = #tpu.dot_dimension_numbers<[1], [0], [0], [1], [0, 0, 1, 1], [], []>} : vector<256x128xf32>, vector<128x128xf32>, vector<256x128xf32> -> vector<256x128xf32>
    %82 = arith.addf %77, %81 : vector<256x128xf32>
    %c0_46 = arith.constant 0 : index
    %c1 = arith.constant 1 : index
    %c0_47 = arith.constant 0 : index
    %83 = vector.load %arg11[%c0_46, %c1, %c0_47] : memref<18x18x128xf32, #tpu.memory_space<vmem>>, vector<16x16x128xf32>
    %84 = vector.shape_cast %83 : vector<16x16x128xf32> to vector<256x128xf32>
    %c128 = arith.constant 128 : index
    %c0_48 = arith.constant 0 : index
    %85 = vector.load %arg7[%c128, %c0_48] : memref<1152x128xf32, #tpu.memory_space<vmem>>, vector<128x128xf32>
    %cst_49 = arith.constant dense<0.000000e+00> : vector<256x128xf32>
    %86 = tpu.matmul %84, %85, %cst_49 {dimension_numbers = #tpu.dot_dimension_numbers<[1], [0], [0], [1], [0, 0, 1, 1], [], []>} : vector<256x128xf32>, vector<128x128xf32>, vector<256x128xf32> -> vector<256x128xf32>
    %87 = arith.addf %82, %86 : vector<256x128xf32>
    %c0_50 = arith.constant 0 : index
    %c2 = arith.constant 2 : index
    %c0_51 = arith.constant 0 : index
    %88 = vector.load %arg11[%c0_50, %c2, %c0_51] : memref<18x18x128xf32, #tpu.memory_space<vmem>>, vector<16x16x128xf32>
    %89 = vector.shape_cast %88 : vector<16x16x128xf32> to vector<256x128xf32>
    %c256 = arith.constant 256 : index
    %c0_52 = arith.constant 0 : index
    %90 = vector.load %arg7[%c256, %c0_52] : memref<1152x128xf32, #tpu.memory_space<vmem>>, vector<128x128xf32>
    %cst_53 = arith.constant dense<0.000000e+00> : vector<256x128xf32>
    %91 = tpu.matmul %89, %90, %cst_53 {dimension_numbers = #tpu.dot_dimension_numbers<[1], [0], [0], [1], [0, 0, 1, 1], [], []>} : vector<256x128xf32>, vector<128x128xf32>, vector<256x128xf32> -> vector<256x128xf32>
    %92 = arith.addf %87, %91 : vector<256x128xf32>
    %c1_54 = arith.constant 1 : index
    %c0_55 = arith.constant 0 : index
    %c0_56 = arith.constant 0 : index
    %93 = vector.load %arg11[%c1_54, %c0_55, %c0_56] : memref<18x18x128xf32, #tpu.memory_space<vmem>>, vector<16x16x128xf32>
    %94 = vector.shape_cast %93 : vector<16x16x128xf32> to vector<256x128xf32>
    %c384 = arith.constant 384 : index
    %c0_57 = arith.constant 0 : index
    %95 = vector.load %arg7[%c384, %c0_57] : memref<1152x128xf32, #tpu.memory_space<vmem>>, vector<128x128xf32>
    %cst_58 = arith.constant dense<0.000000e+00> : vector<256x128xf32>
    %96 = tpu.matmul %94, %95, %cst_58 {dimension_numbers = #tpu.dot_dimension_numbers<[1], [0], [0], [1], [0, 0, 1, 1], [], []>} : vector<256x128xf32>, vector<128x128xf32>, vector<256x128xf32> -> vector<256x128xf32>
    %97 = arith.addf %92, %96 : vector<256x128xf32>
    %c1_59 = arith.constant 1 : index
    %c1_60 = arith.constant 1 : index
    %c0_61 = arith.constant 0 : index
    %98 = vector.load %arg11[%c1_59, %c1_60, %c0_61] : memref<18x18x128xf32, #tpu.memory_space<vmem>>, vector<16x16x128xf32>
    %99 = vector.shape_cast %98 : vector<16x16x128xf32> to vector<256x128xf32>
    %c512 = arith.constant 512 : index
    %c0_62 = arith.constant 0 : index
    %100 = vector.load %arg7[%c512, %c0_62] : memref<1152x128xf32, #tpu.memory_space<vmem>>, vector<128x128xf32>
    %cst_63 = arith.constant dense<0.000000e+00> : vector<256x128xf32>
    %101 = tpu.matmul %99, %100, %cst_63 {dimension_numbers = #tpu.dot_dimension_numbers<[1], [0], [0], [1], [0, 0, 1, 1], [], []>} : vector<256x128xf32>, vector<128x128xf32>, vector<256x128xf32> -> vector<256x128xf32>
    %102 = arith.addf %97, %101 : vector<256x128xf32>
    %c1_64 = arith.constant 1 : index
    %c2_65 = arith.constant 2 : index
    %c0_66 = arith.constant 0 : index
    %103 = vector.load %arg11[%c1_64, %c2_65, %c0_66] : memref<18x18x128xf32, #tpu.memory_space<vmem>>, vector<16x16x128xf32>
    %104 = vector.shape_cast %103 : vector<16x16x128xf32> to vector<256x128xf32>
    %c640 = arith.constant 640 : index
    %c0_67 = arith.constant 0 : index
    %105 = vector.load %arg7[%c640, %c0_67] : memref<1152x128xf32, #tpu.memory_space<vmem>>, vector<128x128xf32>
    %cst_68 = arith.constant dense<0.000000e+00> : vector<256x128xf32>
    %106 = tpu.matmul %104, %105, %cst_68 {dimension_numbers = #tpu.dot_dimension_numbers<[1], [0], [0], [1], [0, 0, 1, 1], [], []>} : vector<256x128xf32>, vector<128x128xf32>, vector<256x128xf32> -> vector<256x128xf32>
    %107 = arith.addf %102, %106 : vector<256x128xf32>
    %c2_69 = arith.constant 2 : index
    %c0_70 = arith.constant 0 : index
    %c0_71 = arith.constant 0 : index
    %108 = vector.load %arg11[%c2_69, %c0_70, %c0_71] : memref<18x18x128xf32, #tpu.memory_space<vmem>>, vector<16x16x128xf32>
    %109 = vector.shape_cast %108 : vector<16x16x128xf32> to vector<256x128xf32>
    %c768 = arith.constant 768 : index
    %c0_72 = arith.constant 0 : index
    %110 = vector.load %arg7[%c768, %c0_72] : memref<1152x128xf32, #tpu.memory_space<vmem>>, vector<128x128xf32>
    %cst_73 = arith.constant dense<0.000000e+00> : vector<256x128xf32>
    %111 = tpu.matmul %109, %110, %cst_73 {dimension_numbers = #tpu.dot_dimension_numbers<[1], [0], [0], [1], [0, 0, 1, 1], [], []>} : vector<256x128xf32>, vector<128x128xf32>, vector<256x128xf32> -> vector<256x128xf32>
    %112 = arith.addf %107, %111 : vector<256x128xf32>
    %c2_74 = arith.constant 2 : index
    %c1_75 = arith.constant 1 : index
    %c0_76 = arith.constant 0 : index
    %113 = vector.load %arg11[%c2_74, %c1_75, %c0_76] : memref<18x18x128xf32, #tpu.memory_space<vmem>>, vector<16x16x128xf32>
    %114 = vector.shape_cast %113 : vector<16x16x128xf32> to vector<256x128xf32>
    %c896 = arith.constant 896 : index
    %c0_77 = arith.constant 0 : index
    %115 = vector.load %arg7[%c896, %c0_77] : memref<1152x128xf32, #tpu.memory_space<vmem>>, vector<128x128xf32>
    %cst_78 = arith.constant dense<0.000000e+00> : vector<256x128xf32>
    %116 = tpu.matmul %114, %115, %cst_78 {dimension_numbers = #tpu.dot_dimension_numbers<[1], [0], [0], [1], [0, 0, 1, 1], [], []>} : vector<256x128xf32>, vector<128x128xf32>, vector<256x128xf32> -> vector<256x128xf32>
    %117 = arith.addf %112, %116 : vector<256x128xf32>
    %c2_79 = arith.constant 2 : index
    %c2_80 = arith.constant 2 : index
    %c0_81 = arith.constant 0 : index
    %118 = vector.load %arg11[%c2_79, %c2_80, %c0_81] : memref<18x18x128xf32, #tpu.memory_space<vmem>>, vector<16x16x128xf32>
    %119 = vector.shape_cast %118 : vector<16x16x128xf32> to vector<256x128xf32>
    %c1024 = arith.constant 1024 : index
    %c0_82 = arith.constant 0 : index
    %120 = vector.load %arg7[%c1024, %c0_82] : memref<1152x128xf32, #tpu.memory_space<vmem>>, vector<128x128xf32>
    %cst_83 = arith.constant dense<0.000000e+00> : vector<256x128xf32>
    %121 = tpu.matmul %119, %120, %cst_83 {dimension_numbers = #tpu.dot_dimension_numbers<[1], [0], [0], [1], [0, 0, 1, 1], [], []>} : vector<256x128xf32>, vector<128x128xf32>, vector<256x128xf32> -> vector<256x128xf32>
    %122 = arith.addf %117, %121 : vector<256x128xf32>
    %123 = vector.shape_cast %122 : vector<256x128xf32> to vector<1x16x16x128xf32>
    %c0_84 = arith.constant 0 : index
    %c0_85 = arith.constant 0 : index
    %c0_86 = arith.constant 0 : index
    %c0_87 = arith.constant 0 : index
    %124 = vector.load %arg9[%c0_84, %c0_85, %c0_86, %c0_87] : memref<1x16x16x128xf32, #tpu.memory_space<vmem>>, vector<1x16x16x128xf32>
    tpu.vector_store %arg9[%c0_84, %c0_85, %c0_86, %c0_87], %123 {strides = array<i32>} : memref<1x16x16x128xf32, #tpu.memory_space<vmem>>, vector<1x16x16x128xf32>,
    %cst_88 = arith.constant dense<0.000000e+00> : vector<128xf32>
    %125 = vector.multi_reduction <add>, %122, %cst_88 [0] : vector<256x128xf32> to vector<128xf32>
    %126 = vector.shape_cast %125 : vector<128xf32> to vector<1x128xf32>
    %c0_89 = arith.constant 0 : index
    %c0_90 = arith.constant 0 : index
    %c0_91 = arith.constant 0 : index
    %c0_92 = arith.constant 0 : index
    %127 = vector.load %arg10[%c0_89, %c0_90, %c0_91, %c0_92] : memref<1x1x2x128xf32, #tpu.memory_space<vmem>>, vector<1x1x1x128xf32>
    %128 = vector.shape_cast %127 : vector<1x1x1x128xf32> to vector<1x128xf32>
    %129 = vector.shape_cast %126 : vector<1x128xf32> to vector<1x1x1x128xf32>
    tpu.vector_store %arg10[%c0_89, %c0_90, %c0_91, %c0_92], %129 {strides = array<i32>} : memref<1x1x2x128xf32, #tpu.memory_space<vmem>>, vector<1x1x1x128xf32>,
    %130 = arith.mulf %122, %122 : vector<256x128xf32>
    %cst_93 = arith.constant dense<0.000000e+00> : vector<128xf32>
    %131 = vector.multi_reduction <add>, %130, %cst_93 [0] : vector<256x128xf32> to vector<128xf32>
    %132 = vector.shape_cast %131 : vector<128xf32> to vector<1x128xf32>
    %c0_94 = arith.constant 0 : index
    %c0_95 = arith.constant 0 : index
    %c1_96 = arith.constant 1 : index
    %c0_97 = arith.constant 0 : index
    %133 = vector.load %arg10[%c0_94, %c0_95, %c1_96, %c0_97] : memref<1x1x2x128xf32, #tpu.memory_space<vmem>>, vector<1x1x1x128xf32>
    %134 = vector.shape_cast %133 : vector<1x1x1x128xf32> to vector<1x128xf32>
    %135 = vector.shape_cast %132 : vector<1x128xf32> to vector<1x1x1x128xf32>
    tpu.vector_store %arg10[%c0_94, %c0_95, %c1_96, %c0_97], %135 {strides = array<i32>} : memref<1x1x2x128xf32, #tpu.memory_space<vmem>>, vector<1x1x1x128xf32>,
    return
  }
  func.func @transform_0(%arg0: i32, %arg1: i32) -> (i32, i32, i32, i32) {
    %c0_i32 = arith.constant 0 : i32
    %c0_i32_0 = arith.constant 0 : i32
    %c0_i32_1 = arith.constant 0 : i32
    return %arg0, %arg1, %c0_i32, %c0_i32_0 : i32, i32, i32, i32
  }
  func.func @transform_1(%arg0: i32, %arg1: i32) -> (i32, i32, i32, i32) {
    %c1_i32 = arith.constant 1 : i32
    %0 = arith.addi %arg1, %c1_i32 : i32
    %c16_i32 = arith.constant 16 : i32
    %1 = arith.muli %0, %c16_i32 : i32
    %c0_i32 = arith.constant 0 : i32
    %c0_i32_0 = arith.constant 0 : i32
    %c0_i32_1 = arith.constant 0 : i32
    return %arg0, %1, %c0_i32, %c0_i32_0 : i32, i32, i32, i32
  }
  func.func @transform_2(%arg0: i32, %arg1: i32) -> (i32, i32, i32, i32) {
    %c1_i32 = arith.constant 1 : i32
    %0 = arith.addi %arg1, %c1_i32 : i32
    %c16_i32 = arith.constant 16 : i32
    %1 = arith.muli %0, %c16_i32 : i32
    %c1_i32_0 = arith.constant 1 : i32
    %2 = arith.addi %1, %c1_i32_0 : i32
    %c0_i32 = arith.constant 0 : i32
    %c0_i32_1 = arith.constant 0 : i32
    %c0_i32_2 = arith.constant 0 : i32
    return %arg0, %2, %c0_i32, %c0_i32_1 : i32, i32, i32, i32
  }
  func.func @transform_3(%arg0: i32, %arg1: i32) -> (i32, i32) {
    %c0_i32 = arith.constant 0 : i32
    %c0_i32_0 = arith.constant 0 : i32
    %c0_i32_1 = arith.constant 0 : i32
    return %c0_i32, %c0_i32_0 : i32, i32
  }
  func.func @transform_4(%arg0: i32, %arg1: i32) -> (i32, i32) {
    %c0_i32 = arith.constant 0 : i32
    %c0_i32_0 = arith.constant 0 : i32
    %c0_i32_1 = arith.constant 0 : i32
    return %c0_i32, %c0_i32_0 : i32, i32
  }
  func.func @transform_5(%arg0: i32, %arg1: i32) -> (i32, i32) {
    %c0_i32 = arith.constant 0 : i32
    %c0_i32_0 = arith.constant 0 : i32
    %c0_i32_1 = arith.constant 0 : i32
    return %c0_i32, %c0_i32_0 : i32, i32
  }
  func.func @transform_6(%arg0: i32, %arg1: i32) -> (i32, i32) {
    %c0_i32 = arith.constant 0 : i32
    %c0_i32_0 = arith.constant 0 : i32
    %c0_i32_1 = arith.constant 0 : i32
    return %c0_i32, %c0_i32_0 : i32, i32
  }
  func.func @transform_7(%arg0: i32, %arg1: i32) -> (i32, i32, i32, i32) {
    %c0_i32 = arith.constant 0 : i32
    %c0_i32_0 = arith.constant 0 : i32
    %c0_i32_1 = arith.constant 0 : i32
    return %arg0, %arg1, %c0_i32, %c0_i32_0 : i32, i32, i32, i32
  }
  func.func @transform_8(%arg0: i32, %arg1: i32) -> (i32, i32, i32, i32) {
    %c0_i32 = arith.constant 0 : i32
    %c0_i32_0 = arith.constant 0 : i32
    %c0_i32_1 = arith.constant 0 : i32
    return %arg0, %arg1, %c0_i32, %c0_i32_0 : i32, i32, i32, i32
  }
}

module attributes {stable_mosaic.version = 11 : i64} {
  func.func @_bn_relu_kernel(%arg0: i32, %arg1: memref<512x128xf32, #tpu.memory_space<vmem>>, %arg2: memref<1x128xf32, #tpu.memory_space<vmem>>, %arg3: memref<1x128xf32, #tpu.memory_space<vmem>>, %arg4: memref<512x128xf32, #tpu.memory_space<vmem>>) attributes {dimension_semantics = [#tpu.dimension_semantics<parallel>], iteration_bounds = array<i64: 1>, scalar_prefetch = 0 : i64, scratch_operands = 0 : i64, tpu.core_type = #tpu.core_type<tc>, window_params = [{transform_indices = @transform_0, window_bounds = array<i64: 512, 128>}, {pipeline_mode = #tpu.pipeline_mode<synchronous>, transform_indices = @transform_1, window_bounds = array<i64: 1, 128>}, {pipeline_mode = #tpu.pipeline_mode<synchronous>, transform_indices = @transform_2, window_bounds = array<i64: 1, 128>}, {transform_indices = @transform_3, window_bounds = array<i64: 512, 128>}]} {
    %c0 = arith.constant 0 : index
    %c0_0 = arith.constant 0 : index
    %0 = vector.load %arg1[%c0, %c0_0] : memref<512x128xf32, #tpu.memory_space<vmem>>, vector<512x128xf32>
    %c0_1 = arith.constant 0 : index
    %c0_2 = arith.constant 0 : index
    %1 = vector.load %arg2[%c0_1, %c0_2] : memref<1x128xf32, #tpu.memory_space<vmem>>, vector<1x128xf32>
    %2 = vector.broadcast %1 : vector<1x128xf32> to vector<512x128xf32>
    %3 = arith.mulf %0, %2 : vector<512x128xf32>
    %c0_3 = arith.constant 0 : index
    %c0_4 = arith.constant 0 : index
    %4 = vector.load %arg3[%c0_3, %c0_4] : memref<1x128xf32, #tpu.memory_space<vmem>>, vector<1x128xf32>
    %5 = vector.broadcast %4 : vector<1x128xf32> to vector<512x128xf32>
    %6 = arith.addf %3, %5 : vector<512x128xf32>
    %cst = arith.constant 0.000000e+00 : f32
    %7 = vector.broadcast %cst : f32 to vector<512x128xf32>
    %8 = arith.maximumf %6, %7 : vector<512x128xf32>
    %c0_5 = arith.constant 0 : index
    %c0_6 = arith.constant 0 : index
    %9 = vector.load %arg4[%c0_5, %c0_6] : memref<512x128xf32, #tpu.memory_space<vmem>>, vector<512x128xf32>
    tpu.vector_store %arg4[%c0_5, %c0_6], %8 {strides = array<i32>} : memref<512x128xf32, #tpu.memory_space<vmem>>, vector<512x128xf32>,
    return
  }
  func.func @transform_0(%arg0: i32) -> (i32, i32) {
    %c0_i32 = arith.constant 0 : i32
    %c0_i32_0 = arith.constant 0 : i32
    return %arg0, %c0_i32 : i32, i32
  }
  func.func @transform_1(%arg0: i32) -> (i32, i32) {
    %c0_i32 = arith.constant 0 : i32
    %c0_i32_0 = arith.constant 0 : i32
    %c0_i32_1 = arith.constant 0 : i32
    return %c0_i32, %c0_i32_0 : i32, i32
  }
  func.func @transform_2(%arg0: i32) -> (i32, i32) {
    %c0_i32 = arith.constant 0 : i32
    %c0_i32_0 = arith.constant 0 : i32
    %c0_i32_1 = arith.constant 0 : i32
    return %c0_i32, %c0_i32_0 : i32, i32
  }
  func.func @transform_3(%arg0: i32) -> (i32, i32) {
    %c0_i32 = arith.constant 0 : i32
    %c0_i32_0 = arith.constant 0 : i32
    return %arg0, %c0_i32 : i32, i32
  }
}

</mosaic_0001>

<bundles_post_ra>
// kernel: tile.8
= control target key start
LH: loop header
LB: loop body
LE: loop exit
PB: predicated region body
PF: predicated region fallthrough
CT: control target
= control target key end

     0   :  { %2 = vsyncpa [#allocation1], 0  ;;  %s68_s0 = inlined_call_operand.vmem [shape: f32[128], index: 0, kind: input, shape index: {}]   ;;  %s69_s1 = inlined_call_operand.hbm [shape: f32[4,128], index: 1, kind: output, shape index: {}]  }
   0x1   :  { %v5_v0 = vld [vmem:[%s68_s0] ss:$0 sm:$0xff]  ;;  %s42_s0 = smov [#allocation0]  }
   0x2   :  { %6 = vst [vmem:[#allocation0] sm:$0xf] %v5_v0  ;;  %s11_s8 = sshll.u32 %s42_s0, 4  ;;  %s12_s8 = int_to_ptr.vmem [resolvable:$true] %s11_s8 }
   0x3   :  { %s18_s9 = scalar_lea.vmem %s12_s8, 64  ;;  %p23_p1 = scmp.lt.s32.totalorder %s12_s8, %s12_s8 }
   0x4   :  { %p19_p0 = scmp.ne.s32.totalorder %s12_s8, %s18_s9  ;;  %p24_p2 = scmp.lt.s32.totalorder %s18_s9, %s18_s9 }
   0x6   :  { %p25_p3 = por %p24_p2, %p23_p1 }
   0x8   :  { %p26_p4 = pnand %p25_p3, %p19_p0 }
   0xa   :  { %29 = shalt.err (!%p26_p4)
}
   0xb   :  { %s30_s12 = scalar_lea.hbm %s69_s1, 64 }
   0xc   :  { %p31_p5 = scmp.ne.s32.totalorder %s69_s1, %s30_s12  ;;  %p34_p6 = scmp.lt.u32.totalorder %s30_s12, %s69_s1 }
   0xe   :  { %p36_p7 = pnand %p34_p6, %p31_p5 }
  0x10   :  { %39 = shalt.err (!%p36_p7)
}
  0x11   :  { %14 = dma.vmem_to_hbm [thread:$0]  %s12_s8, 64, %s69_s1, [#allocation1]  }
  0x12   :  { %40 = dma.done.wait [#allocation1], 64  }
  0x13   :  { %41 = vsyncadd [#allocation1], 4294967232 }
  0x14   :  { %16 = vsyncpa [#allocation1], 1 }

// kernel: up_forward.4
= control target key start
LH: loop header
LB: loop body
LE: loop exit
PB: predicated region body
PF: predicated region fallthrough
CT: control target
= control target key end

     0   :  { %8 = vsyncpa [#allocation3], 0  ;;  %s1465_s0 = inlined_call_operand.hbm [shape: f32[2,8,8,128], index: 0, kind: input, shape index: {}]   ;;  %s1466_s1 = inlined_call_operand.hbm [shape: f32[128,512], index: 1, kind: input, shape index: {}]   ;;  %s1467_s2 = inlined_call_operand.hbm [shape: f32[1,512], index: 2, kind: input, shape index: {}]   ;;  %s1468_s3 = inlined_call_operand.hbm [shape: f32[2,8,2,8,256], index: 3, kind: output, shape index: {}]  }
   0x1   :  { %10 = vsyncpa [#allocation3 + $0x1], 0 }
   0x2   :  { %11 = vsyncpa [#allocation6], 0 }
   0x3   :  { %12 = vsyncpa [#allocation4], 0 }
   0x4   :  { %14 = vsyncpa [#allocation4 + $0x1], 0  ;;  %s1108_s12 = smov 0   ;;  %s1110_s13 = smov 0  }
   0x5   :  { %s1112_s14 = smov 0   ;;  %s1114_s15 = smov 0  }
   0x6   :  { %s1116_s16 = smov 0   ;;  %s1118_s17 = smov 0  }
   0x7 LB: > { %s712_s18 = sadd.s32 4294967295, %s1075_s17   ;;  %s713_s19 = sadd.s32 4294967294, %s1075_s17   ;;  %s1075_s17 = sphi %s1118_s17, %s20_s17   ;;  %s1071_s16 = sphi %s1116_s16, %s1490_s16   ;;  %s1067_s15 = sphi %s1114_s15, %s1489_s15   ;;  %s1063_s14 = sphi %s1112_s14, %s1488_s14   ;;  %s1059_s13 = sphi %s1110_s13, %s1487_s13   ;;  %s1055_s12 = sphi %s1108_s12, %s1486_s12  }
   0x8   : > { %p54_p0 = scmp.ne.s32.totalorder %s1059_s13, %s1055_s12  ;;  %p1142_p1 = scmp.eq.s32.totalorder %s712_s18, 0 }
   0x9   : > { %p1146_p2 = scmp.eq.s32.totalorder %s712_s18, 1  ;;  %p128_p3 = scmp.eq.s32.totalorder %s713_s19, 1 }
   0xa   : > { %s1473_s20 = scalar_select %p1142_p1, 1, 0 }
   0xb   : > { %p1152_p4 = por %p1142_p1, %p54_p0  ;;  %p714_p5 = scmp.ge.s32.totalorder %s1075_s17, 1 }
   0xc   : > { %p1157_p6 = por %p128_p3, %p54_p0  ;;  %p135_p7 = scmp.lt.s32.totalorder %s1075_s17, 3 }
   0xd   : > { %s1475_s22 = scalar_select %p1152_p4, 1, 0 }
   0xe   : > { %s1476_s23 = scalar_select %p1157_p6, 1, 0 }
   0xf   : > { %p1162_p8 = pnand %p714_p5, %p135_p7  ;;  %s1077_s25 = smov [#allocation5]  }
  0x10   : > { %s147_s26 = sshll.u32 %s1077_s25, 4  ;;  %s1078_s28 = smov [#allocation7]   ;;  %s1166_s26 = int_to_ptr.vmem [resolvable:$true] %s147_s26 }
  0x11   : > { %p825_p9 = pneg %p1162_p8  ;;  %s161_s29 = sshll.u32 %s1078_s28, 4  ;;  %s1177_s29 = int_to_ptr.vmem [resolvable:$true] %s161_s29 }
  0x12   : > { %s903_s5 = scalar_lea.hbm %s1466_s1, 8192 }
  0x13   : > { %p1173_p11 = pnand %p825_p9, %p1142_p1  ;;  %p904_p12 = scmp.ne.s32.totalorder %s1466_s1, %s903_s5 }
  0x14   : > { %p910_p5 = scmp.lt.u32.totalorder %s903_s5, %s1466_s1 }
  0x15   : > { %p905_p13 = pneg %p1173_p11 }
  0x17   : > { %p906_p0 = pnand %p905_p13, %p904_p12 }
  0x19   : > { %p907_p3 = pneg %p906_p0 }
  0x1b   : > { %p912_p7 = pnand %p910_p5, %p907_p3 }
  0x1d   : > { %915 = shalt.err (!%p912_p7)
}
  0x1e   : > { %s916_s10 = scalar_lea.vmem %s1166_s26, 8192  ;;  %p924_p1 = scmp.lt.s32.totalorder %s1166_s26, %s1166_s26 }
  0x1f   : > { %p917_p9 = scmp.ne.s32.totalorder %s1166_s26, %s916_s10  ;;  %p925_p12 = scmp.lt.s32.totalorder %s916_s10, %s916_s10 }
  0x21   : > { %p919_p10 = pnand %p917_p9, %p905_p13  ;;  %p926_p0 = por %p925_p12, %p924_p1 }
  0x23   : > { %p920_p6 = pneg %p919_p10 }
  0x25   : > { %p927_p4 = pnand %p926_p0, %p920_p6 }
  0x27   : > { %930 = shalt.err (!%p927_p4)
}
  0x28   : > { %s1079_s11 = smov 512   ;;  %s1080_s18 = smov 32  }
  0x29   : > { %828 = dma.hbm_to_vmem [thread:$0]  (!%p1173_p11), %s1466_s1, 8192, %s1166_s26, [#allocation6], %s1079_s11, %s1079_s11, %s1080_s18  }
  0x2a   : > { %s931_s4 = scalar_lea.hbm %s1467_s2, 64 }
  0x2b   : > { %p932_p1 = scmp.ne.s32.totalorder %s1467_s2, %s931_s4  ;;  %p938_p10 = scmp.lt.u32.totalorder %s931_s4, %s1467_s2 }
  0x2d   : > { %p934_p4 = pnand %p932_p1, %p905_p13 }
  0x2f   : > { %p935_p6 = pneg %p934_p4 }
  0x31   : > { %p940_p3 = pnand %p938_p10, %p935_p6 }
  0x33   : > { %943 = shalt.err (!%p940_p3)
}
  0x34   : > { %s944_s26 = scalar_lea.vmem %s1177_s29, 64  ;;  %p952_p12 = scmp.lt.s32.totalorder %s1177_s29, %s1177_s29 }
  0x35   : > { %p945_p5 = scmp.ne.s32.totalorder %s1177_s29, %s944_s26  ;;  %p953_p0 = scmp.lt.s32.totalorder %s944_s26, %s944_s26 }
  0x37   : > { %p947_p7 = pnand %p945_p5, %p905_p13  ;;  %p954_p1 = por %p953_p0, %p952_p12 }
  0x39   : > { %p948_p9 = pneg %p947_p7 }
  0x3b   : > { %p955_p4 = pnand %p954_p1, %p948_p9 }
  0x3d   : > { %958 = shalt.err (!%p955_p4)
}
  0x3e   : > { %831 = dma.hbm_to_vmem [thread:$0]  (!%p1173_p11), %s1467_s2, 64, %s1177_s29, [#allocation6]  }
  0x3f   : > { %s32_s11 = sadd.s32 1, %s1071_s16  ;;  %s41_s18 = sadd.s32 1, %s1063_s14 }
  0x40   : > { %p34_p13 = scmp.ge.s32.totalorder %s32_s11, 2  ;;  %p48_p6 = scmp.ne.s32.totalorder %s1063_s14, %s1059_s13 }
  0x41   : > { %p49_p10 = scmp.eq.s32.totalorder %s1075_s17, 0  ;;  %p842_p3 = scmp.lt.s32.totalorder %s1075_s17, 2 }
  0x42   : > { %s1492_s11 = smov (%p34_p13, %s32_s11), 0  ;;  %p1241_p7 = por %p1146_p2, %p48_p6 }
  0x43   : > { %p50_p5 = por %p49_p10, %p48_p6  ;;  %s36_s19 = ssub.s32 %s1071_s16, %s1492_s11 }
  0x44   : > { %s1479_s27 = scalar_select %p1241_p7, 1, 0 }
  0x45   : > { %s172_s25 = sand.u32 1, %s1063_s14   ;;  %p39_p9 = scmp.eq.s32.totalorder %s36_s19, 0 }
  0x46   : > { %s718_s29 = sshll.u32 %s172_s25, 6  ;;  %s747_s28 = sshll.u32 %s1071_s16, 10 }
  0x47   : > { %s1250_s30 = scalar_select %p39_p9, %s1063_s14, %s41_s18  }
  0x48   : > { %s1255_s6 = scalar_lea.hbm %s1465_s0, %s747_s28  ;;  %s176_s21 = scalar_lea.vmem [#allocation2], %s718_s29 }
  0x49   : > { %s185_s7 = sshll.u32 %s176_s21, 4  ;;  %p1259_p2 = pnand %p842_p3, %p50_p5  ;;  %s1263_s7 = int_to_ptr.vmem [resolvable:$true] %s185_s7 }
  0x4a   : > { %s1265_s26 = scalar_lea.sflag [#allocation3], %s172_s25  ;;  %s959_s9 = scalar_lea.hbm %s1255_s6, 1024 }
  0x4b   : > { %p960_p11 = scmp.ne.s32.totalorder %s1255_s6, %s959_s9  ;;  %p961_p12 = pneg %p1259_p2 }
  0x4c   : > { %s964_s19 = scalar_lea.hbm %s1465_s0, 2048  ;;  %p965_p4 = scmp.lt.u32.totalorder %s1255_s6, %s1465_s0 }
  0x4d   : > { %p962_p0 = pnand %p961_p12, %p960_p11  ;;  %p966_p13 = scmp.lt.u32.totalorder %s964_s19, %s959_s9 }
  0x4e   : > { %p968_p10 = scmp.lt.u32.totalorder %s959_s9, %s1255_s6 }
  0x4f   : > { %p963_p1 = pneg %p962_p0  ;;  %p967_p6 = por %p966_p13, %p965_p4 }
  0x51   : > { %p969_p3 = por %p968_p10, %p967_p6 }
  0x53   : > { %p970_p5 = pnand %p969_p3, %p963_p1 }
  0x55   : > { %973 = shalt.err (!%p970_p5)
}
  0x56   : > { %s974_s25 = scalar_lea.vmem %s1263_s7, 1024  ;;  %s1081_s4 = smov [#allocation2]  }
  0x57   : > { %p975_p9 = scmp.ne.s32.totalorder %s1263_s7, %s974_s25  ;;  %s979_s5 = sshll.u32 %s1081_s4, 4  ;;  %s980_s5 = int_to_ptr.vmem [resolvable:$false] %s979_s5 }
  0x58   : > { %s981_s21 = scalar_lea.vmem %s980_s5, 2048  ;;  %p982_p7 = scmp.lt.s32.totalorder %s1263_s7, %s980_s5 }
  0x59   : > { %p977_p11 = pnand %p975_p9, %p961_p12  ;;  %p983_p4 = scmp.lt.s32.totalorder %s981_s21, %s974_s25 }
  0x5b   : > { %p978_p0 = pneg %p977_p11  ;;  %p984_p13 = por %p983_p4, %p982_p7 }
  0x5d   : > { %p985_p6 = pnand %p984_p13, %p978_p0 }
  0x5f   : > { %988 = shalt.err (!%p985_p6)
}
  0x60   : > { %s1082_s9 = smov 128   ;;  %s1083_s10 = smov 8  }
  0x61   : > { %835 = dma.hbm_to_vmem [thread:$0]  (!%p1259_p2), %s1255_s6, 1024, %s1263_s7, %s1265_s26, %s1082_s9, %s1082_s9, %s1083_s10  }
  0x62   : > { %197 = sbr.rel (%p1162_p8) target bundleno = 404 (0x194), region = 32  ;;  %s1296_s18 = sand.u32 (!%p1162_p8), 1, %s1059_s13  }
  0x63   : > { %s722_s19 = sshll.u32 (!%p1162_p8), %s1296_s18, 6  ;;  %s200_s29 = scalar_lea.sflag (!%p1162_p8), [#allocation3], %s1296_s18 }
  0x64   : > { %s1300_s28 = scalar_lea.vmem (!%p1162_p8), [#allocation2], %s722_s19  ;;  %p1481_p7 = scmp.ne.s32.totalorder (!%p1162_p8), %s1475_s22, 0 }
  0x69   : > { %1042 = dma.done.wait (%p1481_p7), %s200_s29, 1024  }
  0x6a   : > { %1044 = vsyncadd (%p1481_p7), %s200_s29, 4294966272  ;;  %p1482_p2 = scmp.ne.s32.totalorder %s1473_s20, 0 }
  0x6c   : > { %1046 = dma.done.wait (%p1482_p2), [#allocation6], 8256  }
  0x6d   : > { %1048 = vsyncadd (%p1482_p2), [#allocation6], 4294959040  ;;  %v1084_v0 = vmov 0.0   ;;  %v245_v1 = vld [vmem:[#allocation5 + $0x8] sm:$0xff]  ;;  %v247_v3 = vld [vmem:[#allocation5 + $0x18] sm:$0xff]  ;;  %s725_s20 = sshll.u32 %s1296_s18, 8 }
  0x6e   : > { %394 = vmatprep.mubr.f32.mxu0 %v1084_v0  ;;  %507 = vmatprep.mubr.f32.mxu1 %v1084_v0  ;;  %v249_v2 = vld [vmem:[#allocation5 + $0x28] sm:$0xff]  ;;  %v251_v5 = vld [vmem:[#allocation5 + $0x38] sm:$0xff]  ;;  %v244_v6 = vld [vmem:[#allocation5] sm:$0xff]  ;;  %s1346_s22 = scalar_lea.vmem [#allocation8], %s725_s20  ;;  %s748_s24 = sshll.u32 %s1067_s15, 12 }
  0x6f   : > { %v749_v4 = vpack.c.bf16 %v249_v2, %v245_v1  ;;  %v248_v7 = vld [vmem:[#allocation5 + $0x20] sm:$0xff]  ;;  %v781_v8 = vpack.c.bf16 %v251_v5, %v247_v3  ;;  %v246_v10 = vld [vmem:[#allocation5 + $0x10] sm:$0xff]  ;;  %v253_v12 = vld [vmem:[#allocation5 + $0x48] sm:$0xff]  ;;  %s606_s6 = sshll.u32 %s1346_s22, 4  ;;  %s1409_s8 = scalar_lea.hbm %s1468_s3, %s748_s24  ;;  %s1411_s6 = int_to_ptr.vmem [resolvable:$true] %s606_s6 }
  0x70   : > { %v751_v9 = vpack.c.bf16 %v248_v7, %v244_v6  ;;  %v250_v11 = vld [vmem:[#allocation5 + $0x30] sm:$0xff]  ;;  %v257_v14 = vld [vmem:[#allocation5 + $0x68] sm:$0xff]  ;;  %v255_v15 = vld [vmem:[#allocation5 + $0x58] sm:$0xff]  ;;  %s590_s26 = scalar_lea.sflag [#allocation4], %s1296_s18  ;;  %s989_s25 = scalar_lea.vmem %s1411_s6, 4096 }
  0x71   : > { %750 = vmatprep.subr.bf16.mxu0 %v749_v4  ;;  %v783_v13 = vpack.c.bf16 %v250_v11, %v246_v10  ;;  %v259_v16 = vld [vmem:[#allocation5 + $0x78] sm:$0xff]  ;;  %782 = vmatprep.subr.bf16.mxu1 %v781_v8  ;;  %v753_v17 = vpack.c.bf16 %v257_v14, %v253_v12  ;;  %v252_v19 = vld [vmem:[#allocation5 + $0x40] sm:$0xff]  ;;  %v254_v21 = vld [vmem:[#allocation5 + $0x50] sm:$0xff]  ;;  %p990_p8 = scmp.ne.s32.totalorder %s1411_s6, %s989_s25  ;;  %p1483_p12 = scmp.ne.s32.totalorder %s1479_s27, 0 }
  0x72   : > { %752 = vmatpush1.bf16.msra.mxu0 %v751_v9  ;;  %v785_v18 = vpack.c.bf16 %v259_v16, %v255_v15  ;;  %v256_v20 = vld [vmem:[#allocation5 + $0x60] sm:$0xff]  ;;  %v258_v23 = vld [vmem:[#allocation5 + $0x70] sm:$0xff]  ;;  %v261_v24 = vld [vmem:[#allocation5 + $0x88] sm:$0xff]  ;;  %s1085_s4 = smov [#allocation8]  }
  0x73   : > { %784 = vmatpush1.bf16.msra.mxu1 %v783_v13  ;;  %v755_v22 = vpack.c.bf16 %v256_v20, %v252_v19  ;;  %v265_v25 = vld [vmem:[#allocation5 + $0xa8] sm:$0xff]  ;;  %754 = vmatprep.subr.bf16.mxu0 %v753_v17  ;;  %v787_v26 = vpack.c.bf16 %v258_v23, %v254_v21  ;;  %v263_v28 = vld [vmem:[#allocation5 + $0x98] sm:$0xff]  ;;  %v260_v30 = vld [vmem:[#allocation5 + $0x80] sm:$0xff]  ;;  %p991_p1 = pnand %p990_p8, %p1483_p12  ;;  %s993_s5 = sshll.u32 %s1085_s4, 4  ;;  %s994_s5 = int_to_ptr.vmem [resolvable:$false] %s993_s5 }
  0x74   : > { %786 = vmatprep.subr.bf16.mxu1 %v785_v18  ;;  %v757_v27 = vpack.c.bf16 %v265_v25, %v261_v24  ;;  %v267_v29 = vld [vmem:[#allocation5 + $0xb8] sm:$0xff]  ;;  %v264_v32 = vld [vmem:[#allocation5 + $0xa0] sm:$0xff]  ;;  %v262_v33 = vld [vmem:[#allocation5 + $0x90] sm:$0xff]  ;;  %s995_s21 = scalar_lea.vmem %s994_s5, 8192  ;;  %p996_p3 = scmp.lt.s32.totalorder %s1411_s6, %s994_s5 }
  0x75   : > { %v789_v31 = vpack.c.bf16 %v267_v29, %v263_v28  ;;  %v266_v34 = vld [vmem:[#allocation5 + $0xb0] sm:$0xff]  ;;  %v759_v35 = vpack.c.bf16 %v264_v32, %v260_v30  ;;  %v269_v36 = vld [vmem:[#allocation5 + $0xc8] sm:$0xff]  ;;  %v271_v38 = vld [vmem:[#allocation5 + $0xd8] sm:$0xff]  ;;  %p992_p10 = pneg %p991_p1  ;;  %p997_p5 = scmp.lt.s32.totalorder %s995_s21, %s989_s25 }
  0x76   : > { %756 = vmatpush1.bf16.msra.mxu0 %v755_v22  ;;  %v273_v37 = vld [vmem:[#allocation5 + $0xe8] sm:$0xff]  ;;  %v791_v39 = vpack.c.bf16 %v266_v34, %v262_v33  ;;  %v275_v41 = vld [vmem:[#allocation5 + $0xf8] sm:$0xff]  ;;  %v268_v42 = vld [vmem:[#allocation5 + $0xc0] sm:$0xff] }
  0x77   : > { %788 = vmatpush1.bf16.msra.mxu1 %v787_v26  ;;  %758 = vmatprep.subr.bf16.mxu0 %v757_v27  ;;  %v761_v40 = vpack.c.bf16 %v273_v37, %v269_v36  ;;  %v272_v43 = vld [vmem:[#allocation5 + $0xe0] sm:$0xff]  ;;  %v793_v44 = vpack.c.bf16 %v275_v41, %v271_v38  ;;  %v270_v45 = vld [vmem:[#allocation5 + $0xd0] sm:$0xff]  ;;  %v277_v47 = vld [vmem:[#allocation5 + $0x108] sm:$0xff]  ;;  %p998_p9 = por %p997_p5, %p996_p3 }
  0x78   : > { %790 = vmatprep.subr.bf16.mxu1 %v789_v31  ;;  %v274_v46 = vld [vmem:[#allocation5 + $0xf0] sm:$0xff]  ;;  %v281_v48 = vld [vmem:[#allocation5 + $0x128] sm:$0xff]  ;;  %v279_v49 = vld [vmem:[#allocation5 + $0x118] sm:$0xff]  ;;  %v763_v51 = vpack.c.bf16 %v272_v43, %v268_v42  ;;  %v310_v42 = vlaneseq }
  0x79   : > { %v283_v50 = vld [vmem:[#allocation5 + $0x138] sm:$0xff]  ;;  %v795_v52 = vpack.c.bf16 %v274_v46, %v270_v45  ;;  %v765_v53 = vpack.c.bf16 %v281_v48, %v277_v47  ;;  %v276_v54 = vld [vmem:[#allocation5 + $0x100] sm:$0xff]  ;;  %v278_v56 = vld [vmem:[#allocation5 + $0x110] sm:$0xff]  ;;  %p999_p11 = pnand %p998_p9, %p992_p10 }
  0x7a   : > { %760 = vmatpush1.bf16.msra.mxu0 %v759_v35  ;;  %v280_v55 = vld [vmem:[#allocation5 + $0x120] sm:$0xff]  ;;  %v797_v57 = vpack.c.bf16 %v283_v50, %v279_v49  ;;  %v282_v58 = vld [vmem:[#allocation5 + $0x130] sm:$0xff]  ;;  %v285_v59 = vld [vmem:[#allocation5 + $0x148] sm:$0xff]  ;;  %v311_v43 = vshrl.u32 %v310_v42, 7 }
  0x7b   : > { %792 = vmatpush1.bf16.msra.mxu1 %v791_v39  ;;  %762 = vmatprep.subr.bf16.mxu0 %v761_v40  ;;  %v289_v60 = vld [vmem:[#allocation5 + $0x168] sm:$0xff]  ;;  %v287_v61 = vld [vmem:[#allocation5 + $0x158] sm:$0xff]  ;;  %v767_v63 = vpack.c.bf16 %v280_v55, %v276_v54  ;;  %v799_v1 = vpack.c.bf16 %v282_v58, %v278_v56  ;;  %v284_v3 = vld [vmem:[#allocation5 + $0x140] sm:$0xff] }
  0x7c   : > { %794 = vmatprep.subr.bf16.mxu1 %v793_v44  ;;  %v291_v62 = vld [vmem:[#allocation5 + $0x178] sm:$0xff]  ;;  %v769_v2 = vpack.c.bf16 %v289_v60, %v285_v59  ;;  %v288_v4 = vld [vmem:[#allocation5 + $0x160] sm:$0xff]  ;;  %v286_v5 = vld [vmem:[#allocation5 + $0x150] sm:$0xff]  ;;  %v312_v44 = vsub.s32 0, %v311_v43  ;;  %v320_v46 = vsub.s32 2, %v311_v43  ;;  %v316_v47 = vsub.s32 1, %v311_v43 }
  0x7d   : > { %v801_v6 = vpack.c.bf16 %v291_v62, %v287_v61  ;;  %v290_v7 = vld [vmem:[#allocation5 + $0x170] sm:$0xff]  ;;  %v293_v8 = vld [vmem:[#allocation5 + $0x188] sm:$0xff]  ;;  %v295_v10 = vld [vmem:[#allocation5 + $0x198] sm:$0xff]  ;;  %v771_v12 = vpack.c.bf16 %v288_v4, %v284_v3  ;;  %v324_v48 = vsub.s32 3, %v311_v43 }
  0x7e   : > { %764 = vmatpush1.bf16.msra.mxu0 %v763_v51  ;;  %v297_v9 = vld [vmem:[#allocation5 + $0x1a8] sm:$0xff]  ;;  %v299_v11 = vld [vmem:[#allocation5 + $0x1b8] sm:$0xff]  ;;  %v803_v13 = vpack.c.bf16 %v290_v7, %v286_v5  ;;  %v292_v15 = vld [vmem:[#allocation5 + $0x180] sm:$0xff] }
  0x7f   : > { %796 = vmatpush1.bf16.msra.mxu1 %v795_v52  ;;  %766 = vmatprep.subr.bf16.mxu0 %v765_v53  ;;  %v773_v14 = vpack.c.bf16 %v297_v9, %v293_v8  ;;  %v296_v16 = vld [vmem:[#allocation5 + $0x1a0] sm:$0xff]  ;;  %v294_v17 = vld [vmem:[#allocation5 + $0x190] sm:$0xff]  ;;  %v805_v18 = vpack.c.bf16 %v299_v11, %v295_v10  ;;  %v301_v20 = vld [vmem:[#allocation5 + $0x1c8] sm:$0xff] }
  0x80   : > { %798 = vmatprep.subr.bf16.mxu1 %v797_v57  ;;  %v298_v19 = vld [vmem:[#allocation5 + $0x1b0] sm:$0xff]  ;;  %v305_v21 = vld [vmem:[#allocation5 + $0x1e8] sm:$0xff]  ;;  %v303_v22 = vld [vmem:[#allocation5 + $0x1d8] sm:$0xff]  ;;  %v775_v24 = vpack.c.bf16 %v296_v16, %v292_v15 }
  0x81   : > { %v307_v23 = vld [vmem:[#allocation5 + $0x1f8] sm:$0xff]  ;;  %v807_v25 = vpack.c.bf16 %v298_v19, %v294_v17  ;;  %v777_v26 = vpack.c.bf16 %v305_v21, %v301_v20  ;;  %v300_v27 = vld [vmem:[#allocation5 + $0x1c0] sm:$0xff]  ;;  %v302_v30 = vld [vmem:[#allocation5 + $0x1d0] sm:$0xff] }
  0x82   : > { %768 = vmatpush1.bf16.msra.mxu0 %v767_v63  ;;  %v304_v28 = vld [vmem:[#allocation5 + $0x1e0] sm:$0xff]  ;;  %v809_v29 = vpack.c.bf16 %v307_v23, %v303_v22  ;;  %v306_v31 = vld [vmem:[#allocation5 + $0x1f0] sm:$0xff]  ;;  %v237_v35 = vld [vmem:[%s1300_s28 + $0x8] sm:$0xff] }
  0x83   : > { %800 = vmatpush1.bf16.msra.mxu1 %v799_v1  ;;  %770 = vmatprep.subr.bf16.mxu0 %v769_v2  ;;  %v779_v32 = vpack.c.bf16 %v304_v28, %v300_v27  ;;  %v811_v33 = vpack.c.bf16 %v306_v31, %v302_v30  ;;  %v236_v34 = vld [vmem:[%s1300_s28] sm:$0xff]  ;;  %v238_v36 = vld [vmem:[%s1300_s28 + $0x10] sm:$0xff]  ;;  %v239_v37 = vld [vmem:[%s1300_s28 + $0x18] sm:$0xff] }
  0x84   : > { %802 = vmatprep.subr.bf16.mxu1 %v801_v6  ;;  %v240_v38 = vld [vmem:[%s1300_s28 + $0x20] sm:$0xff]  ;;  %v241_v39 = vld [vmem:[%s1300_s28 + $0x28] sm:$0xff]  ;;  %v242_v40 = vld [vmem:[%s1300_s28 + $0x30] sm:$0xff] }
  0x85   : > { %v243_v41 = vld [vmem:[%s1300_s28 + $0x38] sm:$0xff]  ;;  %v308_v45 = vld [vmem:[#allocation7] sm:$0xf] }
  0x86   : > { %772 = vmatpush1.bf16.msra.mxu0 %v771_v12  ;;  %v1335_v49 = vrot.slane %v308_v45, %v312_v44  ;;  %v1337_v50 = vrot.slane %v308_v45, %v320_v46  ;;  %v1339_v51 = vrot.slane %v308_v45, %v316_v47  ;;  %v1341_v52 = vrot.slane %v308_v45, %v324_v48 }
  0x87   : > { %804 = vmatpush1.bf16.msra.mxu1 %v803_v13  ;;  %774 = vmatprep.subr.bf16.mxu0 %v773_v14 }
  0x88   : > { %806 = vmatprep.subr.bf16.mxu1 %v805_v18 }
  0x8a   : > { %776 = vmatpush1.bf16.msra.mxu0 %v775_v24 }
  0x8b   : > { %808 = vmatpush1.bf16.msra.mxu1 %v807_v25  ;;  %778 = vmatprep.subr.bf16.mxu0 %v777_v26 }
  0x8c   : > { %810 = vmatprep.subr.bf16.mxu1 %v809_v29 }
  0x8e   : > { %780 = vmatpush1.bf16.msra.mxu0 %v779_v32 }
  0x8f   : > { %812 = vmatpush1.bf16.msra.mxu1 %v811_v33 }
  0x91   : > { %395 = vmatmul.mubr.f32.vlgmr.msra.gmra.mrb[0].mxu0 %v236_v34 }
  0x92   : > { %508 = vmatmul.mubr.f32.vlgmr.msra.gmra.mrb[0].mxu1 %v236_v34  ;;  %400 = vmatprep.mubr.f32.mxu0 %v1084_v0 }
  0x93   : > { %513 = vmatprep.mubr.f32.mxu1 %v1084_v0 }
  0x95   : > { %401 = vmatmul.mubr.f32.gmra.mrb[2].mxu0 %v237_v35 }
  0x96   : > { %514 = vmatmul.mubr.f32.gmra.mrb[2].mxu1 %v237_v35  ;;  %406 = vmatprep.mubr.f32.mxu0 %v1084_v0 }
  0x97   : > { %519 = vmatprep.mubr.f32.mxu1 %v1084_v0 }
  0x99   : > { %407 = vmatmul.mubr.f32.gmra.mrb[4].mxu0 %v238_v36 }
  0x9a   : > { %520 = vmatmul.mubr.f32.gmra.mrb[4].mxu1 %v238_v36  ;;  %412 = vmatprep.mubr.f32.mxu0 %v1084_v0 }
  0x9b   : > { %525 = vmatprep.mubr.f32.mxu1 %v1084_v0 }
  0x9d   : > { %413 = vmatmul.mubr.f32.gmra.mrb[6].mxu0 %v239_v37 }
  0x9e   : > { %526 = vmatmul.mubr.f32.gmra.mrb[6].mxu1 %v239_v37  ;;  %418 = vmatprep.mubr.f32.mxu0 %v1084_v0 }
  0x9f   : > { %531 = vmatprep.mubr.f32.mxu1 %v1084_v0 }
  0xa1   : > { %419 = vmatmul.mubr.f32.gmra.mrb[8].mxu0 %v240_v38 }
  0xa2   : > { %532 = vmatmul.mubr.f32.gmra.mrb[8].mxu1 %v240_v38  ;;  %424 = vmatprep.mubr.f32.mxu0 %v1084_v0 }
  0xa3   : > { %537 = vmatprep.mubr.f32.mxu1 %v1084_v0 }
  0xa5   : > { %425 = vmatmul.mubr.f32.gmra.mrb[10].mxu0 %v241_v39 }
  0xa6   : > { %538 = vmatmul.mubr.f32.gmra.mrb[10].mxu1 %v241_v39  ;;  %430 = vmatprep.mubr.f32.mxu0 %v1084_v0 }
  0xa7   : > { %543 = vmatprep.mubr.f32.mxu1 %v1084_v0 }
  0xa9   : > { %431 = vmatmul.mubr.f32.gmra.mrb[12].mxu0 %v242_v40 }
  0xaa   : > { %544 = vmatmul.mubr.f32.gmra.mrb[12].mxu1 %v242_v40  ;;  %436 = vmatprep.mubr.f32.mxu0 %v1084_v0 }
  0xab   : > { %549 = vmatprep.mubr.f32.mxu1 %v1084_v0 }
  0xad   : > { %437 = vmatmul.mubr.f32.gmra.mrb[14].mxu0 %v243_v41 }
  0xae   : > { %550 = vmatmul.mubr.f32.gmra.mrb[14].mxu1 %v243_v41 }
 0x164   : > { %v396_v53 = vpop.f32.mrb[0].mxu0 }
 0x165   : > { %v397_v0 = vadd.f32 %v396_v53, %v1335_v49  ;;  %v509_v54 = vpop.f32.mrb[0].mxu1  ;;  %v398_v55 = vpop.f32.mrb[1].mxu0 }
 0x166   : > { %v510_v56 = vadd.f32 %v509_v54, %v1337_v50  ;;  %v399_v57 = vadd.f32 %v398_v55, %v1339_v51  ;;  %v511_v58 = vpop.f32.mrb[1].mxu1 }
 0x167   : > { %556 = vst [vmem:[%s1346_s22] sm:$0xff] %v397_v0  ;;  %v512_v59 = vadd.f32 %v511_v58, %v1341_v52 }
 0x168   : > { %726 = vst [vmem:[%s1346_s22 + $0x10] sm:$0xff] %v510_v56  ;;  %557 = vst [vmem:[%s1346_s22 + $0x8] sm:$0xff] %v399_v57  ;;  %v402_v60 = vpop.f32.mrb[2].mxu0 }
 0x169   : > { %727 = vst [vmem:[%s1346_s22 + $0x18] sm:$0xff] %v512_v59  ;;  %v403_v61 = vadd.f32 %v402_v60, %v1335_v49  ;;  %v515_v62 = vpop.f32.mrb[2].mxu1  ;;  %v404_v63 = vpop.f32.mrb[3].mxu0 }
 0x16a   : > { %v516_v1 = vadd.f32 %v515_v62, %v1337_v50  ;;  %v405_v2 = vadd.f32 %v404_v63, %v1339_v51  ;;  %v517_v3 = vpop.f32.mrb[3].mxu1 }
 0x16b   : > { %558 = vst [vmem:[%s1346_s22 + $0x20] sm:$0xff] %v403_v61  ;;  %v518_v4 = vadd.f32 %v517_v3, %v1341_v52 }
 0x16c   : > { %728 = vst [vmem:[%s1346_s22 + $0x30] sm:$0xff] %v516_v1  ;;  %559 = vst [vmem:[%s1346_s22 + $0x28] sm:$0xff] %v405_v2  ;;  %v408_v5 = vpop.f32.mrb[4].mxu0 }
 0x16d   : > { %729 = vst [vmem:[%s1346_s22 + $0x38] sm:$0xff] %v518_v4  ;;  %v409_v6 = vadd.f32 %v408_v5, %v1335_v49  ;;  %v521_v7 = vpop.f32.mrb[4].mxu1  ;;  %v410_v8 = vpop.f32.mrb[5].mxu0 }
 0x16e   : > { %v522_v9 = vadd.f32 %v521_v7, %v1337_v50  ;;  %v411_v10 = vadd.f32 %v410_v8, %v1339_v51  ;;  %v523_v11 = vpop.f32.mrb[5].mxu1 }
 0x16f   : > { %560 = vst [vmem:[%s1346_s22 + $0x40] sm:$0xff] %v409_v6  ;;  %v524_v12 = vadd.f32 %v523_v11, %v1341_v52 }
 0x170   : > { %730 = vst [vmem:[%s1346_s22 + $0x50] sm:$0xff] %v522_v9  ;;  %561 = vst [vmem:[%s1346_s22 + $0x48] sm:$0xff] %v411_v10  ;;  %v414_v13 = vpop.f32.mrb[6].mxu0 }
 0x171   : > { %731 = vst [vmem:[%s1346_s22 + $0x58] sm:$0xff] %v524_v12  ;;  %v415_v14 = vadd.f32 %v414_v13, %v1335_v49  ;;  %v527_v15 = vpop.f32.mrb[6].mxu1  ;;  %v416_v16 = vpop.f32.mrb[7].mxu0 }
 0x172   : > { %v528_v17 = vadd.f32 %v527_v15, %v1337_v50  ;;  %v417_v18 = vadd.f32 %v416_v16, %v1339_v51  ;;  %v529_v19 = vpop.f32.mrb[7].mxu1 }
 0x173   : > { %562 = vst [vmem:[%s1346_s22 + $0x60] sm:$0xff] %v415_v14  ;;  %v530_v20 = vadd.f32 %v529_v19, %v1341_v52 }
 0x174   : > { %732 = vst [vmem:[%s1346_s22 + $0x70] sm:$0xff] %v528_v17  ;;  %563 = vst [vmem:[%s1346_s22 + $0x68] sm:$0xff] %v417_v18  ;;  %v420_v21 = vpop.f32.mrb[8].mxu0 }
 0x175   : > { %733 = vst [vmem:[%s1346_s22 + $0x78] sm:$0xff] %v530_v20  ;;  %v421_v22 = vadd.f32 %v420_v21, %v1335_v49  ;;  %v533_v23 = vpop.f32.mrb[8].mxu1  ;;  %v422_v24 = vpop.f32.mrb[9].mxu0 }
 0x176   : > { %v534_v25 = vadd.f32 %v533_v23, %v1337_v50  ;;  %v423_v26 = vadd.f32 %v422_v24, %v1339_v51  ;;  %v535_v27 = vpop.f32.mrb[9].mxu1 }
 0x177   : > { %564 = vst [vmem:[%s1346_s22 + $0x80] sm:$0xff] %v421_v22  ;;  %v536_v28 = vadd.f32 %v535_v27, %v1341_v52 }
 0x178   : > { %734 = vst [vmem:[%s1346_s22 + $0x90] sm:$0xff] %v534_v25  ;;  %565 = vst [vmem:[%s1346_s22 + $0x88] sm:$0xff] %v423_v26  ;;  %v426_v29 = vpop.f32.mrb[10].mxu0 }
 0x179   : > { %735 = vst [vmem:[%s1346_s22 + $0x98] sm:$0xff] %v536_v28  ;;  %v427_v30 = vadd.f32 %v426_v29, %v1335_v49  ;;  %v539_v31 = vpop.f32.mrb[10].mxu1  ;;  %v428_v32 = vpop.f32.mrb[11].mxu0 }
 0x17a   : > { %v540_v33 = vadd.f32 %v539_v31, %v1337_v50  ;;  %v429_v34 = vadd.f32 %v428_v32, %v1339_v51  ;;  %v541_v35 = vpop.f32.mrb[11].mxu1 }
 0x17b   : > { %566 = vst [vmem:[%s1346_s22 + $0xa0] sm:$0xff] %v427_v30  ;;  %v542_v36 = vadd.f32 %v541_v35, %v1341_v52 }
 0x17c   : > { %736 = vst [vmem:[%s1346_s22 + $0xb0] sm:$0xff] %v540_v33  ;;  %567 = vst [vmem:[%s1346_s22 + $0xa8] sm:$0xff] %v429_v34  ;;  %v432_v37 = vpop.f32.mrb[12].mxu0 }
 0x17d   : > { %737 = vst [vmem:[%s1346_s22 + $0xb8] sm:$0xff] %v542_v36  ;;  %v433_v38 = vadd.f32 %v432_v37, %v1335_v49  ;;  %v545_v39 = vpop.f32.mrb[12].mxu1  ;;  %v434_v40 = vpop.f32.mrb[13].mxu0 }
 0x17e   : > { %v546_v41 = vadd.f32 %v545_v39, %v1337_v50  ;;  %v435_v42 = vadd.f32 %v434_v40, %v1339_v51  ;;  %v547_v43 = vpop.f32.mrb[13].mxu1 }
 0x17f   : > { %568 = vst [vmem:[%s1346_s22 + $0xc0] sm:$0xff] %v433_v38  ;;  %v548_v44 = vadd.f32 %v547_v43, %v1341_v52 }
 0x180   : > { %738 = vst [vmem:[%s1346_s22 + $0xd0] sm:$0xff] %v546_v41  ;;  %569 = vst [vmem:[%s1346_s22 + $0xc8] sm:$0xff] %v435_v42  ;;  %v438_v45 = vpop.f32.mrb[14].mxu0 }
 0x181   : > { %739 = vst [vmem:[%s1346_s22 + $0xd8] sm:$0xff] %v548_v44  ;;  %v439_v46 = vadd.f32 %v438_v45, %v1335_v49  ;;  %v551_v47 = vpop.f32.mrb[14].mxu1  ;;  %v440_v48 = vpop.f32.mrb[15].mxu0 }
 0x182   : > { %v552_v53 = vadd.f32 %v551_v47, %v1337_v50  ;;  %v441_v0 = vadd.f32 %v440_v48, %v1339_v51  ;;  %v553_v54 = vpop.f32.mrb[15].mxu1 }
 0x183   : > { %570 = vst [vmem:[%s1346_s22 + $0xe0] sm:$0xff] %v439_v46  ;;  %v554_v49 = vadd.f32 %v553_v54, %v1341_v52 }
 0x184   : > { %740 = vst [vmem:[%s1346_s22 + $0xf0] sm:$0xff] %v552_v53  ;;  %571 = vst [vmem:[%s1346_s22 + $0xe8] sm:$0xff] %v441_v0 }
 0x185   : > { %741 = vst [vmem:[%s1346_s22 + $0xf8] sm:$0xff] %v554_v49 }
 0x186   : > { %1002 = shalt.err (!%p999_p11)
}
 0x187   : > { %s1003_s9 = scalar_lea.hbm %s1409_s8, 4096  ;;  %s1007_s29 = scalar_lea.hbm %s1468_s3, 8192 }
 0x188   : > { %p1004_p0 = scmp.ne.s32.totalorder %s1409_s8, %s1003_s9  ;;  %p1008_p6 = scmp.lt.u32.totalorder %s1409_s8, %s1468_s3 }
 0x189   : > { %p1009_p7 = scmp.lt.u32.totalorder %s1007_s29, %s1003_s9  ;;  %p1011_p8 = scmp.lt.u32.totalorder %s1003_s9, %s1409_s8 }
 0x18a   : > { %p1005_p4 = pnand %p1004_p0, %p1483_p12 }
 0x18b   : > { %p1010_p2 = por %p1009_p7, %p1008_p6 }
 0x18c   : > { %p1006_p13 = pneg %p1005_p4 }
 0x18d   : > { %p1012_p1 = por %p1011_p8, %p1010_p2 }
 0x18f   : > { %p1013_p10 = pnand %p1012_p1, %p1006_p13 }
 0x191   : > { %1016 = shalt.err (!%p1013_p10)
}
 0x192   : > { %s1086_s22 = smov 256   ;;  %s1087_s24 = smov 16  }
 0x193   : > { %823 = dma.vmem_to_hbm [thread:$0]  (%p1483_p12), %s1411_s6, 4096, %s1409_s8, %s590_s26, %s1086_s22, %s1086_s22, %s1087_s24  }
 0x194 PF: > { %s621_s15 = sand.u32 1, %s1055_s12   ;;  %p1484_p3 = scmp.ne.s32.totalorder %s1476_s23, 0 }
 0x195   : > { %p1485_p5 = scmp.ge.s32.totalorder %s1075_s17, 2  ;;  %s622_s7 = scalar_lea.sflag [#allocation4], %s621_s15 }
 0x197   : > { %p837_p9 = pnand %p1485_p5, %p1484_p3 }
 0x199   : > { %1050 = dma.done.wait (!%p837_p9), %s622_s7, 4096  }
 0x19a   : > { %1052 = vsyncadd (!%p837_p9), %s622_s7, 4294963200  ;;  %s20_s17 = sadd.s32 1, %s1075_s17   ;;  %s1486_s12 = smov %s1059_s13 }
 0x19b   : > { %p17_p11 = scmp.ge.s32.totalorder %s20_s17, 4   ;;  %s1487_s13 = smov %s1063_s14 }
 0x19c   : > { %s1488_s14 = smov %s1250_s30  ;;  %s1489_s15 = smov %s1071_s16 }
 0x19d   : > { %s1490_s16 = smov %s1492_s11  ;;  %19 = sbr.rel (!%p17_p11) target bundleno = 7 (0x7), region = 86 }
 0x1a4   :  { %627 = vsyncpa [#allocation3], 1 }
 0x1a5   :  { %629 = vsyncpa [#allocation3 + $0x1], 1 }
 0x1a6   :  { %630 = vsyncpa [#allocation6], 1 }
 0x1a7   :  { %631 = vsyncpa [#allocation4], 1 }
 0x1a8   :  { %633 = vsyncpa [#allocation4 + $0x1], 1 }

// kernel: up_forward.7
= control target key start
LH: loop header
LB: loop body
LE: loop exit
PB: predicated region body
PF: predicated region fallthrough
CT: control target
= control target key end

     0   :  { %8 = vsyncpa [#allocation3], 0  ;;  %s725_s0 = inlined_call_operand.hbm [shape: f32[512,128], index: 0, kind: input, shape index: {}]   ;;  %s726_s1 = inlined_call_operand.hbm [shape: f32[1,128], index: 1, kind: input, shape index: {}]   ;;  %s727_s2 = inlined_call_operand.hbm [shape: f32[1,128], index: 2, kind: input, shape index: {}]   ;;  %s728_s3 = inlined_call_operand.hbm [shape: f32[512,128], index: 3, kind: output, shape index: {}]  }
   0x1   :  { %9 = vsyncpa [#allocation6], 0 }
   0x2   :  { %10 = vsyncpa [#allocation4], 0  ;;  %s506_s12 = smov [#allocation5]   ;;  %s507_s14 = smov [#allocation2]  }
   0x3   :  { %s29_s13 = sshll.u32 %s506_s12, 4  ;;  %s16_s15 = sshll.u32 %s507_s14, 4  ;;  %s30_s13 = int_to_ptr.vmem [resolvable:$true] %s29_s13  ;;  %s532_s15 = int_to_ptr.vmem [resolvable:$true] %s16_s15 }
   0x4   :  { %s412_s18 = scalar_lea.hbm %s726_s1, 16 }
   0x5   :  { %p413_p0 = scmp.ne.s32.totalorder %s726_s1, %s412_s18  ;;  %p416_p1 = scmp.lt.u32.totalorder %s412_s18, %s726_s1 }
   0x7   :  { %p418_p2 = pnand %p416_p1, %p413_p0 }
   0x9   :  { %421 = shalt.err (!%p418_p2)
}
   0xa   :  { %s422_s23 = scalar_lea.vmem %s30_s13, 16  ;;  %s426_s24 = scalar_lea.vmem %s30_s13, 32 }
   0xb   :  { %p423_p3 = scmp.ne.s32.totalorder %s30_s13, %s422_s23  ;;  %p427_p4 = scmp.lt.s32.totalorder %s30_s13, %s30_s13 }
   0xc   :  { %p428_p5 = scmp.lt.s32.totalorder %s426_s24, %s422_s23 }
   0xe   :  { %p429_p6 = por %p428_p5, %p427_p4 }
  0x10   :  { %p430_p7 = pnand %p429_p6, %p423_p3 }
  0x12   :  { %433 = shalt.err (!%p430_p7)
}
  0x13   :  { %32 = dma.hbm_to_vmem [thread:$0]  %s726_s1, 16, %s30_s13, [#allocation6]  }
  0x14   :  { %s434_s29 = scalar_lea.hbm %s725_s0, 8192 }
  0x15   :  { %p435_p8 = scmp.ne.s32.totalorder %s725_s0, %s434_s29  ;;  %p438_p9 = scmp.lt.u32.totalorder %s434_s29, %s725_s0 }
  0x17   :  { %p440_p10 = pnand %p438_p9, %p435_p8 }
  0x19   :  { %443 = shalt.err (!%p440_p10)
}
  0x1a   :  { %s444_s7 = scalar_lea.vmem %s532_s15, 8192  ;;  %p449_p12 = scmp.lt.s32.totalorder %s532_s15, %s532_s15 }
  0x1b   :  { %p445_p11 = scmp.ne.s32.totalorder %s532_s15, %s444_s7  ;;  %p450_p13 = scmp.lt.s32.totalorder %s444_s7, %s444_s7 }
  0x1d   :  { %p451_p0 = por %p450_p13, %p449_p12 }
  0x1f   :  { %p452_p1 = pnand %p451_p0, %p445_p11 }
  0x21   :  { %455 = shalt.err (!%p452_p1)
}
  0x22   :  { %s508_s1 = smov 128   ;;  %s509_s8 = smov 8  }
  0x23   :  { %22 = dma.hbm_to_vmem [thread:$0]  %s725_s0, 8192, %s532_s15, [#allocation3], %s508_s1, %s508_s1, %s509_s8  }
  0x24   :  { %s510_s11 = smov [#allocation7]   ;;  %s456_s16 = scalar_lea.hbm %s727_s2, 16 }
  0x25   :  { %s39_s12 = sshll.u32 %s510_s11, 4  ;;  %p457_p2 = scmp.ne.s32.totalorder %s727_s2, %s456_s16  ;;  %s40_s12 = int_to_ptr.vmem [resolvable:$true] %s39_s12 }
  0x26   :  { %p460_p3 = scmp.lt.u32.totalorder %s456_s16, %s727_s2 }
  0x28   :  { %p462_p4 = pnand %p460_p3, %p457_p2 }
  0x2a   :  { %465 = shalt.err (!%p462_p4)
}
  0x2b   :  { %s466_s21 = scalar_lea.vmem %s40_s12, 16  ;;  %s470_s0 = scalar_lea.vmem %s40_s12, 32 }
  0x2c   :  { %p467_p5 = scmp.ne.s32.totalorder %s40_s12, %s466_s21  ;;  %p471_p6 = scmp.lt.s32.totalorder %s40_s12, %s40_s12 }
  0x2d   :  { %p472_p7 = scmp.lt.s32.totalorder %s470_s0, %s466_s21 }
  0x2f   :  { %p473_p8 = por %p472_p7, %p471_p6 }
  0x31   :  { %p474_p9 = pnand %p473_p8, %p467_p5 }
  0x33   :  { %477 = shalt.err (!%p474_p9)
}
  0x34   :  { %42 = dma.hbm_to_vmem [thread:$0]  %s727_s2, 16, %s40_s12, [#allocation6]  }
  0x35   :  { %500 = dma.done.wait [#allocation3], 8192  }
  0x36   :  { %501 = vsyncadd [#allocation3], 4294959104 }
  0x37   :  { %502 = dma.done.wait [#allocation6], 32  }
  0x38   :  { %503 = vsyncadd [#allocation6], 4294967264  ;;  %v52_v0 = vld [vmem:[#allocation2] sm:$0xff]  ;;  %v53_v4 = vld [vmem:[#allocation2 + $0x8] sm:$0xff]  ;;  %s511_s2 = smov [#allocation8]  }
  0x39   :  { %v578_v1 = vld [vmem:[#allocation5] ss:$0 sm:$0xff]  ;;  %v580_v2 = vld [vmem:[#allocation7] ss:$0 sm:$0xff]  ;;  %v54_v5 = vld [vmem:[#allocation2 + $0x10] sm:$0xff]  ;;  %s391_s23 = sshll.u32 %s511_s2, 4  ;;  %s392_s23 = int_to_ptr.vmem [resolvable:$true] %s391_s23 }
  0x3a   :  { %v123_v3 = vmul.f32 %v578_v1, %v52_v0  ;;  %v55_v6 = vld [vmem:[#allocation2 + $0x18] sm:$0xff]  ;;  %v124_v7 = vmul.f32 %v578_v1, %v53_v4  ;;  %v125_v8 = vmul.f32 %v578_v1, %v54_v5  ;;  %v56_v10 = vld [vmem:[#allocation2 + $0x20] sm:$0xff]  ;;  %v57_v11 = vld [vmem:[#allocation2 + $0x28] sm:$0xff]  ;;  %s478_s24 = scalar_lea.vmem %s392_s23, 8192  ;;  %p483_p11 = scmp.lt.s32.totalorder %s392_s23, %s392_s23 }
  0x3b   :  { %v126_v9 = vmul.f32 %v578_v1, %v55_v6  ;;  %v58_v12 = vld [vmem:[#allocation2 + $0x30] sm:$0xff]  ;;  %v127_v14 = vmul.f32 %v578_v1, %v56_v10  ;;  %v128_v15 = vmul.f32 %v578_v1, %v57_v11  ;;  %v59_v17 = vld [vmem:[#allocation2 + $0x38] sm:$0xff]  ;;  %v60_v22 = vld [vmem:[#allocation2 + $0x40] sm:$0xff]  ;;  %p479_p10 = scmp.ne.s32.totalorder %s392_s23, %s478_s24  ;;  %p484_p12 = scmp.lt.s32.totalorder %s478_s24, %s478_s24 }
  0x3c   :  { %v194_v13 = vadd.f32 %v580_v2, %v123_v3  ;;  %v129_v16 = vmul.f32 %v578_v1, %v58_v12  ;;  %v195_v18 = vadd.f32 %v580_v2, %v124_v7  ;;  %v196_v19 = vadd.f32 %v580_v2, %v125_v8  ;;  %v61_v27 = vld [vmem:[#allocation2 + $0x48] sm:$0xff]  ;;  %v62_v28 = vld [vmem:[#allocation2 + $0x50] sm:$0xff]  ;;  %v63_v29 = vld [vmem:[#allocation2 + $0x58] sm:$0xff] }
  0x3d   :  { %v197_v20 = vadd.f32 %v580_v2, %v126_v9  ;;  %v130_v21 = vmul.f32 %v578_v1, %v59_v17  ;;  %v198_v24 = vadd.f32 %v580_v2, %v127_v14  ;;  %v199_v25 = vadd.f32 %v580_v2, %v128_v15  ;;  %v64_v34 = vld [vmem:[#allocation2 + $0x60] sm:$0xff]  ;;  %v65_v35 = vld [vmem:[#allocation2 + $0x68] sm:$0xff]  ;;  %v66_v36 = vld [vmem:[#allocation2 + $0x70] sm:$0xff]  ;;  %p485_p13 = por %p484_p12, %p483_p11 }
  0x3e   :  { %v258_v23 = vmax.f32 %v194_v13, 0.0  ;;  %v200_v26 = vadd.f32 %v580_v2, %v129_v16  ;;  %v259_v30 = vmax.f32 %v195_v18, 0.0  ;;  %v260_v31 = vmax.f32 %v196_v19, 0.0  ;;  %v67_v41 = vld [vmem:[#allocation2 + $0x78] sm:$0xff]  ;;  %v68_v54 = vld [vmem:[#allocation2 + $0x80] sm:$0xff]  ;;  %v69_v59 = vld [vmem:[#allocation2 + $0x88] sm:$0xff] }
  0x3f   :  { %v261_v32 = vmax.f32 %v197_v20, 0.0  ;;  %v201_v33 = vadd.f32 %v580_v2, %v130_v21  ;;  %v262_v37 = vmax.f32 %v198_v24, 0.0  ;;  %v263_v38 = vmax.f32 %v199_v25, 0.0  ;;  %v70_v60 = vld [vmem:[#allocation2 + $0x90] sm:$0xff]  ;;  %v71_v61 = vld [vmem:[#allocation2 + $0x98] sm:$0xff]  ;;  %v72_v4 = vld [vmem:[#allocation2 + $0xa0] sm:$0xff]  ;;  %p486_p0 = pnand %p485_p13, %p479_p10 }
  0x40   :  { %322 = vst [vmem:[#allocation8] sm:$0xff] %v258_v23  ;;  %v264_v39 = vmax.f32 %v200_v26, 0.0  ;;  %v131_v40 = vmul.f32 %v578_v1, %v60_v22  ;;  %323 = vst [vmem:[#allocation8 + $0x8] sm:$0xff] %v259_v30  ;;  %v132_v43 = vmul.f32 %v578_v1, %v61_v27  ;;  %v133_v44 = vmul.f32 %v578_v1, %v62_v28  ;;  %v73_v5 = vld [vmem:[#allocation2 + $0xa8] sm:$0xff]  ;;  %v74_v6 = vld [vmem:[#allocation2 + $0xb0] sm:$0xff] }
  0x41   :  { %324 = vst [vmem:[#allocation8 + $0x10] sm:$0xff] %v260_v31  ;;  %325 = vst [vmem:[#allocation8 + $0x18] sm:$0xff] %v261_v32  ;;  %v265_v42 = vmax.f32 %v201_v33, 0.0  ;;  %v134_v45 = vmul.f32 %v578_v1, %v63_v29  ;;  %v135_v47 = vmul.f32 %v578_v1, %v64_v34  ;;  %v136_v48 = vmul.f32 %v578_v1, %v65_v35  ;;  %v75_v11 = vld [vmem:[#allocation2 + $0xb8] sm:$0xff]  ;;  %v76_v24 = vld [vmem:[#allocation2 + $0xc0] sm:$0xff] }
  0x42   :  { %326 = vst [vmem:[#allocation8 + $0x20] sm:$0xff] %v262_v37  ;;  %327 = vst [vmem:[#allocation8 + $0x28] sm:$0xff] %v263_v38  ;;  %v202_v46 = vadd.f32 %v580_v2, %v131_v40  ;;  %v137_v49 = vmul.f32 %v578_v1, %v66_v36  ;;  %v203_v50 = vadd.f32 %v580_v2, %v132_v43  ;;  %v77_v29 = vld [vmem:[#allocation2 + $0xc8] sm:$0xff]  ;;  %v78_v30 = vld [vmem:[#allocation2 + $0xd0] sm:$0xff] }
  0x43   :  { %328 = vst [vmem:[#allocation8 + $0x30] sm:$0xff] %v264_v39  ;;  %329 = vst [vmem:[#allocation8 + $0x38] sm:$0xff] %v265_v42  ;;  %v204_v51 = vadd.f32 %v580_v2, %v133_v44  ;;  %v205_v52 = vadd.f32 %v580_v2, %v134_v45  ;;  %v138_v53 = vmul.f32 %v578_v1, %v67_v41  ;;  %v79_v31 = vld [vmem:[#allocation2 + $0xd8] sm:$0xff]  ;;  %v80_v36 = vld [vmem:[#allocation2 + $0xe0] sm:$0xff] }
  0x44   :  { %v266_v55 = vmax.f32 %v202_v46, 0.0  ;;  %v206_v56 = vadd.f32 %v580_v2, %v135_v47  ;;  %v207_v57 = vadd.f32 %v580_v2, %v136_v48  ;;  %v208_v58 = vadd.f32 %v580_v2, %v137_v49  ;;  %v81_v37 = vld [vmem:[#allocation2 + $0xe8] sm:$0xff]  ;;  %v82_v38 = vld [vmem:[#allocation2 + $0xf0] sm:$0xff]  ;;  %v83_v43 = vld [vmem:[#allocation2 + $0xf8] sm:$0xff] }
  0x45   :  { %v267_v62 = vmax.f32 %v203_v50, 0.0  ;;  %v268_v63 = vmax.f32 %v204_v51, 0.0  ;;  %v269_v0 = vmax.f32 %v205_v52, 0.0  ;;  %v209_v3 = vadd.f32 %v580_v2, %v138_v53 }
  0x46   :  { %330 = vst [vmem:[#allocation8 + $0x40] sm:$0xff] %v266_v55  ;;  %v270_v7 = vmax.f32 %v206_v56, 0.0  ;;  %v271_v8 = vmax.f32 %v207_v57, 0.0  ;;  %v272_v9 = vmax.f32 %v208_v58, 0.0  ;;  %v139_v10 = vmul.f32 %v578_v1, %v68_v54  ;;  %v84_v56 = vld [vmem:[#allocation2 + $0x100] sm:$0xff] }
  0x47   :  { %331 = vst [vmem:[#allocation8 + $0x48] sm:$0xff] %v267_v62  ;;  %332 = vst [vmem:[#allocation8 + $0x50] sm:$0xff] %v268_v63  ;;  %v273_v12 = vmax.f32 %v209_v3, 0.0  ;;  %v140_v13 = vmul.f32 %v578_v1, %v69_v59  ;;  %v141_v14 = vmul.f32 %v578_v1, %v70_v60  ;;  %v142_v15 = vmul.f32 %v578_v1, %v71_v61  ;;  %v85_v61 = vld [vmem:[#allocation2 + $0x108] sm:$0xff]  ;;  %v86_v62 = vld [vmem:[#allocation2 + $0x110] sm:$0xff] }
  0x48   :  { %333 = vst [vmem:[#allocation8 + $0x58] sm:$0xff] %v269_v0  ;;  %334 = vst [vmem:[#allocation8 + $0x60] sm:$0xff] %v270_v7  ;;  %v210_v16 = vadd.f32 %v580_v2, %v139_v10  ;;  %v143_v17 = vmul.f32 %v578_v1, %v72_v4  ;;  %v144_v18 = vmul.f32 %v578_v1, %v73_v5  ;;  %v87_v63 = vld [vmem:[#allocation2 + $0x118] sm:$0xff]  ;;  %v89_v7 = vld [vmem:[#allocation2 + $0x128] sm:$0xff] }
  0x49   :  { %335 = vst [vmem:[#allocation8 + $0x68] sm:$0xff] %v271_v8  ;;  %336 = vst [vmem:[#allocation8 + $0x70] sm:$0xff] %v272_v9  ;;  %v145_v19 = vmul.f32 %v578_v1, %v74_v6  ;;  %v211_v20 = vadd.f32 %v580_v2, %v140_v13  ;;  %v212_v21 = vadd.f32 %v580_v2, %v141_v14  ;;  %v88_v6 = vld [vmem:[#allocation2 + $0x120] sm:$0xff]  ;;  %v90_v8 = vld [vmem:[#allocation2 + $0x130] sm:$0xff] }
  0x4a   :  { %337 = vst [vmem:[#allocation8 + $0x78] sm:$0xff] %v273_v12  ;;  %v213_v22 = vadd.f32 %v580_v2, %v142_v15  ;;  %v146_v23 = vmul.f32 %v578_v1, %v75_v11  ;;  %v274_v25 = vmax.f32 %v210_v16, 0.0  ;;  %v214_v26 = vadd.f32 %v580_v2, %v143_v17  ;;  %v91_v13 = vld [vmem:[#allocation2 + $0x138] sm:$0xff] }
  0x4b   :  { %v215_v27 = vadd.f32 %v580_v2, %v144_v18  ;;  %v216_v28 = vadd.f32 %v580_v2, %v145_v19  ;;  %v275_v32 = vmax.f32 %v211_v20, 0.0  ;;  %v276_v33 = vmax.f32 %v212_v21, 0.0 }
  0x4c   :  { %v277_v34 = vmax.f32 %v213_v22, 0.0  ;;  %v217_v35 = vadd.f32 %v580_v2, %v146_v23  ;;  %338 = vst [vmem:[#allocation8 + $0x80] sm:$0xff] %v274_v25  ;;  %v278_v39 = vmax.f32 %v214_v26, 0.0  ;;  %v147_v42 = vmul.f32 %v578_v1, %v76_v24  ;;  %v92_v26 = vld [vmem:[#allocation2 + $0x140] sm:$0xff] }
  0x4d   :  { %v279_v40 = vmax.f32 %v215_v27, 0.0  ;;  %v280_v41 = vmax.f32 %v216_v28, 0.0  ;;  %339 = vst [vmem:[#allocation8 + $0x88] sm:$0xff] %v275_v32  ;;  %340 = vst [vmem:[#allocation8 + $0x90] sm:$0xff] %v276_v33  ;;  %v148_v45 = vmul.f32 %v578_v1, %v77_v29  ;;  %v149_v46 = vmul.f32 %v578_v1, %v78_v30  ;;  %v94_v32 = vld [vmem:[#allocation2 + $0x150] sm:$0xff]  ;;  %v95_v33 = vld [vmem:[#allocation2 + $0x158] sm:$0xff] }
  0x4e   :  { %341 = vst [vmem:[#allocation8 + $0x98] sm:$0xff] %v277_v34  ;;  %v281_v44 = vmax.f32 %v217_v35, 0.0  ;;  %v150_v47 = vmul.f32 %v578_v1, %v79_v31  ;;  %342 = vst [vmem:[#allocation8 + $0xa0] sm:$0xff] %v278_v39  ;;  %v218_v48 = vadd.f32 %v580_v2, %v147_v42  ;;  %v151_v49 = vmul.f32 %v578_v1, %v80_v36  ;;  %v93_v31 = vld [vmem:[#allocation2 + $0x148] sm:$0xff] }
  0x4f   :  { %343 = vst [vmem:[#allocation8 + $0xa8] sm:$0xff] %v279_v40  ;;  %344 = vst [vmem:[#allocation8 + $0xb0] sm:$0xff] %v280_v41  ;;  %v152_v50 = vmul.f32 %v578_v1, %v81_v37  ;;  %v153_v51 = vmul.f32 %v578_v1, %v82_v38  ;;  %v219_v52 = vadd.f32 %v580_v2, %v148_v45  ;;  %v96_v38 = vld [vmem:[#allocation2 + $0x160] sm:$0xff]  ;;  %v97_v39 = vld [vmem:[#allocation2 + $0x168] sm:$0xff] }
  0x50   :  { %345 = vst [vmem:[#allocation8 + $0xb8] sm:$0xff] %v281_v44  ;;  %v220_v53 = vadd.f32 %v580_v2, %v149_v46  ;;  %v221_v54 = vadd.f32 %v580_v2, %v150_v47  ;;  %v154_v55 = vmul.f32 %v578_v1, %v83_v43  ;;  %v282_v57 = vmax.f32 %v218_v48, 0.0  ;;  %v98_v40 = vld [vmem:[#allocation2 + $0x170] sm:$0xff]  ;;  %v99_v45 = vld [vmem:[#allocation2 + $0x178] sm:$0xff] }
  0x51   :  { %v222_v58 = vadd.f32 %v580_v2, %v151_v49  ;;  %v223_v59 = vadd.f32 %v580_v2, %v152_v50  ;;  %v224_v60 = vadd.f32 %v580_v2, %v153_v51  ;;  %v283_v0 = vmax.f32 %v219_v52, 0.0 }
  0x52   :  { %v284_v3 = vmax.f32 %v220_v53, 0.0  ;;  %v285_v4 = vmax.f32 %v221_v54, 0.0  ;;  %v225_v5 = vadd.f32 %v580_v2, %v154_v55  ;;  %346 = vst [vmem:[#allocation8 + $0xc0] sm:$0xff] %v282_v57  ;;  %v155_v12 = vmul.f32 %v578_v1, %v84_v56 }
  0x53   :  { %v286_v9 = vmax.f32 %v222_v58, 0.0  ;;  %v287_v10 = vmax.f32 %v223_v59, 0.0  ;;  %v288_v11 = vmax.f32 %v224_v60, 0.0  ;;  %347 = vst [vmem:[#allocation8 + $0xc8] sm:$0xff] %v283_v0  ;;  %v156_v15 = vmul.f32 %v578_v1, %v85_v61  ;;  %v100_v58 = vld [vmem:[#allocation2 + $0x180] sm:$0xff]  ;;  %v102_v0 = vld [vmem:[#allocation2 + $0x190] sm:$0xff] }
  0x54   :  { %348 = vst [vmem:[#allocation8 + $0xd0] sm:$0xff] %v284_v3  ;;  %349 = vst [vmem:[#allocation8 + $0xd8] sm:$0xff] %v285_v4  ;;  %v289_v14 = vmax.f32 %v225_v5, 0.0  ;;  %v157_v16 = vmul.f32 %v578_v1, %v86_v62  ;;  %v158_v17 = vmul.f32 %v578_v1, %v87_v63  ;;  %v226_v18 = vadd.f32 %v580_v2, %v155_v12  ;;  %v101_v63 = vld [vmem:[#allocation2 + $0x188] sm:$0xff]  ;;  %v103_v3 = vld [vmem:[#allocation2 + $0x198] sm:$0xff] }
  0x55   :  { %350 = vst [vmem:[#allocation8 + $0xe0] sm:$0xff] %v286_v9  ;;  %351 = vst [vmem:[#allocation8 + $0xe8] sm:$0xff] %v287_v10  ;;  %v159_v19 = vmul.f32 %v578_v1, %v88_v6  ;;  %v160_v20 = vmul.f32 %v578_v1, %v89_v7  ;;  %v161_v21 = vmul.f32 %v578_v1, %v90_v8  ;;  %v104_v8 = vld [vmem:[#allocation2 + $0x1a0] sm:$0xff]  ;;  %v105_v9 = vld [vmem:[#allocation2 + $0x1a8] sm:$0xff] }
  0x56   :  { %352 = vst [vmem:[#allocation8 + $0xf0] sm:$0xff] %v288_v11  ;;  %353 = vst [vmem:[#allocation8 + $0xf8] sm:$0xff] %v289_v14  ;;  %v227_v22 = vadd.f32 %v580_v2, %v156_v15  ;;  %v228_v23 = vadd.f32 %v580_v2, %v157_v16  ;;  %v229_v24 = vadd.f32 %v580_v2, %v158_v17  ;;  %v290_v27 = vmax.f32 %v226_v18, 0.0  ;;  %v106_v10 = vld [vmem:[#allocation2 + $0x1b0] sm:$0xff]  ;;  %v107_v15 = vld [vmem:[#allocation2 + $0x1b8] sm:$0xff] }
  0x57   :  { %v162_v25 = vmul.f32 %v578_v1, %v91_v13  ;;  %v230_v28 = vadd.f32 %v580_v2, %v159_v19  ;;  %v231_v29 = vadd.f32 %v580_v2, %v160_v20  ;;  %v232_v30 = vadd.f32 %v580_v2, %v161_v21 }
  0x58   :  { %v291_v34 = vmax.f32 %v227_v22, 0.0  ;;  %v292_v35 = vmax.f32 %v228_v23, 0.0  ;;  %v293_v36 = vmax.f32 %v229_v24, 0.0  ;;  %354 = vst [vmem:[#allocation8 + $0x100] sm:$0xff] %v290_v27  ;;  %v163_v44 = vmul.f32 %v578_v1, %v92_v26 }
  0x59   :  { %v233_v37 = vadd.f32 %v580_v2, %v162_v25  ;;  %v294_v41 = vmax.f32 %v230_v28, 0.0  ;;  %v295_v42 = vmax.f32 %v231_v29, 0.0  ;;  %v296_v43 = vmax.f32 %v232_v30, 0.0  ;;  %v108_v28 = vld [vmem:[#allocation2 + $0x1c0] sm:$0xff] }
  0x5a   :  { %355 = vst [vmem:[#allocation8 + $0x108] sm:$0xff] %v291_v34  ;;  %356 = vst [vmem:[#allocation8 + $0x110] sm:$0xff] %v292_v35  ;;  %v164_v47 = vmul.f32 %v578_v1, %v93_v31  ;;  %v165_v48 = vmul.f32 %v578_v1, %v94_v32  ;;  %v166_v49 = vmul.f32 %v578_v1, %v95_v33  ;;  %v109_v33 = vld [vmem:[#allocation2 + $0x1c8] sm:$0xff]  ;;  %v110_v34 = vld [vmem:[#allocation2 + $0x1d0] sm:$0xff] }
  0x5b   :  { %357 = vst [vmem:[#allocation8 + $0x118] sm:$0xff] %v293_v36  ;;  %v297_v46 = vmax.f32 %v233_v37, 0.0  ;;  %358 = vst [vmem:[#allocation8 + $0x120] sm:$0xff] %v294_v41  ;;  %v234_v50 = vadd.f32 %v580_v2, %v163_v44  ;;  %v167_v51 = vmul.f32 %v578_v1, %v96_v38  ;;  %v168_v52 = vmul.f32 %v578_v1, %v97_v39  ;;  %v111_v35 = vld [vmem:[#allocation2 + $0x1d8] sm:$0xff]  ;;  %v113_v41 = vld [vmem:[#allocation2 + $0x1e8] sm:$0xff] }
  0x5c   :  { %359 = vst [vmem:[#allocation8 + $0x128] sm:$0xff] %v295_v42  ;;  %360 = vst [vmem:[#allocation8 + $0x130] sm:$0xff] %v296_v43  ;;  %v169_v53 = vmul.f32 %v578_v1, %v98_v40  ;;  %v235_v54 = vadd.f32 %v580_v2, %v164_v47  ;;  %v236_v55 = vadd.f32 %v580_v2, %v165_v48  ;;  %v112_v40 = vld [vmem:[#allocation2 + $0x1e0] sm:$0xff]  ;;  %v114_v42 = vld [vmem:[#allocation2 + $0x1f0] sm:$0xff] }
  0x5d   :  { %361 = vst [vmem:[#allocation8 + $0x138] sm:$0xff] %v297_v46  ;;  %v237_v56 = vadd.f32 %v580_v2, %v166_v49  ;;  %v170_v57 = vmul.f32 %v578_v1, %v99_v45  ;;  %v298_v59 = vmax.f32 %v234_v50, 0.0  ;;  %v238_v60 = vadd.f32 %v580_v2, %v167_v51  ;;  %v115_v47 = vld [vmem:[#allocation2 + $0x1f8] sm:$0xff] }
  0x5e   :  { %v239_v61 = vadd.f32 %v580_v2, %v168_v52  ;;  %v240_v62 = vadd.f32 %v580_v2, %v169_v53  ;;  %v299_v4 = vmax.f32 %v235_v54, 0.0  ;;  %v300_v5 = vmax.f32 %v236_v55, 0.0 }
  0x5f   :  { %v301_v6 = vmax.f32 %v237_v56, 0.0  ;;  %v241_v7 = vadd.f32 %v580_v2, %v170_v57  ;;  %362 = vst [vmem:[#allocation8 + $0x140] sm:$0xff] %v298_v59  ;;  %v302_v11 = vmax.f32 %v238_v60, 0.0  ;;  %v171_v14 = vmul.f32 %v578_v1, %v100_v58 }
  0x60   :  { %v303_v12 = vmax.f32 %v239_v61, 0.0  ;;  %v304_v13 = vmax.f32 %v240_v62, 0.0  ;;  %363 = vst [vmem:[#allocation8 + $0x148] sm:$0xff] %v299_v4  ;;  %364 = vst [vmem:[#allocation8 + $0x150] sm:$0xff] %v300_v5  ;;  %v172_v17 = vmul.f32 %v578_v1, %v101_v63  ;;  %v173_v18 = vmul.f32 %v578_v1, %v102_v0 }
  0x61   :  { %365 = vst [vmem:[#allocation8 + $0x158] sm:$0xff] %v301_v6  ;;  %v305_v16 = vmax.f32 %v241_v7, 0.0  ;;  %v174_v19 = vmul.f32 %v578_v1, %v103_v3  ;;  %366 = vst [vmem:[#allocation8 + $0x160] sm:$0xff] %v302_v11  ;;  %v242_v20 = vadd.f32 %v580_v2, %v171_v14  ;;  %v175_v21 = vmul.f32 %v578_v1, %v104_v8 }
  0x62   :  { %367 = vst [vmem:[#allocation8 + $0x168] sm:$0xff] %v303_v12  ;;  %368 = vst [vmem:[#allocation8 + $0x170] sm:$0xff] %v304_v13  ;;  %v176_v22 = vmul.f32 %v578_v1, %v105_v9  ;;  %v177_v23 = vmul.f32 %v578_v1, %v106_v10  ;;  %v243_v24 = vadd.f32 %v580_v2, %v172_v17 }
  0x63   :  { %369 = vst [vmem:[#allocation8 + $0x178] sm:$0xff] %v305_v16  ;;  %v244_v25 = vadd.f32 %v580_v2, %v173_v18  ;;  %v245_v26 = vadd.f32 %v580_v2, %v174_v19  ;;  %v178_v27 = vmul.f32 %v578_v1, %v107_v15  ;;  %v306_v29 = vmax.f32 %v242_v20, 0.0 }
  0x64   :  { %v246_v30 = vadd.f32 %v580_v2, %v175_v21  ;;  %v247_v31 = vadd.f32 %v580_v2, %v176_v22  ;;  %v248_v32 = vadd.f32 %v580_v2, %v177_v23  ;;  %v307_v36 = vmax.f32 %v243_v24, 0.0 }
  0x65   :  { %v308_v37 = vmax.f32 %v244_v25, 0.0  ;;  %v309_v38 = vmax.f32 %v245_v26, 0.0  ;;  %v249_v39 = vadd.f32 %v580_v2, %v178_v27  ;;  %370 = vst [vmem:[#allocation8 + $0x180] sm:$0xff] %v306_v29  ;;  %v179_v46 = vmul.f32 %v578_v1, %v108_v28 }
  0x66   :  { %v310_v43 = vmax.f32 %v246_v30, 0.0  ;;  %v311_v44 = vmax.f32 %v247_v31, 0.0  ;;  %v312_v45 = vmax.f32 %v248_v32, 0.0  ;;  %371 = vst [vmem:[#allocation8 + $0x188] sm:$0xff] %v307_v36  ;;  %v180_v49 = vmul.f32 %v578_v1, %v109_v33 }
  0x67   :  { %372 = vst [vmem:[#allocation8 + $0x190] sm:$0xff] %v308_v37  ;;  %373 = vst [vmem:[#allocation8 + $0x198] sm:$0xff] %v309_v38  ;;  %v313_v48 = vmax.f32 %v249_v39, 0.0  ;;  %v181_v50 = vmul.f32 %v578_v1, %v110_v34  ;;  %v182_v51 = vmul.f32 %v578_v1, %v111_v35  ;;  %v250_v52 = vadd.f32 %v580_v2, %v179_v46 }
  0x68   :  { %374 = vst [vmem:[#allocation8 + $0x1a0] sm:$0xff] %v310_v43  ;;  %375 = vst [vmem:[#allocation8 + $0x1a8] sm:$0xff] %v311_v44  ;;  %v183_v53 = vmul.f32 %v578_v1, %v112_v40  ;;  %v184_v54 = vmul.f32 %v578_v1, %v113_v41  ;;  %v185_v55 = vmul.f32 %v578_v1, %v114_v42 }
  0x69   :  { %376 = vst [vmem:[#allocation8 + $0x1b0] sm:$0xff] %v312_v45  ;;  %377 = vst [vmem:[#allocation8 + $0x1b8] sm:$0xff] %v313_v48  ;;  %v251_v56 = vadd.f32 %v580_v2, %v180_v49  ;;  %v252_v57 = vadd.f32 %v580_v2, %v181_v50  ;;  %v253_v58 = vadd.f32 %v580_v2, %v182_v51  ;;  %v314_v60 = vmax.f32 %v250_v52, 0.0 }
  0x6a   :  { %v186_v59 = vmul.f32 %v578_v1, %v115_v47  ;;  %v254_v61 = vadd.f32 %v580_v2, %v183_v53  ;;  %v255_v62 = vadd.f32 %v580_v2, %v184_v54  ;;  %v256_v63 = vadd.f32 %v580_v2, %v185_v55 }
  0x6b   :  { %v315_v0 = vmax.f32 %v251_v56, 0.0  ;;  %v316_v3 = vmax.f32 %v252_v57, 0.0  ;;  %v317_v4 = vmax.f32 %v253_v58, 0.0  ;;  %378 = vst [vmem:[#allocation8 + $0x1c0] sm:$0xff] %v314_v60 }
  0x6c   :  { %v257_v5 = vadd.f32 %v580_v2, %v186_v59  ;;  %v318_v6 = vmax.f32 %v254_v61, 0.0  ;;  %v319_v7 = vmax.f32 %v255_v62, 0.0  ;;  %v320_v8 = vmax.f32 %v256_v63, 0.0 }
  0x6d   :  { %379 = vst [vmem:[#allocation8 + $0x1c8] sm:$0xff] %v315_v0  ;;  %380 = vst [vmem:[#allocation8 + $0x1d0] sm:$0xff] %v316_v3 }
  0x6e   :  { %381 = vst [vmem:[#allocation8 + $0x1d8] sm:$0xff] %v317_v4  ;;  %v321_v1 = vmax.f32 %v257_v5, 0.0  ;;  %382 = vst [vmem:[#allocation8 + $0x1e0] sm:$0xff] %v318_v6 }
  0x6f   :  { %383 = vst [vmem:[#allocation8 + $0x1e8] sm:$0xff] %v319_v7  ;;  %384 = vst [vmem:[#allocation8 + $0x1f0] sm:$0xff] %v320_v8 }
  0x70   :  { %385 = vst [vmem:[#allocation8 + $0x1f8] sm:$0xff] %v321_v1 }
  0x71   :  { %489 = shalt.err (!%p486_p0)
}
  0x72   :  { %s490_s27 = scalar_lea.hbm %s728_s3, 8192 }
  0x73   :  { %p491_p1 = scmp.ne.s32.totalorder %s728_s3, %s490_s27  ;;  %p494_p2 = scmp.lt.u32.totalorder %s490_s27, %s728_s3 }
  0x75   :  { %p496_p3 = pnand %p494_p2, %p491_p1 }
  0x77   :  { %499 = shalt.err (!%p496_p3)
}
  0x78   :  { %397 = dma.vmem_to_hbm [thread:$0]  %s392_s23, 8192, %s728_s3, [#allocation4], %s508_s1, %s508_s1, %s509_s8  }
  0x79   :  { %504 = dma.done.wait [#allocation4], 8192  }
  0x7a   :  { %505 = vsyncadd [#allocation4], 4294959104 }
  0x7b   :  { %401 = vsyncpa [#allocation3], 1 }
  0x7c   :  { %402 = vsyncpa [#allocation6], 1 }
  0x7d   :  { %403 = vsyncpa [#allocation4], 1 }

// kernel: up_forward.6
= control target key start
LH: loop header
LB: loop body
LE: loop exit
PB: predicated region body
PF: predicated region fallthrough
CT: control target
= control target key end

     0   :  { %s8002_s0 = inlined_call_operand.hbm [shape: f32[2,18,18,128], index: 0, kind: input, shape index: {}, may-alias: {0,1,2}]   ;;  %s8003_s1 = inlined_call_operand.hbm [shape: f32[2,18,18,128], index: 1, kind: input, shape index: {}, may-alias: {0,1,2}]   ;;  %s8004_s2 = inlined_call_operand.hbm [shape: f32[2,18,18,128], index: 2, kind: input, shape index: {}, may-alias: {0,1,2}]   ;;  %s8005_s3 = inlined_call_operand.hbm [shape: f32[1,128], index: 3, kind: input, shape index: {}]   ;;  %s8006_s4 = inlined_call_operand.hbm [shape: f32[1,128], index: 4, kind: input, shape index: {}]   ;;  %s8007_s5 = inlined_call_operand.hbm [shape: f32[1152,128], index: 5, kind: input, shape index: {}]   ;;  %s8008_s6 = inlined_call_operand.hbm [shape: f32[1,128], index: 6, kind: input, shape index: {}]   ;;  %s8009_s7 = inlined_call_operand.hbm [shape: f32[2,16,16,128], index: 7, kind: output, shape index: {0}]   ;;  %s8010_s8 = inlined_call_operand.hbm [shape: f32[2,1,2,128], index: 8, kind: output, shape index: {1}]  }
   0x1   :  { %8072 = sst [smem:[#allocation53_spill]] %s8003_s1 }
   0x2   :  { %8073 = sst [smem:[#allocation54_spill]] %s8005_s3 }
   0x3   :  { %8074 = sst [smem:[#allocation55_spill]] %s8007_s5 }
   0x4   :  { %8075 = sst [smem:[#allocation56_spill]] %s8009_s7 }
   0x5   :  { %8076 = sst [smem:[#allocation57_spill]] %s8010_s8 }
   0x6   :  { %14 = vsyncpa [#allocation4], 0 }
   0x7   :  { %16 = vsyncpa [#allocation4 + $0x1], 0 }
   0x8   :  { %17 = vsyncpa [#allocation7], 0 }
   0x9   :  { %19 = vsyncpa [#allocation7 + $0x1], 0 }
   0xa   :  { %20 = vsyncpa [#allocation10], 0 }
   0xb   :  { %21 = vsyncpa [#allocation13], 0 }
   0xc   :  { %22 = vsyncpa [#allocation5], 0 }
   0xd   :  { %24 = vsyncpa [#allocation5 + $0x1], 0 }
   0xe   :  { %25 = vsyncpa [#allocation17], 0 }
   0xf   :  { %27 = vsyncpa [#allocation17 + $0x1], 0  ;;  %s6628_s27 = smov 0   ;;  %s6630_s28 = smov 0  }
  0x10   :  { %s6632_s29 = smov 0   ;;  %s6634_s30 = smov 0  }
  0x11   :  { %s6636_s9 = smov 0   ;;  %s6638_s10 = smov 0  }
  0x12 LB: > { %8077 = sst [smem:[#allocation24_spill]] %s6547_s27  ;;  %s6659_s11 = sadd.s32 4294967295, %s6567_s10   ;;  %s6567_s10 = sphi %s6638_s10, %s33_s10   ;;  %s6563_s9 = sphi %s6636_s9, %s8169_s9   ;;  %s6559_s30 = sphi %s6634_s30, %s8168_s30   ;;  %s6555_s29 = sphi %s6632_s29, %s8167_s29   ;;  %s6551_s28 = sphi %s6630_s28, %s8171_s28   ;;  %s6547_s27 = sphi %s6628_s27, %s8170_s27  }
  0x13   : > { %8078 = sst [smem:[#allocation25_spill]] %s6555_s29  ;;  %s4305_s12 = sadd.s32 4294967294, %s6567_s10  }
  0x14   : > { %8079 = sst [smem:[#allocation26_spill]] %s6563_s9  ;;  %p67_p0 = scmp.ne.s32.totalorder %s6551_s28, %s6547_s27 }
  0x15   : > { %8080 = sst [smem:[#allocation27_spill]] %s6567_s10  ;;  %p8011_p1 = scmp.eq.s32.totalorder %s6659_s11, 0 }
  0x16   : > { %p249_p3 = scmp.eq.s32.totalorder %s4305_s12, 1  ;;  %p4306_p5 = scmp.ge.s32.totalorder %s6567_s10, 1 }
  0x17   : > { %p6668_p4 = por %p8011_p1, %p67_p0  ;;  %p284_p7 = scmp.lt.s32.totalorder %s6567_s10, 3 }
  0x18   : > { %p6673_p6 = por %p249_p3, %p67_p0  ;;  %s6569_s16 = smov [#allocation9]  }
  0x19   : > { %s8081_s13 = scalar_select %p6668_p4, 1, 0 }
  0x1a   : > { %s8082_s14 = scalar_select %p6673_p6, 1, 0 }
  0x1b   : > { %p6678_p8 = pnand %p4306_p5, %p284_p7  ;;  %s297_s17 = sshll.u32 %s6569_s16, 4  ;;  %s298_s17 = int_to_ptr.vmem [resolvable:$true] %s297_s17 }
  0x1c   : > { %8083 = sst [smem:[#allocation28_spill]] %s8082_s14  ;;  %s6570_s18 = smov [#allocation12]  }
  0x1d   : > { %s8084_s15 = scalar_select %p6678_p8, 1, 0 }
  0x1e   : > { %p6109_p10 = pneg %p6678_p8  ;;  %s318_s19 = sshll.u32 %s6570_s18, 4  ;;  %s6691_s19 = int_to_ptr.vmem [resolvable:$true] %s318_s19 }
  0x1f   : > { %s8086_s3 = sld [smem:[#allocation54_spill]] }
  0x20   : > { %p6687_p11 = pnand %p6109_p10, %p8011_p1 }
  0x22   : > { %s8085_s20 = scalar_select %p6687_p11, 1, 0 }
  0x23   : > { %p6701_p13 = pneg %p6687_p11 }
  0x25   : > { %s6237_s23 = scalar_lea.hbm %s8086_s3, 16 }
  0x26   : > { %p6238_p12 = scmp.ne.s32.totalorder %s8086_s3, %s6237_s23  ;;  %p6244_p5 = scmp.lt.u32.totalorder %s6237_s23, %s8086_s3 }
  0x27   : > { %s8087_s26 = scalar_select %p6701_p13, 1, 0 }
  0x28   : > { %p6240_p0 = pnand %p6701_p13, %p6238_p12 }
  0x2a   : > { %p6241_p3 = pneg %p6240_p0 }
  0x2c   : > { %p6246_p7 = pnand %p6244_p5, %p6241_p3 }
  0x2e   : > { %6249 = shalt.err (!%p6246_p7)
}
  0x2f   : > { %s6250_s18 = scalar_lea.vmem %s298_s17, 16  ;;  %s6257_s21 = scalar_lea.vmem %s298_s17, 32 }
  0x30   : > { %p6251_p10 = scmp.ne.s32.totalorder %s298_s17, %s6250_s18  ;;  %p6258_p2 = scmp.lt.s32.totalorder %s298_s17, %s298_s17 }
  0x31   : > { %p6259_p6 = scmp.lt.s32.totalorder %s6257_s21, %s6250_s18 }
  0x32   : > { %p6253_p9 = pnand %p6251_p10, %p6701_p13 }
  0x33   : > { %p6260_p4 = por %p6259_p6, %p6258_p2 }
  0x34   : > { %p6254_p1 = pneg %p6253_p9 }
  0x36   : > { %p6261_p8 = pnand %p6260_p4, %p6254_p1 }
  0x38   : > { %6264 = shalt.err (!%p6261_p8)
}
  0x39   : > { %6112 = dma.hbm_to_vmem [thread:$0]  (!%p6687_p11), %s8086_s3, 16, %s298_s17, [#allocation10]  }
  0x3a   : > { %s8088_s5 = sld [smem:[#allocation55_spill]] }
  0x40   : > { %s6265_s12 = scalar_lea.hbm %s8088_s5, 18432 }
  0x41   : > { %p6266_p9 = scmp.ne.s32.totalorder %s8088_s5, %s6265_s12  ;;  %p6272_p1 = scmp.lt.u32.totalorder %s6265_s12, %s8088_s5 }
  0x43   : > { %p6268_p12 = pnand %p6266_p9, %p6701_p13 }
  0x45   : > { %p6269_p2 = pneg %p6268_p12 }
  0x47   : > { %p6274_p4 = pnand %p6272_p1, %p6269_p2 }
  0x49   : > { %6277 = shalt.err (!%p6274_p4)
}
  0x4a   : > { %s6278_s17 = scalar_lea.vmem %s6691_s19, 18432  ;;  %p6286_p3 = scmp.lt.s32.totalorder %s6691_s19, %s6691_s19 }
  0x4b   : > { %p6279_p6 = scmp.ne.s32.totalorder %s6691_s19, %s6278_s17  ;;  %p6287_p5 = scmp.lt.s32.totalorder %s6278_s17, %s6278_s17 }
  0x4d   : > { %p6281_p8 = pnand %p6279_p6, %p6701_p13  ;;  %p6288_p7 = por %p6287_p5, %p6286_p3 }
  0x4f   : > { %p6282_p0 = pneg %p6281_p8 }
  0x51   : > { %p6289_p10 = pnand %p6288_p7, %p6282_p0 }
  0x53   : > { %6292 = shalt.err (!%p6289_p10)
}
  0x54   : > { %s8015_s14 = smov 128   ;;  %s8017_s22 = smov 8  }
  0x55   : > { %6118 = dma.hbm_to_vmem [thread:$0]  (!%p6687_p11), %s8088_s5, 18432, %s6691_s19, [#allocation13], %s8015_s14, %s8015_s14, %s8017_s22  }
  0x56   : > { %s45_s25 = sadd.s32 1, %s6563_s9  ;;  %s54_s12 = sadd.s32 1, %s6555_s29 }
  0x57   : > { %p47_p9 = scmp.ge.s32.totalorder %s45_s25, 2  ;;  %p61_p12 = scmp.ne.s32.totalorder %s6555_s29, %s6551_s28 }
  0x58   : > { %p62_p2 = scmp.eq.s32.totalorder %s6567_s10, 0  ;;  %p6143_p1 = scmp.lt.s32.totalorder %s6567_s10, 2 }
  0x59   : > { %s8173_s25 = smov (%p47_p9, %s45_s25), 0  ;;  %p8090_p6 = scmp.eq.s32.totalorder %s6659_s11, 1 }
  0x5a   : > { %8089 = sst [smem:[#allocation29_spill]] %s8173_s25  ;;  %p63_p4 = por %p62_p2, %p61_p12 }
  0x5b   : > { %p6753_p8 = por %p8090_p6, %p61_p12  ;;  %s49_s18 = ssub.s32 %s6563_s9, %s8173_s25 }
  0x5c   : > { %s6760_s21 = sand.u32 1, %s6555_s29   ;;  %p52_p0 = scmp.eq.s32.totalorder %s49_s18, 0 }
  0x5d   : > { %s8091_s16 = scalar_select %p6753_p8, 1, 0 }
  0x5e   : > { %s6763_s19 = smul.u32 6912, %s6563_s9  ;;  %p6765_p3 = pnand %p6143_p1, %p63_p4 }
  0x5f   : > { %s375_s24 = sand.u32 1, %s6567_s10   ;;  %s8023_s14 = smul.u32 24, %s6760_s21 }
  0x60   : > { %s8092_s17 = scalar_select %p6765_p3, 1, 0 }
  0x61   : > { %s6771_s23 = scalar_select %p52_p0, %s6555_s29, %s54_s12  }
  0x62   : > { %s8094_s1 = sld [smem:[#allocation53_spill]]  ;;  %s6573_s18 = smov [#allocation11]  }
  0x63   : > { %8093 = sst [smem:[#allocation30_spill]] %s6771_s23  ;;  %s308_s9 = sshll.u32 %s6573_s18, 4  ;;  %s6782_s9 = int_to_ptr.vmem [resolvable:$true] %s308_s9 }
  0x64   : > { %s379_s27 = scalar_lea.vmem [#allocation6], %s8023_s14  ;;  %s6786_s12 = scalar_lea.sflag [#allocation7], %s375_s24 }
  0x65   : > { %s390_s8 = sshll.u32 %s379_s27, 4  ;;  %p6791_p7 = pneg %p6765_p3  ;;  %s6784_s8 = int_to_ptr.vmem [resolvable:$true] %s390_s8 }
  0x67   : > { %s8095_s3 = scalar_select %p6791_p7, 1, 0 }
  0x68   : > { %s4153_s5 = scalar_lea.hbm %s8094_s1, %s6763_s19  ;;  %s6298_s27 = scalar_lea.hbm %s8094_s1, 13824 }
  0x69   : > { %s6778_s25 = scalar_lea.hbm %s4153_s5, 6144  ;;  %s6323_s23 = scalar_lea.hbm %s4153_s5, 6528 }
  0x6a   : > { %p6294_p5 = scmp.ne.s32.totalorder %s6778_s25, %s6323_s23  ;;  %p6299_p12 = scmp.lt.u32.totalorder %s6778_s25, %s8094_s1 }
  0x6b   : > { %p6300_p2 = scmp.lt.u32.totalorder %s6298_s27, %s6323_s23  ;;  %p6302_p4 = scmp.lt.u32.totalorder %s6323_s23, %s6778_s25 }
  0x6c   : > { %p6296_p10 = pnand %p6791_p7, %p6294_p5 }
  0x6d   : > { %p6301_p1 = por %p6300_p2, %p6299_p12 }
  0x6e   : > { %p6297_p9 = pneg %p6296_p10 }
  0x6f   : > { %p6303_p6 = por %p6302_p4, %p6301_p1 }
  0x71   : > { %p6304_p0 = pnand %p6303_p6, %p6297_p9 }
  0x73   : > { %6307 = shalt.err (!%p6304_p0)
}
  0x74   : > { %s6308_s5 = scalar_lea.vmem %s6784_s8, 384  ;;  %s6574_s24 = smov [#allocation6]  }
  0x75   : > { %p6309_p5 = scmp.ne.s32.totalorder %s6784_s8, %s6308_s5  ;;  %s6313_s22 = sshll.u32 %s6574_s24, 4  ;;  %s6314_s22 = int_to_ptr.vmem [resolvable:$false] %s6313_s22 }
  0x76   : > { %s6315_s29 = scalar_lea.vmem %s6314_s22, 768  ;;  %p6316_p11 = scmp.lt.s32.totalorder %s6784_s8, %s6314_s22 }
  0x77   : > { %p6311_p10 = pnand %p6309_p5, %p6791_p7  ;;  %p6317_p13 = scmp.lt.s32.totalorder %s6315_s29, %s6308_s5 }
  0x79   : > { %p6312_p8 = pneg %p6311_p10  ;;  %p6318_p12 = por %p6317_p13, %p6316_p11 }
  0x7b   : > { %p6319_p2 = pnand %p6318_p12, %p6312_p8 }
  0x7d   : > { %6322 = shalt.err (!%p6319_p2)
}
  0x7e   : > { %s8096_s14 = smov 8   ;;  %s8097_s23 = smov 128  }
  0x7f   : > { %6128 = dma.hbm_to_vmem [thread:$0]  (!%p6765_p3), %s6778_s25, 384, %s6784_s8, %s6786_s12, %s8097_s23, %s8097_s23, %s8096_s14  }
  0x80   : > { %s6324_s24 = scalar_lea.hbm %s8006_s4, 16  ;;  %p8098_p13 = scmp.ne.s32.totalorder %s8087_s26, 0 }
  0x81   : > { %p6325_p11 = scmp.ne.s32.totalorder %s8006_s4, %s6324_s24  ;;  %p6331_p1 = scmp.lt.u32.totalorder %s6324_s24, %s8006_s4 }
  0x83   : > { %p6327_p8 = pnand %p6325_p11, %p8098_p13 }
  0x85   : > { %p6328_p9 = pneg %p6327_p8 }
  0x87   : > { %p6333_p4 = pnand %p6331_p1, %p6328_p9 }
  0x89   : > { %6336 = shalt.err (!%p6333_p4)
}
  0x8a   : > { %s6337_s8 = scalar_lea.vmem %s6782_s9, 16  ;;  %s6344_s1 = scalar_lea.vmem %s6782_s9, 32 }
  0x8b   : > { %p6338_p6 = scmp.ne.s32.totalorder %s6782_s9, %s6337_s8  ;;  %p6345_p10 = scmp.lt.s32.totalorder %s6782_s9, %s6782_s9 }
  0x8c   : > { %p6346_p12 = scmp.lt.s32.totalorder %s6344_s1, %s6337_s8 }
  0x8d   : > { %p6340_p0 = pnand %p6338_p6, %p8098_p13 }
  0x8e   : > { %p6347_p2 = por %p6346_p12, %p6345_p10 }
  0x8f   : > { %p6341_p5 = pneg %p6340_p0 }
  0x91   : > { %p6348_p11 = pnand %p6347_p2, %p6341_p5 }
  0x93   : > { %6351 = shalt.err (!%p6348_p11)
}
  0x94   : > { %p8099_p8 = scmp.ne.s32.totalorder %s8085_s20, 0  ;;  %s6575_s27 = smov [#allocation14]  }
  0x95   : > { %s332_s24 = sshll.u32 %s6575_s27, 4  ;;  %s6077_s22 = smul.u32 384, %s6760_s21  ;;  %s333_s24 = int_to_ptr.vmem [resolvable:$true] %s332_s24 }
  0x96   : > { %6115 = dma.hbm_to_vmem [thread:$0]  (!%p8099_p8), %s8006_s4, 16, %s6782_s9, [#allocation10]  }
  0x97   : > { %s6352_s8 = scalar_lea.hbm %s8008_s6, 16 }
  0x98   : > { %p6353_p9 = scmp.ne.s32.totalorder %s8008_s6, %s6352_s8  ;;  %p6359_p6 = scmp.lt.u32.totalorder %s6352_s8, %s8008_s6 }
  0x9a   : > { %p6355_p1 = pnand %p6353_p9, %p8098_p13 }
  0x9c   : > { %p6356_p4 = pneg %p6355_p1 }
  0x9e   : > { %p6361_p0 = pnand %p6359_p6, %p6356_p4 }
  0xa0   : > { %6364 = shalt.err (!%p6361_p0)
}
  0xa1   : > { %s6365_s9 = scalar_lea.vmem %s333_s24, 16  ;;  %s6372_s18 = scalar_lea.vmem %s333_s24, 32 }
  0xa2   : > { %p6366_p5 = scmp.ne.s32.totalorder %s333_s24, %s6365_s9  ;;  %p6373_p2 = scmp.lt.s32.totalorder %s333_s24, %s333_s24 }
  0xa3   : > { %p6374_p11 = scmp.lt.s32.totalorder %s6372_s18, %s6365_s9 }
  0xa4   : > { %p6368_p10 = pnand %p6366_p5, %p8098_p13 }
  0xa5   : > { %p6375_p3 = por %p6374_p11, %p6373_p2 }
  0xa6   : > { %p6369_p12 = pneg %p6368_p10 }
  0xa8   : > { %p6376_p7 = pnand %p6375_p3, %p6369_p12 }
  0xaa   : > { %6379 = shalt.err (!%p6376_p7)
}
  0xab   : > { %6121 = dma.hbm_to_vmem [thread:$0]  (!%p8099_p8), %s8008_s6, 16, %s333_s24, [#allocation13]  }
  0xac   : > { %s6865_s5 = scalar_lea.hbm %s8002_s0, %s6763_s19  ;;  %s347_s29 = scalar_lea.vmem [#allocation3], %s6077_s22 }
  0xad   : > { %s365_s8 = sshll.u32 %s347_s29, 4  ;;  %s6873_s25 = scalar_lea.hbm %s8004_s2, %s6763_s19  ;;  %s6867_s8 = int_to_ptr.vmem [resolvable:$true] %s365_s8 }
  0xae   : > { %s344_s9 = scalar_lea.sflag [#allocation4], %s6760_s21  ;;  %s6380_s24 = scalar_lea.hbm %s6865_s5, 6144 }
  0xaf   : > { %p6381_p3 = scmp.ne.s32.totalorder %s6865_s5, %s6380_s24  ;;  %p8100_p7 = scmp.ne.s32.totalorder %s8095_s3, 0 }
  0xb0   : > { %s6385_s27 = scalar_lea.hbm %s8002_s0, 13824  ;;  %p6386_p9 = scmp.lt.u32.totalorder %s6865_s5, %s8002_s0 }
  0xb1   : > { %p6383_p13 = pnand %p6381_p3, %p8100_p7  ;;  %p6387_p1 = scmp.lt.u32.totalorder %s6385_s27, %s6380_s24 }
  0xb2   : > { %p6389_p6 = scmp.lt.u32.totalorder %s6380_s24, %s6865_s5 }
  0xb3   : > { %p6384_p8 = pneg %p6383_p13  ;;  %p6388_p4 = por %p6387_p1, %p6386_p9 }
  0xb5   : > { %p6390_p0 = por %p6389_p6, %p6388_p4 }
  0xb7   : > { %p6391_p5 = pnand %p6390_p0, %p6384_p8 }
  0xb9   : > { %6394 = shalt.err (!%p6391_p5)
}
  0xba   : > { %s6395_s19 = scalar_lea.vmem %s6867_s8, 6144  ;;  %s6576_s26 = smov [#allocation3]  }
  0xbb   : > { %p6396_p10 = scmp.ne.s32.totalorder %s6867_s8, %s6395_s19  ;;  %s6400_s29 = sshll.u32 %s6576_s26, 4  ;;  %s6401_s29 = int_to_ptr.vmem [resolvable:$false] %s6400_s29 }
  0xbc   : > { %s6402_s20 = scalar_lea.vmem %s6401_s29, 12288  ;;  %p6403_p11 = scmp.lt.s32.totalorder %s6867_s8, %s6401_s29 }
  0xbd   : > { %p6398_p12 = pnand %p6396_p10, %p8100_p7  ;;  %p6404_p3 = scmp.lt.s32.totalorder %s6402_s20, %s6395_s19 }
  0xbf   : > { %p6399_p2 = pneg %p6398_p12  ;;  %p6405_p13 = por %p6404_p3, %p6403_p11 }
  0xc1   : > { %p6406_p9 = pnand %p6405_p13, %p6399_p2 }
  0xc3   : > { %6409 = shalt.err (!%p6406_p9)
}
  0xc4   : > { %p8101_p8 = scmp.ne.s32.totalorder %s8092_s17, 0  ;;  %s6903_s1 = scalar_lea.hbm %s6873_s25, 6528 }
  0xc5   : > { %s8102_s24 = smul.u32 24, %s6760_s21  ;;  %s6440_s27 = scalar_lea.hbm %s6873_s25, 6912 }
  0xc6   : > { %6125 = dma.hbm_to_vmem [thread:$0]  (!%p8101_p8), %s6865_s5, 6144, %s6867_s8, %s344_s9, %s8097_s23, %s8097_s23, %s8096_s14  }
  0xc7   : > { %s404_s18 = scalar_lea.vmem [#allocation8], %s8102_s24  ;;  %p6411_p1 = scmp.ne.s32.totalorder %s6903_s1, %s6440_s27 }
  0xc8   : > { %s416_s10 = sshll.u32 %s404_s18, 4  ;;  %s6415_s19 = scalar_lea.hbm %s8004_s2, 13824  ;;  %s6907_s10 = int_to_ptr.vmem [resolvable:$true] %s416_s10 }
  0xc9   : > { %p6413_p4 = pnand %p6411_p1, %p8100_p7  ;;  %p6416_p0 = scmp.lt.u32.totalorder %s6903_s1, %s8004_s2 }
  0xca   : > { %p6417_p5 = scmp.lt.u32.totalorder %s6415_s19, %s6440_s27  ;;  %p6419_p12 = scmp.lt.u32.totalorder %s6440_s27, %s6903_s1 }
  0xcb   : > { %p6414_p6 = pneg %p6413_p4 }
  0xcc   : > { %p6418_p10 = por %p6417_p5, %p6416_p0 }
  0xce   : > { %p6420_p2 = por %p6419_p12, %p6418_p10 }
  0xd0   : > { %p6421_p11 = pnand %p6420_p2, %p6414_p6 }
  0xd2   : > { %6424 = shalt.err (!%p6421_p11)
}
  0xd3   : > { %s6425_s21 = scalar_lea.vmem %s6907_s10, 384  ;;  %s6577_s25 = smov [#allocation8]  }
  0xd4   : > { %p6426_p3 = scmp.ne.s32.totalorder %s6907_s10, %s6425_s21  ;;  %s6430_s9 = sshll.u32 %s6577_s25, 4  ;;  %s6431_s9 = int_to_ptr.vmem [resolvable:$false] %s6430_s9 }
  0xd5   : > { %s6432_s26 = scalar_lea.vmem %s6431_s9, 768  ;;  %p6433_p1 = scmp.lt.s32.totalorder %s6907_s10, %s6431_s9 }
  0xd6   : > { %p6428_p13 = pnand %p6426_p3, %p8100_p7  ;;  %p6434_p4 = scmp.lt.s32.totalorder %s6432_s26, %s6425_s21 }
  0xd8   : > { %p6429_p9 = pneg %p6428_p13  ;;  %p6435_p0 = por %p6434_p4, %p6433_p1 }
  0xda   : > { %p6436_p5 = pnand %p6435_p0, %p6429_p9 }
  0xdc   : > { %6439 = shalt.err (!%p6436_p5)
}
  0xdd   : > { %6131 = dma.hbm_to_vmem [thread:$0]  (!%p8101_p8), %s6903_s1, 384, %s6907_s10, %s6786_s12, %s8097_s23, %s8097_s23, %s8096_s14  }
  0xde   : > { %p8103_p7 = scmp.ne.s32.totalorder %s8084_s15, 0 }
  0xe0   : > { %428 = sbr.rel (%p8103_p7) target bundleno = 825 (0x339), region = 48 }
  0xe7   : > { %s6937_s3 = sand.u32 1, %s6551_s28   ;;  %p8104_p6 = scmp.ne.s32.totalorder %s8081_s13, 0 }
  0xe8   : > { %s6081_s29 = smul.u32 384, %s6937_s3  ;;  %s431_s20 = scalar_lea.sflag [#allocation4], %s6937_s3 }
  0xea   : > { %s6941_s24 = scalar_lea.vmem [#allocation3], %s6081_s29 }
  0xeb   : > { %6522 = dma.done.wait (%p8104_p6), %s431_s20, 6144  }
  0xec   : > { %6524 = vsyncadd (%p8104_p6), %s431_s20, 4294961152  ;;  %s439_s15 = sand.u32 1, %s6659_s11   ;;  %s6082_s17 = smul.u32 24, %s6937_s3 }
  0xed   : > { %s440_s12 = scalar_lea.sflag [#allocation7], %s439_s15 }
  0xee   : > { %s6949_s14 = scalar_lea.vmem [#allocation6], %s6082_s17 }
  0xef   : > { %6526 = dma.done.wait (%p8104_p6), %s440_s12, 768  }
  0xf0   : > { %6528 = vsyncadd (%p8104_p6), %s440_s12, 4294966528  ;;  %p8105_p8 = scmp.eq.s32.totalorder %s6659_s11, 0 }
  0xf2   : > { %6530 = dma.done.wait (%p8105_p8), [#allocation10], 32   ;;  %p8106_p10 = pmov %p8105_p8 }
  0xf3   : > { %p8107_p12 = pmov %p8105_p8 }
  0xf4   : > { %6532 = vsyncadd (%p8106_p10), [#allocation10], 4294967264 }
  0xf5   : > { %6534 = dma.done.wait (%p8107_p12), [#allocation13], 18448   ;;  %p8108_p2 = pmov %p8105_p8 }
  0xf6   : > { %v6578_v0 = vmov 0.0   ;;  %v1203_v1 = vld [vmem:[#allocation12] sm:$0xff]  ;;  %v1204_v2 = vld [vmem:[#allocation12 + $0x8] sm:$0xff]  ;;  %v1205_v6 = vld [vmem:[#allocation12 + $0x10] sm:$0xff]  ;;  %v528_v8 = vlaneseq  ;;  %s4320_s11 = sshll.u32 %s6937_s3, 8  ;;  %s4332_s23 = sshll.u32 %s6559_s30, 12 }
  0xf7   : > { %6536 = vsyncadd (%p8108_p2), [#allocation13], 4294948848  ;;  %1107 = vst [vmem:[#allocation2] sm:$0xff] %v6578_v0  ;;  %4797 = vmatprep.mubr.f32.mxu1 %v6578_v0  ;;  %v2424_v3 = vld [vmem:[#allocation12 + $0x200] sm:$0xff]  ;;  %v5485_v4 = vpack.c.bf16 %v1204_v2, %v1203_v1  ;;  %v2425_v5 = vld [vmem:[#allocation12 + $0x208] sm:$0xff]  ;;  %s7846_s13 = scalar_lea.vmem [#allocation15], %s4320_s11 }
  0xf8   : > { %1108 = vst [vmem:[#allocation2 + $0x8] sm:$0xff] %v6578_v0  ;;  %1109 = vst [vmem:[#allocation2 + $0x10] sm:$0x3] %v6578_v0  ;;  %v1206_v7 = vld [vmem:[#allocation12 + $0x18] sm:$0xff]  ;;  %v6970_v9 = vpack.c.bf16 %v2425_v5, %v2424_v3  ;;  %v2426_v11 = vld [vmem:[#allocation12 + $0x210] sm:$0xff]  ;;  %v6976_v19 = vshrl.u32 %v528_v8, 7 }
  0xf9   : > { %1160 = vst [vmem:[#allocation2 + $0x198] sm:$0xff] %v6578_v0  ;;  %1161 = vst [vmem:[#allocation2 + $0x1a0] sm:$0xff] %v6578_v0  ;;  %v5489_v10 = vpack.c.bf16 %v1206_v7, %v1205_v6  ;;  %v2427_v12 = vld [vmem:[#allocation12 + $0x218] sm:$0xff]  ;;  %v1207_v13 = vld [vmem:[#allocation12 + $0x20] sm:$0xff]  ;;  %5486 = vmatprep.subr.bf16.mxu1 %v5485_v4  ;;  %s4080_s1 = sshll.u32 %s7846_s13, 4  ;;  %s8156_s27 = sld [smem:[#allocation56_spill]]  ;;  %s7920_s1 = int_to_ptr.vmem [resolvable:$true] %s4080_s1 }
  0xfa   : > { %1162 = vst [vmem:[#allocation2 + $0x1a8] sm:$0x3] %v6578_v0  ;;  %8109 = vst [vmem:[#allocation31_spill] sm:$0xff] %v6970_v9  ;;  %v6972_v14 = vpack.c.bf16 %v2427_v12, %v2426_v11  ;;  %v1208_v15 = vld [vmem:[#allocation12 + $0x28] sm:$0xff]  ;;  %v2428_v16 = vld [vmem:[#allocation12 + $0x220] sm:$0xff]  ;;  %5614 = vmatprep.subr.bf16.mxu0 %v6970_v9  ;;  %5488 = vmatpush3.bf16.msra.mxu1 %v5485_v4  ;;  %v6983_v28 = vadd.s32 16, %v6976_v19 }
  0xfb   : > { %v2429_v17 = vld [vmem:[#allocation12 + $0x228] sm:$0xff]  ;;  %5616 = vmatpush3.bf16.msra.mxu0 %v6970_v9  ;;  %5490 = vmatprep.subr.bf16.mxu1 %v5489_v10  ;;  %v5493_v18 = vpack.c.bf16 %v1208_v15, %v1207_v13  ;;  %v1209_v21 = vld [vmem:[#allocation12 + $0x30] sm:$0xff]  ;;  %v1210_v22 = vld [vmem:[#allocation12 + $0x38] sm:$0xff]  ;;  %vm532_vm0 = vcmp.ge.s32.totalorder %v6976_v19, 1  ;;  %s4059_s19 = scalar_lea.sflag [#allocation5], %s6937_s3  ;;  %s6441_s5 = scalar_lea.vmem %s7920_s1, 4096 }
  0xfc   : > { %8110 = vst [vmem:[#allocation32_spill] sm:$0xff] %v6972_v14  ;;  %5618 = vmatprep.subr.bf16.mxu0 %v6972_v14  ;;  %v6979_v20 = vpack.c.bf16 %v2429_v17, %v2428_v16  ;;  %v2430_v23 = vld [vmem:[#allocation12 + $0x230] sm:$0xff]  ;;  %v2431_v24 = vld [vmem:[#allocation12 + $0x238] sm:$0xff]  ;;  %v5497_v25 = vpack.c.bf16 %v1210_v22, %v1209_v21  ;;  %v1211_v26 = vld [vmem:[#allocation12 + $0x40] sm:$0xff]  ;;  %vm537_vm1 = vcmp.le.s32.totalorder %v6983_v28, 16  ;;  %p6442_p11 = scmp.ne.s32.totalorder %s7920_s1, %s6441_s5  ;;  %p8158_p3 = scmp.ne.s32.totalorder %s8091_s16, 0 }
  0xfd   : > { %v1212_v27 = vld [vmem:[#allocation12 + $0x48] sm:$0xff]  ;;  %v6986_v29 = vpack.c.bf16 %v2431_v24, %v2430_v23  ;;  %v2432_v30 = vld [vmem:[#allocation12 + $0x240] sm:$0xff]  ;;  %v544_v32 = vld [vmem:[%s6941_s24 + $0x18] sm:$0xff]  ;;  %s6579_s8 = smov [#allocation15]  }
  0xfe   : > { %8111 = vst [vmem:[#allocation33_spill] sm:$0xff] %v6979_v20  ;;  %5492 = vmatpush3.bf16.msra.mxu1 %v5489_v10  ;;  %v2433_v31 = vld [vmem:[#allocation12 + $0x248] sm:$0xff]  ;;  %v545_v33 = vld [vmem:[%s6941_s24 + $0x20] sm:$0xff]  ;;  %v1213_v36 = vld [vmem:[#allocation12 + $0x50] sm:$0xff]  ;;  %v5501_v41 = vpack.c.bf16 %v1212_v27, %v1211_v26  ;;  %p6443_p13 = pnand %p6442_p11, %p8158_p3  ;;  %s6445_s21 = sshll.u32 %s6579_s8, 4  ;;  %s6446_s21 = int_to_ptr.vmem [resolvable:$false] %s6445_s21 }
  0xff   : > { %5620 = vmatpush3.bf16.msra.mxu0 %v6972_v14  ;;  %5494 = vmatprep.subr.bf16.mxu1 %v5493_v18  ;;  %8112 = vst [vmem:[#allocation34_spill] sm:$0xff] %v6986_v29  ;;  %v6990_v34 = vld [vmem:[#allocation9] ss:$0 sm:$0xff]  ;;  %v6992_v35 = vld [vmem:[#allocation11] ss:$0 sm:$0xff]  ;;  %v2434_v42 = vld [vmem:[#allocation12 + $0x250] sm:$0xff]  ;;  %v7003_v46 = vpack.c.bf16 %v2433_v31, %v2432_v30  ;;  %s8157_s7 = smov %s8156_s27  ;;  %s7918_s22 = scalar_lea.hbm %s8156_s27, %s4332_s23 }
 0x100   : > { %5622 = vmatprep.subr.bf16.mxu0 %v6979_v20  ;;  %v1214_v37 = vld [vmem:[#allocation12 + $0x58] sm:$0xff]  ;;  %v780_v38 = vmul.f32 %v6990_v34, %v544_v32  ;;  %v781_v39 = vmul.f32 %v6990_v34, %v545_v33  ;;  %v546_v40 = vld [vmem:[%s6941_s24 + $0x28] sm:$0x3]  ;;  %v547_v45 = vld [vmem:[%s6941_s24 + $0x30] sm:$0xff]  ;;  %p6444_p9 = pneg %p6443_p13  ;;  %s6447_s25 = scalar_lea.vmem %s6446_s21, 8192 }
 0x101   : > { %v2435_v43 = vld [vmem:[#allocation12 + $0x258] sm:$0xff]  ;;  %v782_v44 = vmul.f32 %v6990_v34, %v546_v40  ;;  %8113 = vst [vmem:[#allocation35_spill] sm:$0xff] %v7003_v46  ;;  %v1215_v47 = vld [vmem:[#allocation12 + $0x60] sm:$0xff]  ;;  %v783_v51 = vmul.f32 %v6990_v34, %v547_v45  ;;  %v7014_v53 = vpack.c.bf16 %v1214_v37, %v1213_v36  ;;  %v1216_v54 = vld [vmem:[#allocation12 + $0x68] sm:$0xff]  ;;  %p6448_p1 = scmp.lt.s32.totalorder %s7920_s1, %s6446_s21  ;;  %p6449_p4 = scmp.lt.s32.totalorder %s6447_s25, %s6441_s5 }
 0x102   : > { %5496 = vmatpush3.bf16.msra.mxu1 %v5493_v18  ;;  %v7006_v48 = vadd.f32 %v6992_v35, %v780_v38  ;;  %v7009_v49 = vadd.f32 %v6992_v35, %v781_v39  ;;  %v548_v50 = vld [vmem:[%s6941_s24 + $0x38] sm:$0xff]  ;;  %v549_v52 = vld [vmem:[%s6941_s24 + $0x40] sm:$0x3]  ;;  %v550_v58 = vld [vmem:[%s6941_s24 + $0x48] sm:$0xff]  ;;  %v7021_v60 = vpack.c.bf16 %v2435_v43, %v2434_v42  ;;  %v7036_v8 = vpack.c.bf16 %v1216_v54, %v1215_v47 }
 0x103   : > { %5624 = vmatpush3.bf16.msra.mxu0 %v6979_v20  ;;  %5498 = vmatprep.subr.bf16.mxu1 %v5497_v25  ;;  %v836_v55 = vadd.f32 %v6992_v35, %v782_v44  ;;  %v784_v56 = vmul.f32 %v6990_v34, %v548_v50  ;;  %v785_v57 = vmul.f32 %v6990_v34, %v549_v52  ;;  %v551_v59 = vld [vmem:[%s6941_s24 + $0x50] sm:$0xff]  ;;  %v2436_v1 = vld [vmem:[#allocation12 + $0x260] sm:$0xff]  ;;  %v552_v7 = vld [vmem:[%s6941_s24 + $0x58] sm:$0x3]  ;;  %p6450_p0 = por %p6449_p4, %p6448_p1 }
 0x104   : > { %5626 = vmatprep.subr.bf16.mxu0 %v6986_v29  ;;  %8114 = vst [vmem:[#allocation36_spill] sm:$0xff] %v7021_v60  ;;  %v882_v61 = vmax.f32 %v7006_v48, 0.0  ;;  %v883_v62 = vmax.f32 %v7009_v49, 0.0  ;;  %v7026_v63 = vadd.f32 %v6992_v35, %v783_v51  ;;  %v2437_v2 = vld [vmem:[#allocation12 + $0x268] sm:$0xff]  ;;  %v786_v6 = vmul.f32 %v6990_v34, %v550_v58  ;;  %v1217_v10 = vld [vmem:[#allocation12 + $0x70] sm:$0xff]  ;;  %v553_v15 = vld [vmem:[%s6941_s24 + $0x60] sm:$0xff] }
 0x105   : > { %v884_v3 = vmax.f32 %v836_v55, 0.0  ;;  %v7030_v4 = vadd.f32 %v6992_v35, %v784_v56  ;;  %v839_v5 = vadd.f32 %v6992_v35, %v785_v57  ;;  %v787_v13 = vmul.f32 %v6990_v34, %v551_v59  ;;  %v554_v16 = vld [vmem:[%s6941_s24 + $0x68] sm:$0xff]  ;;  %v1218_v17 = vld [vmem:[#allocation12 + $0x78] sm:$0xff]  ;;  %v555_v24 = vld [vmem:[%s6941_s24 + $0x70] sm:$0x3]  ;;  %p6451_p5 = pnand %p6450_p0, %p6444_p9 }
 0x106   : > { %5500 = vmatpush3.bf16.msra.mxu1 %v5497_v25  ;;  %v1026_v11 = vsel %vm532_vm0, %v882_v61, 0.0  ;;  %1111 = vst [vmem:[#allocation2 + $0x20] sm:$0xff] %v883_v62  ;;  %v885_v12 = vmax.f32 %v7026_v63, 0.0  ;;  %v7052_v23 = vadd.f32 %v6992_v35, %v786_v6  ;;  %v7055_v25 = vpack.c.bf16 %v2437_v2, %v2436_v1  ;;  %v556_v31 = vld [vmem:[%s6941_s24 + $0x78] sm:$0xff]  ;;  %v557_v40 = vld [vmem:[%s6941_s24 + $0x80] sm:$0xff]  ;;  %v1509_v50 = vld [vmem:[#allocation12 + $0x88] sm:$0xff] }
 0x107   : > { %5628 = vmatpush3.bf16.msra.mxu0 %v6986_v29  ;;  %5502 = vmatprep.subr.bf16.mxu1 %v5501_v41  ;;  %1110 = vst [vmem:[#allocation2 + $0x18] sm:$0xff] %v1026_v11  ;;  %v1028_v18 = vsel %vm537_vm1, %v884_v3, 0.0  ;;  %v886_v21 = vmax.f32 %v7030_v4, 0.0  ;;  %v887_v22 = vmax.f32 %v839_v5, 0.0  ;;  %v7062_v27 = vadd.f32 %v6992_v35, %v787_v13  ;;  %v2438_v32 = vld [vmem:[#allocation12 + $0x270] sm:$0xff]  ;;  %v2439_v33 = vld [vmem:[#allocation12 + $0x278] sm:$0xff] }
 0x108   : > { %5630 = vmatprep.subr.bf16.mxu0 %v7003_v46  ;;  %8115 = vst [vmem:[#allocation37_spill] sm:$0xff] %v7055_v25  ;;  %1112 = vst [vmem:[#allocation2 + $0x28] sm:$0x3] %v1028_v18  ;;  %v1029_v26 = vsel %vm532_vm0, %v885_v12, 0.0  ;;  %v788_v30 = vmul.f32 %v6990_v34, %v552_v7  ;;  %v888_v37 = vmax.f32 %v7052_v23, 0.0  ;;  %v789_v38 = vmul.f32 %v6990_v34, %v553_v15  ;;  %v1508_v47 = vld [vmem:[#allocation12 + $0x80] sm:$0xff] }
 0x109   : > { %1113 = vst [vmem:[#allocation2 + $0x30] sm:$0xff] %v1029_v26  ;;  %1114 = vst [vmem:[#allocation2 + $0x38] sm:$0xff] %v886_v21  ;;  %v1031_v36 = vsel %vm537_vm1, %v887_v22, 0.0  ;;  %v790_v39 = vmul.f32 %v6990_v34, %v554_v16  ;;  %v889_v42 = vmax.f32 %v7062_v27, 0.0  ;;  %v791_v44 = vmul.f32 %v6990_v34, %v555_v24  ;;  %v558_v45 = vld [vmem:[%s6941_s24 + $0x88] sm:$0x3] }
 0x10a   : > { %5504 = vmatpush3.bf16.msra.mxu1 %v5501_v41  ;;  %v7077_v41 = vpack.c.bf16 %v1218_v17, %v1217_v10  ;;  %1115 = vst [vmem:[#allocation2 + $0x40] sm:$0x3] %v1031_v36  ;;  %v842_v43 = vadd.f32 %v6992_v35, %v788_v30  ;;  %v1032_v51 = vsel %vm532_vm0, %v888_v37, 0.0  ;;  %v7088_v52 = vadd.f32 %v6992_v35, %v789_v38  ;;  %v559_v1 = vld [vmem:[%s6941_s24 + $0x90] sm:$0xff]  ;;  %v560_v6 = vld [vmem:[%s6941_s24 + $0x98] sm:$0xff]  ;;  %v2729_v13 = vld [vmem:[#allocation12 + $0x280] sm:$0xff] }
 0x10b   : > { %5632 = vmatpush3.bf16.msra.mxu0 %v7003_v46  ;;  %5506 = vmatprep.subr.bf16.mxu1 %v7014_v53  ;;  %v7091_v54 = vadd.f32 %v6992_v35, %v790_v39  ;;  %v792_v55 = vmul.f32 %v6990_v34, %v556_v31  ;;  %v7095_v56 = vpack.c.bf16 %v2439_v33, %v2438_v32  ;;  %v561_v7 = vld [vmem:[%s6941_s24 + $0xa0] sm:$0x3]  ;;  %v2730_v15 = vld [vmem:[#allocation12 + $0x288] sm:$0xff]  ;;  %v3041_v28 = vld [vmem:[#allocation12 + $0x330] sm:$0xff] }
 0x10c   : > { %5634 = vmatprep.subr.bf16.mxu0 %v7021_v60  ;;  %1116 = vst [vmem:[#allocation2 + $0x48] sm:$0xff] %v1032_v51  ;;  %1117 = vst [vmem:[#allocation2 + $0x50] sm:$0xff] %v889_v42  ;;  %v890_v57 = vmax.f32 %v842_v43, 0.0  ;;  %v845_v58 = vadd.f32 %v6992_v35, %v791_v44  ;;  %v793_v59 = vmul.f32 %v6990_v34, %v557_v40  ;;  %v891_v2 = vmax.f32 %v7088_v52, 0.0  ;;  %v562_v31 = vld [vmem:[%s6941_s24 + $0xa8] sm:$0xff]  ;;  %v563_v32 = vld [vmem:[%s6941_s24 + $0xb0] sm:$0xff] }
 0x10d   : > { %8116 = vst [vmem:[#allocation38_spill] sm:$0xff] %v7095_v56  ;;  %v7107_v3 = vadd.f32 %v6992_v35, %v792_v55  ;;  %v794_v5 = vmul.f32 %v6990_v34, %v558_v45  ;;  %v7115_v11 = vpack.c.bf16 %v1509_v50, %v1508_v47  ;;  %v795_v30 = vmul.f32 %v6990_v34, %v559_v1  ;;  %v564_v40 = vld [vmem:[%s6941_s24 + $0xb8] sm:$0x3]  ;;  %v2732_v50 = vld [vmem:[#allocation12 + $0x298] sm:$0xff]  ;;  %v2738_v49 = vld [vmem:[#allocation12 + $0x2c8] sm:$0xff] }
 0x10e   : > { %5508 = vmatpush3.bf16.msra.mxu1 %v7014_v53  ;;  %v892_v53 = vmax.f32 %v7091_v54, 0.0  ;;  %v7113_v10 = vld [vmem:[#allocation2 + $0x19] sm:$0xff]  ;;  %v1034_v16 = vsel %vm537_vm1, %v890_v57, 0.0  ;;  %v893_v17 = vmax.f32 %v845_v58, 0.0  ;;  %v7120_v18 = vadd.f32 %v6992_v35, %v793_v59  ;;  %v2731_v47 = vld [vmem:[#allocation12 + $0x290] sm:$0xff]  ;;  %v565_v59 = vld [vmem:[%s6941_s24 + $0xc0] sm:$0xff] }
 0x10f   : > { %5636 = vmatpush3.bf16.msra.mxu0 %v7021_v60  ;;  %5510 = vmatprep.subr.bf16.mxu1 %v7036_v8  ;;  %1118 = vst [vmem:[#allocation2 + $0x58] sm:$0x3] %v1034_v16  ;;  %v1035_v22 = vsel %vm532_vm0, %v891_v2, 0.0  ;;  %v894_v24 = vmax.f32 %v7107_v3, 0.0  ;;  %v848_v26 = vadd.f32 %v6992_v35, %v794_v5  ;;  %v796_v38 = vmul.f32 %v6990_v34, %v560_v6  ;;  %v1510_v1 = vld [vmem:[#allocation12 + $0x90] sm:$0xff]  ;;  %v1511_v5 = vld [vmem:[#allocation12 + $0x98] sm:$0xff] }
 0x110   : > { %5638 = vmatprep.subr.bf16.mxu0 %v7055_v25  ;;  %5117 = vmatprep.mubr.f32.mxu0 %v7113_v10  ;;  %1120 = vst [vmem:[#allocation2 + $0x68] sm:$0xff] %v892_v53  ;;  %1119 = vst [vmem:[#allocation2 + $0x60] sm:$0xff] %v1035_v22  ;;  %v1037_v33 = vsel %vm537_vm1, %v893_v17, 0.0  ;;  %v8037_v36 = vmax.f32 %v7120_v18, 0.0  ;;  %v797_v39 = vmul.f32 %v6990_v34, %v561_v7  ;;  %v2733_v16 = vld [vmem:[#allocation12 + $0x2a0] sm:$0xff]  ;;  %v2734_v17 = vld [vmem:[#allocation12 + $0x2a8] sm:$0xff] }
 0x111   : > { %v7143_v43 = vpack.c.bf16 %v2730_v15, %v2729_v13  ;;  %1121 = vst [vmem:[#allocation2 + $0x70] sm:$0x3] %v1037_v33  ;;  %v896_v44 = vmax.f32 %v848_v26, 0.0  ;;  %v849_v45 = vadd.f32 %v6992_v35, %v795_v30  ;;  %v850_v51 = vadd.f32 %v6992_v35, %v796_v38  ;;  %v566_v15 = vld [vmem:[%s6941_s24 + $0xc8] sm:$0xff]  ;;  %v7172_v33 = vld [vmem:[#allocation2 + $0x21] sm:$0xff]  ;;  %v1519_v27 = vld [vmem:[#allocation12 + $0xd8] sm:$0xff] }
 0x112   : > { %5512 = vmatpush3.bf16.msra.mxu1 %v7036_v8  ;;  %v1038_v8 = vsel %vm532_vm0, %v894_v24, 0.0  ;;  %1123 = vst [vmem:[#allocation2 + $0x80] sm:$0xff] %v8037_v36  ;;  %v851_v55 = vadd.f32 %v6992_v35, %v797_v39  ;;  %v798_v57 = vmul.f32 %v6990_v34, %v562_v31  ;;  %v799_v58 = vmul.f32 %v6990_v34, %v563_v32  ;;  %v567_v32 = vld [vmem:[%s6941_s24 + $0xd0] sm:$0x3]  ;;  %v2736_v39 = vld [vmem:[#allocation12 + $0x2b8] sm:$0xff]  ;;  %v1520_v54 = vld [vmem:[#allocation12 + $0xe0] sm:$0xff] }
 0x113   : > { %5640 = vmatpush3.bf16.msra.mxu0 %v7055_v25  ;;  %5514 = vmatprep.subr.bf16.mxu1 %v7077_v41  ;;  %1122 = vst [vmem:[#allocation2 + $0x78] sm:$0xff] %v1038_v8  ;;  %v1040_v6 = vsel %vm537_vm1, %v896_v44, 0.0  ;;  %v7160_v7 = vmax.f32 %v849_v45, 0.0  ;;  %v800_v13 = vmul.f32 %v6990_v34, %v564_v40  ;;  %v7165_v22 = vmax.f32 %v850_v51, 0.0  ;;  %v7182_v45 = vld [vmem:[#allocation2 + $0x31] sm:$0xff]  ;;  %v571_v36 = vld [vmem:[%s6941_s24 + $0xf0] sm:$0xff] }
 0x114   : > { %5642 = vmatprep.subr.bf16.mxu0 %v7095_v56  ;;  %1124 = vst [vmem:[#allocation2 + $0x88] sm:$0x3] %v1040_v6  ;;  %v899_v26 = vmax.f32 %v851_v55, 0.0  ;;  %v852_v30 = vadd.f32 %v6992_v35, %v798_v57  ;;  %v853_v31 = vadd.f32 %v6992_v35, %v799_v58  ;;  %v7174_v38 = vpack.c.bf16 %v2732_v50, %v2731_v47  ;;  %v568_v57 = vld [vmem:[%s6941_s24 + $0xd8] sm:$0xff]  ;;  %v590_v20 = vld [vmem:[%s6949_s14 + $0x8] sm:$0xff] }
 0x115   : > { %v1041_v40 = vsel %vm532_vm0, %v7160_v7, 0.0  ;;  %v854_v8 = vadd.f32 %v6992_v35, %v800_v13  ;;  %v801_v44 = vmul.f32 %v6990_v34, %v565_v59  ;;  %1126 = vst [vmem:[#allocation2 + $0x98] sm:$0xff] %v7165_v22  ;;  %v802_v55 = vmul.f32 %v6990_v34, %v566_v15  ;;  %v7227_v48 = vld [vmem:[#allocation2 + $0x49] sm:$0xff]  ;;  %v591_v14 = vld [vmem:[%s6949_s14 + $0x10] sm:$0x3] }
 0x116   : > { %5516 = vmatpush3.bf16.msra.mxu1 %v7077_v41  ;;  %v2735_v41 = vld [vmem:[#allocation12 + $0x2b0] sm:$0xff]  ;;  %1125 = vst [vmem:[#allocation2 + $0x90] sm:$0xff] %v1041_v40  ;;  %v1043_v47 = vsel %vm537_vm1, %v899_v26, 0.0  ;;  %v7187_v50 = vmax.f32 %v852_v30, 0.0  ;;  %v7189_v51 = vmax.f32 %v853_v31, 0.0  ;;  %v7194_v58 = vpack.c.bf16 %v1511_v5, %v1510_v1  ;;  %v569_v40 = vld [vmem:[%s6941_s24 + $0xe0] sm:$0xff] }
 0x117   : > { %5644 = vmatpush3.bf16.msra.mxu0 %v7095_v56  ;;  %5518 = vmatprep.subr.bf16.mxu1 %v7115_v11  ;;  %1127 = vst [vmem:[#allocation2 + $0xa0] sm:$0x3] %v1043_v47  ;;  %v902_v59 = vmax.f32 %v854_v8, 0.0  ;;  %v855_v6 = vadd.f32 %v6992_v35, %v801_v44  ;;  %v803_v13 = vmul.f32 %v6990_v34, %v567_v32  ;;  %v572_v26 = vld [vmem:[%s6941_s24 + $0xf8] sm:$0xff]  ;;  %v1513_v1 = vld [vmem:[#allocation12 + $0xa8] sm:$0xff]  ;;  %v7256_v63 = vld [vmem:[#allocation2 + $0x51] sm:$0xff] }
 0x118   : > { %5646 = vmatprep.subr.bf16.mxu0 %v7143_v43  ;;  %v7203_v30 = vpack.c.bf16 %v2734_v17, %v2733_v16  ;;  %v7205_v15 = vpack.c.bf16 %v2736_v39, %v2735_v41  ;;  %v1044_v5 = vsel %vm532_vm0, %v7187_v50, 0.0  ;;  %1129 = vst [vmem:[#allocation2 + $0xb0] sm:$0xff] %v7189_v51  ;;  %v856_v31 = vadd.f32 %v6992_v35, %v802_v55  ;;  %v1514_v16 = vld [vmem:[#allocation12 + $0xb0] sm:$0xff]  ;;  %v574_v55 = vld [vmem:[%s6941_s24 + $0x108] sm:$0xff]  ;;  %v2744_v56 = vld [vmem:[#allocation12 + $0x2f8] sm:$0xff] }
 0x119   : > { %4798 = vmatmul.mubr.f32.vlgmr.msra.gmra.mrb[0].mxu1 %v6578_v0  ;;  %v1512_v0 = vld [vmem:[#allocation12 + $0xa0] sm:$0xff]  ;;  %1128 = vst [vmem:[#allocation2 + $0xa8] sm:$0xff] %v1044_v5  ;;  %v1046_v17 = vsel %vm537_vm1, %v902_v59, 0.0  ;;  %v7221_v32 = vmax.f32 %v855_v6, 0.0  ;;  %v857_v41 = vadd.f32 %v6992_v35, %v803_v13  ;;  %v804_v39 = vmul.f32 %v6990_v34, %v568_v57  ;;  %v7305_v23 = vld [vmem:[#allocation2 + $0x69] sm:$0xff]  ;;  %v3036_v9 = vld [vmem:[#allocation12 + $0x308] sm:$0xff] }
 0x11a   : > { %5118 = vmatmul.mubr.f32.vlgmr.msra.gmra.mrb[0].mxu0 %v7172_v33  ;;  %5520 = vmatpush3.bf16.msra.mxu1 %v7115_v11  ;;  %v7217_v11 = vld [vmem:[#allocation2 + $0x39] sm:$0xff]  ;;  %1130 = vst [vmem:[#allocation2 + $0xb8] sm:$0x3] %v1046_v17  ;;  %v805_v8 = vmul.f32 %v6990_v34, %v569_v40  ;;  %v807_v44 = vmul.f32 %v6990_v34, %v571_v36  ;;  %v576_v3 = vld [vmem:[%s6941_s24 + $0x118] sm:$0x3]  ;;  %v3648_v19 = vld [vmem:[#allocation12 + $0x418] sm:$0xff] }
 0x11b   : > { %5648 = vmatpush3.bf16.msra.mxu0 %v7143_v43  ;;  %6211 = vmatprep.mubr.msk.f32.mxu1 %vm532_vm0, %v882_v61  ;;  %v1515_v61 = vld [vmem:[#allocation12 + $0xb8] sm:$0xff]  ;;  %v7229_v43 = vmax.f32 %v856_v31, 0.0  ;;  %v808_v47 = vmul.f32 %v6990_v34, %v572_v26  ;;  %v5525_v57 = vpack.c.bf16 %v1513_v1, %v1512_v0  ;;  %v2737_v59 = vld [vmem:[#allocation12 + $0x2c0] sm:$0xff]  ;;  %v1047_v6 = vsel %vm532_vm0, %v7221_v32, 0.0  ;;  %v575_v36 = vld [vmem:[%s6941_s24 + $0x110] sm:$0xff] }
 0x11c   : > { %5120 = vmatprep.mubr.f32.mxu0 %v7182_v45  ;;  %5650 = vmatprep.subr.bf16.mxu0 %v7174_v38  ;;  %v905_v13 = vmax.f32 %v857_v41, 0.0  ;;  %v858_v40 = vadd.f32 %v6992_v35, %v804_v39  ;;  %1131 = vst [vmem:[#allocation2 + $0xc0] sm:$0xff] %v1047_v6  ;;  %v861_v26 = vadd.f32 %v6992_v35, %v807_v44  ;;  %v577_v1 = vld [vmem:[%s6941_s24 + $0x120] sm:$0xff]  ;;  %v578_v5 = vld [vmem:[%s6941_s24 + $0x128] sm:$0xff]  ;;  %v580_v6 = vld [vmem:[%s6941_s24 + $0x138] sm:$0xff] }
 0x11d   : > { %4801 = vmatmul.mubr.f32.gmra.mrb[2].mxu1 %v883_v62  ;;  %5522 = vmatprep.subr.bf16.mxu1 %v7194_v58  ;;  %1132 = vst [vmem:[#allocation2 + $0xc8] sm:$0xff] %v7229_v43  ;;  %v859_v62 = vadd.f32 %v6992_v35, %v805_v8  ;;  %v862_v0 = vadd.f32 %v6992_v35, %v808_v47  ;;  %v1516_v17 = vld [vmem:[#allocation12 + $0xc0] sm:$0xff]  ;;  %v1517_v41 = vld [vmem:[#allocation12 + $0xc8] sm:$0xff] }
 0x11e   : > { %5121 = vmatmul.mubr.f32.gmra.mrb[2].mxu0 %v7217_v11  ;;  %6212 = vmatprep.mubr.msk.f32.mxu1 %vm532_vm0, %v885_v12  ;;  %v7258_v12 = vpack.c.bf16 %v1515_v61, %v1514_v16  ;;  %v1049_v31 = vsel %vm537_vm1, %v905_v13, 0.0  ;;  %v7262_v39 = vmax.f32 %v858_v40, 0.0  ;;  %v810_v8 = vmul.f32 %v6990_v34, %v574_v55  ;;  %v7345_v52 = vld [vmem:[#allocation2 + $0x81] sm:$0xff] }
 0x11f   : > { %5652 = vmatpush3.bf16.msra.mxu0 %v7174_v38  ;;  %5123 = vmatprep.mubr.f32.mxu0 %v7227_v48  ;;  %v7267_v38 = vld [vmem:[#allocation2 + $0x61] sm:$0xff]  ;;  %1133 = vst [vmem:[#allocation2 + $0xd0] sm:$0x3] %v1049_v31  ;;  %v7269_v16 = vmax.f32 %v859_v62, 0.0  ;;  %v7271_v61 = vmax.f32 %v861_v26, 0.0  ;;  %v7273_v44 = vmax.f32 %v862_v0, 0.0  ;;  %v811_v47 = vmul.f32 %v6990_v34, %v575_v36 }
 0x120   : > { %5654 = vmatprep.subr.bf16.mxu0 %v7203_v30  ;;  %5524 = vmatpush3.bf16.msra.mxu1 %v7194_v58  ;;  %v1050_v58 = vsel %vm532_vm0, %v7262_v39, 0.0  ;;  %v864_v55 = vadd.f32 %v6992_v35, %v810_v8  ;;  %v813_v13 = vmul.f32 %v6990_v34, %v577_v1  ;;  %v814_v40 = vmul.f32 %v6990_v34, %v578_v5  ;;  %v581_v62 = vld [vmem:[%s6941_s24 + $0x140] sm:$0xff]  ;;  %v583_v26 = vld [vmem:[%s6941_s24 + $0x150] sm:$0xff]  ;;  %v584_v0 = vld [vmem:[%s6941_s24 + $0x158] sm:$0xff] }
 0x121   : > { %4804 = vmatmul.mubr.f32.gmra.mrb[4].mxu1 %v886_v21  ;;  %5526 = vmatprep.subr.bf16.mxu1 %v5525_v57  ;;  %v7293_v4 = vpack.c.bf16 %v2738_v49, %v2737_v59  ;;  %v7295_v21 = vpack.c.bf16 %v1517_v41, %v1516_v17  ;;  %1134 = vst [vmem:[#allocation2 + $0xd8] sm:$0xff] %v1050_v58  ;;  %1135 = vst [vmem:[#allocation2 + $0xe0] sm:$0xff] %v7269_v16  ;;  %v1053_v36 = vsel %vm532_vm0, %v7271_v61, 0.0  ;;  %v7313_v31 = vld [vmem:[#allocation2 + $0x79] sm:$0xff]  ;;  %v2740_v17 = vld [vmem:[#allocation12 + $0x2d8] sm:$0xff] }
 0x122   : > { %5124 = vmatmul.mubr.f32.gmra.mrb[4].mxu0 %v7256_v63  ;;  %6213 = vmatprep.mubr.msk.f32.mxu1 %vm532_vm0, %v888_v37  ;;  %1138 = vst [vmem:[#allocation2 + $0xf8] sm:$0xff] %v7273_v44  ;;  %v865_v1 = vadd.f32 %v6992_v35, %v811_v47  ;;  %1137 = vst [vmem:[#allocation2 + $0xf0] sm:$0xff] %v1053_v36  ;;  %v7307_v37 = vmax.f32 %v864_v55, 0.0  ;;  %v867_v59 = vadd.f32 %v6992_v35, %v813_v13  ;;  %v587_v36 = vld [vmem:[%s6941_s24 + $0x170] sm:$0xff] }
 0x123   : > { %5656 = vmatpush3.bf16.msra.mxu0 %v7203_v30  ;;  %5126 = vmatprep.mubr.f32.mxu0 %v7267_v38  ;;  %v868_v49 = vadd.f32 %v6992_v35, %v814_v40  ;;  %v816_v5 = vmul.f32 %v6990_v34, %v580_v6  ;;  %v2739_v30 = vld [vmem:[#allocation12 + $0x2d0] sm:$0xff]  ;;  %v817_v8 = vmul.f32 %v6990_v34, %v581_v62  ;;  %v586_v62 = vld [vmem:[%s6941_s24 + $0x168] sm:$0xff] }
 0x124   : > { %5658 = vmatprep.subr.bf16.mxu0 %v7205_v15  ;;  %5528 = vmatpush3.bf16.msra.mxu1 %v5525_v57  ;;  %v7315_v41 = vmax.f32 %v865_v1, 0.0  ;;  %v819_v47 = vmul.f32 %v6990_v34, %v583_v26  ;;  %v820_v58 = vmul.f32 %v6990_v34, %v584_v0  ;;  %v1518_v6 = vld [vmem:[#allocation12 + $0xd0] sm:$0xff]  ;;  %v1056_v57 = vsel %vm532_vm0, %v7307_v37, 0.0  ;;  %v570_v1 = vld [vmem:[%s6941_s24 + $0xe8] sm:$0x3] }
 0x125   : > { %4807 = vmatmul.mubr.f32.gmra.mrb[6].mxu1 %v889_v42  ;;  %5530 = vmatprep.subr.bf16.mxu1 %v7258_v12  ;;  %v7326_v55 = vmax.f32 %v867_v59, 0.0  ;;  %v7328_v13 = vmax.f32 %v868_v49, 0.0  ;;  %v870_v40 = vadd.f32 %v6992_v35, %v816_v5  ;;  %1140 = vst [vmem:[#allocation2 + $0x108] sm:$0xff] %v1056_v57  ;;  %v871_v42 = vadd.f32 %v6992_v35, %v817_v8  ;;  %v7356_v5 = vld [vmem:[#allocation2 + $0x91] sm:$0xff]  ;;  %v2742_v57 = vld [vmem:[#allocation12 + $0x2e8] sm:$0xff] }
 0x126   : > { %5127 = vmatmul.mubr.f32.gmra.mrb[6].mxu0 %v7305_v23  ;;  %6214 = vmatprep.mubr.msk.f32.mxu1 %vm532_vm0, %v891_v2  ;;  %1141 = vst [vmem:[#allocation2 + $0x110] sm:$0xff] %v7315_v41  ;;  %v873_v26 = vadd.f32 %v6992_v35, %v819_v47  ;;  %v874_v0 = vadd.f32 %v6992_v35, %v820_v58  ;;  %v573_v47 = vld [vmem:[%s6941_s24 + $0x100] sm:$0x3]  ;;  %v2741_v58 = vld [vmem:[#allocation12 + $0x2e0] sm:$0xff] }
 0x127   : > { %5660 = vmatpush3.bf16.msra.mxu0 %v7205_v15  ;;  %5129 = vmatprep.mubr.f32.mxu0 %v7313_v31  ;;  %v7347_v2 = vpack.c.bf16 %v2740_v17, %v2739_v30  ;;  %v1059_v59 = vsel %vm532_vm0, %v7326_v55, 0.0  ;;  %1144 = vst [vmem:[#allocation2 + $0x128] sm:$0xff] %v7328_v13  ;;  %v7353_v49 = vmax.f32 %v870_v40, 0.0  ;;  %v7359_v15 = vmax.f32 %v871_v42, 0.0 }
 0x128   : > { %5662 = vmatprep.subr.bf16.mxu0 %v7293_v4  ;;  %5532 = vmatpush3.bf16.msra.mxu1 %v7258_v12  ;;  %1143 = vst [vmem:[#allocation2 + $0x120] sm:$0xff] %v1059_v59  ;;  %v7361_v8 = vmax.f32 %v873_v26, 0.0  ;;  %v7363_v30 = vmax.f32 %v874_v0, 0.0  ;;  %v822_v17 = vmul.f32 %v6990_v34, %v586_v62  ;;  %v5537_v40 = vpack.c.bf16 %v1519_v27, %v1518_v6  ;;  %v7396_v59 = vld [vmem:[#allocation2 + $0xa9] sm:$0xff] }
 0x129   : > { %4810 = vmatmul.mubr.f32.gmra.mrb[8].mxu1 %v892_v53  ;;  %5534 = vmatprep.subr.bf16.mxu1 %v7295_v21  ;;  %v1062_v12 = vsel %vm532_vm0, %v7353_v49, 0.0  ;;  %v823_v42 = vmul.f32 %v6990_v34, %v587_v36  ;;  %v806_v26 = vmul.f32 %v6990_v34, %v570_v1  ;;  %v1521_v53 = vld [vmem:[#allocation12 + $0xe8] sm:$0xff]  ;;  %1147 = vst [vmem:[#allocation2 + $0x140] sm:$0xff] %v7359_v15 }
 0x12a   : > { %5130 = vmatmul.mubr.f32.gmra.mrb[8].mxu0 %v7345_v52  ;;  %6215 = vmatprep.mubr.msk.f32.mxu1 %vm532_vm0, %v894_v24  ;;  %1146 = vst [vmem:[#allocation2 + $0x138] sm:$0xff] %v1062_v12  ;;  %v1065_v6 = vsel %vm532_vm0, %v7361_v8, 0.0  ;;  %1150 = vst [vmem:[#allocation2 + $0x158] sm:$0xff] %v7363_v30  ;;  %v876_v62 = vadd.f32 %v6992_v35, %v822_v17  ;;  %v809_v27 = vmul.f32 %v6990_v34, %v573_v47  ;;  %v7390_v24 = vld [vmem:[#allocation2 + $0x99] sm:$0xff] }
 0x12b   : > { %5664 = vmatpush3.bf16.msra.mxu0 %v7293_v4  ;;  %5132 = vmatprep.mubr.f32.mxu0 %v7356_v5  ;;  %1149 = vst [vmem:[#allocation2 + $0x150] sm:$0xff] %v1065_v6  ;;  %v877_v0 = vadd.f32 %v6992_v35, %v823_v42  ;;  %v860_v36 = vadd.f32 %v6992_v35, %v806_v26  ;;  %v579_v1 = vld [vmem:[%s6941_s24 + $0x130] sm:$0x3]  ;;  %v582_v6 = vld [vmem:[%s6941_s24 + $0x148] sm:$0x3]  ;;  %v8117_v42 = vmax.f32 %v7120_v18, 0.0 }
 0x12c   : > { %5666 = vmatprep.subr.bf16.mxu0 %v7347_v2  ;;  %v5669_v17 = vpack.c.bf16 %v2742_v57, %v2741_v58  ;;  %5536 = vmatpush3.bf16.msra.mxu1 %v7295_v21  ;;  %v7399_v47 = vmax.f32 %v876_v62, 0.0  ;;  %v863_v4 = vadd.f32 %v6992_v35, %v809_v27  ;;  %v812_v12 = vmul.f32 %v6990_v34, %v576_v3  ;;  %v2743_v26 = vld [vmem:[#allocation12 + $0x2f0] sm:$0xff]  ;;  %v585_v57 = vld [vmem:[%s6941_s24 + $0x160] sm:$0x3] }
 0x12d   : > { %4813 = vmatmul.mubr.f32.gmra.mrb[10].mxu1 %v8117_v42  ;;  %5538 = vmatprep.subr.bf16.mxu1 %v5537_v40  ;;  %v5541_v25 = vpack.c.bf16 %v1521_v53, %v1520_v54  ;;  %v7406_v60 = vmax.f32 %v877_v0, 0.0  ;;  %v908_v58 = vmax.f32 %v860_v36, 0.0  ;;  %v815_v21 = vmul.f32 %v6990_v34, %v579_v1  ;;  %v1522_v62 = vld [vmem:[#allocation12 + $0xf0] sm:$0xff]  ;;  %v1523_v18 = vld [vmem:[#allocation12 + $0xf8] sm:$0xff] }
 0x12e   : > { %5133 = vmatmul.mubr.f32.gmra.mrb[10].mxu0 %v7390_v24  ;;  %6216 = vmatprep.mubr.msk.f32.mxu1 %vm532_vm0, %v7160_v7  ;;  %v1068_v27 = vsel %vm532_vm0, %v7399_v47, 0.0  ;;  %v911_v3 = vmax.f32 %v863_v4, 0.0  ;;  %v866_v54 = vadd.f32 %v6992_v35, %v812_v12  ;;  %v818_v53 = vmul.f32 %v6990_v34, %v582_v6  ;;  %v588_v0 = vld [vmem:[%s6941_s24 + $0x178] sm:$0x3]  ;;  %v7422_v36 = vld [vmem:[#allocation2 + $0xb1] sm:$0xff] }
 0x12f   : > { %5668 = vmatpush3.bf16.msra.mxu0 %v7347_v2  ;;  %5135 = vmatprep.mubr.f32.mxu0 %v7396_v59  ;;  %v7424_v1 = vld [vmem:[#allocation2 + $0xc1] sm:$0xff]  ;;  %1152 = vst [vmem:[#allocation2 + $0x168] sm:$0xff] %v1068_v27  ;;  %1153 = vst [vmem:[#allocation2 + $0x170] sm:$0xff] %v7406_v60  ;;  %v1052_v4 = vsel %vm537_vm1, %v908_v58, 0.0  ;;  %v869_v12 = vadd.f32 %v6992_v35, %v815_v21  ;;  %v821_v6 = vmul.f32 %v6990_v34, %v585_v57  ;;  %v3035_v58 = vld [vmem:[#allocation12 + $0x300] sm:$0xff] }
 0x130   : > { %5670 = vmatprep.subr.bf16.mxu0 %v5669_v17  ;;  %v5673_v2 = vpack.c.bf16 %v2744_v56, %v2743_v26  ;;  %5540 = vmatpush3.bf16.msra.mxu1 %v5537_v40  ;;  %1136 = vst [vmem:[#allocation2 + $0xe8] sm:$0x3] %v1052_v4  ;;  %v1055_v42 = vsel %vm537_vm1, %v911_v3, 0.0  ;;  %v914_v46 = vmax.f32 %v866_v54, 0.0  ;;  %v872_v29 = vadd.f32 %v6992_v35, %v818_v53  ;;  %v589_v27 = vld [vmem:[%s6949_s14] sm:$0xff]  ;;  %v1814_v3 = vld [vmem:[#allocation12 + $0x108] sm:$0xff] }
 0x131   : > { %4816 = vmatmul.mubr.f32.gmra.mrb[12].mxu1 %v7165_v22  ;;  %5542 = vmatprep.subr.bf16.mxu1 %v5541_v25  ;;  %v5545_v21 = vpack.c.bf16 %v1523_v18, %v1522_v62  ;;  %1139 = vst [vmem:[#allocation2 + $0x100] sm:$0x3] %v1055_v42  ;;  %v917_v57 = vmax.f32 %v869_v12, 0.0  ;;  %v875_v56 = vadd.f32 %v6992_v35, %v821_v6  ;;  %v1813_v26 = vld [vmem:[#allocation12 + $0x100] sm:$0xff] }
 0x132   : > { %v824_v40 = vmul.f32 %v6990_v34, %v588_v0  ;;  %5136 = vmatmul.mubr.f32.gmra.mrb[12].mxu0 %v7422_v36  ;;  %6217 = vmatprep.mubr.msk.f32.mxu1 %vm532_vm0, %v7187_v50  ;;  %v1058_v54 = vsel %vm537_vm1, %v914_v46, 0.0  ;;  %v920_v53 = vmax.f32 %v872_v29, 0.0  ;;  %v1071_v62 = vmul.f32 %v6990_v34, %v589_v27  ;;  %v7449_v0 = vld [vmem:[#allocation2 + $0xc9] sm:$0xff]  ;;  %v7455_v29 = vld [vmem:[#allocation2 + $0x1a] sm:$0xff] }
 0x133   : > { %v1072_v18 = vmul.f32 %v6990_v34, %v590_v20  ;;  %5672 = vmatpush3.bf16.msra.mxu0 %v5669_v17  ;;  %5138 = vmatprep.mubr.f32.mxu0 %v7424_v1  ;;  %1142 = vst [vmem:[#allocation2 + $0x118] sm:$0x3] %v1058_v54  ;;  %v1061_v4 = vsel %vm537_vm1, %v917_v57, 0.0  ;;  %v923_v12 = vmax.f32 %v875_v56, 0.0  ;;  %v1073_v42 = vmul.f32 %v6990_v34, %v591_v14  ;;  %v3037_v57 = vld [vmem:[#allocation12 + $0x310] sm:$0xff]  ;;  %v3038_v56 = vld [vmem:[#allocation12 + $0x318] sm:$0xff] }
 0x134   : > { %v878_v6 = vadd.f32 %v6992_v35, %v824_v40  ;;  %5674 = vmatprep.subr.bf16.mxu0 %v5673_v2  ;;  %v5677_v46 = vpack.c.bf16 %v3036_v9, %v3035_v58  ;;  %5544 = vmatpush3.bf16.msra.mxu1 %v5541_v25  ;;  %1145 = vst [vmem:[#allocation2 + $0x130] sm:$0x3] %v1061_v4  ;;  %v1064_v20 = vsel %vm537_vm1, %v920_v53, 0.0  ;;  %v7482_v54 = vld [vmem:[#allocation2 + $0x32] sm:$0xff] }
 0x135   : > { %v7460_v17 = vadd.f32 %v6992_v35, %v1071_v62  ;;  %v7463_v27 = vadd.f32 %v6992_v35, %v1072_v18  ;;  %4819 = vmatmul.mubr.f32.gmra.mrb[14].mxu1 %v7189_v51  ;;  %5546 = vmatprep.subr.bf16.mxu1 %v5545_v21  ;;  %v7466_v14 = vpack.c.bf16 %v1814_v3, %v1813_v26  ;;  %v1067_v9 = vsel %vm537_vm1, %v923_v12, 0.0  ;;  %v7478_v26 = vld [vmem:[#allocation2 + $0x22] sm:$0xff]  ;;  %v7501_v12 = vld [vmem:[#allocation2 + $0x4a] sm:$0xff] }
 0x136   : > { %1148 = vst [vmem:[#allocation2 + $0x148] sm:$0x3] %v1064_v20  ;;  %v926_v34 = vmax.f32 %v878_v6, 0.0  ;;  %v1076_v25 = vadd.f32 %v6992_v35, %v1073_v42  ;;  %5139 = vmatmul.mubr.f32.gmra.mrb[14].mxu0 %v7449_v0  ;;  %6218 = vmatprep.mubr.msk.f32.mxu1 %vm532_vm0, %v7221_v32  ;;  %1151 = vst [vmem:[#allocation2 + $0x160] sm:$0x3] %v1067_v9  ;;  %v5681_v53 = vpack.c.bf16 %v3038_v56, %v3037_v57  ;;  %v3040_v18 = vld [vmem:[#allocation12 + $0x328] sm:$0xff] }
 0x137   : > { %8118 = vst [vmem:[#allocation39_spill] sm:$0xff] %v7463_v27  ;;  %v8055_v58 = vmax.f32 %v7460_v17, 0.0  ;;  %v8054_v40 = vmax.f32 %v7463_v27, 0.0  ;;  %5676 = vmatpush3.bf16.msra.mxu0 %v5673_v2  ;;  %5197 = vmatprep.mubr.f32.mxu0 %v7455_v29  ;;  %v3039_v2 = vld [vmem:[#allocation12 + $0x320] sm:$0xff]  ;;  %v3042_v42 = vld [vmem:[#allocation12 + $0x338] sm:$0xff]  ;;  %v3044_v9 = vld [vmem:[#allocation12 + $0x348] sm:$0xff] }
 0x138   : > { %v1070_v3 = vsel %vm537_vm1, %v926_v34, 0.0  ;;  %v1079_v35 = vmax.f32 %v1076_v25, 0.0  ;;  %5678 = vmatprep.subr.bf16.mxu0 %v5677_v46  ;;  %5548 = vmatpush3.bf16.msra.mxu1 %v5545_v21  ;;  %v7499_v21 = vld [vmem:[#allocation2 + $0x3a] sm:$0xff]  ;;  %v5685_v6 = vpack.c.bf16 %v3040_v18, %v3039_v2  ;;  %v7509_v20 = vld [vmem:[#allocation2 + $0x52] sm:$0xff]  ;;  %v5689_v57 = vpack.c.bf16 %v3042_v42, %v3041_v28  ;;  %v7519_v34 = vld [vmem:[#allocation2 + $0x6a] sm:$0xff] }
 0x139   : > { %1154 = vst [vmem:[#allocation2 + $0x178] sm:$0x3] %v1070_v3  ;;  %v1086_v62 = vsel %vm532_vm0, %v8055_v58, 0.0  ;;  %1157 = vst [vmem:[#allocation2 + $0x188] sm:$0xff] %v8054_v40  ;;  %4822 = vmatmul.mubr.f32.gmra.mrb[16].mxu1 %v7229_v43  ;;  %5550 = vmatprep.subr.bf16.mxu1 %v7466_v14  ;;  %v3043_v56 = vld [vmem:[#allocation12 + $0x340] sm:$0xff]  ;;  %v7541_v42 = vld [vmem:[#allocation2 + $0xaa] sm:$0xff] }
 0x13a   : > { %1156 = vst [vmem:[#allocation2 + $0x180] sm:$0xff] %v1086_v62  ;;  %v1088_v4 = vsel %vm537_vm1, %v1079_v35, 0.0  ;;  %5198 = vmatmul.mubr.f32.vlgmr.msra.gmra.mrb[0].mxu0 %v7478_v26  ;;  %6219 = vmatprep.mubr.msk.f32.mxu1 %vm532_vm0, %v7262_v39  ;;  %v7521_v25 = vld [vmem:[#allocation2 + $0x7a] sm:$0xff]  ;;  %v5693_v3 = vpack.c.bf16 %v3044_v9, %v3043_v56  ;;  %v3045_v35 = vld [vmem:[#allocation12 + $0x350] sm:$0xff]  ;;  %v7531_v2 = vld [vmem:[#allocation2 + $0x92] sm:$0xff] }
 0x13b   : > { %1158 = vst [vmem:[#allocation2 + $0x190] sm:$0x3] %v1088_v4  ;;  %5200 = vmatprep.mubr.f32.mxu0 %v7482_v54  ;;  %5680 = vmatpush3.bf16.msra.mxu0 %v5677_v46  ;;  %v7511_v46 = vld [vmem:[#allocation2 + $0x62] sm:$0xff]  ;;  %v3047_v4 = vld [vmem:[#allocation12 + $0x360] sm:$0xff]  ;;  %8119 = vst [vmem:[#allocation40_spill] sm:$0xff] %v7541_v42 }
 0x13c   : > { %5682 = vmatprep.subr.bf16.mxu0 %v5681_v53  ;;  %v7529_v62 = vld [vmem:[#allocation2 + $0x82] sm:$0xff]  ;;  %v7539_v28 = vld [vmem:[#allocation2 + $0x9a] sm:$0xff]  ;;  %v3050_v9 = vld [vmem:[#allocation12 + $0x378] sm:$0xff] }
 0x13d   : > { %4825 = vmatmul.mubr.f32.gmra.mrb[18].mxu1 %v7269_v16  ;;  %v3049_v56 = vld [vmem:[#allocation12 + $0x370] sm:$0xff]  ;;  %v7570_v27 = vld [vmem:[#allocation2 + $0xf2] sm:$0xff] }
 0x13e   : > { %5201 = vmatmul.mubr.f32.gmra.mrb[2].mxu0 %v7499_v21  ;;  %6220 = vmatprep.mubr.msk.f32.mxu1 %vm532_vm0, %v7271_v61  ;;  %v7559_v40 = vld [vmem:[#allocation2 + $0xca] sm:$0xff]  ;;  %v1476_v58 = vld [vmem:[#allocation2 + $0x1] sm:$0xff] }
 0x13f   : > { %5203 = vmatprep.mubr.f32.mxu0 %v7501_v12  ;;  %5684 = vmatpush3.bf16.msra.mxu0 %v5681_v53  ;;  %v3046_v53 = vld [vmem:[#allocation12 + $0x358] sm:$0xff] }
 0x140   : > { %5686 = vmatprep.subr.bf16.mxu0 %v5685_v6  ;;  %v5697_v18 = vpack.c.bf16 %v3046_v53, %v3045_v35  ;;  %v7549_v35 = vld [vmem:[#allocation2 + $0xb2] sm:$0xff]  ;;  %v5705_v53 = vpack.c.bf16 %v3050_v9, %v3049_v56  ;;  %v1815_v9 = vld [vmem:[#allocation12 + $0x110] sm:$0xff] }
 0x141   : > { %4828 = vmatmul.mubr.f32.gmra.mrb[20].mxu1 %v7273_v44  ;;  %8120 = vst [vmem:[#allocation41_spill] sm:$0xff] %v7549_v35 }
 0x142   : > { %5204 = vmatmul.mubr.f32.gmra.mrb[4].mxu0 %v7509_v20  ;;  %6221 = vmatprep.mubr.msk.f32.mxu1 %vm532_vm0, %v7307_v37 }
 0x143   : > { %5206 = vmatprep.mubr.f32.mxu0 %v7511_v46  ;;  %5688 = vmatpush3.bf16.msra.mxu0 %v5685_v6  ;;  %v3048_v6 = vld [vmem:[#allocation12 + $0x368] sm:$0xff] }
 0x144   : > { %5690 = vmatprep.subr.bf16.mxu0 %v5689_v57 }
 0x145   : > { %4831 = vmatmul.mubr.f32.gmra.mrb[22].mxu1 %v7315_v41 }
 0x146   : > { %5207 = vmatmul.mubr.f32.gmra.mrb[6].mxu0 %v7519_v34  ;;  %6222 = vmatprep.mubr.msk.f32.mxu1 %vm532_vm0, %v7326_v55 }
 0x147   : > { %5209 = vmatprep.mubr.f32.mxu0 %v7521_v25  ;;  %5692 = vmatpush3.bf16.msra.mxu0 %v5689_v57  ;;  %v5701_v57 = vpack.c.bf16 %v3048_v6, %v3047_v4  ;;  %v3340_v4 = vld [vmem:[#allocation12 + $0x380] sm:$0xff]  ;;  %v3341_v6 = vld [vmem:[#allocation12 + $0x388] sm:$0xff] }
 0x148   : > { %5694 = vmatprep.subr.bf16.mxu0 %v5693_v3  ;;  %v7563_v56 = vpack.c.bf16 %v3341_v6, %v3340_v4  ;;  %v1817_v4 = vld [vmem:[#allocation12 + $0x120] sm:$0xff]  ;;  %v1818_v6 = vld [vmem:[#allocation12 + $0x128] sm:$0xff] }
 0x149   : > { %4834 = vmatmul.mubr.f32.gmra.mrb[24].mxu1 %v7328_v13 }
 0x14a   : > { %5210 = vmatmul.mubr.f32.gmra.mrb[8].mxu0 %v7529_v62  ;;  %6223 = vmatprep.mubr.msk.f32.mxu1 %vm532_vm0, %v7353_v49 }
 0x14b   : > { %5212 = vmatprep.mubr.f32.mxu0 %v7531_v2  ;;  %5696 = vmatpush3.bf16.msra.mxu0 %v5693_v3  ;;  %v7551_v3 = vld [vmem:[#allocation2 + $0xc2] sm:$0xff] }
 0x14c   : > { %5698 = vmatprep.subr.bf16.mxu0 %v5697_v18  ;;  %8121 = vst [vmem:[#allocation42_spill] sm:$0xff] %v7551_v3 }
 0x14d   : > { %4837 = vmatmul.mubr.f32.gmra.mrb[26].mxu1 %v7359_v15 }
 0x14e   : > { %5213 = vmatmul.mubr.f32.gmra.mrb[10].mxu0 %v7539_v28  ;;  %6224 = vmatprep.mubr.msk.f32.mxu1 %vm532_vm0, %v7361_v8 }
 0x14f   : > { %5215 = vmatprep.mubr.f32.mxu0 %v7541_v42  ;;  %5700 = vmatpush3.bf16.msra.mxu0 %v5697_v18  ;;  %v7561_v18 = vld [vmem:[#allocation2 + $0xda] sm:$0xff]  ;;  %v1816_v42 = vld [vmem:[#allocation12 + $0x118] sm:$0xff] }
 0x150   : > { %5702 = vmatprep.subr.bf16.mxu0 %v5701_v57  ;;  %8122 = vst [vmem:[#allocation43_spill] sm:$0xff] %v7561_v18 }
 0x151   : > { %4840 = vmatmul.mubr.f32.gmra.mrb[28].mxu1 %v7363_v30 }
 0x152   : > { %5216 = vmatmul.mubr.f32.gmra.mrb[12].mxu0 %v7549_v35  ;;  %6225 = vmatprep.mubr.msk.f32.mxu1 %vm532_vm0, %v7399_v47  ;;  %v1477_v35 = vld [vmem:[#allocation2 + $0x9] sm:$0xff] }
 0x153   : > { %5218 = vmatprep.mubr.f32.mxu0 %v7551_v3  ;;  %5704 = vmatpush3.bf16.msra.mxu0 %v5701_v57  ;;  %v7568_v3 = vld [vmem:[#allocation2 + $0xe2] sm:$0xff]  ;;  %v5553_v57 = vpack.c.bf16 %v1816_v42, %v1815_v9 }
 0x154   : > { %5706 = vmatprep.subr.bf16.mxu0 %v5705_v53  ;;  %v1819_v42 = vld [vmem:[#allocation12 + $0x130] sm:$0xff] }
 0x155   : > { %4843 = vmatmul.mubr.f32.gmra.mrb[30].mxu1 %v7406_v60 }
 0x156   : > { %5219 = vmatmul.mubr.f32.gmra.mrb[14].mxu0 %v7559_v40  ;;  %4877 = vmatprep.mubr.f32.mxu1 %v1476_v58  ;;  %v7577_v58 = vld [vmem:[#allocation2 + $0xfa] sm:$0xff] }
 0x157   : > { %5221 = vmatprep.mubr.f32.mxu0 %v7561_v18  ;;  %5708 = vmatpush3.bf16.msra.mxu0 %v5705_v53  ;;  %v7579_v18 = vld [vmem:[#allocation2 + $0x10a] sm:$0xff]  ;;  %v5557_v53 = vpack.c.bf16 %v1818_v6, %v1817_v4  ;;  %v1821_v4 = vld [vmem:[#allocation12 + $0x140] sm:$0xff]  ;;  %v1822_v6 = vld [vmem:[#allocation12 + $0x148] sm:$0xff] }
 0x158   : > { %5710 = vmatprep.subr.bf16.mxu0 %v7563_v56 }
 0x159   : > { %4878 = vmatmul.mubr.f32.vlgmr.msra.gmra.mrb[0].mxu1 %v1477_v35  ;;  %v1820_v35 = vld [vmem:[#allocation12 + $0x138] sm:$0xff] }
 0x15a   : > { %5222 = vmatmul.mubr.f32.gmra.mrb[16].mxu0 %v7568_v3  ;;  %5552 = vmatpush3.bf16.msra.mxu1 %v7466_v14  ;;  %v7585_v14 = vld [vmem:[#allocation2 + $0x112] sm:$0xff]  ;;  %v5561_v9 = vpack.c.bf16 %v1820_v35, %v1819_v42  ;;  %v1823_v42 = vld [vmem:[#allocation12 + $0x150] sm:$0xff] }
 0x15b   : > { %4880 = vmatprep.mubr.f32.mxu1 %v7113_v10  ;;  %5224 = vmatprep.mubr.f32.mxu0 %v7570_v27  ;;  %v7587_v10 = vld [vmem:[#allocation2 + $0x122] sm:$0xff]  ;;  %v1824_v35 = vld [vmem:[#allocation12 + $0x158] sm:$0xff] }
 0x15c   : > { %5554 = vmatprep.subr.bf16.mxu1 %v5553_v57 }
 0x15d   : > { %4881 = vmatmul.mubr.f32.gmra.mrb[2].mxu1 %v7172_v33  ;;  %v7593_v33 = vld [vmem:[#allocation2 + $0x12a] sm:$0xff] }
 0x15e   : > { %5225 = vmatmul.mubr.f32.gmra.mrb[18].mxu0 %v7577_v58  ;;  %4883 = vmatprep.mubr.f32.mxu1 %v7182_v45  ;;  %v7595_v45 = vld [vmem:[#allocation2 + $0x13a] sm:$0xff] }
 0x15f   : > { %5227 = vmatprep.mubr.f32.mxu0 %v7579_v18  ;;  %5556 = vmatpush3.bf16.msra.mxu1 %v5553_v57  ;;  %v5565_v57 = vpack.c.bf16 %v1822_v6, %v1821_v4  ;;  %v1825_v4 = vld [vmem:[#allocation12 + $0x160] sm:$0xff]  ;;  %v1826_v6 = vld [vmem:[#allocation12 + $0x168] sm:$0xff] }
 0x160   : > { %5558 = vmatprep.subr.bf16.mxu1 %v5557_v53 }
 0x161   : > { %4884 = vmatmul.mubr.f32.gmra.mrb[4].mxu1 %v7217_v11  ;;  %v7601_v11 = vld [vmem:[#allocation2 + $0x142] sm:$0xff] }
 0x162   : > { %5228 = vmatmul.mubr.f32.gmra.mrb[20].mxu0 %v7585_v14  ;;  %4886 = vmatprep.mubr.f32.mxu1 %v7227_v48  ;;  %v7603_v48 = vld [vmem:[#allocation2 + $0x152] sm:$0xff] }
 0x163   : > { %5230 = vmatprep.mubr.f32.mxu0 %v7587_v10  ;;  %5560 = vmatpush3.bf16.msra.mxu1 %v5557_v53  ;;  %8123 = vst [vmem:[#allocation44_spill] sm:$0xff] %v7603_v48  ;;  %v5569_v53 = vpack.c.bf16 %v1824_v35, %v1823_v42  ;;  %v1827_v42 = vld [vmem:[#allocation12 + $0x170] sm:$0xff]  ;;  %v1828_v35 = vld [vmem:[#allocation12 + $0x178] sm:$0xff] }
 0x164   : > { %5562 = vmatprep.subr.bf16.mxu1 %v5561_v9 }
 0x165   : > { %4887 = vmatmul.mubr.f32.gmra.mrb[6].mxu1 %v7256_v63  ;;  %v7609_v63 = vld [vmem:[#allocation2 + $0x15a] sm:$0xff] }
 0x166   : > { %5231 = vmatmul.mubr.f32.gmra.mrb[22].mxu0 %v7593_v33  ;;  %4889 = vmatprep.mubr.f32.mxu1 %v7267_v38  ;;  %v7611_v38 = vld [vmem:[#allocation2 + $0x16a] sm:$0xff] }
 0x167   : > { %5233 = vmatprep.mubr.f32.mxu0 %v7595_v45  ;;  %5564 = vmatpush3.bf16.msra.mxu1 %v5561_v9  ;;  %v5573_v9 = vpack.c.bf16 %v1826_v6, %v1825_v4  ;;  %v2120_v4 = vld [vmem:[#allocation12 + $0x188] sm:$0xff] }
 0x168   : > { %5566 = vmatprep.subr.bf16.mxu1 %v5565_v57 }
 0x169   : > { %4890 = vmatmul.mubr.f32.gmra.mrb[8].mxu1 %v7305_v23  ;;  %v7617_v23 = vld [vmem:[#allocation2 + $0x172] sm:$0xff] }
 0x16a   : > { %5234 = vmatmul.mubr.f32.gmra.mrb[24].mxu0 %v7601_v11  ;;  %4892 = vmatprep.mubr.f32.mxu1 %v7313_v31  ;;  %v2727_v31 = vld [vmem:[#allocation2 + $0x182] sm:$0xff] }
 0x16b   : > { %5236 = vmatprep.mubr.f32.mxu0 %v7603_v48  ;;  %5568 = vmatpush3.bf16.msra.mxu1 %v5565_v57  ;;  %v5577_v57 = vpack.c.bf16 %v1828_v35, %v1827_v42  ;;  %v2119_v48 = vld [vmem:[#allocation12 + $0x180] sm:$0xff]  ;;  %v3343_v42 = vld [vmem:[#allocation12 + $0x398] sm:$0xff] }
 0x16c   : > { %5570 = vmatprep.subr.bf16.mxu1 %v5569_v53  ;;  %v7624_v6 = vpack.c.bf16 %v2120_v4, %v2119_v48  ;;  %v3345_v48 = vld [vmem:[#allocation12 + $0x3a8] sm:$0xff] }
 0x16d   : > { %4893 = vmatmul.mubr.f32.gmra.mrb[10].mxu1 %v7345_v52  ;;  %v2728_v52 = vld [vmem:[#allocation2 + $0x18a] sm:$0xff]  ;;  %v7647_v4 = vld [vmem:[#allocation2 + $0x60] sm:$0xff] }
 0x16e   : > { %5237 = vmatmul.mubr.f32.gmra.mrb[26].mxu0 %v7609_v63  ;;  %4895 = vmatprep.mubr.f32.mxu1 %v7356_v5  ;;  %v7622_v5 = vld [vmem:[#allocation2 + $0x30] sm:$0xff]  ;;  %8129 = vst [vmem:[#allocation50_spill] sm:$0xff] %v7647_v4 }
 0x16f   : > { %5239 = vmatprep.mubr.f32.mxu0 %v7611_v38  ;;  %5572 = vmatpush3.bf16.msra.mxu1 %v5569_v53  ;;  %8124 = vst [vmem:[#allocation45_spill] sm:$0xff] %v7622_v5  ;;  %v3342_v53 = vld [vmem:[#allocation12 + $0x390] sm:$0xff] }
 0x170   : > { %5574 = vmatprep.subr.bf16.mxu1 %v5573_v9  ;;  %v5713_v35 = vpack.c.bf16 %v3343_v42, %v3342_v53  ;;  %v3347_v53 = vld [vmem:[#allocation12 + $0x3b8] sm:$0xff]  ;;  %v7652_v42 = vld [vmem:[#allocation2 + $0xf9] sm:$0xff] }
 0x171   : > { %4896 = vmatmul.mubr.f32.gmra.mrb[12].mxu1 %v7390_v24  ;;  %v7629_v24 = vld [vmem:[#allocation2 + $0x38] sm:$0xff] }
 0x172   : > { %5240 = vmatmul.mubr.f32.gmra.mrb[28].mxu0 %v7617_v23  ;;  %4898 = vmatprep.mubr.f32.mxu1 %v7396_v59  ;;  %8125 = vst [vmem:[#allocation46_spill] sm:$0xff] %v7629_v24  ;;  %v7631_v59 = vld [vmem:[#allocation2 + $0xd9] sm:$0xff] }
 0x173   : > { %5242 = vmatprep.mubr.f32.mxu0 %v2727_v31  ;;  %5576 = vmatpush3.bf16.msra.mxu1 %v5573_v9  ;;  %v7633_v9 = vld [vmem:[#allocation2 + $0x48] sm:$0xff]  ;;  %v7643_v31 = vld [vmem:[#allocation2 + $0x50] sm:$0xff] }
 0x174   : > { %5578 = vmatprep.subr.bf16.mxu1 %v5577_v57  ;;  %8126 = vst [vmem:[#allocation47_spill] sm:$0xff] %v7633_v9  ;;  %8127 = vst [vmem:[#allocation48_spill] sm:$0xff] %v7643_v31 }
 0x175   : > { %4899 = vmatmul.mubr.f32.gmra.mrb[14].mxu1 %v7422_v36  ;;  %v3344_v36 = vld [vmem:[#allocation12 + $0x3a0] sm:$0xff] }
 0x176   : > { %5243 = vmatmul.mubr.f32.gmra.mrb[30].mxu0 %v2728_v52  ;;  %4901 = vmatprep.mubr.f32.mxu1 %v7424_v1  ;;  %v7639_v1 = vld [vmem:[#allocation2 + $0xe1] sm:$0xff] }
 0x177   : > { %5277 = vmatprep.mubr.f32.mxu0 %v7622_v5  ;;  %5580 = vmatpush3.bf16.msra.mxu1 %v5577_v57  ;;  %v7645_v57 = vld [vmem:[#allocation2 + $0xf1] sm:$0xff]  ;;  %v3346_v52 = vld [vmem:[#allocation12 + $0x3b0] sm:$0xff] }
 0x178   : > { %5582 = vmatprep.subr.bf16.mxu1 %v7624_v6  ;;  %8128 = vst [vmem:[#allocation49_spill] sm:$0xff] %v7645_v57  ;;  %v6206_v5 = vld [vmem:[#allocation2 + $0x78] sm:$0xff] }
 0x179   : > { %4902 = vmatmul.mubr.f32.gmra.mrb[16].mxu1 %v7449_v0  ;;  %v5717_v0 = vpack.c.bf16 %v3345_v48, %v3344_v36  ;;  %v3348_v36 = vld [vmem:[#allocation12 + $0x3c0] sm:$0xff]  ;;  %v3349_v48 = vld [vmem:[#allocation12 + $0x3c8] sm:$0xff] }
 0x17a   : > { %5278 = vmatmul.mubr.f32.vlgmr.msra.gmra.mrb[0].mxu0 %v7629_v24  ;;  %4904 = vmatprep.mubr.f32.mxu1 %v7631_v59  ;;  %v5721_v24 = vpack.c.bf16 %v3347_v53, %v3346_v52  ;;  %v3351_v52 = vld [vmem:[#allocation12 + $0x3d8] sm:$0xff]  ;;  %v6207_v53 = vld [vmem:[#allocation2 + $0x80] sm:$0xff] }
 0x17b   : > { %5280 = vmatprep.mubr.f32.mxu0 %v7633_v9  ;;  %5712 = vmatpush3.bf16.msra.mxu0 %v7563_v56  ;;  %v7655_v56 = vld [vmem:[#allocation2 + $0x68] sm:$0xff] }
 0x17c   : > { %5714 = vmatprep.subr.bf16.mxu0 %v5713_v35  ;;  %8130 = vst [vmem:[#allocation51_spill] sm:$0xff] %v7655_v56  ;;  %v7657_v9 = vld [vmem:[#allocation2 + $0x109] sm:$0xff] }
 0x17d   : > { %4905 = vmatmul.mubr.f32.gmra.mrb[18].mxu1 %v7639_v1 }
 0x17e   : > { %5281 = vmatmul.mubr.f32.gmra.mrb[2].mxu0 %v7643_v31  ;;  %4907 = vmatprep.mubr.f32.mxu1 %v7645_v57  ;;  %v7662_v31 = vld [vmem:[#allocation2 + $0x111] sm:$0xff]  ;;  %v5725_v57 = vpack.c.bf16 %v3349_v48, %v3348_v36  ;;  %v3353_v48 = vld [vmem:[#allocation12 + $0x3e8] sm:$0xff] }
 0x17f   : > { %5283 = vmatprep.mubr.f32.mxu0 %v7647_v4  ;;  %5716 = vmatpush3.bf16.msra.mxu0 %v5713_v35  ;;  %v7664_v4 = vld [vmem:[#allocation2 + $0x121] sm:$0xff]  ;;  %v3352_v36 = vld [vmem:[#allocation12 + $0x3e0] sm:$0xff] }
 0x180   : > { %5718 = vmatprep.subr.bf16.mxu0 %v5717_v0  ;;  %v3350_v35 = vld [vmem:[#allocation12 + $0x3d0] sm:$0xff] }
 0x181   : > { %4908 = vmatmul.mubr.f32.gmra.mrb[20].mxu1 %v7652_v42 }
 0x182   : > { %5284 = vmatmul.mubr.f32.gmra.mrb[4].mxu0 %v7655_v56  ;;  %4910 = vmatprep.mubr.f32.mxu1 %v7657_v9  ;;  %v7668_v56 = vld [vmem:[#allocation2 + $0x129] sm:$0xff] }
 0x183   : > { %5286 = vmatprep.mubr.f32.mxu0 %v6206_v5  ;;  %5720 = vmatpush3.bf16.msra.mxu0 %v5717_v0  ;;  %v7673_v5 = vld [vmem:[#allocation2 + $0x139] sm:$0xff]  ;;  %v5729_v0 = vpack.c.bf16 %v3351_v52, %v3350_v35  ;;  %v3354_v35 = vld [vmem:[#allocation12 + $0x3f0] sm:$0xff]  ;;  %v3355_v52 = vld [vmem:[#allocation12 + $0x3f8] sm:$0xff] }
 0x184   : > { %5722 = vmatprep.subr.bf16.mxu0 %v5721_v24 }
 0x185   : > { %4911 = vmatmul.mubr.f32.gmra.mrb[22].mxu1 %v7662_v31 }
 0x186   : > { %5287 = vmatmul.mubr.f32.gmra.mrb[6].mxu0 %v6207_v53  ;;  %4913 = vmatprep.mubr.f32.mxu1 %v7664_v4  ;;  %v7678_v53 = vld [vmem:[#allocation2 + $0x141] sm:$0xff] }
 0x187   : > { %6226 = vmatprep.mubr.msk.f32.mxu0 %vm532_vm0, %v7160_v7  ;;  %5724 = vmatpush3.bf16.msra.mxu0 %v5721_v24  ;;  %v7683_v7 = vld [vmem:[#allocation2 + $0x151] sm:$0xff]  ;;  %v5733_v24 = vpack.c.bf16 %v3353_v48, %v3352_v36  ;;  %v3646_v48 = vld [vmem:[#allocation12 + $0x408] sm:$0xff] }
 0x188   : > { %5726 = vmatprep.subr.bf16.mxu0 %v5725_v57  ;;  %v3645_v36 = vld [vmem:[#allocation12 + $0x400] sm:$0xff] }
 0x189   : > { %4914 = vmatmul.mubr.f32.gmra.mrb[24].mxu1 %v7668_v56 }
 0x18a   : > { %5290 = vmatmul.mubr.f32.gmra.mrb[8].mxu0 %v7165_v22  ;;  %4916 = vmatprep.mubr.f32.mxu1 %v7673_v5  ;;  %v7688_v22 = vld [vmem:[#allocation2 + $0x159] sm:$0xff] }
 0x18b   : > { %6227 = vmatprep.mubr.msk.f32.mxu0 %vm532_vm0, %v7187_v50  ;;  %5728 = vmatpush3.bf16.msra.mxu0 %v5725_v57  ;;  %v7693_v50 = vld [vmem:[#allocation2 + $0x169] sm:$0xff]  ;;  %v5737_v57 = vpack.c.bf16 %v3355_v52, %v3354_v35 }
 0x18c   : > { %5730 = vmatprep.subr.bf16.mxu0 %v5729_v0  ;;  %8131 = vst [vmem:[#allocation52_spill] sm:$0xff] %v7693_v50  ;;  %v2121_v35 = vld [vmem:[#allocation12 + $0x190] sm:$0xff]  ;;  %v2122_v52 = vld [vmem:[#allocation12 + $0x198] sm:$0xff] }
 0x18d   : > { %4917 = vmatmul.mubr.f32.gmra.mrb[26].mxu1 %v7678_v53 }
 0x18e   : > { %5293 = vmatmul.mubr.f32.gmra.mrb[10].mxu0 %v7189_v51  ;;  %4919 = vmatprep.mubr.f32.mxu1 %v7683_v7  ;;  %v7698_v51 = vld [vmem:[#allocation2 + $0x171] sm:$0xff] }
 0x18f   : > { %6228 = vmatprep.mubr.msk.f32.mxu0 %vm532_vm0, %v7221_v32  ;;  %5732 = vmatpush3.bf16.msra.mxu0 %v5729_v0  ;;  %v1781_v32 = vld [vmem:[#allocation2 + $0x2] sm:$0xff]  ;;  %v7703_v0 = vpack.c.bf16 %v3646_v48, %v3645_v36  ;;  %v3649_v36 = vld [vmem:[#allocation12 + $0x420] sm:$0xff] }
 0x190   : > { %5734 = vmatprep.subr.bf16.mxu0 %v5733_v24  ;;  %v3650_v48 = vld [vmem:[#allocation12 + $0x428] sm:$0xff] }
 0x191   : > { %4920 = vmatmul.mubr.f32.gmra.mrb[28].mxu1 %v7688_v22 }
 0x192   : > { %5296 = vmatmul.mubr.f32.gmra.mrb[12].mxu0 %v7229_v43  ;;  %4922 = vmatprep.mubr.f32.mxu1 %v7693_v50  ;;  %v1782_v43 = vld [vmem:[#allocation2 + $0xa] sm:$0xff]  ;;  %v5585_v50 = vpack.c.bf16 %v2122_v52, %v2121_v35  ;;  %v3312_v52 = vld [vmem:[#allocation2 + $0x61] sm:$0xff] }
 0x193   : > { %6229 = vmatprep.mubr.msk.f32.mxu0 %vm532_vm0, %v7262_v39  ;;  %5736 = vmatpush3.bf16.msra.mxu0 %v5733_v24  ;;  %v2123_v39 = vld [vmem:[#allocation12 + $0x1a0] sm:$0xff]  ;;  %v2124_v24 = vld [vmem:[#allocation12 + $0x1a8] sm:$0xff] }
 0x194   : > { %5738 = vmatprep.subr.bf16.mxu0 %v5737_v57  ;;  %v3311_v35 = vld [vmem:[#allocation2 + $0x51] sm:$0xff] }
 0x195   : > { %4923 = vmatmul.mubr.f32.gmra.mrb[30].mxu1 %v7698_v51 }
 0x196   : > { %5299 = vmatmul.mubr.f32.gmra.mrb[14].mxu0 %v7269_v16  ;;  %4957 = vmatprep.mubr.f32.mxu1 %v1781_v32  ;;  %v5589_v16 = vpack.c.bf16 %v2124_v24, %v2123_v39  ;;  %v8139_v32 = vld [vmem:[#allocation43_spill] sm:$0xff]  ;;  %v3651_v39 = vld [vmem:[#allocation12 + $0x430] sm:$0xff]  ;;  %v3652_v24 = vld [vmem:[#allocation12 + $0x438] sm:$0xff] }
 0x197   : > { %6230 = vmatprep.mubr.msk.f32.mxu0 %vm532_vm0, %v7271_v61  ;;  %5740 = vmatpush3.bf16.msra.mxu0 %v5737_v57  ;;  %v2125_v61 = vld [vmem:[#allocation12 + $0x1b0] sm:$0xff]  ;;  %v2126_v57 = vld [vmem:[#allocation12 + $0x1b8] sm:$0xff] }
 0x198   : > { %5742 = vmatprep.subr.bf16.mxu0 %v7703_v0 }
 0x199   : > { %4958 = vmatmul.mubr.f32.vlgmr.msra.gmra.mrb[0].mxu1 %v1782_v43  ;;  %v5749_v43 = vpack.c.bf16 %v3650_v48, %v3649_v36  ;;  %v2100_v36 = vld [vmem:[#allocation2 + $0xb0] sm:$0xff] }
 0x19a   : > { %5302 = vmatmul.mubr.f32.gmra.mrb[16].mxu0 %v7273_v44  ;;  %5584 = vmatpush3.bf16.msra.mxu1 %v7624_v6  ;;  %v5593_v44 = vpack.c.bf16 %v2126_v57, %v2125_v61  ;;  %v5753_v61 = vpack.c.bf16 %v3652_v24, %v3651_v39  ;;  %v3654_v57 = vld [vmem:[#allocation12 + $0x448] sm:$0xff]  ;;  %v7804_v48 = vld [vmem:[#allocation2 + $0x189] sm:$0xff] }
 0x19b   : > { %4960 = vmatprep.mubr.f32.mxu1 %v7455_v29  ;;  %6231 = vmatprep.mubr.msk.f32.mxu0 %vm532_vm0, %v7307_v37  ;;  %v2127_v37 = vld [vmem:[#allocation12 + $0x1c0] sm:$0xff]  ;;  %v2128_v29 = vld [vmem:[#allocation12 + $0x1c8] sm:$0xff] }
 0x19c   : > { %5586 = vmatprep.subr.bf16.mxu1 %v5585_v50  ;;  %v3339_v39 = vld [vmem:[#allocation2 + $0x1a1] sm:$0xff]  ;;  %v2103_v24 = vld [vmem:[#allocation2 + $0xd8] sm:$0xff] }
 0x19d   : > { %4961 = vmatmul.mubr.f32.gmra.mrb[2].mxu1 %v7478_v26  ;;  %v2130_v26 = vld [vmem:[#allocation12 + $0x1d8] sm:$0xff] }
 0x19e   : > { %5305 = vmatmul.mubr.f32.gmra.mrb[18].mxu0 %v7315_v41  ;;  %4963 = vmatprep.mubr.f32.mxu1 %v7482_v54  ;;  %v5597_v41 = vpack.c.bf16 %v2128_v29, %v2127_v37  ;;  %v2132_v54 = vld [vmem:[#allocation12 + $0x1e8] sm:$0xff]  ;;  %v3656_v29 = vld [vmem:[#allocation12 + $0x458] sm:$0xff] }
 0x19f   : > { %6232 = vmatprep.mubr.msk.f32.mxu0 %vm532_vm0, %v7326_v55  ;;  %5588 = vmatpush3.bf16.msra.mxu1 %v5585_v50  ;;  %v2129_v55 = vld [vmem:[#allocation12 + $0x1d0] sm:$0xff]  ;;  %v8138_v50 = vld [vmem:[#allocation31_spill] sm:$0xff] }
 0x1a0   : > { %5590 = vmatprep.subr.bf16.mxu1 %v5589_v16 }
 0x1a1   : > { %4964 = vmatmul.mubr.f32.gmra.mrb[4].mxu1 %v7499_v21  ;;  %v2134_v21 = vld [vmem:[#allocation12 + $0x1f8] sm:$0xff] }
 0x1a2   : > { %5308 = vmatmul.mubr.f32.gmra.mrb[20].mxu0 %v7328_v13  ;;  %4966 = vmatprep.mubr.f32.mxu1 %v7501_v12  ;;  %v5601_v13 = vpack.c.bf16 %v2130_v26, %v2129_v55  ;;  %v8132_v12 = vmax.f32 %v7460_v17, 0.0  ;;  %v3647_v17 = vld [vmem:[#allocation12 + $0x410] sm:$0xff]  ;;  %v3658_v26 = vld [vmem:[#allocation12 + $0x468] sm:$0xff] }
 0x1a3   : > { %6233 = vmatprep.mubr.msk.f32.mxu0 %vm532_vm0, %v7353_v49  ;;  %5592 = vmatpush3.bf16.msra.mxu1 %v5589_v16  ;;  %v2131_v49 = vld [vmem:[#allocation12 + $0x1e0] sm:$0xff]  ;;  %v5745_v6 = vpack.c.bf16 %v3648_v19, %v3647_v17 }
 0x1a4   : > { %5594 = vmatprep.subr.bf16.mxu1 %v5593_v44  ;;  %v3314_v16 = vld [vmem:[#allocation2 + $0x79] sm:$0xff]  ;;  %v2097_v17 = vld [vmem:[#allocation2 + $0x90] sm:$0xff] }
 0x1a5   : > { %4967 = vmatmul.mubr.f32.gmra.mrb[6].mxu1 %v7509_v20  ;;  %v8151_v19 = vld [vmem:[#allocation35_spill] sm:$0xff] }
 0x1a6   : > { %5311 = vmatmul.mubr.f32.gmra.mrb[22].mxu0 %v7359_v15  ;;  %4969 = vmatprep.mubr.f32.mxu1 %v7511_v46  ;;  %v5605_v15 = vpack.c.bf16 %v2132_v54, %v2131_v49  ;;  %v8135_v46 = vld [vmem:[#allocation40_spill] sm:$0xff]  ;;  %v3660_v54 = vld [vmem:[#allocation12 + $0x478] sm:$0xff] }
 0x1a7   : > { %6234 = vmatprep.mubr.msk.f32.mxu0 %vm532_vm0, %v7361_v8  ;;  %5596 = vmatpush3.bf16.msra.mxu1 %v5593_v44  ;;  %v2133_v8 = vld [vmem:[#allocation12 + $0x1f0] sm:$0xff]  ;;  %v3316_v44 = vld [vmem:[#allocation2 + $0x91] sm:$0xff] }
 0x1a8   : > { %5598 = vmatprep.subr.bf16.mxu1 %v5597_v41 }
 0x1a9   : > { %4970 = vmatmul.mubr.f32.gmra.mrb[8].mxu1 %v7519_v34  ;;  %v6208_v34 = vld [vmem:[#allocation2] sm:$0xff] }
 0x1aa   : > { %5314 = vmatmul.mubr.f32.gmra.mrb[24].mxu0 %v7363_v30  ;;  %4972 = vmatprep.mubr.f32.mxu1 %v7521_v25  ;;  %v5609_v30 = vpack.c.bf16 %v2134_v21, %v2133_v8  ;;  %v8136_v25 = vld [vmem:[#allocation41_spill] sm:$0xff] }
 0x1ab   : > { %6235 = vmatprep.mubr.msk.f32.mxu0 %vm532_vm0, %v7399_v47  ;;  %5600 = vmatpush3.bf16.msra.mxu1 %v5597_v41  ;;  %v8133_v47 = vld [vmem:[#allocation39_spill] sm:$0xff]  ;;  %v3318_v41 = vld [vmem:[#allocation2 + $0xa9] sm:$0xff] }
 0x1ac   : > { %5602 = vmatprep.subr.bf16.mxu1 %v5601_v13  ;;  %v8134_v20 = vmax.f32 %v8133_v47, 0.0  ;;  %v8141_v21 = vld [vmem:[#allocation49_spill] sm:$0xff]  ;;  %v8147_v47 = vld [vmem:[#allocation48_spill] sm:$0xff] }
 0x1ad   : > { %4973 = vmatmul.mubr.f32.gmra.mrb[10].mxu1 %v7529_v62  ;;  %v8137_v62 = vld [vmem:[#allocation42_spill] sm:$0xff] }
 0x1ae   : > { %5317 = vmatmul.mubr.f32.gmra.mrb[26].mxu0 %v7406_v60  ;;  %4975 = vmatprep.mubr.f32.mxu1 %v7531_v2  ;;  %v3308_v60 = vld [vmem:[#allocation2 + $0x31] sm:$0xff]  ;;  %v3309_v2 = vld [vmem:[#allocation2 + $0x39] sm:$0xff] }
 0x1af   : > { %6236 = vmatprep.mubr.msk.f32.mxu0 %vm532_vm0, %v8132_v12  ;;  %5604 = vmatpush3.bf16.msra.mxu1 %v5601_v13  ;;  %v3320_v13 = vld [vmem:[#allocation2 + $0xc1] sm:$0xff]  ;;  %v8144_v12 = vld [vmem:[#allocation46_spill] sm:$0xff] }
 0x1b0   : > { %5606 = vmatprep.subr.bf16.mxu1 %v5605_v15 }
 0x1b1   : > { %4976 = vmatmul.mubr.f32.gmra.mrb[12].mxu1 %v7539_v28  ;;  %v3310_v28 = vld [vmem:[#allocation2 + $0x49] sm:$0xff] }
 0x1b2   : > { %5320 = vmatmul.mubr.f32.gmra.mrb[28].mxu0 %v8134_v20  ;;  %4978 = vmatprep.mubr.f32.mxu1 %v8135_v46  ;;  %v8148_v20 = vld [vmem:[#allocation50_spill] sm:$0xff] }
 0x1b3   : > { %5322 = vmatprep.mubr.f32.mxu0 %v6208_v34  ;;  %5608 = vmatpush3.bf16.msra.mxu1 %v5605_v15  ;;  %v8140_v15 = vld [vmem:[#allocation44_spill] sm:$0xff]  ;;  %v2095_v46 = vld [vmem:[#allocation2 + $0x78] sm:$0xff] }
 0x1b4   : > { %5610 = vmatprep.subr.bf16.mxu1 %v5609_v30 }
 0x1b5   : > { %4979 = vmatmul.mubr.f32.gmra.mrb[14].mxu1 %v8136_v25  ;;  %v2096_v25 = vld [vmem:[#allocation2 + $0x80] sm:$0xff] }
 0x1b6   : > { %5323 = vmatmul.mubr.f32.gmra.mrb[30].mxu0 %v6208_v34  ;;  %4981 = vmatprep.mubr.f32.mxu1 %v8137_v62  ;;  %v8149_v34 = vld [vmem:[#allocation34_spill] sm:$0xff] }
 0x1b7   : > { %5357 = vmatprep.mubr.f32.mxu0 %v3308_v60  ;;  %5612 = vmatpush3.bf16.msra.mxu1 %v5609_v30  ;;  %v8146_v30 = vld [vmem:[#allocation33_spill] sm:$0xff]  ;;  %v8150_v60 = vld [vmem:[#allocation51_spill] sm:$0xff] }
 0x1b8   : > { %5773 = vmatprep.subr.bf16.mxu1 %v8138_v50  ;;  %v2098_v62 = vld [vmem:[#allocation2 + $0x98] sm:$0xff] }
 0x1b9   : > { %4982 = vmatmul.mubr.f32.gmra.mrb[16].mxu1 %v7559_v40  ;;  %v3313_v40 = vld [vmem:[#allocation2 + $0x69] sm:$0xff] }
 0x1ba   : > { %5358 = vmatmul.mubr.f32.vlgmr.msra.gmra.mrb[0].mxu0 %v3309_v2  ;;  %4984 = vmatprep.mubr.f32.mxu1 %v8139_v32  ;;  %v8152_v2 = vld [vmem:[#allocation52_spill] sm:$0xff] }
 0x1bb   : > { %5360 = vmatprep.mubr.f32.mxu0 %v3310_v28  ;;  %5744 = vmatpush3.bf16.msra.mxu0 %v7703_v0  ;;  %v3653_v0 = vld [vmem:[#allocation12 + $0x440] sm:$0xff]  ;;  %v2099_v28 = vld [vmem:[#allocation2 + $0xa8] sm:$0xff]  ;;  %v2101_v32 = vld [vmem:[#allocation2 + $0xc0] sm:$0xff] }
 0x1bc   : > { %5746 = vmatprep.subr.bf16.mxu0 %v5745_v6  ;;  %v5757_v37 = vpack.c.bf16 %v3654_v57, %v3653_v0  ;;  %v3614_v0 = vld [vmem:[#allocation2 + $0x3a] sm:$0xff]  ;;  %v2105_v57 = vld [vmem:[#allocation2 + $0xf0] sm:$0xff] }
 0x1bd   : > { %4985 = vmatmul.mubr.f32.gmra.mrb[18].mxu1 %v7568_v3  ;;  %v3315_v3 = vld [vmem:[#allocation2 + $0x81] sm:$0xff] }
 0x1be   : > { %5361 = vmatmul.mubr.f32.gmra.mrb[2].mxu0 %v3311_v35  ;;  %4987 = vmatprep.mubr.f32.mxu1 %v7570_v27  ;;  %v3655_v27 = vld [vmem:[#allocation12 + $0x450] sm:$0xff]  ;;  %v3338_v35 = vld [vmem:[#allocation2 + $0x199] sm:$0xff] }
 0x1bf   : > { %5363 = vmatprep.mubr.f32.mxu0 %v3312_v52  ;;  %5748 = vmatpush3.bf16.msra.mxu0 %v5745_v6  ;;  %v5761_v55 = vpack.c.bf16 %v3656_v29, %v3655_v27  ;;  %v7799_v6 = vld [vmem:[#allocation2 + $0x181] sm:$0xff]  ;;  %v8154_v52 = vld [vmem:[#allocation37_spill] sm:$0xff] }
 0x1c0   : > { %5750 = vmatprep.subr.bf16.mxu0 %v5749_v43  ;;  %v2107_v27 = vld [vmem:[#allocation2 + $0x108] sm:$0xff] }
 0x1c1   : > { %4988 = vmatmul.mubr.f32.gmra.mrb[20].mxu1 %v7577_v58  ;;  %v3317_v58 = vld [vmem:[#allocation2 + $0x99] sm:$0xff]  ;;  %v3617_v29 = vld [vmem:[#allocation2 + $0x62] sm:$0xff] }
 0x1c2   : > { %5364 = vmatmul.mubr.f32.gmra.mrb[4].mxu0 %v3313_v40  ;;  %4990 = vmatprep.mubr.f32.mxu1 %v7579_v18  ;;  %v3657_v18 = vld [vmem:[#allocation12 + $0x460] sm:$0xff] }
 0x1c3   : > { %5366 = vmatprep.mubr.f32.mxu0 %v3314_v16  ;;  %5752 = vmatpush3.bf16.msra.mxu0 %v5749_v43  ;;  %v5765_v49 = vpack.c.bf16 %v3658_v26, %v3657_v18  ;;  %v2102_v43 = vld [vmem:[#allocation2 + $0xc8] sm:$0xff]  ;;  %v3613_v40 = vld [vmem:[#allocation2 + $0x32] sm:$0xff]  ;;  %v3619_v18 = vld [vmem:[#allocation2 + $0x7a] sm:$0xff] }
 0x1c4   : > { %5754 = vmatprep.subr.bf16.mxu0 %v5753_v61  ;;  %v8155_v16 = vld [vmem:[#allocation38_spill] sm:$0xff]  ;;  %v2110_v26 = vld [vmem:[#allocation2 + $0x128] sm:$0xff] }
 0x1c5   : > { %4991 = vmatmul.mubr.f32.gmra.mrb[22].mxu1 %v7585_v14  ;;  %v3319_v14 = vld [vmem:[#allocation2 + $0xb1] sm:$0xff] }
 0x1c6   : > { %5367 = vmatmul.mubr.f32.gmra.mrb[6].mxu0 %v3315_v3  ;;  %4993 = vmatprep.mubr.f32.mxu1 %v7587_v10  ;;  %v3659_v10 = vld [vmem:[#allocation12 + $0x470] sm:$0xff] }
 0x1c7   : > { %5369 = vmatprep.mubr.f32.mxu0 %v3316_v44  ;;  %5756 = vmatpush3.bf16.msra.mxu0 %v5753_v61  ;;  %v5769_v8 = vpack.c.bf16 %v3660_v54, %v3659_v10  ;;  %v2104_v61 = vld [vmem:[#allocation2 + $0xe0] sm:$0xff]  ;;  %v3615_v3 = vld [vmem:[#allocation2 + $0x4a] sm:$0xff]  ;;  %v2106_v44 = vld [vmem:[#allocation2 + $0xf8] sm:$0xff] }
 0x1c8   : > { %5758 = vmatprep.subr.bf16.mxu0 %v5757_v37  ;;  %v2112_v10 = vld [vmem:[#allocation2 + $0x140] sm:$0xff] }
 0x1c9   : > { %4994 = vmatmul.mubr.f32.gmra.mrb[24].mxu1 %v7593_v33  ;;  %v3321_v33 = vld [vmem:[#allocation2 + $0xc9] sm:$0xff]  ;;  %v3622_v54 = vld [vmem:[#allocation2 + $0x9a] sm:$0xff] }
 0x1ca   : > { %5370 = vmatmul.mubr.f32.gmra.mrb[8].mxu0 %v3317_v58  ;;  %4996 = vmatprep.mubr.f32.mxu1 %v7595_v45  ;;  %v2087_v45 = vld [vmem:[#allocation2 + $0x18] sm:$0xff]  ;;  %v2108_v58 = vld [vmem:[#allocation2 + $0x110] sm:$0xff] }
 0x1cb   : > { %5372 = vmatprep.mubr.f32.mxu0 %v3318_v41  ;;  %5760 = vmatpush3.bf16.msra.mxu0 %v5757_v37  ;;  %v3616_v37 = vld [vmem:[#allocation2 + $0x52] sm:$0xff]  ;;  %v3618_v41 = vld [vmem:[#allocation2 + $0x6a] sm:$0xff] }
 0x1cc   : > { %5762 = vmatprep.subr.bf16.mxu0 %v5761_v55 }
 0x1cd   : > { %4997 = vmatmul.mubr.f32.gmra.mrb[26].mxu1 %v7601_v11  ;;  %v2088_v11 = vld [vmem:[#allocation2 + $0x20] sm:$0xff] }
 0x1ce   : > { %5373 = vmatmul.mubr.f32.gmra.mrb[10].mxu0 %v3319_v14  ;;  %4999 = vmatprep.mubr.f32.mxu1 %v8140_v15  ;;  %v3620_v14 = vld [vmem:[#allocation2 + $0x82] sm:$0xff]  ;;  %v2113_v15 = vld [vmem:[#allocation2 + $0x150] sm:$0xff] }
 0x1cf   : > { %5375 = vmatprep.mubr.f32.mxu0 %v3320_v13  ;;  %5764 = vmatpush3.bf16.msra.mxu0 %v5761_v55  ;;  %v2109_v55 = vld [vmem:[#allocation2 + $0x120] sm:$0xff]  ;;  %v2111_v13 = vld [vmem:[#allocation2 + $0x138] sm:$0xff] }
 0x1d0   : > { %5766 = vmatprep.subr.bf16.mxu0 %v5765_v49 }
 0x1d1   : > { %5000 = vmatmul.mubr.f32.gmra.mrb[28].mxu1 %v7609_v63  ;;  %v8142_v63 = vld [vmem:[#allocation45_spill] sm:$0xff] }
 0x1d2   : > { %5376 = vmatmul.mubr.f32.gmra.mrb[12].mxu0 %v3321_v33  ;;  %5002 = vmatprep.mubr.f32.mxu1 %v7611_v38  ;;  %v8143_v38 = vld [vmem:[#allocation32_spill] sm:$0xff]  ;;  %v3623_v33 = vld [vmem:[#allocation2 + $0xaa] sm:$0xff] }
 0x1d3   : > { %5378 = vmatprep.mubr.f32.mxu0 %v7631_v59  ;;  %5768 = vmatpush3.bf16.msra.mxu0 %v5765_v49  ;;  %v3621_v49 = vld [vmem:[#allocation2 + $0x92] sm:$0xff] }
 0x1d4   : > { %5770 = vmatprep.subr.bf16.mxu0 %v5769_v8 }
 0x1d5   : > { %5003 = vmatmul.mubr.f32.gmra.mrb[30].mxu1 %v7617_v23  ;;  %v8145_v23 = vld [vmem:[#allocation47_spill] sm:$0xff] }
 0x1d6   : > { %5379 = vmatmul.mubr.f32.gmra.mrb[14].mxu0 %v7639_v1  ;;  %5037 = vmatprep.mubr.f32.mxu1 %v2087_v45  ;;  %v3624_v45 = vld [vmem:[#allocation2 + $0xb2] sm:$0xff] }
 0x1d7   : > { %5381 = vmatprep.mubr.f32.mxu0 %v8141_v21  ;;  %5772 = vmatpush3.bf16.msra.mxu0 %v5769_v8  ;;  %v2114_v8 = vld [vmem:[#allocation2 + $0x158] sm:$0xff] }
 0x1d9   : > { %5038 = vmatmul.mubr.f32.vlgmr.msra.gmra.mrb[0].mxu1 %v2088_v11  ;;  %v2115_v11 = vld [vmem:[#allocation2 + $0x168] sm:$0xff] }
 0x1da   : > { %5382 = vmatmul.mubr.f32.gmra.mrb[16].mxu0 %v7652_v42  ;;  %5781 = vmatpush3.bf16.msra.mxu1 %v8138_v50  ;;  %v8153_v50 = vld [vmem:[#allocation36_spill] sm:$0xff] }
 0x1db   : > { %5040 = vmatprep.mubr.f32.mxu1 %v8142_v63  ;;  %5384 = vmatprep.mubr.f32.mxu0 %v7657_v9  ;;  %v3625_v63 = vld [vmem:[#allocation2 + $0xc2] sm:$0xff] }
 0x1dc   : > { %5774 = vmatprep.subr.bf16.mxu1 %v8143_v38 }
 0x1dd   : > { %5041 = vmatmul.mubr.f32.gmra.mrb[2].mxu1 %v8144_v12  ;;  %v3626_v12 = vld [vmem:[#allocation2 + $0xca] sm:$0xff] }
 0x1de   : > { %5385 = vmatmul.mubr.f32.gmra.mrb[18].mxu0 %v7662_v31  ;;  %5043 = vmatprep.mubr.f32.mxu1 %v8145_v23  ;;  %v3627_v23 = vld [vmem:[#allocation2 + $0xda] sm:$0xff] }
 0x1df   : > { %5387 = vmatprep.mubr.f32.mxu0 %v7664_v4  ;;  %5782 = vmatpush3.bf16.msra.mxu1 %v8143_v38  ;;  %v2116_v38 = vld [vmem:[#allocation2 + $0x170] sm:$0xff] }
 0x1e0   : > { %5775 = vmatprep.subr.bf16.mxu1 %v8146_v30 }
 0x1e1   : > { %5044 = vmatmul.mubr.f32.gmra.mrb[4].mxu1 %v8147_v47  ;;  %v3628_v47 = vld [vmem:[#allocation2 + $0xe2] sm:$0xff] }
 0x1e2   : > { %5388 = vmatmul.mubr.f32.gmra.mrb[20].mxu0 %v7668_v56  ;;  %5046 = vmatprep.mubr.f32.mxu1 %v8148_v20  ;;  %v3629_v20 = vld [vmem:[#allocation2 + $0xf2] sm:$0xff] }
 0x1e3   : > { %5390 = vmatprep.mubr.f32.mxu0 %v7673_v5  ;;  %5783 = vmatpush3.bf16.msra.mxu1 %v8146_v30  ;;  %v6209_v30 = vld [vmem:[#allocation2 + $0x180] sm:$0xff] }
 0x1e4   : > { %5776 = vmatprep.subr.bf16.mxu1 %v8149_v34 }
 0x1e5   : > { %5047 = vmatmul.mubr.f32.gmra.mrb[6].mxu1 %v8150_v60  ;;  %v3631_v60 = vld [vmem:[#allocation2 + $0x10a] sm:$0xff] }
 0x1e6   : > { %5391 = vmatmul.mubr.f32.gmra.mrb[22].mxu0 %v7678_v53  ;;  %5049 = vmatprep.mubr.f32.mxu1 %v2095_v46  ;;  %v6210_v46 = vld [vmem:[#allocation2 + $0x188] sm:$0xff] }
 0x1e7   : > { %5393 = vmatprep.mubr.f32.mxu0 %v7683_v7  ;;  %5784 = vmatpush3.bf16.msra.mxu1 %v8149_v34  ;;  %v3630_v34 = vld [vmem:[#allocation2 + $0xfa] sm:$0xff] }
 0x1e8   : > { %5777 = vmatprep.subr.bf16.mxu1 %v8151_v19 }
 0x1e9   : > { %5050 = vmatmul.mubr.f32.gmra.mrb[8].mxu1 %v2096_v25  ;;  %v3632_v25 = vld [vmem:[#allocation2 + $0x112] sm:$0xff] }
 0x1ea   : > { %5394 = vmatmul.mubr.f32.gmra.mrb[24].mxu0 %v7688_v22  ;;  %5052 = vmatprep.mubr.f32.mxu1 %v2097_v17  ;;  %v3633_v17 = vld [vmem:[#allocation2 + $0x122] sm:$0xff] }
 0x1eb   : > { %5396 = vmatprep.mubr.f32.mxu0 %v8152_v2  ;;  %5785 = vmatpush3.bf16.msra.mxu1 %v8151_v19  ;;  %v3634_v19 = vld [vmem:[#allocation2 + $0x12a] sm:$0xff] }
 0x1ec   : > { %5778 = vmatprep.subr.bf16.mxu1 %v8153_v50 }
 0x1ed   : > { %5053 = vmatmul.mubr.f32.gmra.mrb[10].mxu1 %v2098_v62  ;;  %v3635_v62 = vld [vmem:[#allocation2 + $0x13a] sm:$0xff] }
 0x1ee   : > { %5397 = vmatmul.mubr.f32.gmra.mrb[26].mxu0 %v7698_v51  ;;  %5055 = vmatprep.mubr.f32.mxu1 %v2099_v28 }
 0x1ef   : > { %5399 = vmatprep.mubr.f32.mxu0 %v7799_v6  ;;  %5786 = vmatpush3.bf16.msra.mxu1 %v8153_v50 }
 0x1f0   : > { %5779 = vmatprep.subr.bf16.mxu1 %v8154_v52 }
 0x1f1   : > { %5056 = vmatmul.mubr.f32.gmra.mrb[12].mxu1 %v2100_v36 }
 0x1f2   : > { %5400 = vmatmul.mubr.f32.gmra.mrb[28].mxu0 %v7804_v48  ;;  %5058 = vmatprep.mubr.f32.mxu1 %v2101_v32 }
 0x1f3   : > { %5402 = vmatprep.mubr.f32.mxu0 %v3338_v35  ;;  %5787 = vmatpush3.bf16.msra.mxu1 %v8154_v52 }
 0x1f4   : > { %5780 = vmatprep.subr.bf16.mxu1 %v8155_v16 }
 0x1f5   : > { %5059 = vmatmul.mubr.f32.gmra.mrb[14].mxu1 %v2102_v43 }
 0x1f6   : > { %5403 = vmatmul.mubr.f32.gmra.mrb[30].mxu0 %v3339_v39  ;;  %5061 = vmatprep.mubr.f32.mxu1 %v2103_v24  ;;  %v7838_v24 = vld [vmem:[#allocation14] ss:$0 sm:$0xff] }
 0x1f7   : > { %5437 = vmatprep.mubr.f32.mxu0 %v3613_v40  ;;  %5788 = vmatpush3.bf16.msra.mxu1 %v8155_v16 }
 0x1f9   : > { %5062 = vmatmul.mubr.f32.gmra.mrb[16].mxu1 %v2104_v61 }
 0x1fa   : > { %5438 = vmatmul.mubr.f32.vlgmr.msra.gmra.mrb[0].mxu0 %v3614_v0  ;;  %5064 = vmatprep.mubr.f32.mxu1 %v2105_v57 }
 0x1fb   : > { %5440 = vmatprep.mubr.f32.mxu0 %v3615_v3 }
 0x1fd   : > { %5065 = vmatmul.mubr.f32.gmra.mrb[18].mxu1 %v2106_v44 }
 0x1fe   : > { %5441 = vmatmul.mubr.f32.gmra.mrb[2].mxu0 %v3616_v37  ;;  %5067 = vmatprep.mubr.f32.mxu1 %v2107_v27 }
 0x1ff   : > { %5443 = vmatprep.mubr.f32.mxu0 %v3617_v29 }
 0x201   : > { %5068 = vmatmul.mubr.f32.gmra.mrb[20].mxu1 %v2108_v58 }
 0x202   : > { %5444 = vmatmul.mubr.f32.gmra.mrb[4].mxu0 %v3618_v41  ;;  %5070 = vmatprep.mubr.f32.mxu1 %v2109_v55 }
 0x203   : > { %5446 = vmatprep.mubr.f32.mxu0 %v3619_v18 }
 0x205   : > { %5071 = vmatmul.mubr.f32.gmra.mrb[22].mxu1 %v2110_v26 }
 0x206   : > { %5447 = vmatmul.mubr.f32.gmra.mrb[6].mxu0 %v3620_v14  ;;  %5073 = vmatprep.mubr.f32.mxu1 %v2111_v13 }
 0x207   : > { %5449 = vmatprep.mubr.f32.mxu0 %v3621_v49 }
 0x209   : > { %5074 = vmatmul.mubr.f32.gmra.mrb[24].mxu1 %v2112_v10 }
 0x20a   : > { %5450 = vmatmul.mubr.f32.gmra.mrb[8].mxu0 %v3622_v54  ;;  %5076 = vmatprep.mubr.f32.mxu1 %v2113_v15 }
 0x20b   : > { %5452 = vmatprep.mubr.f32.mxu0 %v3623_v33 }
 0x20d   : > { %5077 = vmatmul.mubr.f32.gmra.mrb[26].mxu1 %v2114_v8 }
 0x20e   : > { %5453 = vmatmul.mubr.f32.gmra.mrb[10].mxu0 %v3624_v45  ;;  %5079 = vmatprep.mubr.f32.mxu1 %v2115_v11 }
 0x20f   : > { %5455 = vmatprep.mubr.f32.mxu0 %v3625_v63 }
 0x211   : > { %5080 = vmatmul.mubr.f32.gmra.mrb[28].mxu1 %v2116_v38 }
 0x212   : > { %5456 = vmatmul.mubr.f32.gmra.mrb[12].mxu0 %v3626_v12  ;;  %5082 = vmatprep.mubr.f32.mxu1 %v6209_v30 }
 0x213   : > { %5458 = vmatprep.mubr.f32.mxu0 %v3627_v23 }
 0x215   : > { %5083 = vmatmul.mubr.f32.gmra.mrb[30].mxu1 %v6210_v46 }
 0x216   : > { %5459 = vmatmul.mubr.f32.gmra.mrb[14].mxu0 %v3628_v47  ;;  %5141 = vmatprep.mubr.f32.mxu1 %v7631_v59  ;;  %v3636_v59 = vld [vmem:[#allocation2 + $0x142] sm:$0xff] }
 0x217   : > { %5461 = vmatprep.mubr.f32.mxu0 %v3629_v20 }
 0x219   : > { %5142 = vmatmul.mubr.f32.vlgmr.msra.gmra.mrb[16].mxu1 %v7639_v1  ;;  %v3637_v1 = vld [vmem:[#allocation2 + $0x152] sm:$0xff] }
 0x21a   : > { %5462 = vmatmul.mubr.f32.gmra.mrb[16].mxu0 %v3630_v34  ;;  %5144 = vmatprep.mubr.f32.mxu1 %v8141_v21  ;;  %v3639_v21 = vld [vmem:[#allocation2 + $0x16a] sm:$0xff] }
 0x21b   : > { %5464 = vmatprep.mubr.f32.mxu0 %v3631_v60 }
 0x21d   : > { %5145 = vmatmul.mubr.f32.gmra.mrb[18].mxu1 %v7652_v42  ;;  %v3638_v42 = vld [vmem:[#allocation2 + $0x15a] sm:$0xff] }
 0x21e   : > { %5465 = vmatmul.mubr.f32.gmra.mrb[18].mxu0 %v3632_v25  ;;  %5147 = vmatprep.mubr.f32.mxu1 %v7657_v9  ;;  %v3640_v9 = vld [vmem:[#allocation2 + $0x172] sm:$0xff] }
 0x21f   : > { %5467 = vmatprep.mubr.f32.mxu0 %v3633_v17 }
 0x221   : > { %5148 = vmatmul.mubr.f32.gmra.mrb[20].mxu1 %v7662_v31  ;;  %v3641_v31 = vld [vmem:[#allocation2 + $0x182] sm:$0xff] }
 0x222   : > { %5468 = vmatmul.mubr.f32.gmra.mrb[20].mxu0 %v3634_v19  ;;  %5150 = vmatprep.mubr.f32.mxu1 %v7664_v4  ;;  %v3642_v4 = vld [vmem:[#allocation2 + $0x18a] sm:$0xff] }
 0x223   : > { %5470 = vmatprep.mubr.f32.mxu0 %v3635_v62 }
 0x225   : > { %5151 = vmatmul.mubr.f32.gmra.mrb[22].mxu1 %v7668_v56  ;;  %v3643_v56 = vld [vmem:[#allocation2 + $0x19a] sm:$0xff] }
 0x226   : > { %5471 = vmatmul.mubr.f32.gmra.mrb[22].mxu0 %v3636_v59  ;;  %5153 = vmatprep.mubr.f32.mxu1 %v7673_v5  ;;  %v3644_v5 = vld [vmem:[#allocation2 + $0x1a2] sm:$0xff] }
 0x227   : > { %5473 = vmatprep.mubr.f32.mxu0 %v3637_v1 }
 0x229   : > { %5154 = vmatmul.mubr.f32.gmra.mrb[24].mxu1 %v7678_v53 }
 0x22a   : > { %5474 = vmatmul.mubr.f32.gmra.mrb[24].mxu0 %v3638_v42  ;;  %5156 = vmatprep.mubr.f32.mxu1 %v7683_v7 }
 0x22b   : > { %5476 = vmatprep.mubr.f32.mxu0 %v3639_v21 }
 0x22d   : > { %5157 = vmatmul.mubr.f32.gmra.mrb[26].mxu1 %v7688_v22 }
 0x22e   : > { %5477 = vmatmul.mubr.f32.gmra.mrb[26].mxu0 %v3640_v9  ;;  %5159 = vmatprep.mubr.f32.mxu1 %v8152_v2 }
 0x22f   : > { %5479 = vmatprep.mubr.f32.mxu0 %v3641_v31 }
 0x231   : > { %5160 = vmatmul.mubr.f32.gmra.mrb[28].mxu1 %v7698_v51 }
 0x232   : > { %5480 = vmatmul.mubr.f32.gmra.mrb[28].mxu0 %v3642_v4  ;;  %5162 = vmatprep.mubr.f32.mxu1 %v7799_v6 }
 0x233   : > { %5482 = vmatprep.mubr.f32.mxu0 %v3643_v56 }
 0x235   : > { %5163 = vmatmul.mubr.f32.gmra.mrb[30].mxu1 %v7804_v48 }
 0x236   : > { %5483 = vmatmul.mubr.f32.gmra.mrb[30].mxu0 %v3644_v5 }
 0x2ac   : > { %v5039_v53 = vpop.f32.mrb[0].mxu1 }
 0x2ad   : > { %v2201_v7 = vpop.f32.mrb[1].mxu1  ;;  %v5789_v16 = vadd.f32 %v5039_v53, %v7838_v24 }
 0x2ae   : > { %v5791_v61 = vadd.f32 %v7838_v24, %v2201_v7 }
 0x2b0   : > { %v5042_v22 = vpop.f32.mrb[2].mxu1 }
 0x2b1   : > { %v2211_v28 = vpop.f32.mrb[3].mxu1  ;;  %v5793_v37 = vadd.f32 %v5042_v22, %v7838_v24 }
 0x2b2   : > { %v5795_v29 = vadd.f32 %v7838_v24, %v2211_v28 }
 0x2b4   : > { %v5045_v50 = vpop.f32.mrb[4].mxu1 }
 0x2b5   : > { %v2221_v2 = vpop.f32.mrb[5].mxu1  ;;  %v5797_v49 = vadd.f32 %v5045_v50, %v7838_v24 }
 0x2b6   : > { %v5799_v10 = vadd.f32 %v7838_v24, %v2221_v2 }
 0x2b8   : > { %v5048_v36 = vpop.f32.mrb[6].mxu1 }
 0x2b9   : > { %v2231_v32 = vpop.f32.mrb[7].mxu1  ;;  %v5801_v23 = vadd.f32 %v5048_v36, %v7838_v24 }
 0x2ba   : > { %v5803_v30 = vadd.f32 %v7838_v24, %v2231_v32 }
 0x2bc   : > { %v5051_v35 = vpop.f32.mrb[8].mxu1 }
 0x2bd   : > { %v2241_v52 = vpop.f32.mrb[9].mxu1  ;;  %v5805_v1 = vadd.f32 %v5051_v35, %v7838_v24 }
 0x2be   : > { %v5807_v42 = vadd.f32 %v7838_v24, %v2241_v52 }
 0x2c0   : > { %v7828_v51 = vpop.f32.mrb[10].mxu1 }
 0x2c1   : > { %v7830_v43 = vpop.f32.mrb[11].mxu1  ;;  %v5809_v50 = vadd.f32 %v7828_v51, %v7838_v24 }
 0x2c2   : > { %v5811_v2 = vadd.f32 %v7838_v24, %v7830_v43 }
 0x2c4   : > { %v7832_v6 = vpop.f32.mrb[12].mxu1 }
 0x2c5   : > { %v7834_v39 = vpop.f32.mrb[13].mxu1  ;;  %v5813_v51 = vadd.f32 %v7832_v6, %v7838_v24 }
 0x2c6   : > { %v5815_v43 = vadd.f32 %v7838_v24, %v7834_v39 }
 0x2c8   : > { %v7836_v48 = vpop.f32.mrb[14].mxu1 }
 0x2c9   : > { %v7840_v40 = vpop.f32.mrb[15].mxu1  ;;  %v5817_v6 = vadd.f32 %v7836_v48, %v7838_v24 }
 0x2ca   : > { %v5819_v39 = vadd.f32 %v7838_v24, %v7840_v40 }
 0x2cd   : > { %v5439_v0 = vpop.f32.mrb[0].mxu0 }
 0x2ce   : > { %v5790_v57 = vadd.f32 %v5789_v16, %v5439_v0  ;;  %v3727_v3 = vpop.f32.mrb[1].mxu0 }
 0x2cf   : > { %v5792_v44 = vadd.f32 %v5791_v61, %v3727_v3 }
 0x2d0   : > { %3919 = vst [vmem:[%s7846_s13 + $0x8] sm:$0xff] %v5790_v57  ;;  %v3989_v27 = vmul.f32 %v5790_v57, %v5790_v57 }
 0x2d1   : > { %3918 = vst [vmem:[%s7846_s13] sm:$0xff] %v5792_v44  ;;  %v3950_v58 = vadd.f32 %v5792_v44, %v5790_v57  ;;  %v3988_v41 = vmul.f32 %v5792_v44, %v5792_v44  ;;  %v5442_v55 = vpop.f32.mrb[2].mxu0 }
 0x2d2   : > { %v5794_v18 = vadd.f32 %v5793_v37, %v5442_v55  ;;  %v3737_v26 = vpop.f32.mrb[3].mxu0 }
 0x2d3   : > { %v4020_v14 = vadd.f32 %v3989_v27, %v3988_v41  ;;  %v5796_v13 = vadd.f32 %v5795_v29, %v3737_v26 }
 0x2d4   : > { %3921 = vst [vmem:[%s7846_s13 + $0x18] sm:$0xff] %v5794_v18  ;;  %v3991_v11 = vmul.f32 %v5794_v18, %v5794_v18 }
 0x2d5   : > { %3920 = vst [vmem:[%s7846_s13 + $0x10] sm:$0xff] %v5796_v13  ;;  %v3951_v54 = vadd.f32 %v5796_v13, %v3950_v58  ;;  %v3990_v15 = vmul.f32 %v5796_v13, %v5796_v13  ;;  %v5445_v33 = vpop.f32.mrb[4].mxu0 }
 0x2d6   : > { %v5798_v8 = vadd.f32 %v5797_v49, %v5445_v33  ;;  %v3747_v45 = vpop.f32.mrb[5].mxu0 }
 0x2d7   : > { %v4021_v63 = vadd.f32 %v4020_v14, %v3990_v15  ;;  %v5800_v38 = vadd.f32 %v5799_v10, %v3747_v45  ;;  %v3952_v12 = vadd.f32 %v5794_v18, %v3951_v54 }
 0x2d8   : > { %3923 = vst [vmem:[%s7846_s13 + $0x28] sm:$0xff] %v5798_v8  ;;  %v3993_v17 = vmul.f32 %v5798_v8, %v5798_v8 }
 0x2d9   : > { %3922 = vst [vmem:[%s7846_s13 + $0x20] sm:$0xff] %v5800_v38  ;;  %v3953_v47 = vadd.f32 %v5800_v38, %v3952_v12  ;;  %v3992_v20 = vmul.f32 %v5800_v38, %v5800_v38  ;;  %v4022_v46 = vadd.f32 %v4021_v63, %v3991_v11  ;;  %v5448_v34 = vpop.f32.mrb[6].mxu0 }
 0x2da   : > { %v5802_v60 = vadd.f32 %v5801_v23, %v5448_v34  ;;  %v3757_v25 = vpop.f32.mrb[7].mxu0 }
 0x2db   : > { %v4023_v19 = vadd.f32 %v4022_v46, %v3992_v20  ;;  %v5804_v62 = vadd.f32 %v5803_v30, %v3757_v25  ;;  %v3954_v59 = vadd.f32 %v5798_v8, %v3953_v47 }
 0x2dc   : > { %3925 = vst [vmem:[%s7846_s13 + $0x38] sm:$0xff] %v5802_v60  ;;  %v3995_v53 = vmul.f32 %v5802_v60, %v5802_v60 }
 0x2dd   : > { %3924 = vst [vmem:[%s7846_s13 + $0x30] sm:$0xff] %v5804_v62  ;;  %v3955_v21 = vadd.f32 %v5804_v62, %v3954_v59  ;;  %v3994_v9 = vmul.f32 %v5804_v62, %v5804_v62  ;;  %v4024_v31 = vadd.f32 %v4023_v19, %v3993_v17  ;;  %v5451_v4 = vpop.f32.mrb[8].mxu0 }
 0x2de   : > { %v5806_v56 = vadd.f32 %v5805_v1, %v5451_v4  ;;  %v3767_v5 = vpop.f32.mrb[9].mxu0 }
 0x2df   : > { %v4025_v7 = vadd.f32 %v4024_v31, %v3994_v9  ;;  %v5808_v22 = vadd.f32 %v5807_v42, %v3767_v5  ;;  %v3956_v28 = vadd.f32 %v5802_v60, %v3955_v21 }
 0x2e0   : > { %3927 = vst [vmem:[%s7846_s13 + $0x48] sm:$0xff] %v5806_v56  ;;  %v3997_v0 = vmul.f32 %v5806_v56, %v5806_v56 }
 0x2e1   : > { %3926 = vst [vmem:[%s7846_s13 + $0x40] sm:$0xff] %v5808_v22  ;;  %v3957_v36 = vadd.f32 %v5808_v22, %v3956_v28  ;;  %v3996_v32 = vmul.f32 %v5808_v22, %v5808_v22  ;;  %v4026_v35 = vadd.f32 %v4025_v7, %v3995_v53  ;;  %v5454_v52 = vpop.f32.mrb[10].mxu0 }
 0x2e2   : > { %v5810_v16 = vadd.f32 %v5809_v50, %v5454_v52  ;;  %v3777_v61 = vpop.f32.mrb[11].mxu0 }
 0x2e3   : > { %v4027_v57 = vadd.f32 %v4026_v35, %v3996_v32  ;;  %v5812_v3 = vadd.f32 %v5811_v2, %v3777_v61  ;;  %v3958_v44 = vadd.f32 %v5806_v56, %v3957_v36 }
 0x2e4   : > { %3929 = vst [vmem:[%s7846_s13 + $0x58] sm:$0xff] %v5810_v16  ;;  %v3999_v18 = vmul.f32 %v5810_v16, %v5810_v16 }
 0x2e5   : > { %3928 = vst [vmem:[%s7846_s13 + $0x50] sm:$0xff] %v5812_v3  ;;  %v3959_v37 = vadd.f32 %v5812_v3, %v3958_v44  ;;  %v3998_v27 = vmul.f32 %v5812_v3, %v5812_v3  ;;  %v4028_v29 = vadd.f32 %v4027_v57, %v3997_v0  ;;  %v5457_v58 = vpop.f32.mrb[12].mxu0 }
 0x2e6   : > { %v5814_v41 = vadd.f32 %v5813_v51, %v5457_v58  ;;  %v3787_v55 = vpop.f32.mrb[13].mxu0 }
 0x2e7   : > { %v4029_v26 = vadd.f32 %v4028_v29, %v3998_v27  ;;  %v5816_v14 = vadd.f32 %v5815_v43, %v3787_v55  ;;  %v3960_v13 = vadd.f32 %v5810_v16, %v3959_v37 }
 0x2e8   : > { %3931 = vst [vmem:[%s7846_s13 + $0x68] sm:$0xff] %v5814_v41  ;;  %v4001_v45 = vmul.f32 %v5814_v41, %v5814_v41 }
 0x2e9   : > { %3930 = vst [vmem:[%s7846_s13 + $0x60] sm:$0xff] %v5816_v14  ;;  %v3961_v49 = vadd.f32 %v5816_v14, %v3960_v13  ;;  %v4000_v10 = vmul.f32 %v5816_v14, %v5816_v14  ;;  %v4030_v54 = vadd.f32 %v4029_v26, %v3999_v18  ;;  %v5460_v15 = vpop.f32.mrb[14].mxu0 }
 0x2ea   : > { %v5818_v33 = vadd.f32 %v5817_v6, %v5460_v15  ;;  %v3797_v8 = vpop.f32.mrb[15].mxu0 }
 0x2eb   : > { %v4031_v11 = vadd.f32 %v4030_v54, %v4000_v10  ;;  %v5820_v63 = vadd.f32 %v5819_v39, %v3797_v8  ;;  %v3962_v38 = vadd.f32 %v5814_v41, %v3961_v49 }
 0x2ec   : > { %3933 = vst [vmem:[%s7846_s13 + $0x78] sm:$0xff] %v5818_v33  ;;  %v5143_v12 = vpop.f32.mrb[16].mxu1  ;;  %v4003_v60 = vmul.f32 %v5818_v33, %v5818_v33 }
 0x2ed   : > { %3932 = vst [vmem:[%s7846_s13 + $0x70] sm:$0xff] %v5820_v63  ;;  %v3963_v48 = vadd.f32 %v5820_v63, %v3962_v38  ;;  %v4002_v23 = vmul.f32 %v5820_v63, %v5820_v63  ;;  %v4032_v30 = vadd.f32 %v4031_v11, %v4001_v45  ;;  %v5821_v40 = vadd.f32 %v5143_v12, %v7838_v24  ;;  %v5463_v47 = vpop.f32.mrb[16].mxu0  ;;  %v2586_v20 = vpop.f32.mrb[17].mxu1 }
 0x2ee   : > { %v5823_v46 = vadd.f32 %v7838_v24, %v2586_v20  ;;  %v3807_v34 = vpop.f32.mrb[17].mxu0 }
 0x2ef   : > { %v4033_v25 = vadd.f32 %v4032_v30, %v4002_v23  ;;  %v5822_v17 = vadd.f32 %v5821_v40, %v5463_v47  ;;  %v3964_v19 = vadd.f32 %v5818_v33, %v3963_v48 }
 0x2f0   : > { %v5824_v62 = vadd.f32 %v5823_v46, %v3807_v34  ;;  %v5146_v59 = vpop.f32.mrb[18].mxu1 }
 0x2f1   : > { %3935 = vst [vmem:[%s7846_s13 + $0x88] sm:$0xff] %v5822_v17  ;;  %v4034_v1 = vadd.f32 %v4033_v25, %v4003_v60  ;;  %v5825_v42 = vadd.f32 %v5146_v59, %v7838_v24  ;;  %v5466_v21 = vpop.f32.mrb[18].mxu0  ;;  %v2596_v9 = vpop.f32.mrb[19].mxu1  ;;  %v4005_v7 = vmul.f32 %v5822_v17, %v5822_v17 }
 0x2f2   : > { %3934 = vst [vmem:[%s7846_s13 + $0x80] sm:$0xff] %v5824_v62  ;;  %v3965_v31 = vadd.f32 %v5824_v62, %v3964_v19  ;;  %v4004_v4 = vmul.f32 %v5824_v62, %v5824_v62  ;;  %v5827_v56 = vadd.f32 %v7838_v24, %v2596_v9  ;;  %v3817_v5 = vpop.f32.mrb[19].mxu0 }
 0x2f3   : > { %v5826_v53 = vadd.f32 %v5825_v42, %v5466_v21 }
 0x2f4   : > { %v4035_v22 = vadd.f32 %v4034_v1, %v4004_v4  ;;  %v5828_v28 = vadd.f32 %v5827_v56, %v3817_v5  ;;  %v3966_v50 = vadd.f32 %v5822_v17, %v3965_v31  ;;  %v5149_v2 = vpop.f32.mrb[20].mxu1 }
 0x2f5   : > { %3937 = vst [vmem:[%s7846_s13 + $0x98] sm:$0xff] %v5826_v53  ;;  %v5829_v36 = vadd.f32 %v5149_v2, %v7838_v24  ;;  %v5469_v32 = vpop.f32.mrb[20].mxu0  ;;  %v2606_v35 = vpop.f32.mrb[21].mxu1  ;;  %v4007_v44 = vmul.f32 %v5826_v53, %v5826_v53 }
 0x2f6   : > { %3936 = vst [vmem:[%s7846_s13 + $0x90] sm:$0xff] %v5828_v28  ;;  %v3967_v52 = vadd.f32 %v5828_v28, %v3966_v50  ;;  %v4006_v16 = vmul.f32 %v5828_v28, %v5828_v28  ;;  %v4036_v61 = vadd.f32 %v4035_v22, %v4005_v7  ;;  %v5831_v0 = vadd.f32 %v7838_v24, %v2606_v35  ;;  %v3827_v57 = vpop.f32.mrb[21].mxu0 }
 0x2f7   : > { %v5830_v3 = vadd.f32 %v5829_v36, %v5469_v32 }
 0x2f8   : > { %v4037_v51 = vadd.f32 %v4036_v61, %v4006_v16  ;;  %v5832_v43 = vadd.f32 %v5831_v0, %v3827_v57  ;;  %v3968_v37 = vadd.f32 %v5826_v53, %v3967_v52  ;;  %v5152_v27 = vpop.f32.mrb[22].mxu1 }
 0x2f9   : > { %3939 = vst [vmem:[%s7846_s13 + $0xa8] sm:$0xff] %v5830_v3  ;;  %v5833_v29 = vadd.f32 %v5152_v27, %v7838_v24  ;;  %v5472_v58 = vpop.f32.mrb[22].mxu0  ;;  %v2616_v41 = vpop.f32.mrb[23].mxu1  ;;  %v4009_v39 = vmul.f32 %v5830_v3, %v5830_v3 }
 0x2fa   : > { %3938 = vst [vmem:[%s7846_s13 + $0xa0] sm:$0xff] %v5832_v43  ;;  %v3969_v55 = vadd.f32 %v5832_v43, %v3968_v37  ;;  %v4008_v18 = vmul.f32 %v5832_v43, %v5832_v43  ;;  %v4038_v26 = vadd.f32 %v4037_v51, %v4007_v44  ;;  %v5835_v14 = vadd.f32 %v7838_v24, %v2616_v41  ;;  %v3837_v13 = vpop.f32.mrb[23].mxu0 }
 0x2fb   : > { %v5834_v6 = vadd.f32 %v5833_v29, %v5472_v58 }
 0x2fc   : > { %v4039_v49 = vadd.f32 %v4038_v26, %v4008_v18  ;;  %v5836_v10 = vadd.f32 %v5835_v14, %v3837_v13  ;;  %v3970_v54 = vadd.f32 %v5830_v3, %v3969_v55  ;;  %v5155_v15 = vpop.f32.mrb[24].mxu1 }
 0x2fd   : > { %3941 = vst [vmem:[%s7846_s13 + $0xb8] sm:$0xff] %v5834_v6  ;;  %v5837_v33 = vadd.f32 %v5155_v15, %v7838_v24  ;;  %v5475_v8 = vpop.f32.mrb[24].mxu0  ;;  %v2626_v45 = vpop.f32.mrb[25].mxu1  ;;  %v4011_v30 = vmul.f32 %v5834_v6, %v5834_v6 }
 0x2fe   : > { %3940 = vst [vmem:[%s7846_s13 + $0xb0] sm:$0xff] %v5836_v10  ;;  %v3971_v11 = vadd.f32 %v5836_v10, %v3970_v54  ;;  %v4010_v63 = vmul.f32 %v5836_v10, %v5836_v10  ;;  %v4040_v38 = vadd.f32 %v4039_v49, %v4009_v39  ;;  %v5839_v12 = vadd.f32 %v7838_v24, %v2626_v45  ;;  %v3847_v48 = vpop.f32.mrb[25].mxu0 }
 0x2ff   : > { %v5838_v23 = vadd.f32 %v5837_v33, %v5475_v8 }
 0x300   : > { %v4041_v40 = vadd.f32 %v4040_v38, %v4010_v63  ;;  %v5840_v47 = vadd.f32 %v5839_v12, %v3847_v48  ;;  %v3972_v20 = vadd.f32 %v5834_v6, %v3971_v11  ;;  %v5158_v46 = vpop.f32.mrb[26].mxu1 }
 0x301   : > { %3943 = vst [vmem:[%s7846_s13 + $0xc8] sm:$0xff] %v5838_v23  ;;  %v5841_v34 = vadd.f32 %v5158_v46, %v7838_v24  ;;  %v5478_v60 = vpop.f32.mrb[26].mxu0  ;;  %v2636_v25 = vpop.f32.mrb[27].mxu1  ;;  %v4013_v21 = vmul.f32 %v5838_v23, %v5838_v23 }
 0x302   : > { %3942 = vst [vmem:[%s7846_s13 + $0xc0] sm:$0xff] %v5840_v47  ;;  %v3973_v17 = vadd.f32 %v5840_v47, %v3972_v20  ;;  %v4012_v19 = vmul.f32 %v5840_v47, %v5840_v47  ;;  %v4042_v62 = vadd.f32 %v4041_v40, %v4011_v30  ;;  %v5843_v59 = vadd.f32 %v7838_v24, %v2636_v25  ;;  %v3857_v1 = vpop.f32.mrb[27].mxu0 }
 0x303   : > { %v5842_v42 = vadd.f32 %v5841_v34, %v5478_v60 }
 0x304   : > { %v4043_v9 = vadd.f32 %v4042_v62, %v4012_v19  ;;  %v5844_v31 = vadd.f32 %v5843_v59, %v3857_v1  ;;  %v3974_v4 = vadd.f32 %v5838_v23, %v3973_v17  ;;  %v5161_v56 = vpop.f32.mrb[28].mxu1 }
 0x305   : > { %3945 = vst [vmem:[%s7846_s13 + $0xd8] sm:$0xff] %v5842_v42  ;;  %v5845_v5 = vadd.f32 %v5161_v56, %v7838_v24  ;;  %v5481_v53 = vpop.f32.mrb[28].mxu0  ;;  %v2646_v7 = vpop.f32.mrb[29].mxu1  ;;  %v4015_v35 = vmul.f32 %v5842_v42, %v5842_v42 }
 0x306   : > { %3944 = vst [vmem:[%s7846_s13 + $0xd0] sm:$0xff] %v5844_v31  ;;  %v3975_v22 = vadd.f32 %v5844_v31, %v3974_v4  ;;  %v4014_v28 = vmul.f32 %v5844_v31, %v5844_v31  ;;  %v4044_v50 = vadd.f32 %v4043_v9, %v4013_v21  ;;  %v5847_v2 = vadd.f32 %v7838_v24, %v2646_v7  ;;  %v3867_v36 = vpop.f32.mrb[29].mxu0 }
 0x307   : > { %v5846_v32 = vadd.f32 %v5845_v5, %v5481_v53 }
 0x308   : > { %v4045_v52 = vadd.f32 %v4044_v50, %v4014_v28  ;;  %v5848_v16 = vadd.f32 %v5847_v2, %v3867_v36  ;;  %v3976_v61 = vadd.f32 %v5842_v42, %v3975_v22  ;;  %v5164_v0 = vpop.f32.mrb[30].mxu1 }
 0x309   : > { %3947 = vst [vmem:[%s7846_s13 + $0xe8] sm:$0xff] %v5846_v32  ;;  %v5849_v57 = vadd.f32 %v5164_v0, %v7838_v24  ;;  %v5484_v3 = vpop.f32.mrb[30].mxu0  ;;  %v2656_v44 = vpop.f32.mrb[31].mxu1  ;;  %v4017_v41 = vmul.f32 %v5846_v32, %v5846_v32 }
 0x30a   : > { %3946 = vst [vmem:[%s7846_s13 + $0xe0] sm:$0xff] %v5848_v16  ;;  %v3977_v51 = vadd.f32 %v5848_v16, %v3976_v61  ;;  %v4016_v43 = vmul.f32 %v5848_v16, %v5848_v16  ;;  %v4046_v37 = vadd.f32 %v4045_v52, %v4015_v35  ;;  %v5851_v27 = vadd.f32 %v7838_v24, %v2656_v44  ;;  %v3877_v29 = vpop.f32.mrb[31].mxu0 }
 0x30b   : > { %v5850_v58 = vadd.f32 %v5849_v57, %v5484_v3 }
 0x30c   : > { %v4047_v55 = vadd.f32 %v4046_v37, %v4016_v43  ;;  %v5852_v18 = vadd.f32 %v5851_v27, %v3877_v29  ;;  %v3978_v26 = vadd.f32 %v5846_v32, %v3977_v51 }
 0x30d   : > { %3949 = vst [vmem:[%s7846_s13 + $0xf8] sm:$0xff] %v5850_v58 }
 0x30e   : > { %3948 = vst [vmem:[%s7846_s13 + $0xf0] sm:$0xff] %v5852_v18  ;;  %v3979_v24 = vadd.f32 %v5852_v18, %v3978_v26  ;;  %v4018_v14 = vmul.f32 %v5852_v18, %v5852_v18  ;;  %v4048_v13 = vadd.f32 %v4047_v55, %v4017_v41 }
 0x30f   : > { %6454 = shalt.err (!%p6451_p5)
}
 0x310   : > { %s6455_s9 = scalar_lea.hbm %s7918_s22, 4096  ;;  %s6459_s20 = scalar_lea.hbm %s8157_s7, 8192 }
 0x311   : > { %p6456_p7 = scmp.ne.s32.totalorder %s7918_s22, %s6455_s9  ;;  %p6460_p10 = scmp.lt.u32.totalorder %s7918_s22, %s8157_s7 }
 0x312   : > { %p6461_p12 = scmp.lt.u32.totalorder %s6459_s20, %s6455_s9  ;;  %p6463_p11 = scmp.lt.u32.totalorder %s6455_s9, %s7918_s22 }
 0x313   : > { %p6457_p6 = pnand %p6456_p7, %p8158_p3 }
 0x314   : > { %p6462_p2 = por %p6461_p12, %p6460_p10 }
 0x315   : > { %p6458_p8 = pneg %p6457_p6 }
 0x316   : > { %p6464_p13 = por %p6463_p11, %p6462_p2 }
 0x318   : > { %p6465_p9 = pnand %p6464_p13, %p6458_p8 }
 0x31a   : > { %6468 = shalt.err (!%p6465_p9)
}
 0x31b   : > { %s6580_s17 = smov 128   ;;  %s6581_s12 = smov 8   ;;  %v4019_v6 = vmul.f32 %v5850_v58, %v5850_v58  ;;  %v3980_v39 = vadd.f32 %v5850_v58, %v3979_v24  ;;  %v4049_v49 = vadd.f32 %v4048_v13, %v4018_v14 }
 0x31c   : > { %6105 = dma.vmem_to_hbm [thread:$0]  (%p8158_p3), %s7920_s1, 4096, %s7918_s22, %s4059_s19, %s6580_s17, %s6580_s17, %s6581_s12  }
 0x31d   : > { %v3981_v10 = vrot.slane %v3980_v39, 4  ;;  %v4050_v54 = vadd.f32 %v4049_v49, %v4019_v6  ;;  %s4321_s14 = sshll.u32 %s6937_s3, 1  ;;  %s4329_s11 = sshll.u32 %s6559_s30, 5 }
 0x31e   : > { %s515_s13 = scalar_lea.vmem [#allocation16], %s4321_s14  ;;  %s8159_s10 = sld [smem:[#allocation57_spill]] }
 0x31f   : > { %v3982_v15 = vadd.f32 %v3981_v10, %v3980_v39  ;;  %v4051_v33 = vrot.slane %v4050_v54, 4  ;;  %s4097_s23 = sshll.u32 %s515_s13, 4  ;;  %s4064_s19 = scalar_lea.sflag [#allocation17], %s6937_s3  ;;  %s7955_s23 = int_to_ptr.vmem [resolvable:$true] %s4097_s23 }
 0x320   : > { %s6469_s5 = scalar_lea.vmem %s7955_s23, 32  ;;  %s6582_s30 = smov [#allocation16]  }
 0x321   : > { %v3983_v8 = vrot.slane %v3982_v15, 2  ;;  %v4052_v45 = vadd.f32 %v4051_v33, %v4050_v54  ;;  %p6470_p1 = scmp.ne.s32.totalorder %s7955_s23, %s6469_s5  ;;  %s6473_s8 = sshll.u32 %s6582_s30, 4  ;;  %s6474_s8 = int_to_ptr.vmem [resolvable:$false] %s6473_s8 }
 0x322   : > { %s6475_s21 = scalar_lea.vmem %s6474_s8, 64  ;;  %p6476_p5 = scmp.lt.s32.totalorder %s7955_s23, %s6474_s8 }
 0x323   : > { %v3984_v11 = vadd.f32 %v3983_v8, %v3982_v15  ;;  %v4053_v63 = vrot.slane %v4052_v45, 2  ;;  %p6471_p4 = pnand %p6470_p1, %p8158_p3  ;;  %p6477_p7 = scmp.lt.s32.totalorder %s6475_s21, %s6469_s5 }
 0x324   : > { %s8160_s22 = smov %s8159_s10  ;;  %s7953_s27 = scalar_lea.hbm %s8159_s10, %s4329_s11 }
 0x325   : > { %v3985_v38 = vrot.slane %v3984_v11, 1  ;;  %v4054_v12 = vadd.f32 %v4053_v63, %v4052_v45  ;;  %p6472_p0 = pneg %p6471_p4  ;;  %p6478_p6 = por %p6477_p7, %p6476_p5 }
 0x327   : > { %v3986_v48 = vadd.f32 %v3985_v38, %v3984_v11  ;;  %v4055_v23 = vrot.slane %v4054_v12, 1  ;;  %p6479_p8 = pnand %p6478_p6, %p6472_p0 }
 0x329   : > { %3987 = vst [vmem:[%s515_s13] sm:$0x1] %v3986_v48  ;;  %v4056_v30 = vadd.f32 %v4055_v23, %v4054_v12 }
 0x32b   : > { %4057 = vst [vmem:[%s515_s13 + $0x1] sm:$0x1] %v4056_v30 }
 0x32c   : > { %6482 = shalt.err (!%p6479_p8)
}
 0x32d   : > { %s6483_s3 = scalar_lea.hbm %s7953_s27, 32  ;;  %s6487_s26 = scalar_lea.hbm %s8160_s22, 64 }
 0x32e   : > { %p6484_p10 = scmp.ne.s32.totalorder %s7953_s27, %s6483_s3  ;;  %p6488_p11 = scmp.lt.u32.totalorder %s7953_s27, %s8160_s22 }
 0x32f   : > { %p6489_p13 = scmp.lt.u32.totalorder %s6487_s26, %s6483_s3  ;;  %p6491_p1 = scmp.lt.u32.totalorder %s6483_s3, %s7953_s27 }
 0x330   : > { %p6485_p12 = pnand %p6484_p10, %p8158_p3 }
 0x331   : > { %p6490_p9 = por %p6489_p13, %p6488_p11 }
 0x332   : > { %p6486_p2 = pneg %p6485_p12 }
 0x333   : > { %p6492_p4 = por %p6491_p1, %p6490_p9 }
 0x335   : > { %p6493_p0 = pnand %p6492_p4, %p6486_p2 }
 0x337   : > { %6496 = shalt.err (!%p6493_p0)
}
 0x338   : > { %6106 = dma.vmem_to_hbm [thread:$0]  (%p8158_p3), %s7955_s23, 32, %s7953_s27, %s4064_s19  }
 0x339 PF: > { %s8161_s24 = sld [smem:[#allocation24_spill]]  ;;  %s8162_s15 = sld [smem:[#allocation28_spill]] }
 0x33a   : > { %s8163_s17 = sld [smem:[#allocation27_spill]] }
 0x33f   : > { %s4109_s12 = sand.u32 1, %s8161_s24   ;;  %p8164_p5 = scmp.ne.s32.totalorder %s8162_s15, 0 }
 0x340   : > { %p8165_p7 = scmp.ge.s32.totalorder %s8163_s17, 2  ;;  %s4110_s14 = scalar_lea.sflag [#allocation5], %s4109_s12 }
 0x342   : > { %p6133_p6 = pnand %p8165_p7, %p8164_p5 }
 0x344   : > { %6538 = dma.done.wait (!%p6133_p6), %s4110_s14, 4096  }
 0x345   : > { %6540 = vsyncadd (!%p6133_p6), %s4110_s14, 4294963200  ;;  %s4119_s11 = scalar_lea.sflag [#allocation17], %s4109_s12 }
 0x346   : > { %6542 = dma.done.wait (!%p6133_p6), %s4119_s11, 32  }
 0x347   : > { %6544 = vsyncadd (!%p6133_p6), %s4119_s11, 4294967264  ;;  %s33_s10 = sadd.s32 1, %s8163_s17   ;;  %s8166_s16 = sld [smem:[#allocation25_spill]] }
 0x348   : > { %p30_p8 = scmp.ge.s32.totalorder %s33_s10, 4   ;;  %s8167_s29 = sld [smem:[#allocation30_spill]] }
 0x349   : > { %s8168_s30 = sld [smem:[#allocation26_spill]]  ;;  %s8169_s9 = sld [smem:[#allocation29_spill]] }
 0x34a   : > { %s8170_s27 = smov %s6551_s28  ;;  %32 = sbr.rel (!%p30_p8) target bundleno = 18 (0x12), region = 154 }
 0x34d   : > { %s8171_s28 = smov %s8166_s16 }
 0x351   :  { %4124 = vsyncpa [#allocation4], 1 }
 0x352   :  { %4126 = vsyncpa [#allocation4 + $0x1], 1 }
 0x353   :  { %4127 = vsyncpa [#allocation7], 1 }
 0x354   :  { %4129 = vsyncpa [#allocation7 + $0x1], 1 }
 0x355   :  { %4130 = vsyncpa [#allocation10], 1 }
 0x356   :  { %4131 = vsyncpa [#allocation13], 1 }
 0x357   :  { %4132 = vsyncpa [#allocation5], 1 }
 0x358   :  { %4134 = vsyncpa [#allocation5 + $0x1], 1 }
 0x359   :  { %4135 = vsyncpa [#allocation17], 1 }
 0x35a   :  { %4137 = vsyncpa [#allocation17 + $0x1], 1 }

// kernel: up_forward.5
= control target key start
LH: loop header
LB: loop body
LE: loop exit
PB: predicated region body
PF: predicated region fallthrough
CT: control target
= control target key end

     0   :  { %s12059_s0 = inlined_call_operand.hbm [shape: f32[2,18,18,128], index: 0, kind: input, shape index: {}, may-alias: {0,1,2}]   ;;  %s12060_s1 = inlined_call_operand.hbm [shape: f32[2,18,18,128], index: 1, kind: input, shape index: {}, may-alias: {0,1,2}]   ;;  %s12061_s2 = inlined_call_operand.hbm [shape: f32[2,18,18,128], index: 2, kind: input, shape index: {}, may-alias: {0,1,2}]   ;;  %s12062_s3 = inlined_call_operand.hbm [shape: f32[2,18,18,128], index: 3, kind: input, shape index: {}, may-alias: {3,4,5}]   ;;  %s12063_s4 = inlined_call_operand.hbm [shape: f32[2,18,18,128], index: 4, kind: input, shape index: {}, may-alias: {3,4,5}]   ;;  %s12064_s5 = inlined_call_operand.hbm [shape: f32[2,18,18,128], index: 5, kind: input, shape index: {}, may-alias: {3,4,5}]   ;;  %s12065_s6 = inlined_call_operand.hbm [shape: f32[1152,128], index: 6, kind: input, shape index: {}]   ;;  %s12066_s7 = inlined_call_operand.hbm [shape: f32[1152,128], index: 7, kind: input, shape index: {}]   ;;  %s12067_s8 = inlined_call_operand.hbm [shape: f32[1,128], index: 8, kind: input, shape index: {}]   ;;  %s12068_s9 = inlined_call_operand.hbm [shape: f32[2,16,16,128], index: 9, kind: output, shape index: {0}]   ;;  %s12069_s10 = inlined_call_operand.hbm [shape: f32[2,1,2,128], index: 10, kind: output, shape index: {1}]  }
   0x1   :  { %12103 = sst [smem:[#allocation44_spill]] %s12060_s1 }
   0x2   :  { %12104 = sst [smem:[#allocation45_spill]] %s12065_s6 }
   0x3   :  { %12105 = sst [smem:[#allocation46_spill]] %s12066_s7 }
   0x4   :  { %12106 = sst [smem:[#allocation47_spill]] %s12068_s9 }
   0x5   :  { %12107 = sst [smem:[#allocation48_spill]] %s12069_s10 }
   0x6   :  { %16 = vsyncpa [#allocation5], 0 }
   0x7   :  { %18 = vsyncpa [#allocation5 + $0x1], 0 }
   0x8   :  { %19 = vsyncpa [#allocation8], 0 }
   0x9   :  { %21 = vsyncpa [#allocation8 + $0x1], 0 }
   0xa   :  { %22 = vsyncpa [#allocation11], 0 }
   0xb   :  { %24 = vsyncpa [#allocation11 + $0x1], 0 }
   0xc   :  { %25 = vsyncpa [#allocation14], 0 }
   0xd   :  { %27 = vsyncpa [#allocation14 + $0x1], 0 }
   0xe   :  { %28 = vsyncpa [#allocation17], 0 }
   0xf   :  { %29 = vsyncpa [#allocation6], 0 }
  0x10   :  { %31 = vsyncpa [#allocation6 + $0x1], 0 }
  0x11   :  { %32 = vsyncpa [#allocation21], 0 }
  0x12   :  { %34 = vsyncpa [#allocation21 + $0x1], 0  ;;  %s11006_s13 = smov 0   ;;  %s11008_s14 = smov 0  }
  0x13   :  { %s11010_s15 = smov 0   ;;  %s11012_s16 = smov 0  }
  0x14   :  { %s11014_s17 = smov 0   ;;  %s11016_s18 = smov 0  }
  0x15 LB: > { %12108 = sst [smem:[#allocation30_spill]] %s10914_s13  ;;  %s11037_s19 = sadd.s32 4294967295, %s10934_s18   ;;  %s10934_s18 = sphi %s11016_s18, %s40_s18   ;;  %s10930_s17 = sphi %s11014_s17, %s12167_s17   ;;  %s10926_s16 = sphi %s11012_s16, %s12166_s16   ;;  %s10922_s15 = sphi %s11010_s15, %s12165_s15   ;;  %s10918_s14 = sphi %s11008_s14, %s12169_s14   ;;  %s10914_s13 = sphi %s11006_s13, %s12168_s13  }
  0x16   : > { %12109 = sst [smem:[#allocation31_spill]] %s10922_s15  ;;  %s6912_s20 = sadd.s32 4294967294, %s10934_s18  }
  0x17   : > { %12110 = sst [smem:[#allocation32_spill]] %s10926_s16  ;;  %s52_s21 = sadd.s32 1, %s10930_s17 }
  0x18   : > { %12111 = sst [smem:[#allocation33_spill]] %s10930_s17  ;;  %s61_s22 = sadd.s32 1, %s10922_s15 }
  0x19   : > { %12112 = sst [smem:[#allocation34_spill]] %s10934_s18  ;;  %p54_p0 = scmp.ge.s32.totalorder %s52_s21, 2 }
  0x1a   : > { %12113 = sst [smem:[#allocation35_spill]] %s11037_s19  ;;  %p68_p1 = scmp.ne.s32.totalorder %s10922_s15, %s10918_s14 }
  0x1b   : > { %p69_p2 = scmp.eq.s32.totalorder %s10934_s18, 0  ;;  %p74_p3 = scmp.ne.s32.totalorder %s10918_s14, %s10914_s13 }
  0x1c   : > { %s12171_s21 = smov (%p54_p0, %s52_s21), 0  ;;  %p12075_p5 = scmp.eq.s32.totalorder %s11037_s19, 0 }
  0x1d   : > { %12114 = sst [smem:[#allocation36_spill]] %s12171_s21  ;;  %p11049_p4 = por %p69_p2, %p68_p1 }
  0x1e   : > { %s56_s24 = ssub.s32 %s10930_s17, %s12171_s21  ;;  %p323_p6 = scmp.eq.s32.totalorder %s11037_s19, 1 }
  0x1f   : > { %p59_p7 = scmp.eq.s32.totalorder %s56_s24, 0  ;;  %p11059_p8 = por %p12075_p5, %p74_p3 }
  0x20   : > { %p11063_p9 = por %p323_p6, %p68_p1  ;;  %p329_p10 = scmp.eq.s32.totalorder %s6912_s20, 1 }
  0x21   : > { %s12116_s25 = scalar_select %p11059_p8, 1, 0 }
  0x22   : > { %s12118_s26 = scalar_select %p11063_p9, 1, 0 }
  0x23   : > { %12117 = sst [smem:[#allocation37_spill]] %s12116_s25  ;;  %p11070_p11 = por %p329_p10, %p74_p3 }
  0x24   : > { %12119 = sst [smem:[#allocation38_spill]] %s12118_s26  ;;  %p6913_p12 = scmp.ge.s32.totalorder %s10934_s18, 1 }
  0x25   : > { %s11068_s27 = scalar_select %p59_p7, %s10922_s15, %s61_s22  }
  0x26   : > { %s12121_s28 = scalar_select %p11070_p11, 1, 0 }
  0x27   : > { %12120 = sst [smem:[#allocation39_spill]] %s11068_s27  ;;  %p364_p13 = scmp.lt.s32.totalorder %s10934_s18, 3 }
  0x28   : > { %12122 = sst [smem:[#allocation40_spill]] %s12121_s28  ;;  %s10936_s30 = smov [#allocation15]  }
  0x29   : > { %p11076_p0 = pnand %p6913_p12, %p364_p13  ;;  %s376_s11 = sshll.u32 %s10936_s30, 4  ;;  %s11080_s11 = int_to_ptr.vmem [resolvable:$true] %s376_s11 }
  0x2a   : > { %p10472_p6 = scmp.lt.s32.totalorder %s10934_s18, 2  ;;  %s10937_s20 = smov [#allocation16]  }
  0x2b   : > { %s12123_s29 = scalar_select %p11076_p0, 1, 0 }
  0x2c   : > { %p10433_p1 = pneg %p11076_p0  ;;  %s389_s22 = sshll.u32 %s10937_s20, 4  ;;  %s11098_s22 = int_to_ptr.vmem [resolvable:$true] %s389_s22 }
  0x2d   : > { %p11094_p7 = pnand %p10472_p6, %p11049_p4  ;;  %s11101_s30 = sand.u32 1, %s10922_s15  }
  0x2e   : > { %p11088_p3 = pnand %p10433_p1, %p12075_p5  ;;  %s12126_s6 = sld [smem:[#allocation45_spill]] }
  0x2f   : > { %s12125_s24 = scalar_select %p11094_p7, 1, 0 }
  0x30   : > { %s12124_s12 = scalar_select %p11088_p3, 1, 0 }
  0x31   : > { %p11111_p12 = pneg %p11088_p3 }
  0x33   : > { %s12127_s20 = scalar_select %p11111_p12, 1, 0 }
  0x34   : > { %s10532_s28 = scalar_lea.hbm %s12126_s6, 18432 }
  0x35   : > { %p10533_p10 = scmp.ne.s32.totalorder %s12126_s6, %s10532_s28  ;;  %p10539_p1 = scmp.lt.u32.totalorder %s10532_s28, %s12126_s6 }
  0x37   : > { %p10535_p4 = pnand %p11111_p12, %p10533_p10 }
  0x39   : > { %p10536_p13 = pneg %p10535_p4 }
  0x3b   : > { %p10541_p6 = pnand %p10539_p1, %p10536_p13 }
  0x3d   : > { %10544 = shalt.err (!%p10541_p6)
}
  0x3e   : > { %s10545_s10 = scalar_lea.vmem %s11080_s11, 18432  ;;  %p10553_p9 = scmp.lt.s32.totalorder %s11080_s11, %s11080_s11 }
  0x3f   : > { %p10546_p2 = scmp.ne.s32.totalorder %s11080_s11, %s10545_s10  ;;  %p10554_p8 = scmp.lt.s32.totalorder %s10545_s10, %s10545_s10 }
  0x41   : > { %p10548_p5 = pnand %p10546_p2, %p11111_p12  ;;  %p10555_p10 = por %p10554_p8, %p10553_p9 }
  0x43   : > { %p10549_p11 = pneg %p10548_p5 }
  0x45   : > { %p10556_p4 = pnand %p10555_p10, %p10549_p11 }
  0x47   : > { %10559 = shalt.err (!%p10556_p4)
}
  0x48   : > { %s12086_s13 = smov 128   ;;  %s12088_s15 = smov 8  }
  0x49   : > { %10436 = dma.hbm_to_vmem [thread:$0]  (!%p11088_p3), %s12126_s6, 18432, %s11080_s11, [#allocation14], %s12086_s13, %s12086_s13, %s12088_s15  }
  0x4a   : > { %s11136_s28 = smul.u32 6912, %s10930_s17  ;;  %s12128_s7 = sld [smem:[#allocation46_spill]] }
  0x50   : > { %s10560_s9 = scalar_lea.hbm %s12128_s7, 18432 }
  0x51   : > { %p10561_p5 = scmp.ne.s32.totalorder %s12128_s7, %s10560_s9  ;;  %p10567_p11 = scmp.lt.u32.totalorder %s10560_s9, %s12128_s7 }
  0x53   : > { %p10563_p8 = pnand %p10561_p5, %p11111_p12 }
  0x55   : > { %p10564_p9 = pneg %p10563_p8 }
  0x57   : > { %p10569_p2 = pnand %p10567_p11, %p10564_p9 }
  0x59   : > { %10572 = shalt.err (!%p10569_p2)
}
  0x5a   : > { %s10573_s11 = scalar_lea.vmem %s11098_s22, 18432  ;;  %p10581_p10 = scmp.lt.s32.totalorder %s11098_s22, %s11098_s22 }
  0x5b   : > { %p10574_p13 = scmp.ne.s32.totalorder %s11098_s22, %s10573_s11  ;;  %p10582_p4 = scmp.lt.s32.totalorder %s10573_s11, %s10573_s11 }
  0x5d   : > { %p10576_p1 = pnand %p10574_p13, %p11111_p12  ;;  %p10583_p5 = por %p10582_p4, %p10581_p10 }
  0x5f   : > { %p10577_p6 = pneg %p10576_p1 }
  0x61   : > { %p10584_p8 = pnand %p10583_p5, %p10577_p6 }
  0x63   : > { %10587 = shalt.err (!%p10584_p8)
}
  0x64   : > { %10439 = dma.hbm_to_vmem [thread:$0]  (!%p11088_p3), %s12128_s7, 18432, %s11098_s22, [#allocation17], %s12086_s13, %s12086_s13, %s12088_s15  }
  0x65   : > { %s11165_s19 = sand.u32 1, %s10934_s18   ;;  %s11168_s25 = smul.u32 24, %s11101_s30 }
  0x66   : > { %s12129_s1 = sld [smem:[#allocation44_spill]]  ;;  %s12097_s22 = scalar_lea.sflag [#allocation8], %s11165_s19 }
  0x67   : > { %s450_s10 = scalar_lea.vmem [#allocation7], %s11168_s25  ;;  %p11184_p11 = pneg %p11094_p7 }
  0x68   : > { %s461_s11 = sshll.u32 %s450_s10, 4  ;;  %s11178_s11 = int_to_ptr.vmem [resolvable:$true] %s461_s11 }
  0x6c   : > { %s6697_s27 = scalar_lea.hbm %s12129_s1, %s11136_s28  ;;  %s10593_s15 = scalar_lea.hbm %s12129_s1, 13824 }
  0x6d   : > { %s11174_s23 = scalar_lea.hbm %s6697_s27, 6144  ;;  %s10618_s16 = scalar_lea.hbm %s6697_s27, 6528 }
  0x6e   : > { %p10589_p9 = scmp.ne.s32.totalorder %s11174_s23, %s10618_s16  ;;  %p10594_p1 = scmp.lt.u32.totalorder %s11174_s23, %s12129_s1 }
  0x6f   : > { %p10595_p6 = scmp.lt.u32.totalorder %s10593_s15, %s10618_s16  ;;  %p10597_p4 = scmp.lt.u32.totalorder %s10618_s16, %s11174_s23 }
  0x70   : > { %p10591_p2 = pnand %p11184_p11, %p10589_p9 }
  0x71   : > { %p10596_p10 = por %p10595_p6, %p10594_p1 }
  0x72   : > { %p10592_p13 = pneg %p10591_p2 }
  0x73   : > { %p10598_p5 = por %p10597_p4, %p10596_p10 }
  0x75   : > { %p10599_p8 = pnand %p10598_p5, %p10592_p13 }
  0x77   : > { %10602 = shalt.err (!%p10599_p8)
}
  0x78   : > { %s10603_s27 = scalar_lea.vmem %s11178_s11, 384  ;;  %s10940_s26 = smov [#allocation7]  }
  0x79   : > { %p10604_p9 = scmp.ne.s32.totalorder %s11178_s11, %s10603_s27  ;;  %s10608_s21 = sshll.u32 %s10940_s26, 4  ;;  %s10609_s21 = int_to_ptr.vmem [resolvable:$false] %s10608_s21 }
  0x7a   : > { %s10610_s9 = scalar_lea.vmem %s10609_s21, 768  ;;  %p10611_p3 = scmp.lt.s32.totalorder %s11178_s11, %s10609_s21 }
  0x7b   : > { %p10606_p2 = pnand %p10604_p9, %p11184_p11  ;;  %p10612_p12 = scmp.lt.s32.totalorder %s10610_s9, %s10603_s27 }
  0x7d   : > { %p10607_p0 = pneg %p10606_p2  ;;  %p10613_p1 = por %p10612_p12, %p10611_p3 }
  0x7f   : > { %p10614_p6 = pnand %p10613_p1, %p10607_p0 }
  0x81   : > { %10617 = shalt.err (!%p10614_p6)
}
  0x82   : > { %s12131_s15 = smov 8   ;;  %s12132_s16 = smov 128  }
  0x83   : > { %10449 = dma.hbm_to_vmem [thread:$0]  (!%p11094_p7), %s11174_s23, 384, %s11178_s11, %s12097_s22, %s12132_s16, %s12132_s16, %s12131_s15  }
  0x84   : > { %s11216_s27 = scalar_lea.hbm %s12062_s3, %s11136_s28  ;;  %s12133_s21 = smul.u32 384, %s11101_s30 }
  0x85   : > { %s10941_s6 = smov [#allocation18]   ;;  %s498_s17 = scalar_lea.sflag [#allocation11], %s11165_s19 }
  0x86   : > { %s501_s9 = scalar_lea.vmem [#allocation10], %s12133_s21  ;;  %s11222_s7 = sshll.u32 %s10941_s6, 4  ;;  %s404_s7 = int_to_ptr.vmem [resolvable:$true] %s11222_s7 }
  0x87   : > { %s519_s1 = sshll.u32 %s501_s9, 4  ;;  %s10619_s18 = scalar_lea.hbm %s11216_s27, 6144  ;;  %s11220_s1 = int_to_ptr.vmem [resolvable:$true] %s519_s1 }
  0x88   : > { %p10620_p0 = scmp.ne.s32.totalorder %s11216_s27, %s10619_s18  ;;  %s10624_s10 = scalar_lea.hbm %s12062_s3, 13824 }
  0x89   : > { %p10625_p13 = scmp.lt.u32.totalorder %s11216_s27, %s12062_s3  ;;  %p10626_p10 = scmp.lt.u32.totalorder %s10624_s10, %s10619_s18 }
  0x8a   : > { %p10622_p3 = pnand %p10620_p0, %p11184_p11  ;;  %p10628_p5 = scmp.lt.u32.totalorder %s10619_s18, %s11216_s27 }
  0x8b   : > { %p10627_p4 = por %p10626_p10, %p10625_p13 }
  0x8c   : > { %p10623_p12 = pneg %p10622_p3 }
  0x8d   : > { %p10629_p8 = por %p10628_p5, %p10627_p4 }
  0x8f   : > { %p10630_p9 = pnand %p10629_p8, %p10623_p12 }
  0x91   : > { %10633 = shalt.err (!%p10630_p9)
}
  0x92   : > { %s10634_s6 = scalar_lea.vmem %s11220_s1, 6144  ;;  %s10942_s21 = smov [#allocation10]  }
  0x93   : > { %p10635_p2 = scmp.ne.s32.totalorder %s11220_s1, %s10634_s6  ;;  %s10639_s9 = sshll.u32 %s10942_s21, 4  ;;  %s10640_s9 = int_to_ptr.vmem [resolvable:$false] %s10639_s9 }
  0x94   : > { %s10641_s22 = scalar_lea.vmem %s10640_s9, 12288  ;;  %p10642_p0 = scmp.lt.s32.totalorder %s11220_s1, %s10640_s9 }
  0x95   : > { %p10637_p1 = pnand %p10635_p2, %p11184_p11  ;;  %p10643_p3 = scmp.lt.s32.totalorder %s10641_s22, %s10634_s6 }
  0x97   : > { %p10638_p6 = pneg %p10637_p1  ;;  %p10644_p13 = por %p10643_p3, %p10642_p0 }
  0x99   : > { %p10645_p10 = pnand %p10644_p13, %p10638_p6 }
  0x9b   : > { %10648 = shalt.err (!%p10645_p10)
}
  0x9c   : > { %10455 = dma.hbm_to_vmem [thread:$0]  (!%p11094_p7), %s11216_s27, 6144, %s11220_s1, %s498_s17, %s12132_s16, %s12132_s16, %s12131_s15  }
  0x9d   : > { %s10649_s11 = scalar_lea.hbm %s12067_s8, 16  ;;  %p12134_p4 = scmp.ne.s32.totalorder %s12127_s20, 0 }
  0x9e   : > { %p10650_p12 = scmp.ne.s32.totalorder %s12067_s8, %s10649_s11  ;;  %p10656_p9 = scmp.lt.u32.totalorder %s10649_s11, %s12067_s8 }
  0xa0   : > { %p10652_p5 = pnand %p10650_p12, %p12134_p4 }
  0xa2   : > { %p10653_p8 = pneg %p10652_p5 }
  0xa4   : > { %p10658_p2 = pnand %p10656_p9, %p10653_p8 }
  0xa6   : > { %10661 = shalt.err (!%p10658_p2)
}
  0xa7   : > { %s10662_s9 = scalar_lea.vmem %s404_s7, 16  ;;  %s10669_s1 = scalar_lea.vmem %s404_s7, 32 }
  0xa8   : > { %p10663_p1 = scmp.ne.s32.totalorder %s404_s7, %s10662_s9  ;;  %p10670_p3 = scmp.lt.s32.totalorder %s404_s7, %s404_s7 }
  0xa9   : > { %p10671_p13 = scmp.lt.s32.totalorder %s10669_s1, %s10662_s9 }
  0xaa   : > { %p10665_p6 = pnand %p10663_p1, %p12134_p4 }
  0xab   : > { %p10672_p10 = por %p10671_p13, %p10670_p3 }
  0xac   : > { %p10666_p0 = pneg %p10665_p6 }
  0xae   : > { %p10673_p7 = pnand %p10672_p10, %p10666_p0 }
  0xb0   : > { %10676 = shalt.err (!%p10673_p7)
}
  0xb1   : > { %p12135_p12 = scmp.ne.s32.totalorder %s12124_s12, 0  ;;  %s11274_s23 = scalar_lea.hbm %s12059_s0, %s11136_s28 }
  0xb2   : > { %s12136_s11 = smul.u32 384, %s11101_s30  ;;  %s11284_s21 = scalar_lea.hbm %s12061_s2, %s11136_s28 }
  0xb3   : > { %10442 = dma.hbm_to_vmem [thread:$0]  (!%p12135_p12), %s12067_s8, 16, %s404_s7, [#allocation17]  }
  0xb4   : > { %s418_s12 = scalar_lea.vmem [#allocation4], %s12136_s11  ;;  %s415_s7 = scalar_lea.sflag [#allocation5], %s11101_s30 }
  0xb5   : > { %s436_s10 = sshll.u32 %s418_s12, 4  ;;  %s10677_s9 = scalar_lea.hbm %s11274_s23, 6144  ;;  %s11278_s10 = int_to_ptr.vmem [resolvable:$true] %s436_s10 }
  0xb6   : > { %p10678_p7 = scmp.ne.s32.totalorder %s11274_s23, %s10677_s9  ;;  %s10682_s22 = scalar_lea.hbm %s12059_s0, 13824 }
  0xb7   : > { %p10683_p8 = scmp.lt.u32.totalorder %s11274_s23, %s12059_s0  ;;  %p10684_p9 = scmp.lt.u32.totalorder %s10682_s22, %s10677_s9 }
  0xb8   : > { %p10680_p4 = pnand %p10678_p7, %p11184_p11  ;;  %p10686_p1 = scmp.lt.u32.totalorder %s10677_s9, %s11274_s23 }
  0xb9   : > { %p10685_p2 = por %p10684_p9, %p10683_p8 }
  0xba   : > { %p10681_p5 = pneg %p10680_p4 }
  0xbb   : > { %p10687_p6 = por %p10686_p1, %p10685_p2 }
  0xbd   : > { %p10688_p0 = pnand %p10687_p6, %p10681_p5 }
  0xbf   : > { %10691 = shalt.err (!%p10688_p0)
}
  0xc0   : > { %s10692_s11 = scalar_lea.vmem %s11278_s10, 6144  ;;  %s10943_s12 = smov [#allocation4]  }
  0xc1   : > { %p10693_p3 = scmp.ne.s32.totalorder %s11278_s10, %s10692_s11  ;;  %s10697_s26 = sshll.u32 %s10943_s12, 4  ;;  %s10698_s26 = int_to_ptr.vmem [resolvable:$false] %s10697_s26 }
  0xc2   : > { %s10699_s6 = scalar_lea.vmem %s10698_s26, 12288  ;;  %p10700_p12 = scmp.lt.s32.totalorder %s11278_s10, %s10698_s26 }
  0xc3   : > { %p10695_p13 = pnand %p10693_p3, %p11184_p11  ;;  %p10701_p7 = scmp.lt.s32.totalorder %s10699_s6, %s10692_s11 }
  0xc5   : > { %p10696_p10 = pneg %p10695_p13  ;;  %p10702_p4 = por %p10701_p7, %p10700_p12 }
  0xc7   : > { %p10703_p8 = pnand %p10702_p4, %p10696_p10 }
  0xc9   : > { %10706 = shalt.err (!%p10703_p8)
}
  0xca   : > { %p12137_p5 = scmp.ne.s32.totalorder %s12125_s24, 0  ;;  %s11314_s9 = scalar_lea.hbm %s11284_s21, 6528 }
  0xcb   : > { %s475_s1 = scalar_lea.vmem [#allocation9], %s11168_s25  ;;  %s10737_s22 = scalar_lea.hbm %s11284_s21, 6912 }
  0xcc   : > { %10446 = dma.hbm_to_vmem [thread:$0]  (!%p12137_p5), %s11274_s23, 6144, %s11278_s10, %s415_s7, %s12132_s16, %s12132_s16, %s12131_s15  }
  0xcd   : > { %s487_s27 = sshll.u32 %s475_s1, 4  ;;  %p10708_p9 = scmp.ne.s32.totalorder %s11314_s9, %s10737_s22  ;;  %s11317_s27 = int_to_ptr.vmem [resolvable:$true] %s487_s27 }
  0xce   : > { %s10712_s18 = scalar_lea.hbm %s12061_s2, 13824  ;;  %p10713_p6 = scmp.lt.u32.totalorder %s11314_s9, %s12061_s2 }
  0xcf   : > { %p10710_p2 = pnand %p10708_p9, %p11184_p11  ;;  %p10714_p0 = scmp.lt.u32.totalorder %s10712_s18, %s10737_s22 }
  0xd0   : > { %p10716_p13 = scmp.lt.u32.totalorder %s10737_s22, %s11314_s9 }
  0xd1   : > { %p10711_p1 = pneg %p10710_p2  ;;  %p10715_p3 = por %p10714_p0, %p10713_p6 }
  0xd3   : > { %p10717_p10 = por %p10716_p13, %p10715_p3 }
  0xd5   : > { %p10718_p12 = pnand %p10717_p10, %p10711_p1 }
  0xd7   : > { %10721 = shalt.err (!%p10718_p12)
}
  0xd8   : > { %s10722_s10 = scalar_lea.vmem %s11317_s27, 384  ;;  %s10944_s21 = smov [#allocation9]  }
  0xd9   : > { %p10723_p7 = scmp.ne.s32.totalorder %s11317_s27, %s10722_s10  ;;  %s10727_s7 = sshll.u32 %s10944_s21, 4  ;;  %s10728_s7 = int_to_ptr.vmem [resolvable:$false] %s10727_s7 }
  0xda   : > { %s10729_s12 = scalar_lea.vmem %s10728_s7, 768  ;;  %p10730_p9 = scmp.lt.s32.totalorder %s11317_s27, %s10728_s7 }
  0xdb   : > { %p10725_p4 = pnand %p10723_p7, %p11184_p11  ;;  %p10731_p2 = scmp.lt.s32.totalorder %s10729_s12, %s10722_s10 }
  0xdd   : > { %p10726_p8 = pneg %p10725_p4  ;;  %p10732_p6 = por %p10731_p2, %p10730_p9 }
  0xdf   : > { %p10733_p0 = pnand %p10732_p6, %p10726_p8 }
  0xe1   : > { %10736 = shalt.err (!%p10733_p0)
}
  0xe2   : > { %s12138_s26 = scalar_lea.sflag [#allocation8], %s11165_s19  ;;  %s6724_s22 = scalar_lea.hbm %s12063_s4, %s11136_s28 }
  0xe3   : > { %10452 = dma.hbm_to_vmem [thread:$0]  (!%p12137_p5), %s11314_s9, 384, %s11317_s27, %s12138_s26, %s12132_s16, %s12132_s16, %s12131_s15  }
  0xe4   : > { %s533_s30 = scalar_lea.vmem [#allocation12], %s11168_s25  ;;  %s11350_s18 = scalar_lea.hbm %s6724_s22, 6144 }
  0xe5   : > { %s544_s20 = sshll.u32 %s533_s30, 4  ;;  %s10768_s11 = scalar_lea.hbm %s6724_s22, 6528  ;;  %s11352_s20 = int_to_ptr.vmem [resolvable:$true] %s544_s20 }
  0xe6   : > { %p10739_p1 = scmp.ne.s32.totalorder %s11350_s18, %s10768_s11  ;;  %s10743_s27 = scalar_lea.hbm %s12063_s4, 13824 }
  0xe7   : > { %p10744_p10 = scmp.lt.u32.totalorder %s11350_s18, %s12063_s4  ;;  %p10745_p12 = scmp.lt.u32.totalorder %s10743_s27, %s10768_s11 }
  0xe8   : > { %p10741_p3 = pnand %p10739_p1, %p11184_p11  ;;  %p10747_p4 = scmp.lt.u32.totalorder %s10768_s11, %s11350_s18 }
  0xe9   : > { %p10746_p7 = por %p10745_p12, %p10744_p10 }
  0xea   : > { %p10742_p13 = pneg %p10741_p3 }
  0xeb   : > { %p10748_p8 = por %p10747_p4, %p10746_p7 }
  0xed   : > { %p10749_p9 = pnand %p10748_p8, %p10742_p13 }
  0xef   : > { %10752 = shalt.err (!%p10749_p9)
}
  0xf0   : > { %s10753_s7 = scalar_lea.vmem %s11352_s20, 384  ;;  %s10945_s12 = smov [#allocation12]  }
  0xf1   : > { %p10754_p2 = scmp.ne.s32.totalorder %s11352_s20, %s10753_s7  ;;  %s10758_s26 = sshll.u32 %s10945_s12, 4  ;;  %s10759_s26 = int_to_ptr.vmem [resolvable:$false] %s10758_s26 }
  0xf2   : > { %s10760_s6 = scalar_lea.vmem %s10759_s26, 768  ;;  %p10761_p1 = scmp.lt.s32.totalorder %s11352_s20, %s10759_s26 }
  0xf3   : > { %p10756_p6 = pnand %p10754_p2, %p11184_p11  ;;  %p10762_p3 = scmp.lt.s32.totalorder %s10760_s6, %s10753_s7 }
  0xf5   : > { %p10757_p0 = pneg %p10756_p6  ;;  %p10763_p10 = por %p10762_p3, %p10761_p1 }
  0xf7   : > { %p10764_p12 = pnand %p10763_p10, %p10757_p0 }
  0xf9   : > { %10767 = shalt.err (!%p10764_p12)
}
  0xfa   : > { %10458 = dma.hbm_to_vmem [thread:$0]  (!%p12137_p5), %s11350_s18, 384, %s11352_s20, %s498_s17, %s12132_s16, %s12132_s16, %s12131_s15  }
  0xfb   : > { %s6734_s30 = scalar_lea.hbm %s12064_s5, %s11136_s28  ;;  %s558_s11 = scalar_lea.vmem [#allocation13], %s11168_s25 }
  0xfc   : > { %s570_s23 = sshll.u32 %s558_s11, 4  ;;  %s11384_s9 = scalar_lea.hbm %s6734_s30, 6528  ;;  %s11386_s23 = int_to_ptr.vmem [resolvable:$true] %s570_s23 }
  0xfd   : > { %s555_s27 = scalar_lea.sflag [#allocation14], %s11165_s19  ;;  %s10799_s10 = scalar_lea.hbm %s6734_s30, 6912 }
  0xfe   : > { %p10770_p13 = scmp.ne.s32.totalorder %s11384_s9, %s10799_s10  ;;  %s10774_s18 = scalar_lea.hbm %s12064_s5, 13824 }
  0xff   : > { %p10775_p8 = scmp.lt.u32.totalorder %s11384_s9, %s12064_s5  ;;  %p10776_p9 = scmp.lt.u32.totalorder %s10774_s18, %s10799_s10 }
 0x100   : > { %p10772_p7 = pnand %p10770_p13, %p11184_p11  ;;  %p10778_p6 = scmp.lt.u32.totalorder %s10799_s10, %s11384_s9 }
 0x101   : > { %p10777_p2 = por %p10776_p9, %p10775_p8 }
 0x102   : > { %p10773_p4 = pneg %p10772_p7 }
 0x103   : > { %p10779_p0 = por %p10778_p6, %p10777_p2 }
 0x105   : > { %p10780_p1 = pnand %p10779_p0, %p10773_p4 }
 0x107   : > { %10783 = shalt.err (!%p10780_p1)
}
 0x108   : > { %s10784_s21 = scalar_lea.vmem %s11386_s23, 384  ;;  %s10946_s7 = smov [#allocation13]  }
 0x109   : > { %p10785_p3 = scmp.ne.s32.totalorder %s11386_s23, %s10784_s21  ;;  %s10789_s12 = sshll.u32 %s10946_s7, 4  ;;  %s10790_s12 = int_to_ptr.vmem [resolvable:$false] %s10789_s12 }
 0x10a   : > { %s10791_s26 = scalar_lea.vmem %s10790_s12, 768  ;;  %p10792_p13 = scmp.lt.s32.totalorder %s11386_s23, %s10790_s12 }
 0x10b   : > { %p10787_p10 = pnand %p10785_p3, %p11184_p11  ;;  %p10793_p7 = scmp.lt.s32.totalorder %s10791_s26, %s10784_s21 }
 0x10d   : > { %p10788_p12 = pneg %p10787_p10  ;;  %p10794_p8 = por %p10793_p7, %p10792_p13 }
 0x10f   : > { %p10795_p9 = pnand %p10794_p8, %p10788_p12 }
 0x111   : > { %10798 = shalt.err (!%p10795_p9)
}
 0x112   : > { %10461 = dma.hbm_to_vmem [thread:$0]  (!%p12137_p5), %s11384_s9, 384, %s11386_s23, %s555_s27, %s12132_s16, %s12132_s16, %s12131_s15  }
 0x113   : > { %p12139_p11 = scmp.ne.s32.totalorder %s12123_s29, 0 }
 0x115   : > { %582 = sbr.rel (%p12139_p11) target bundleno = 1182 (0x49e), region = 56 }
 0x11c   : > { %s12140_s13 = sld [smem:[#allocation37_spill]]  ;;  %s11417_s6 = sand.u32 1, %s10918_s14  }
 0x11d   : > { %s10403_s1 = smul.u32 384, %s11417_s6  ;;  %s585_s22 = scalar_lea.sflag [#allocation5], %s11417_s6 }
 0x11f   : > { %s11421_s24 = scalar_lea.vmem [#allocation4], %s10403_s1 }
 0x122   : > { %p12141_p4 = scmp.ne.s32.totalorder %s12140_s13, 0 }
 0x124   : > { %10881 = dma.done.wait (%p12141_p4), %s585_s22, 6144  }
 0x125   : > { %10883 = vsyncadd (%p12141_p4), %s585_s22, 4294961152  ;;  %s12142_s19 = sld [smem:[#allocation35_spill]]  ;;  %s10404_s15 = smul.u32 24, %s11417_s6 }
 0x127   : > { %s11429_s30 = scalar_lea.vmem [#allocation7], %s10404_s15 }
 0x12b   : > { %s593_s29 = sand.u32 1, %s12142_s19  }
 0x12c   : > { %s594_s16 = scalar_lea.sflag [#allocation8], %s593_s29 }
 0x12d   : > { %10885 = dma.done.wait (%p12141_p4), %s594_s16, 768  }
 0x12e   : > { %10887 = vsyncadd (%p12141_p4), %s594_s16, 4294966528  ;;  %s11435_s11 = scalar_lea.vmem [#allocation9], %s10404_s15  ;;  %s612_s23 = scalar_lea.sflag [#allocation11], %s593_s29 }
 0x12f   : > { %s11437_s9 = scalar_lea.vmem [#allocation10], %s10403_s1 }
 0x130   : > { %10889 = dma.done.wait (%p12141_p4), %s612_s23, 6528  }
 0x131   : > { %10891 = vsyncadd (%p12141_p4), %s612_s23, 4294960768  ;;  %s11443_s27 = scalar_lea.vmem [#allocation12], %s10404_s15  ;;  %s630_s10 = scalar_lea.sflag [#allocation14], %s593_s29 }
 0x132   : > { %s11445_s17 = scalar_lea.vmem [#allocation13], %s10404_s15 }
 0x133   : > { %10893 = dma.done.wait (%p12141_p4), %s630_s10, 384  }
 0x134   : > { %10895 = vsyncadd (%p12141_p4), %s630_s10, 4294966912  ;;  %p12143_p5 = scmp.eq.s32.totalorder %s12142_s19, 0 }
 0x136   : > { %10897 = dma.done.wait (%p12143_p5), [#allocation14], 18432   ;;  %p12144_p2 = pmov %p12143_p5 }
 0x138   : > { %10899 = vsyncadd (%p12144_p2), [#allocation14], 4294948864  ;;  %p12145_p6 = pmov %p12144_p2 }
 0x139   : > { %p12146_p0 = pmov %p12144_p2 }
 0x13a   : > { %10901 = dma.done.wait (%p12145_p6), [#allocation17], 18448  }
 0x13b   : > { %10903 = vsyncadd (%p12146_p0), [#allocation17], 4294948848  ;;  %v995_v0 = vld [vmem:[#allocation15] sm:$0xff]  ;;  %v996_v1 = vld [vmem:[#allocation15 + $0x8] sm:$0xff]  ;;  %s6928_s20 = sshll.u32 %s11417_s6, 8  ;;  %s12153_s28 = sld [smem:[#allocation32_spill]] }
 0x13c   : > { %v3742_v2 = vld [vmem:[#allocation16] sm:$0xff]  ;;  %v9243_v3 = vpack.c.bf16 %v996_v1, %v995_v0  ;;  %v3743_v4 = vld [vmem:[#allocation16 + $0x8] sm:$0xff]  ;;  %v997_v5 = vld [vmem:[#allocation15 + $0x10] sm:$0xff]  ;;  %s11908_s18 = scalar_lea.vmem [#allocation19], %s6928_s20  ;;  %s12154_s7 = sld [smem:[#allocation38_spill]] }
 0x13d   : > { %v998_v6 = vld [vmem:[#allocation15 + $0x18] sm:$0xff]  ;;  %v9531_v7 = vpack.c.bf16 %v3743_v4, %v3742_v2  ;;  %v3744_v9 = vld [vmem:[#allocation16 + $0x10] sm:$0xff]  ;;  %v999_v11 = vld [vmem:[#allocation15 + $0x20] sm:$0xff]  ;;  %s6619_s21 = sshll.u32 %s11908_s18, 4  ;;  %s12155_s13 = sld [smem:[#allocation47_spill]]  ;;  %s11977_s21 = int_to_ptr.vmem [resolvable:$true] %s6619_s21 }
 0x13e   : > { %v9247_v8 = vpack.c.bf16 %v998_v6, %v997_v5  ;;  %v3745_v10 = vld [vmem:[#allocation16 + $0x18] sm:$0xff]  ;;  %9244 = vmatprep.subr.bf16.mxu1 %v9243_v3  ;;  %v1000_v13 = vld [vmem:[#allocation15 + $0x28] sm:$0xff]  ;;  %v3746_v14 = vld [vmem:[#allocation16 + $0x20] sm:$0xff]  ;;  %s10800_s19 = scalar_lea.vmem %s11977_s21, 4096  ;;  %s10947_s29 = smov [#allocation19]  }
 0x13f   : > { %v9535_v12 = vpack.c.bf16 %v3745_v10, %v3744_v9  ;;  %v3747_v15 = vld [vmem:[#allocation16 + $0x28] sm:$0xff]  ;;  %9532 = vmatprep.subr.bf16.mxu0 %v9531_v7  ;;  %9246 = vmatpush3.bf16.msra.mxu1 %v9243_v3  ;;  %v9251_v16 = vpack.c.bf16 %v1000_v13, %v999_v11  ;;  %v1001_v18 = vld [vmem:[#allocation15 + $0x30] sm:$0xff]  ;;  %v1002_v19 = vld [vmem:[#allocation15 + $0x38] sm:$0xff]  ;;  %p10801_p1 = scmp.ne.s32.totalorder %s11977_s21, %s10800_s19  ;;  %s10804_s15 = sshll.u32 %s10947_s29, 4  ;;  %s10805_s15 = int_to_ptr.vmem [resolvable:$false] %s10804_s15 }
 0x140   : > { %9534 = vmatpush3.bf16.msra.mxu0 %v9531_v7  ;;  %9248 = vmatprep.subr.bf16.mxu1 %v9247_v8  ;;  %v9539_v17 = vpack.c.bf16 %v3747_v15, %v3746_v14  ;;  %v3748_v20 = vld [vmem:[#allocation16 + $0x30] sm:$0xff]  ;;  %v3749_v21 = vld [vmem:[#allocation16 + $0x38] sm:$0xff]  ;;  %v9255_v22 = vpack.c.bf16 %v1002_v19, %v1001_v18  ;;  %v1003_v23 = vld [vmem:[#allocation15 + $0x40] sm:$0xff]  ;;  %s10806_s16 = scalar_lea.vmem %s10805_s15, 8192  ;;  %p10807_p13 = scmp.lt.s32.totalorder %s11977_s21, %s10805_s15 }
 0x141   : > { %9536 = vmatprep.subr.bf16.mxu0 %v9535_v12  ;;  %v9543_v24 = vpack.c.bf16 %v3749_v21, %v3748_v20  ;;  %v1004_v25 = vld [vmem:[#allocation15 + $0x48] sm:$0xff]  ;;  %v3750_v26 = vld [vmem:[#allocation16 + $0x40] sm:$0xff]  ;;  %v1005_v31 = vld [vmem:[#allocation15 + $0x50] sm:$0xff]  ;;  %s6938_s25 = sshll.u32 %s12153_s28, 12  ;;  %p10808_p7 = scmp.lt.s32.totalorder %s10806_s16, %s10800_s19 }
 0x142   : > { %v735_v27 = vld [vmem:[%s11421_s24] sm:$0xff]  ;;  %v3751_v28 = vld [vmem:[#allocation16 + $0x48] sm:$0xff]  ;;  %v1006_v32 = vld [vmem:[#allocation15 + $0x58] sm:$0xff]  ;;  %v9259_v34 = vpack.c.bf16 %v1004_v25, %v1003_v23  ;;  %p12157_p3 = scmp.ne.s32.totalorder %s12154_s7, 0 }
 0x143   : > { %9250 = vmatpush3.bf16.msra.mxu1 %v9247_v8  ;;  %789 = vst [vmem:[#allocation2] sm:$0xff] %v735_v27  ;;  %7835 = vmatprep.mubr.f32.mxu1 %v735_v27  ;;  %v845_v29 = vld [vmem:[%s11437_s9] sm:$0xff]  ;;  %v11462_v30 = vld [vmem:[%s11421_s24 + $0x8] sm:$0xff]  ;;  %v3752_v35 = vld [vmem:[#allocation16 + $0x50] sm:$0xff]  ;;  %v9547_v38 = vpack.c.bf16 %v3751_v28, %v3750_v26  ;;  %v9263_v48 = vpack.c.bf16 %v1006_v32, %v1005_v31  ;;  %s12156_s1 = smov %s12155_s13  ;;  %s11975_s22 = scalar_lea.hbm %s12155_s13, %s6938_s25 }
 0x144   : > { %9538 = vmatpush3.bf16.msra.mxu0 %v9535_v12  ;;  %9252 = vmatprep.subr.bf16.mxu1 %v9251_v16  ;;  %899 = vst [vmem:[#allocation3] sm:$0xff] %v845_v29  ;;  %790 = vst [vmem:[#allocation2 + $0x8] sm:$0xff] %v11462_v30  ;;  %v11466_v33 = vld [vmem:[%s11437_s9 + $0x8] sm:$0xff]  ;;  %v11470_v36 = vld [vmem:[%s11421_s24 + $0x18] sm:$0xff]  ;;  %p10802_p10 = pnand %p10801_p1, %p12157_p3  ;;  %p10809_p8 = por %p10808_p7, %p10807_p13 }
 0x145   : > { %9540 = vmatprep.subr.bf16.mxu0 %v9539_v17  ;;  %8555 = vmatprep.mubr.f32.mxu0 %v845_v29  ;;  %900 = vst [vmem:[#allocation3 + $0x8] sm:$0xff] %v11466_v33  ;;  %v11473_v37 = vld [vmem:[%s11437_s9 + $0x18] sm:$0xff]  ;;  %792 = vst [vmem:[#allocation2 + $0x18] sm:$0xff] %v11470_v36  ;;  %v11478_v39 = vld [vmem:[%s11421_s24 + $0x20] sm:$0xff] }
 0x146   : > { %902 = vst [vmem:[#allocation3 + $0x18] sm:$0xff] %v11473_v37  ;;  %v11481_v40 = vld [vmem:[%s11437_s9 + $0x20] sm:$0xff]  ;;  %v11484_v41 = vld [vmem:[%s11421_s24 + $0x30] sm:$0xff]  ;;  %v3753_v42 = vld [vmem:[#allocation16 + $0x58] sm:$0xff]  ;;  %p10803_p12 = pneg %p10802_p10 }
 0x147   : > { %9254 = vmatpush3.bf16.msra.mxu1 %v9251_v16  ;;  %793 = vst [vmem:[#allocation2 + $0x20] sm:$0xff] %v11478_v39  ;;  %903 = vst [vmem:[#allocation3 + $0x20] sm:$0xff] %v11481_v40  ;;  %v11490_v43 = vld [vmem:[%s11437_s9 + $0x30] sm:$0xff]  ;;  %v11493_v44 = vld [vmem:[%s11421_s24 + $0x38] sm:$0xff]  ;;  %v9551_v52 = vpack.c.bf16 %v3753_v42, %v3752_v35 }
 0x148   : > { %9542 = vmatpush3.bf16.msra.mxu0 %v9539_v17  ;;  %9256 = vmatprep.subr.bf16.mxu1 %v9255_v22  ;;  %795 = vst [vmem:[#allocation2 + $0x30] sm:$0xff] %v11484_v41  ;;  %v1007_v45 = vld [vmem:[#allocation15 + $0x60] sm:$0xff]  ;;  %v1008_v46 = vld [vmem:[#allocation15 + $0x68] sm:$0xff]  ;;  %905 = vst [vmem:[#allocation3 + $0x30] sm:$0xff] %v11490_v43  ;;  %p10810_p9 = pnand %p10809_p8, %p10803_p12 }
 0x149   : > { %9544 = vmatprep.subr.bf16.mxu0 %v9543_v24  ;;  %796 = vst [vmem:[#allocation2 + $0x38] sm:$0xff] %v11493_v44  ;;  %v11498_v47 = vld [vmem:[%s11437_s9 + $0x38] sm:$0xff]  ;;  %v3754_v49 = vld [vmem:[#allocation16 + $0x60] sm:$0xff]  ;;  %v11502_v50 = vld [vmem:[%s11421_s24 + $0x48] sm:$0xff]  ;;  %v9267_v62 = vpack.c.bf16 %v1008_v46, %v1007_v45 }
 0x14a   : > { %906 = vst [vmem:[#allocation3 + $0x38] sm:$0xff] %v11498_v47  ;;  %v11505_v51 = vld [vmem:[%s11437_s9 + $0x48] sm:$0xff]  ;;  %798 = vst [vmem:[#allocation2 + $0x48] sm:$0xff] %v11502_v50  ;;  %v11510_v53 = vld [vmem:[%s11421_s24 + $0x50] sm:$0xff] }
 0x14b   : > { %9258 = vmatpush3.bf16.msra.mxu1 %v9255_v22  ;;  %908 = vst [vmem:[#allocation3 + $0x48] sm:$0xff] %v11505_v51  ;;  %v11513_v54 = vld [vmem:[%s11437_s9 + $0x50] sm:$0xff]  ;;  %v11516_v55 = vld [vmem:[%s11421_s24 + $0x60] sm:$0xff]  ;;  %v3755_v56 = vld [vmem:[#allocation16 + $0x68] sm:$0xff] }
 0x14c   : > { %9546 = vmatpush3.bf16.msra.mxu0 %v9543_v24  ;;  %9260 = vmatprep.subr.bf16.mxu1 %v9259_v34  ;;  %799 = vst [vmem:[#allocation2 + $0x50] sm:$0xff] %v11510_v53  ;;  %909 = vst [vmem:[#allocation3 + $0x50] sm:$0xff] %v11513_v54  ;;  %v11522_v57 = vld [vmem:[%s11437_s9 + $0x60] sm:$0xff]  ;;  %v11525_v58 = vld [vmem:[%s11421_s24 + $0x68] sm:$0xff]  ;;  %v9555_v2 = vpack.c.bf16 %v3755_v56, %v3754_v49 }
 0x14d   : > { %9548 = vmatprep.subr.bf16.mxu0 %v9547_v38  ;;  %801 = vst [vmem:[#allocation2 + $0x60] sm:$0xff] %v11516_v55  ;;  %v1009_v59 = vld [vmem:[#allocation15 + $0x70] sm:$0xff]  ;;  %v1010_v60 = vld [vmem:[#allocation15 + $0x78] sm:$0xff]  ;;  %911 = vst [vmem:[#allocation3 + $0x60] sm:$0xff] %v11522_v57 }
 0x14e   : > { %802 = vst [vmem:[#allocation2 + $0x68] sm:$0xff] %v11525_v58  ;;  %v11530_v61 = vld [vmem:[%s11437_s9 + $0x68] sm:$0xff]  ;;  %v3756_v63 = vld [vmem:[#allocation16 + $0x70] sm:$0xff]  ;;  %v11534_v0 = vld [vmem:[%s11421_s24 + $0x78] sm:$0xff]  ;;  %v9271_v12 = vpack.c.bf16 %v1010_v60, %v1009_v59 }
 0x14f   : > { %9262 = vmatpush3.bf16.msra.mxu1 %v9259_v34  ;;  %912 = vst [vmem:[#allocation3 + $0x68] sm:$0xff] %v11530_v61  ;;  %v11537_v1 = vld [vmem:[%s11437_s9 + $0x78] sm:$0xff]  ;;  %804 = vst [vmem:[#allocation2 + $0x78] sm:$0xff] %v11534_v0  ;;  %v11542_v3 = vld [vmem:[%s11421_s24 + $0x80] sm:$0xff] }
 0x150   : > { %9550 = vmatpush3.bf16.msra.mxu0 %v9547_v38  ;;  %9264 = vmatprep.subr.bf16.mxu1 %v9263_v48  ;;  %914 = vst [vmem:[#allocation3 + $0x78] sm:$0xff] %v11537_v1  ;;  %v11545_v4 = vld [vmem:[%s11437_s9 + $0x80] sm:$0xff]  ;;  %v11548_v5 = vld [vmem:[%s11421_s24 + $0x90] sm:$0xff]  ;;  %v3757_v6 = vld [vmem:[#allocation16 + $0x78] sm:$0xff] }
 0x151   : > { %9552 = vmatprep.subr.bf16.mxu0 %v9551_v52  ;;  %805 = vst [vmem:[#allocation2 + $0x80] sm:$0xff] %v11542_v3  ;;  %915 = vst [vmem:[#allocation3 + $0x80] sm:$0xff] %v11545_v4  ;;  %v11554_v7 = vld [vmem:[%s11437_s9 + $0x90] sm:$0xff]  ;;  %v11557_v8 = vld [vmem:[%s11421_s24 + $0x98] sm:$0xff]  ;;  %v9559_v16 = vpack.c.bf16 %v3757_v6, %v3756_v63 }
 0x152   : > { %807 = vst [vmem:[#allocation2 + $0x90] sm:$0xff] %v11548_v5  ;;  %v1300_v9 = vld [vmem:[#allocation15 + $0x80] sm:$0xff]  ;;  %v1301_v10 = vld [vmem:[#allocation15 + $0x88] sm:$0xff]  ;;  %917 = vst [vmem:[#allocation3 + $0x90] sm:$0xff] %v11554_v7 }
 0x153   : > { %9266 = vmatpush3.bf16.msra.mxu1 %v9263_v48  ;;  %808 = vst [vmem:[#allocation2 + $0x98] sm:$0xff] %v11557_v8  ;;  %v11562_v11 = vld [vmem:[%s11437_s9 + $0x98] sm:$0xff]  ;;  %v4047_v13 = vld [vmem:[#allocation16 + $0x80] sm:$0xff]  ;;  %v11566_v14 = vld [vmem:[%s11421_s24 + $0xa8] sm:$0xff]  ;;  %v9275_v24 = vpack.c.bf16 %v1301_v10, %v1300_v9 }
 0x154   : > { %9554 = vmatpush3.bf16.msra.mxu0 %v9551_v52  ;;  %9268 = vmatprep.subr.bf16.mxu1 %v9267_v62  ;;  %918 = vst [vmem:[#allocation3 + $0x98] sm:$0xff] %v11562_v11  ;;  %v11569_v15 = vld [vmem:[%s11437_s9 + $0xa8] sm:$0xff]  ;;  %810 = vst [vmem:[#allocation2 + $0xa8] sm:$0xff] %v11566_v14  ;;  %v11574_v17 = vld [vmem:[%s11421_s24 + $0xb0] sm:$0xff] }
 0x155   : > { %9556 = vmatprep.subr.bf16.mxu0 %v9555_v2  ;;  %920 = vst [vmem:[#allocation3 + $0xa8] sm:$0xff] %v11569_v15  ;;  %v11577_v18 = vld [vmem:[%s11437_s9 + $0xb0] sm:$0xff]  ;;  %v11580_v19 = vld [vmem:[%s11421_s24 + $0xc0] sm:$0xff]  ;;  %v4048_v20 = vld [vmem:[#allocation16 + $0x88] sm:$0xff] }
 0x156   : > { %811 = vst [vmem:[#allocation2 + $0xb0] sm:$0xff] %v11574_v17  ;;  %921 = vst [vmem:[#allocation3 + $0xb0] sm:$0xff] %v11577_v18  ;;  %v11586_v21 = vld [vmem:[%s11437_s9 + $0xc0] sm:$0xff]  ;;  %v11589_v22 = vld [vmem:[%s11421_s24 + $0xc8] sm:$0xff]  ;;  %v9563_v28 = vpack.c.bf16 %v4048_v20, %v4047_v13 }
 0x157   : > { %813 = vst [vmem:[#allocation2 + $0xc0] sm:$0xff] %v11580_v19  ;;  %9270 = vmatpush3.bf16.msra.mxu1 %v9267_v62  ;;  %923 = vst [vmem:[#allocation3 + $0xc0] sm:$0xff] %v11586_v21  ;;  %v11594_v23 = vld [vmem:[%s11437_s9 + $0xc8] sm:$0xff]  ;;  %v1302_v25 = vld [vmem:[#allocation15 + $0x90] sm:$0xff] }
 0x158   : > { %814 = vst [vmem:[#allocation2 + $0xc8] sm:$0xff] %v11589_v22  ;;  %9558 = vmatpush3.bf16.msra.mxu0 %v9555_v2  ;;  %9272 = vmatprep.subr.bf16.mxu1 %v9271_v12  ;;  %924 = vst [vmem:[#allocation3 + $0xc8] sm:$0xff] %v11594_v23  ;;  %v11598_v26 = vld [vmem:[%s11421_s24 + $0xd8] sm:$0xff]  ;;  %v11606_v29 = vld [vmem:[%s11421_s24 + $0xe0] sm:$0xff] }
 0x159   : > { %v11601_v27 = vld [vmem:[%s11437_s9 + $0xd8] sm:$0xff]  ;;  %9560 = vmatprep.subr.bf16.mxu0 %v9559_v16  ;;  %816 = vst [vmem:[#allocation2 + $0xd8] sm:$0xff] %v11598_v26  ;;  %v11609_v31 = vld [vmem:[%s11437_s9 + $0xe0] sm:$0xff]  ;;  %v11612_v32 = vld [vmem:[%s11421_s24 + $0xf0] sm:$0xff] }
 0x15a   : > { %926 = vst [vmem:[#allocation3 + $0xd8] sm:$0xff] %v11601_v27  ;;  %v1303_v34 = vld [vmem:[#allocation15 + $0x98] sm:$0xff]  ;;  %817 = vst [vmem:[#allocation2 + $0xe0] sm:$0xff] %v11606_v29  ;;  %v11618_v35 = vld [vmem:[%s11437_s9 + $0xf0] sm:$0xff] }
 0x15b   : > { %927 = vst [vmem:[#allocation3 + $0xe0] sm:$0xff] %v11609_v31  ;;  %819 = vst [vmem:[#allocation2 + $0xf0] sm:$0xff] %v11612_v32  ;;  %v11621_v38 = vld [vmem:[%s11421_s24 + $0xf8] sm:$0xff]  ;;  %9274 = vmatpush3.bf16.msra.mxu1 %v9271_v12  ;;  %v4049_v42 = vld [vmem:[#allocation16 + $0x90] sm:$0xff]  ;;  %v9279_v56 = vpack.c.bf16 %v1303_v34, %v1302_v25 }
 0x15c   : > { %v4050_v45 = vld [vmem:[#allocation16 + $0x98] sm:$0xff]  ;;  %929 = vst [vmem:[#allocation3 + $0xf0] sm:$0xff] %v11618_v35  ;;  %820 = vst [vmem:[#allocation2 + $0xf8] sm:$0xff] %v11621_v38  ;;  %9562 = vmatpush3.bf16.msra.mxu0 %v9559_v16  ;;  %9276 = vmatprep.subr.bf16.mxu1 %v9275_v24  ;;  %v1304_v48 = vld [vmem:[#allocation15 + $0xa0] sm:$0xff] }
 0x15d   : > { %v11626_v46 = vld [vmem:[%s11437_s9 + $0xf8] sm:$0xff]  ;;  %v11630_v49 = vld [vmem:[%s11421_s24 + $0x108] sm:$0xff]  ;;  %9564 = vmatprep.subr.bf16.mxu0 %v9563_v28  ;;  %v11638_v59 = vld [vmem:[%s11421_s24 + $0x110] sm:$0xff]  ;;  %v9567_v63 = vpack.c.bf16 %v4050_v45, %v4049_v42 }
 0x15e   : > { %930 = vst [vmem:[#allocation3 + $0xf8] sm:$0xff] %v11626_v46  ;;  %v11633_v52 = vld [vmem:[%s11437_s9 + $0x108] sm:$0xff]  ;;  %822 = vst [vmem:[#allocation2 + $0x108] sm:$0xff] %v11630_v49  ;;  %v11641_v60 = vld [vmem:[%s11437_s9 + $0x110] sm:$0xff]  ;;  %7836 = vmatmul.mubr.f32.vlgmr.msra.gmra.mrb[0].mxu1 %v11462_v30 }
 0x15f   : > { %932 = vst [vmem:[#allocation3 + $0x108] sm:$0xff] %v11633_v52  ;;  %v11644_v62 = vld [vmem:[%s11421_s24 + $0x120] sm:$0xff]  ;;  %v1305_v2 = vld [vmem:[#allocation15 + $0xa8] sm:$0xff]  ;;  %823 = vst [vmem:[#allocation2 + $0x110] sm:$0xff] %v11638_v59  ;;  %8556 = vmatmul.mubr.f32.vlgmr.msra.gmra.mrb[0].mxu0 %v11466_v33  ;;  %9278 = vmatpush3.bf16.msra.mxu1 %v9275_v24 }
 0x160   : > { %933 = vst [vmem:[#allocation3 + $0x110] sm:$0xff] %v11641_v60  ;;  %825 = vst [vmem:[#allocation2 + $0x120] sm:$0xff] %v11644_v62  ;;  %v11651_v6 = vld [vmem:[%s11437_s9 + $0x120] sm:$0xff]  ;;  %v11654_v9 = vld [vmem:[%s11421_s24 + $0x128] sm:$0xff]  ;;  %7838 = vmatprep.mubr.f32.mxu1 %v11470_v36  ;;  %8558 = vmatprep.mubr.f32.mxu0 %v11473_v37  ;;  %v9283_v20 = vpack.c.bf16 %v1305_v2, %v1304_v48 }
 0x161   : > { %v4051_v10 = vld [vmem:[#allocation16 + $0xa0] sm:$0xff]  ;;  %v4052_v30 = vld [vmem:[#allocation16 + $0xa8] sm:$0xff]  ;;  %935 = vst [vmem:[#allocation3 + $0x120] sm:$0xff] %v11651_v6  ;;  %826 = vst [vmem:[#allocation2 + $0x128] sm:$0xff] %v11654_v9  ;;  %9566 = vmatpush3.bf16.msra.mxu0 %v9563_v28  ;;  %9280 = vmatprep.subr.bf16.mxu1 %v9279_v56 }
 0x162   : > { %v11660_v12 = vld [vmem:[%s11437_s9 + $0x128] sm:$0xff]  ;;  %v1306_v13 = vld [vmem:[#allocation15 + $0xb0] sm:$0xff]  ;;  %v11666_v33 = vld [vmem:[%s11421_s24 + $0x138] sm:$0xff]  ;;  %7839 = vmatmul.mubr.f32.gmra.mrb[2].mxu1 %v11478_v39  ;;  %9568 = vmatprep.subr.bf16.mxu0 %v9567_v63  ;;  %v9571_v25 = vpack.c.bf16 %v4052_v30, %v4051_v10 }
 0x163   : > { %936 = vst [vmem:[#allocation3 + $0x128] sm:$0xff] %v11660_v12  ;;  %v11669_v16 = vld [vmem:[%s11437_s9 + $0x138] sm:$0xff]  ;;  %828 = vst [vmem:[#allocation2 + $0x138] sm:$0xff] %v11666_v33  ;;  %v11674_v24 = vld [vmem:[%s11421_s24 + $0x140] sm:$0xff]  ;;  %8559 = vmatmul.mubr.f32.gmra.mrb[2].mxu0 %v11481_v40  ;;  %7841 = vmatprep.mubr.f32.mxu1 %v11484_v41 }
 0x164   : > { %938 = vst [vmem:[#allocation3 + $0x138] sm:$0xff] %v11669_v16  ;;  %v11677_v36 = vld [vmem:[%s11437_s9 + $0x140] sm:$0xff]  ;;  %v11680_v37 = vld [vmem:[%s11421_s24 + $0x150] sm:$0xff]  ;;  %v1307_v34 = vld [vmem:[#allocation15 + $0xb8] sm:$0xff]  ;;  %8561 = vmatprep.mubr.f32.mxu0 %v11490_v43  ;;  %9282 = vmatpush3.bf16.msra.mxu1 %v9279_v56 }
 0x165   : > { %829 = vst [vmem:[#allocation2 + $0x140] sm:$0xff] %v11674_v24  ;;  %939 = vst [vmem:[#allocation3 + $0x140] sm:$0xff] %v11677_v36  ;;  %v11687_v28 = vld [vmem:[%s11437_s9 + $0x150] sm:$0xff]  ;;  %v11690_v42 = vld [vmem:[%s11421_s24 + $0x158] sm:$0xff]  ;;  %9570 = vmatpush3.bf16.msra.mxu0 %v9567_v63  ;;  %9284 = vmatprep.subr.bf16.mxu1 %v9283_v20  ;;  %v9287_v41 = vpack.c.bf16 %v1307_v34, %v1306_v13 }
 0x166   : > { %831 = vst [vmem:[#allocation2 + $0x150] sm:$0xff] %v11680_v37  ;;  %v4053_v39 = vld [vmem:[#allocation16 + $0xb0] sm:$0xff]  ;;  %v4054_v45 = vld [vmem:[#allocation16 + $0xb8] sm:$0xff]  ;;  %941 = vst [vmem:[#allocation3 + $0x150] sm:$0xff] %v11687_v28  ;;  %7842 = vmatmul.mubr.f32.gmra.mrb[4].mxu1 %v11493_v44  ;;  %9572 = vmatprep.subr.bf16.mxu0 %v9571_v25 }
 0x167   : > { %832 = vst [vmem:[#allocation2 + $0x158] sm:$0xff] %v11690_v42  ;;  %v11697_v48 = vld [vmem:[%s11437_s9 + $0x158] sm:$0xff]  ;;  %v11702_v2 = vld [vmem:[%s11421_s24 + $0x168] sm:$0xff]  ;;  %v11710_v10 = vld [vmem:[%s11421_s24 + $0x170] sm:$0xff]  ;;  %v9575_v43 = vpack.c.bf16 %v4054_v45, %v4053_v39  ;;  %8562 = vmatmul.mubr.f32.gmra.mrb[4].mxu0 %v11498_v47  ;;  %7844 = vmatprep.mubr.f32.mxu1 %v11502_v50 }
 0x168   : > { %12147 = vst [vmem:[#allocation41_spill] sm:$0xff] %v11697_v48  ;;  %942 = vst [vmem:[#allocation3 + $0x158] sm:$0xff] %v11697_v48  ;;  %v11705_v40 = vld [vmem:[%s11437_s9 + $0x168] sm:$0xff]  ;;  %v11713_v30 = vld [vmem:[%s11437_s9 + $0x170] sm:$0xff]  ;;  %8564 = vmatprep.mubr.f32.mxu0 %v11505_v51  ;;  %9286 = vmatpush3.bf16.msra.mxu1 %v9283_v20 }
 0x169   : > { %12148 = vst [vmem:[#allocation42_spill] sm:$0xff] %v11705_v40  ;;  %834 = vst [vmem:[#allocation2 + $0x168] sm:$0xff] %v11702_v2  ;;  %v1308_v56 = vld [vmem:[#allocation15 + $0xc0] sm:$0xff]  ;;  %v1309_v48 = vld [vmem:[#allocation15 + $0xc8] sm:$0xff]  ;;  %9574 = vmatpush3.bf16.msra.mxu0 %v9571_v25  ;;  %9288 = vmatprep.subr.bf16.mxu1 %v9287_v41 }
 0x16a   : > { %944 = vst [vmem:[#allocation3 + $0x168] sm:$0xff] %v11705_v40  ;;  %12149 = vst [vmem:[#allocation43_spill] sm:$0xff] %v11713_v30  ;;  %v737_v63 = vld [vmem:[%s11421_s24 + $0x10] sm:$0x3]  ;;  %v4055_v13 = vld [vmem:[#allocation16 + $0xc0] sm:$0xff]  ;;  %v9291_v44 = vpack.c.bf16 %v1309_v48, %v1308_v56  ;;  %7845 = vmatmul.mubr.f32.gmra.mrb[6].mxu1 %v11510_v53  ;;  %9576 = vmatprep.subr.bf16.mxu0 %v9575_v43 }
 0x16b   : > { %835 = vst [vmem:[#allocation2 + $0x170] sm:$0xff] %v11710_v10  ;;  %945 = vst [vmem:[#allocation3 + $0x170] sm:$0xff] %v11713_v30  ;;  %v4056_v34 = vld [vmem:[#allocation16 + $0xc8] sm:$0xff]  ;;  %v847_v40 = vld [vmem:[%s11437_s9 + $0x10] sm:$0x3]  ;;  %8565 = vmatmul.mubr.f32.gmra.mrb[6].mxu0 %v11513_v54  ;;  %7847 = vmatprep.mubr.f32.mxu1 %v11516_v55 }
 0x16c   : > { %791 = vst [vmem:[#allocation2 + $0x10] sm:$0x3] %v737_v63  ;;  %901 = vst [vmem:[#allocation3 + $0x10] sm:$0x3] %v847_v40  ;;  %v740_v39 = vld [vmem:[%s11421_s24 + $0x28] sm:$0x3]  ;;  %v9579_v47 = vpack.c.bf16 %v4056_v34, %v4055_v13  ;;  %8567 = vmatprep.mubr.f32.mxu0 %v11522_v57  ;;  %9290 = vmatpush3.bf16.msra.mxu1 %v9287_v41 }
 0x16d   : > { %v850_v45 = vld [vmem:[%s11437_s9 + $0x28] sm:$0x3]  ;;  %v1310_v50 = vld [vmem:[#allocation15 + $0xd0] sm:$0xff]  ;;  %v1311_v30 = vld [vmem:[#allocation15 + $0xd8] sm:$0xff]  ;;  %794 = vst [vmem:[#allocation2 + $0x28] sm:$0x3] %v740_v39  ;;  %9578 = vmatpush3.bf16.msra.mxu0 %v9575_v43  ;;  %9292 = vmatprep.subr.bf16.mxu1 %v9291_v44 }
 0x16e   : > { %904 = vst [vmem:[#allocation3 + $0x28] sm:$0x3] %v850_v45  ;;  %v743_v63 = vld [vmem:[%s11421_s24 + $0x40] sm:$0x3]  ;;  %v4057_v51 = vld [vmem:[#allocation16 + $0xd0] sm:$0xff]  ;;  %v4058_v20 = vld [vmem:[#allocation16 + $0xd8] sm:$0xff]  ;;  %v9295_v53 = vpack.c.bf16 %v1311_v30, %v1310_v50  ;;  %7848 = vmatmul.mubr.f32.gmra.mrb[8].mxu1 %v11525_v58  ;;  %9580 = vmatprep.subr.bf16.mxu0 %v9579_v47 }
 0x16f   : > { %797 = vst [vmem:[#allocation2 + $0x40] sm:$0x3] %v743_v63  ;;  %v853_v25 = vld [vmem:[%s11437_s9 + $0x40] sm:$0x3]  ;;  %v746_v48 = vld [vmem:[%s11421_s24 + $0x58] sm:$0x3]  ;;  %v9583_v54 = vpack.c.bf16 %v4058_v20, %v4057_v51  ;;  %8568 = vmatmul.mubr.f32.gmra.mrb[8].mxu0 %v11530_v61  ;;  %7850 = vmatprep.mubr.f32.mxu1 %v11534_v0 }
 0x170   : > { %907 = vst [vmem:[#allocation3 + $0x40] sm:$0x3] %v853_v25  ;;  %v856_v40 = vld [vmem:[%s11437_s9 + $0x58] sm:$0x3]  ;;  %v1312_v55 = vld [vmem:[#allocation15 + $0xe0] sm:$0xff]  ;;  %v1313_v56 = vld [vmem:[#allocation15 + $0xe8] sm:$0xff]  ;;  %8570 = vmatprep.mubr.f32.mxu0 %v11537_v1  ;;  %9294 = vmatpush3.bf16.msra.mxu1 %v9291_v44 }
 0x171   : > { %800 = vst [vmem:[#allocation2 + $0x58] sm:$0x3] %v746_v48  ;;  %910 = vst [vmem:[#allocation3 + $0x58] sm:$0x3] %v856_v40  ;;  %v749_v13 = vld [vmem:[%s11421_s24 + $0x70] sm:$0x3]  ;;  %9582 = vmatpush3.bf16.msra.mxu0 %v9579_v47  ;;  %9296 = vmatprep.subr.bf16.mxu1 %v9295_v53  ;;  %v9299_v58 = vpack.c.bf16 %v1313_v56, %v1312_v55 }
 0x172   : > { %v4059_v57 = vld [vmem:[#allocation16 + $0xe0] sm:$0xff]  ;;  %v4060_v41 = vld [vmem:[#allocation16 + $0xe8] sm:$0xff]  ;;  %803 = vst [vmem:[#allocation2 + $0x70] sm:$0x3] %v749_v13  ;;  %v859_v30 = vld [vmem:[%s11437_s9 + $0x70] sm:$0x3]  ;;  %7851 = vmatmul.mubr.f32.gmra.mrb[10].mxu1 %v11542_v3  ;;  %9584 = vmatprep.subr.bf16.mxu0 %v9583_v54 }
 0x173   : > { %913 = vst [vmem:[#allocation3 + $0x70] sm:$0x3] %v859_v30  ;;  %v9587_v61 = vpack.c.bf16 %v4060_v41, %v4059_v57  ;;  %v1314_v43 = vld [vmem:[#allocation15 + $0xf0] sm:$0xff]  ;;  %v1315_v0 = vld [vmem:[#allocation15 + $0xf8] sm:$0xff]  ;;  %v752_v34 = vld [vmem:[%s11421_s24 + $0x88] sm:$0x3]  ;;  %8571 = vmatmul.mubr.f32.gmra.mrb[10].mxu0 %v11545_v4  ;;  %7853 = vmatprep.mubr.f32.mxu1 %v11548_v5 }
 0x174   : > { %v4061_v1 = vld [vmem:[#allocation16 + $0xf0] sm:$0xff]  ;;  %v4062_v44 = vld [vmem:[#allocation16 + $0xf8] sm:$0xff]  ;;  %806 = vst [vmem:[#allocation2 + $0x88] sm:$0x3] %v752_v34  ;;  %v862_v39 = vld [vmem:[%s11437_s9 + $0x88] sm:$0x3]  ;;  %8573 = vmatprep.mubr.f32.mxu0 %v11554_v7  ;;  %9298 = vmatpush3.bf16.msra.mxu1 %v9295_v53  ;;  %v9303_v3 = vpack.c.bf16 %v1315_v0, %v1314_v43 }
 0x175   : > { %916 = vst [vmem:[#allocation3 + $0x88] sm:$0x3] %v862_v39  ;;  %v755_v45 = vld [vmem:[%s11421_s24 + $0xa0] sm:$0x3]  ;;  %9586 = vmatpush3.bf16.msra.mxu0 %v9583_v54  ;;  %9300 = vmatprep.subr.bf16.mxu1 %v9299_v58  ;;  %v9591_v4 = vpack.c.bf16 %v4062_v44, %v4061_v1  ;;  %v1606_v47 = vld [vmem:[#allocation15 + $0x108] sm:$0xff]  ;;  %v4018_v40 = vld [vmem:[#allocation3 + $0x21] sm:$0xff] }
 0x176   : > { %809 = vst [vmem:[#allocation2 + $0xa0] sm:$0x3] %v755_v45  ;;  %7854 = vmatmul.mubr.f32.gmra.mrb[12].mxu1 %v11557_v8  ;;  %9588 = vmatprep.subr.bf16.mxu0 %v9587_v61  ;;  %v1605_v5 = vld [vmem:[#allocation15 + $0x100] sm:$0xff]  ;;  %v4353_v63 = vld [vmem:[#allocation16 + $0x108] sm:$0xff]  ;;  %v758_v51 = vld [vmem:[%s11421_s24 + $0xb8] sm:$0x3] }
 0x177   : > { %v865_v50 = vld [vmem:[%s11437_s9 + $0xa0] sm:$0x3]  ;;  %8574 = vmatmul.mubr.f32.gmra.mrb[12].mxu0 %v11562_v11  ;;  %7856 = vmatprep.mubr.f32.mxu1 %v11566_v14  ;;  %v868_v20 = vld [vmem:[%s11437_s9 + $0xb8] sm:$0x3]  ;;  %v11753_v8 = vpack.c.bf16 %v1606_v47, %v1605_v5  ;;  %812 = vst [vmem:[#allocation2 + $0xb8] sm:$0x3] %v758_v51 }
 0x178   : > { %v4352_v7 = vld [vmem:[#allocation16 + $0x100] sm:$0xff]  ;;  %919 = vst [vmem:[#allocation3 + $0xa0] sm:$0x3] %v865_v50  ;;  %8576 = vmatprep.mubr.f32.mxu0 %v11569_v15  ;;  %9302 = vmatpush3.bf16.msra.mxu1 %v9299_v58  ;;  %922 = vst [vmem:[#allocation3 + $0xb8] sm:$0x3] %v868_v20  ;;  %v4357_v48 = vld [vmem:[#allocation16 + $0x128] sm:$0xff] }
 0x179   : > { %9590 = vmatpush3.bf16.msra.mxu0 %v9587_v61  ;;  %9304 = vmatprep.subr.bf16.mxu1 %v9303_v3  ;;  %v761_v11 = vld [vmem:[%s11421_s24 + $0xd0] sm:$0x3]  ;;  %v11757_v14 = vpack.c.bf16 %v4353_v63, %v4352_v7  ;;  %v874_v25 = vld [vmem:[%s11437_s9 + $0xe8] sm:$0x3]  ;;  %v4356_v53 = vld [vmem:[#allocation16 + $0x120] sm:$0xff] }
 0x17a   : > { %7857 = vmatmul.mubr.f32.gmra.mrb[14].mxu1 %v11574_v17  ;;  %9592 = vmatprep.subr.bf16.mxu0 %v9591_v4  ;;  %815 = vst [vmem:[#allocation2 + $0xd0] sm:$0x3] %v761_v11  ;;  %v871_v15 = vld [vmem:[%s11437_s9 + $0xd0] sm:$0x3]  ;;  %v764_v17 = vld [vmem:[%s11421_s24 + $0xe8] sm:$0x3]  ;;  %v9603_v13 = vpack.c.bf16 %v4357_v48, %v4356_v53 }
 0x17b   : > { %8577 = vmatmul.mubr.f32.gmra.mrb[14].mxu0 %v11577_v18  ;;  %7859 = vmatprep.mubr.f32.mxu1 %v11580_v19  ;;  %925 = vst [vmem:[#allocation3 + $0xd0] sm:$0x3] %v871_v15  ;;  %818 = vst [vmem:[#allocation2 + $0xe8] sm:$0x3] %v764_v17  ;;  %v767_v18 = vld [vmem:[%s11421_s24 + $0x100] sm:$0x3] }
 0x17c   : > { %8579 = vmatprep.mubr.f32.mxu0 %v11586_v21  ;;  %9306 = vmatpush3.bf16.msra.mxu1 %v9303_v3  ;;  %928 = vst [vmem:[#allocation3 + $0xe8] sm:$0x3] %v874_v25  ;;  %821 = vst [vmem:[#allocation2 + $0x100] sm:$0x3] %v767_v18  ;;  %v877_v19 = vld [vmem:[%s11437_s9 + $0x100] sm:$0x3] }
 0x17d   : > { %9594 = vmatpush3.bf16.msra.mxu0 %v9591_v4  ;;  %9308 = vmatprep.subr.bf16.mxu1 %v11753_v8  ;;  %931 = vst [vmem:[#allocation3 + $0x100] sm:$0x3] %v877_v19  ;;  %v770_v21 = vld [vmem:[%s11421_s24 + $0x118] sm:$0x3]  ;;  %v4019_v55 = vld [vmem:[#allocation3 + $0x31] sm:$0xff]  ;;  %v1611_v57 = vld [vmem:[#allocation15 + $0x130] sm:$0xff] }
 0x17e   : > { %7860 = vmatmul.mubr.f32.gmra.mrb[16].mxu1 %v11589_v22  ;;  %9596 = vmatprep.subr.bf16.mxu0 %v11757_v14  ;;  %824 = vst [vmem:[#allocation2 + $0x118] sm:$0x3] %v770_v21  ;;  %v880_v22 = vld [vmem:[%s11437_s9 + $0x118] sm:$0x3]  ;;  %v4358_v58 = vld [vmem:[#allocation16 + $0x130] sm:$0xff]  ;;  %v1613_v39 = vld [vmem:[#allocation15 + $0x140] sm:$0xff] }
 0x17f   : > { %8580 = vmatmul.mubr.f32.gmra.mrb[16].mxu0 %v11594_v23  ;;  %7862 = vmatprep.mubr.f32.mxu1 %v11598_v26  ;;  %934 = vst [vmem:[#allocation3 + $0x118] sm:$0x3] %v880_v22  ;;  %v773_v23 = vld [vmem:[%s11421_s24 + $0x130] sm:$0x3]  ;;  %v1612_v41 = vld [vmem:[#allocation15 + $0x138] sm:$0xff]  ;;  %v1614_v45 = vld [vmem:[#allocation15 + $0x148] sm:$0xff] }
 0x180   : > { %8582 = vmatprep.mubr.f32.mxu0 %v11601_v27  ;;  %827 = vst [vmem:[#allocation2 + $0x130] sm:$0x3] %v773_v23  ;;  %v883_v26 = vld [vmem:[%s11437_s9 + $0x130] sm:$0x3]  ;;  %v776_v27 = vld [vmem:[%s11421_s24 + $0x148] sm:$0x3]  ;;  %v9319_v1 = vpack.c.bf16 %v1612_v41, %v1611_v57  ;;  %v9323_v63 = vpack.c.bf16 %v1614_v45, %v1613_v39 }
 0x181   : > { %937 = vst [vmem:[#allocation3 + $0x130] sm:$0x3] %v883_v26  ;;  %830 = vst [vmem:[#allocation2 + $0x148] sm:$0x3] %v776_v27  ;;  %v1272_v54 = vld [vmem:[#allocation2 + $0x31] sm:$0xff]  ;;  %v1273_v30 = vld [vmem:[#allocation2 + $0x39] sm:$0xff] }
 0x182   : > { %7863 = vmatmul.mubr.f32.gmra.mrb[18].mxu1 %v11606_v29  ;;  %v886_v29 = vld [vmem:[%s11437_s9 + $0x148] sm:$0x3]  ;;  %v4359_v61 = vld [vmem:[#allocation16 + $0x138] sm:$0xff]  ;;  %v4360_v4 = vld [vmem:[#allocation16 + $0x140] sm:$0xff] }
 0x183   : > { %8583 = vmatmul.mubr.f32.gmra.mrb[18].mxu0 %v11609_v31  ;;  %7865 = vmatprep.mubr.f32.mxu1 %v11612_v32  ;;  %940 = vst [vmem:[#allocation3 + $0x148] sm:$0x3] %v886_v29  ;;  %v779_v31 = vld [vmem:[%s11421_s24 + $0x160] sm:$0x3]  ;;  %v4020_v43 = vld [vmem:[#allocation3 + $0x39] sm:$0xff]  ;;  %v9607_v44 = vpack.c.bf16 %v4359_v61, %v4358_v58  ;;  %v1275_v3 = vld [vmem:[#allocation2 + $0x51] sm:$0xff] }
 0x184   : > { %8585 = vmatprep.mubr.f32.mxu0 %v11618_v35  ;;  %833 = vst [vmem:[#allocation2 + $0x160] sm:$0x3] %v779_v31  ;;  %v889_v32 = vld [vmem:[%s11437_s9 + $0x160] sm:$0x3]  ;;  %v782_v35 = vld [vmem:[%s11421_s24 + $0x178] sm:$0x3] }
 0x185   : > { %943 = vst [vmem:[#allocation3 + $0x160] sm:$0x3] %v889_v32  ;;  %836 = vst [vmem:[#allocation2 + $0x178] sm:$0x3] %v782_v35  ;;  %v1274_v0 = vld [vmem:[#allocation2 + $0x49] sm:$0xff]  ;;  %v4021_v34 = vld [vmem:[#allocation3 + $0x49] sm:$0xff] }
 0x186   : > { %7866 = vmatmul.mubr.f32.gmra.mrb[20].mxu1 %v11621_v38  ;;  %v892_v38 = vld [vmem:[%s11437_s9 + $0x178] sm:$0x3]  ;;  %v4361_v5 = vld [vmem:[#allocation16 + $0x148] sm:$0xff]  ;;  %v1615_v20 = vld [vmem:[#allocation15 + $0x150] sm:$0xff]  ;;  %s6598_s24 = scalar_lea.sflag [#allocation6], %s11417_s6 }
 0x187   : > { %8586 = vmatmul.mubr.f32.gmra.mrb[20].mxu0 %v11626_v46  ;;  %7868 = vmatprep.mubr.f32.mxu1 %v11630_v49  ;;  %946 = vst [vmem:[#allocation3 + $0x178] sm:$0x3] %v892_v38  ;;  %v12150_v46 = vld [vmem:[#allocation41_spill] sm:$0xff]  ;;  %v12151_v49 = vld [vmem:[#allocation42_spill] sm:$0xff]  ;;  %v9611_v51 = vpack.c.bf16 %v4361_v5, %v4360_v4  ;;  %v4363_v15 = vld [vmem:[#allocation16 + $0x158] sm:$0xff] }
 0x188   : > { %8588 = vmatprep.mubr.f32.mxu0 %v11633_v52  ;;  %v1268_v52 = vld [vmem:[#allocation2 + $0x1] sm:$0xff]  ;;  %v4023_v7 = vld [vmem:[#allocation3 + $0x61] sm:$0xff]  ;;  %v1277_v11 = vld [vmem:[#allocation2 + $0x69] sm:$0xff] }
 0x189   : > { %v4022_v47 = vld [vmem:[#allocation3 + $0x51] sm:$0xff]  ;;  %v4024_v17 = vld [vmem:[#allocation3 + $0x69] sm:$0xff]  ;;  %v4025_v18 = vld [vmem:[#allocation3 + $0x79] sm:$0xff] }
 0x18a   : > { %7869 = vmatmul.mubr.f32.gmra.mrb[22].mxu1 %v11638_v59  ;;  %v4015_v59 = vld [vmem:[#allocation3 + $0x1] sm:$0xff]  ;;  %v1276_v50 = vld [vmem:[#allocation2 + $0x61] sm:$0xff]  ;;  %v1278_v25 = vld [vmem:[#allocation2 + $0x79] sm:$0xff] }
 0x18b   : > { %8589 = vmatmul.mubr.f32.gmra.mrb[22].mxu0 %v11641_v60  ;;  %7871 = vmatprep.mubr.f32.mxu1 %v11644_v62  ;;  %v1607_v60 = vld [vmem:[#allocation15 + $0x110] sm:$0xff]  ;;  %v1608_v62 = vld [vmem:[#allocation15 + $0x118] sm:$0xff]  ;;  %v1617_v22 = vld [vmem:[#allocation15 + $0x160] sm:$0xff] }
 0x18c   : > { %8591 = vmatprep.mubr.f32.mxu0 %v11651_v6  ;;  %v12152_v6 = vld [vmem:[#allocation43_spill] sm:$0xff]  ;;  %v1618_v23 = vld [vmem:[#allocation15 + $0x168] sm:$0xff]  ;;  %v4364_v27 = vld [vmem:[#allocation16 + $0x160] sm:$0xff] }
 0x18d   : > { %v1279_v26 = vld [vmem:[#allocation2 + $0x81] sm:$0xff]  ;;  %v4026_v31 = vld [vmem:[#allocation3 + $0x81] sm:$0xff]  ;;  %v9331_v38 = vpack.c.bf16 %v1618_v23, %v1617_v22  ;;  %v1289_v61 = vld [vmem:[#allocation2 + $0xf9] sm:$0xff] }
 0x18e   : > { %7872 = vmatmul.mubr.f32.gmra.mrb[24].mxu1 %v11654_v9  ;;  %v1269_v9 = vld [vmem:[#allocation2 + $0x9] sm:$0xff]  ;;  %v1280_v32 = vld [vmem:[#allocation2 + $0x91] sm:$0xff]  ;;  %v4027_v35 = vld [vmem:[#allocation3 + $0x91] sm:$0xff] }
 0x18f   : > { %8592 = vmatmul.mubr.f32.gmra.mrb[24].mxu0 %v11660_v12  ;;  %7874 = vmatprep.mubr.f32.mxu1 %v11666_v33  ;;  %v4354_v12 = vld [vmem:[#allocation16 + $0x110] sm:$0xff]  ;;  %v4355_v33 = vld [vmem:[#allocation16 + $0x118] sm:$0xff]  ;;  %v4365_v29 = vld [vmem:[#allocation16 + $0x168] sm:$0xff] }
 0x190   : > { %8594 = vmatprep.mubr.f32.mxu0 %v11669_v16  ;;  %v4016_v16 = vld [vmem:[#allocation3 + $0x9] sm:$0xff]  ;;  %v4031_v53 = vld [vmem:[#allocation3 + $0xc1] sm:$0xff]  ;;  %v1287_v57 = vld [vmem:[#allocation2 + $0xe1] sm:$0xff] }
 0x191   : > { %v4034_v41 = vld [vmem:[#allocation3 + $0xe1] sm:$0xff]  ;;  %v4035_v58 = vld [vmem:[#allocation3 + $0xf1] sm:$0xff]  ;;  %v4040_v4 = vld [vmem:[#allocation3 + $0x129] sm:$0xff] }
 0x192   : > { %7875 = vmatmul.mubr.f32.gmra.mrb[26].mxu1 %v11674_v24  ;;  %v1270_v24 = vld [vmem:[#allocation2 + $0x19] sm:$0xff]  ;;  %v1292_v39 = vld [vmem:[#allocation2 + $0x121] sm:$0xff]  ;;  %v4039_v45 = vld [vmem:[#allocation3 + $0x121] sm:$0xff] }
 0x193   : > { %8595 = vmatmul.mubr.f32.gmra.mrb[26].mxu0 %v11677_v36  ;;  %7877 = vmatprep.mubr.f32.mxu1 %v11680_v37  ;;  %v4017_v36 = vld [vmem:[#allocation3 + $0x19] sm:$0xff]  ;;  %v9311_v37 = vpack.c.bf16 %v1608_v62, %v1607_v60  ;;  %v4367_v62 = vld [vmem:[#allocation16 + $0x178] sm:$0xff] }
 0x194   : > { %8597 = vmatprep.mubr.f32.mxu0 %v11687_v28  ;;  %v9599_v28 = vpack.c.bf16 %v4355_v33, %v4354_v12  ;;  %v4366_v60 = vld [vmem:[#allocation16 + $0x170] sm:$0xff]  ;;  %v4029_v12 = vld [vmem:[#allocation3 + $0xa9] sm:$0xff] }
 0x195   : > { %v1294_v5 = vld [vmem:[#allocation2 + $0x139] sm:$0xff]  ;;  %v1913_v23 = vld [vmem:[#allocation15 + $0x190] sm:$0xff] }
 0x196   : > { %7878 = vmatmul.mubr.f32.gmra.mrb[28].mxu1 %v11690_v42  ;;  %v1609_v42 = vld [vmem:[#allocation15 + $0x120] sm:$0xff]  ;;  %v4320_v22 = vld [vmem:[#allocation3 + $0x2] sm:$0xff] }
 0x197   : > { %8598 = vmatmul.mubr.f32.gmra.mrb[28].mxu0 %v12150_v46  ;;  %7880 = vmatprep.mubr.f32.mxu1 %v11702_v2  ;;  %v1610_v2 = vld [vmem:[#allocation15 + $0x128] sm:$0xff]  ;;  %v9619_v46 = vpack.c.bf16 %v4365_v29, %v4364_v27 }
 0x198   : > { %8600 = vmatprep.mubr.f32.mxu0 %v12151_v49  ;;  %v9315_v56 = vpack.c.bf16 %v1610_v2, %v1609_v42  ;;  %v1619_v49 = vld [vmem:[#allocation15 + $0x170] sm:$0xff]  ;;  %v4659_v42 = vld [vmem:[#allocation16 + $0x188] sm:$0xff] }
 0x199   : > { %v4030_v2 = vld [vmem:[#allocation3 + $0xb1] sm:$0xff]  ;;  %v1574_v29 = vld [vmem:[#allocation2 + $0xa] sm:$0xff] }
 0x19a   : > { %7881 = vmatmul.mubr.f32.gmra.mrb[30].mxu1 %v11710_v10  ;;  %v1271_v10 = vld [vmem:[#allocation2 + $0x21] sm:$0xff] }
 0x19b   : > { %8601 = vmatmul.mubr.f32.gmra.mrb[30].mxu0 %v12152_v6  ;;  %7915 = vmatprep.mubr.f32.mxu1 %v1268_v52  ;;  %v1620_v52 = vld [vmem:[#allocation15 + $0x178] sm:$0xff]  ;;  %v4028_v6 = vld [vmem:[#allocation3 + $0x99] sm:$0xff] }
 0x19c   : > { %8635 = vmatprep.mubr.f32.mxu0 %v4015_v59  ;;  %v1281_v59 = vld [vmem:[#allocation2 + $0x99] sm:$0xff]  ;;  %v9335_v33 = vpack.c.bf16 %v1620_v52, %v1619_v49 }
 0x19d   : > { %v11830_v27 = vld [vmem:[%s11443_s27 + $0x8] sm:$0xff] }
 0x19e   : > { %7916 = vmatmul.mubr.f32.vlgmr.msra.gmra.mrb[0].mxu1 %v1269_v9  ;;  %v1282_v9 = vld [vmem:[#allocation2 + $0xa9] sm:$0xff]  ;;  %949 = vst [vmem:[#allocation3 + $0x188] sm:$0xff] %v11830_v27 }
 0x19f   : > { %8636 = vmatmul.mubr.f32.vlgmr.msra.gmra.mrb[0].mxu0 %v4016_v16  ;;  %9310 = vmatpush3.bf16.msra.mxu1 %v11753_v8  ;;  %v1616_v8 = vld [vmem:[#allocation15 + $0x158] sm:$0xff]  ;;  %v9623_v16 = vpack.c.bf16 %v4367_v62, %v4366_v60  ;;  %v1916_v60 = vld [vmem:[#allocation15 + $0x1a8] sm:$0xff] }
 0x1a0   : > { %7918 = vmatprep.mubr.f32.mxu1 %v1270_v24  ;;  %8638 = vmatprep.mubr.f32.mxu0 %v4017_v36  ;;  %v9327_v19 = vpack.c.bf16 %v1616_v8, %v1615_v20  ;;  %v1911_v24 = vld [vmem:[#allocation15 + $0x180] sm:$0xff]  ;;  %v1912_v36 = vld [vmem:[#allocation15 + $0x188] sm:$0xff] }
 0x1a1   : > { %9598 = vmatpush3.bf16.msra.mxu0 %v11757_v14  ;;  %9312 = vmatprep.subr.bf16.mxu1 %v9311_v37  ;;  %v4362_v14 = vld [vmem:[#allocation16 + $0x150] sm:$0xff]  ;;  %v11811_v48 = vpack.c.bf16 %v1912_v36, %v1911_v24  ;;  %v1297_v20 = vld [vmem:[#allocation2 + $0x159] sm:$0xff]  ;;  %v1576_v62 = vld [vmem:[#allocation2 + $0x22] sm:$0xff] }
 0x1a2   : > { %7919 = vmatmul.mubr.f32.gmra.mrb[2].mxu1 %v1271_v10  ;;  %9600 = vmatprep.subr.bf16.mxu0 %v9599_v28  ;;  %v9615_v21 = vpack.c.bf16 %v4363_v15, %v4362_v14  ;;  %v1284_v10 = vld [vmem:[#allocation2 + $0xc1] sm:$0xff]  ;;  %v4044_v8 = vld [vmem:[#allocation3 + $0x159] sm:$0xff]  ;;  %v4045_v14 = vld [vmem:[#allocation3 + $0x169] sm:$0xff] }
 0x1a3   : > { %8639 = vmatmul.mubr.f32.gmra.mrb[2].mxu0 %v4018_v40  ;;  %7921 = vmatprep.mubr.f32.mxu1 %v1272_v54  ;;  %v1285_v54 = vld [vmem:[#allocation2 + $0xc9] sm:$0xff]  ;;  %v1299_v15 = vld [vmem:[#allocation2 + $0x171] sm:$0xff] }
 0x1a4   : > { %8641 = vmatprep.mubr.f32.mxu0 %v4019_v55  ;;  %9314 = vmatpush3.bf16.msra.mxu1 %v9311_v37  ;;  %v1283_v37 = vld [vmem:[#allocation2 + $0xb1] sm:$0xff]  ;;  %v4032_v55 = vld [vmem:[#allocation3 + $0xc9] sm:$0xff] }
 0x1a5   : > { %9602 = vmatpush3.bf16.msra.mxu0 %v9599_v28  ;;  %9316 = vmatprep.subr.bf16.mxu1 %v9315_v56  ;;  %v4658_v28 = vld [vmem:[#allocation16 + $0x180] sm:$0xff] }
 0x1a6   : > { %7922 = vmatmul.mubr.f32.gmra.mrb[4].mxu1 %v1273_v30  ;;  %9604 = vmatprep.subr.bf16.mxu0 %v9603_v13  ;;  %v11813_v40 = vpack.c.bf16 %v4659_v42, %v4658_v28  ;;  %v1288_v30 = vld [vmem:[#allocation2 + $0xf1] sm:$0xff]  ;;  %v1578_v42 = vld [vmem:[#allocation2 + $0x3a] sm:$0xff] }
 0x1a7   : > { %8642 = vmatmul.mubr.f32.gmra.mrb[4].mxu0 %v4020_v43  ;;  %7924 = vmatprep.mubr.f32.mxu1 %v1274_v0  ;;  %v4036_v43 = vld [vmem:[#allocation3 + $0xf9] sm:$0xff]  ;;  %v1918_v28 = vld [vmem:[#allocation15 + $0x1b8] sm:$0xff] }
 0x1a8   : > { %8644 = vmatprep.mubr.f32.mxu0 %v4021_v34  ;;  %9318 = vmatpush3.bf16.msra.mxu1 %v9315_v56  ;;  %v1286_v56 = vld [vmem:[#allocation2 + $0xd9] sm:$0xff]  ;;  %v1290_v0 = vld [vmem:[#allocation2 + $0x109] sm:$0xff] }
 0x1a9   : > { %9606 = vmatpush3.bf16.msra.mxu0 %v9603_v13  ;;  %9320 = vmatprep.subr.bf16.mxu1 %v9319_v1  ;;  %v4033_v13 = vld [vmem:[#allocation3 + $0xd9] sm:$0xff]  ;;  %v4037_v34 = vld [vmem:[#allocation3 + $0x109] sm:$0xff] }
 0x1aa   : > { %7925 = vmatmul.mubr.f32.gmra.mrb[6].mxu1 %v1275_v3  ;;  %9608 = vmatprep.subr.bf16.mxu0 %v9607_v44  ;;  %v1293_v3 = vld [vmem:[#allocation2 + $0x129] sm:$0xff] }
 0x1ab   : > { %8645 = vmatmul.mubr.f32.gmra.mrb[6].mxu0 %v4022_v47  ;;  %7927 = vmatprep.mubr.f32.mxu1 %v1276_v50  ;;  %v4041_v47 = vld [vmem:[#allocation3 + $0x139] sm:$0xff]  ;;  %v1295_v50 = vld [vmem:[#allocation2 + $0x141] sm:$0xff] }
 0x1ac   : > { %8647 = vmatprep.mubr.f32.mxu0 %v4023_v7  ;;  %9322 = vmatpush3.bf16.msra.mxu1 %v9319_v1  ;;  %v1291_v1 = vld [vmem:[#allocation2 + $0x111] sm:$0xff] }
 0x1ad   : > { %9610 = vmatpush3.bf16.msra.mxu0 %v9607_v44  ;;  %9324 = vmatprep.subr.bf16.mxu1 %v9323_v63  ;;  %v4038_v44 = vld [vmem:[#allocation3 + $0x111] sm:$0xff]  ;;  %v4042_v7 = vld [vmem:[#allocation3 + $0x141] sm:$0xff] }
 0x1ae   : > { %7928 = vmatmul.mubr.f32.gmra.mrb[8].mxu1 %v1277_v11  ;;  %9612 = vmatprep.subr.bf16.mxu0 %v9611_v51  ;;  %v1298_v11 = vld [vmem:[#allocation2 + $0x169] sm:$0xff] }
 0x1af   : > { %8648 = vmatmul.mubr.f32.gmra.mrb[8].mxu0 %v4024_v17  ;;  %7930 = vmatprep.mubr.f32.mxu1 %v1278_v25  ;;  %v1573_v17 = vld [vmem:[#allocation2 + $0x2] sm:$0xff] }
 0x1b0   : > { %8650 = vmatprep.mubr.f32.mxu0 %v4025_v18  ;;  %9326 = vmatpush3.bf16.msra.mxu1 %v9323_v63  ;;  %v1296_v63 = vld [vmem:[#allocation2 + $0x151] sm:$0xff]  ;;  %v4046_v18 = vld [vmem:[#allocation3 + $0x171] sm:$0xff] }
 0x1b1   : > { %9614 = vmatpush3.bf16.msra.mxu0 %v9611_v51  ;;  %9328 = vmatprep.subr.bf16.mxu1 %v9327_v19  ;;  %v4043_v51 = vld [vmem:[#allocation3 + $0x151] sm:$0xff] }
 0x1b2   : > { %7931 = vmatmul.mubr.f32.gmra.mrb[10].mxu1 %v1279_v26  ;;  %9616 = vmatprep.subr.bf16.mxu0 %v9615_v21  ;;  %v11818_v25 = vld [vmem:[%s11429_s30] sm:$0xff] }
 0x1b3   : > { %8651 = vmatmul.mubr.f32.gmra.mrb[10].mxu0 %v4026_v31  ;;  %7933 = vmatprep.mubr.f32.mxu1 %v1280_v32  ;;  %838 = vst [vmem:[#allocation2 + $0x180] sm:$0xff] %v11818_v25  ;;  %v1914_v26 = vld [vmem:[#allocation15 + $0x198] sm:$0xff]  ;;  %v4660_v31 = vld [vmem:[#allocation16 + $0x190] sm:$0xff] }
 0x1b4   : > { %8653 = vmatprep.mubr.f32.mxu0 %v4027_v35  ;;  %9330 = vmatpush3.bf16.msra.mxu1 %v9327_v19  ;;  %v11822_v19 = vld [vmem:[%s11443_s27] sm:$0xff]  ;;  %v9343_v49 = vpack.c.bf16 %v1914_v26, %v1913_v23  ;;  %v1925_v23 = vld [vmem:[#allocation15 + $0x1f0] sm:$0xff] }
 0x1b5   : > { %9618 = vmatpush3.bf16.msra.mxu0 %v9615_v21  ;;  %9332 = vmatprep.subr.bf16.mxu1 %v9331_v38  ;;  %v11825_v21 = vld [vmem:[%s11429_s30 + $0x8] sm:$0xff]  ;;  %948 = vst [vmem:[#allocation3 + $0x180] sm:$0xff] %v11822_v19  ;;  %v4661_v32 = vld [vmem:[#allocation16 + $0x198] sm:$0xff] }
 0x1b6   : > { %7934 = vmatmul.mubr.f32.gmra.mrb[12].mxu1 %v1281_v59  ;;  %9620 = vmatprep.subr.bf16.mxu0 %v9619_v46  ;;  %839 = vst [vmem:[#allocation2 + $0x188] sm:$0xff] %v11825_v21  ;;  %v4321_v35 = vld [vmem:[#allocation3 + $0xa] sm:$0xff]  ;;  %v9631_v52 = vpack.c.bf16 %v4661_v32, %v4660_v31  ;;  %v4672_v31 = vld [vmem:[#allocation16 + $0x1f0] sm:$0xff] }
 0x1b7   : > { %8654 = vmatmul.mubr.f32.gmra.mrb[12].mxu0 %v4028_v6  ;;  %7936 = vmatprep.mubr.f32.mxu1 %v1282_v9  ;;  %v1915_v59 = vld [vmem:[#allocation15 + $0x1a0] sm:$0xff]  ;;  %v4663_v9 = vld [vmem:[#allocation16 + $0x1a8] sm:$0xff]  ;;  %v1926_v26 = vld [vmem:[#allocation15 + $0x1f8] sm:$0xff] }
 0x1b8   : > { %8656 = vmatprep.mubr.f32.mxu0 %v4029_v12  ;;  %9334 = vmatpush3.bf16.msra.mxu1 %v9331_v38  ;;  %v1575_v38 = vld [vmem:[#allocation2 + $0x1a] sm:$0xff]  ;;  %v4323_v12 = vld [vmem:[#allocation3 + $0x22] sm:$0xff]  ;;  %v9347_v24 = vpack.c.bf16 %v1916_v60, %v1915_v59  ;;  %v2217_v60 = vld [vmem:[#allocation15 + $0x208] sm:$0xff] }
 0x1b9   : > { %9622 = vmatpush3.bf16.msra.mxu0 %v9619_v46  ;;  %9336 = vmatprep.subr.bf16.mxu1 %v9335_v33  ;;  %v4322_v46 = vld [vmem:[#allocation3 + $0x1a] sm:$0xff]  ;;  %v4662_v6 = vld [vmem:[#allocation16 + $0x1a0] sm:$0xff]  ;;  %v4673_v32 = vld [vmem:[#allocation16 + $0x1f8] sm:$0xff] }
 0x1ba   : > { %7937 = vmatmul.mubr.f32.gmra.mrb[14].mxu1 %v1283_v37  ;;  %9624 = vmatprep.subr.bf16.mxu0 %v9623_v16  ;;  %v9635_v36 = vpack.c.bf16 %v4663_v9, %v4662_v6  ;;  %v1917_v37 = vld [vmem:[#allocation15 + $0x1b0] sm:$0xff]  ;;  %v2216_v59 = vld [vmem:[#allocation15 + $0x200] sm:$0xff]  ;;  %v4964_v9 = vld [vmem:[#allocation16 + $0x208] sm:$0xff] }
 0x1bb   : > { %8657 = vmatmul.mubr.f32.gmra.mrb[14].mxu0 %v4030_v2  ;;  %7939 = vmatprep.mubr.f32.mxu1 %v1284_v10  ;;  %v4664_v2 = vld [vmem:[#allocation16 + $0x1b0] sm:$0xff]  ;;  %v4665_v10 = vld [vmem:[#allocation16 + $0x1b8] sm:$0xff]  ;;  %v4963_v6 = vld [vmem:[#allocation16 + $0x200] sm:$0xff] }
 0x1bc   : > { %8659 = vmatprep.mubr.f32.mxu0 %v4031_v53  ;;  %9338 = vmatpush3.bf16.msra.mxu1 %v9335_v33  ;;  %v1577_v33 = vld [vmem:[#allocation2 + $0x32] sm:$0xff]  ;;  %v4325_v53 = vld [vmem:[#allocation3 + $0x3a] sm:$0xff] }
 0x1bd   : > { %9626 = vmatpush3.bf16.msra.mxu0 %v9623_v16  ;;  %9340 = vmatprep.subr.bf16.mxu1 %v11811_v48  ;;  %v4324_v16 = vld [vmem:[#allocation3 + $0x32] sm:$0xff] }
 0x1be   : > { %7940 = vmatmul.mubr.f32.gmra.mrb[16].mxu1 %v1285_v54  ;;  %9628 = vmatprep.subr.bf16.mxu0 %v11813_v40  ;;  %v4326_v54 = vld [vmem:[#allocation3 + $0x4a] sm:$0xff] }
 0x1bf   : > { %8660 = vmatmul.mubr.f32.gmra.mrb[16].mxu0 %v4032_v55  ;;  %7942 = vmatprep.mubr.f32.mxu1 %v1286_v56  ;;  %v9639_v55 = vpack.c.bf16 %v4665_v10, %v4664_v2  ;;  %v1919_v56 = vld [vmem:[#allocation15 + $0x1c0] sm:$0xff]  ;;  %v4338_v2 = vld [vmem:[#allocation3 + $0xda] sm:$0xff] }
 0x1c0   : > { %8662 = vmatprep.mubr.f32.mxu0 %v4033_v13  ;;  %v1920_v13 = vld [vmem:[#allocation15 + $0x1c8] sm:$0xff] }
 0x1c1   : > { %v1592_v10 = vld [vmem:[#allocation2 + $0xe2] sm:$0xff] }
 0x1c2   : > { %7943 = vmatmul.mubr.f32.gmra.mrb[18].mxu1 %v1287_v57  ;;  %v1580_v57 = vld [vmem:[#allocation2 + $0x52] sm:$0xff] }
 0x1c3   : > { %8663 = vmatmul.mubr.f32.gmra.mrb[18].mxu0 %v4034_v41  ;;  %7945 = vmatprep.mubr.f32.mxu1 %v1288_v30  ;;  %v4666_v41 = vld [vmem:[#allocation16 + $0x1c0] sm:$0xff]  ;;  %v4667_v30 = vld [vmem:[#allocation16 + $0x1c8] sm:$0xff] }
 0x1c4   : > { %8665 = vmatprep.mubr.f32.mxu0 %v4035_v58  ;;  %v4327_v58 = vld [vmem:[#allocation3 + $0x52] sm:$0xff] }
 0x1c6   : > { %7946 = vmatmul.mubr.f32.gmra.mrb[20].mxu1 %v1289_v61  ;;  %v1581_v61 = vld [vmem:[#allocation2 + $0x62] sm:$0xff] }
 0x1c7   : > { %8666 = vmatmul.mubr.f32.gmra.mrb[20].mxu0 %v4036_v43  ;;  %7948 = vmatprep.mubr.f32.mxu1 %v1290_v0  ;;  %v4328_v43 = vld [vmem:[#allocation3 + $0x62] sm:$0xff]  ;;  %v9355_v0 = vpack.c.bf16 %v1920_v13, %v1919_v56  ;;  %v1595_v56 = vld [vmem:[#allocation2 + $0x10a] sm:$0xff]  ;;  %v4342_v13 = vld [vmem:[#allocation3 + $0x10a] sm:$0xff] }
 0x1c8   : > { %8668 = vmatprep.mubr.f32.mxu0 %v4037_v34  ;;  %v9643_v34 = vpack.c.bf16 %v4667_v30, %v4666_v41  ;;  %v4343_v41 = vld [vmem:[#allocation3 + $0x112] sm:$0xff] }
 0x1c9   : > { %v1597_v30 = vld [vmem:[#allocation2 + $0x122] sm:$0xff] }
 0x1ca   : > { %7949 = vmatmul.mubr.f32.gmra.mrb[22].mxu1 %v1291_v1  ;;  %v1921_v1 = vld [vmem:[#allocation15 + $0x1d0] sm:$0xff] }
 0x1cb   : > { %8669 = vmatmul.mubr.f32.gmra.mrb[22].mxu0 %v4038_v44  ;;  %7951 = vmatprep.mubr.f32.mxu1 %v1292_v39  ;;  %v1922_v44 = vld [vmem:[#allocation15 + $0x1d8] sm:$0xff]  ;;  %v1582_v39 = vld [vmem:[#allocation2 + $0x6a] sm:$0xff] }
 0x1cc   : > { %8671 = vmatprep.mubr.f32.mxu0 %v4039_v45  ;;  %v4668_v45 = vld [vmem:[#allocation16 + $0x1d0] sm:$0xff] }
 0x1ce   : > { %7952 = vmatmul.mubr.f32.gmra.mrb[24].mxu1 %v1293_v3  ;;  %v4669_v3 = vld [vmem:[#allocation16 + $0x1d8] sm:$0xff] }
 0x1cf   : > { %8672 = vmatmul.mubr.f32.gmra.mrb[24].mxu0 %v4040_v4  ;;  %7954 = vmatprep.mubr.f32.mxu1 %v1294_v5  ;;  %v4329_v4 = vld [vmem:[#allocation3 + $0x6a] sm:$0xff] }
 0x1d0   : > { %8674 = vmatprep.mubr.f32.mxu0 %v4041_v47  ;;  %v1583_v5 = vld [vmem:[#allocation2 + $0x7a] sm:$0xff]  ;;  %v4330_v47 = vld [vmem:[#allocation3 + $0x7a] sm:$0xff] }
 0x1d2   : > { %7955 = vmatmul.mubr.f32.gmra.mrb[26].mxu1 %v1295_v50  ;;  %v9359_v50 = vpack.c.bf16 %v1922_v44, %v1921_v1  ;;  %v1600_v1 = vld [vmem:[#allocation2 + $0x142] sm:$0xff]  ;;  %v4347_v44 = vld [vmem:[#allocation3 + $0x142] sm:$0xff] }
 0x1d3   : > { %8675 = vmatmul.mubr.f32.gmra.mrb[26].mxu0 %v4042_v7  ;;  %7957 = vmatprep.mubr.f32.mxu1 %v1296_v63  ;;  %v9647_v7 = vpack.c.bf16 %v4669_v3, %v4668_v45  ;;  %v1923_v63 = vld [vmem:[#allocation15 + $0x1e0] sm:$0xff]  ;;  %v785_v3 = vld [vmem:[%s11429_s30 + $0x10] sm:$0x3] }
 0x1d4   : > { %8677 = vmatprep.mubr.f32.mxu0 %v4043_v51  ;;  %v1924_v51 = vld [vmem:[#allocation15 + $0x1e8] sm:$0xff]  ;;  %840 = vst [vmem:[#allocation2 + $0x190] sm:$0x3] %v785_v3  ;;  %v2228_v3 = vld [vmem:[#allocation15 + $0x260] sm:$0xff] }
 0x1d5   : > { %v4348_v45 = vld [vmem:[#allocation3 + $0x152] sm:$0xff] }
 0x1d6   : > { %7958 = vmatmul.mubr.f32.gmra.mrb[28].mxu1 %v1297_v20  ;;  %v1584_v20 = vld [vmem:[#allocation2 + $0x82] sm:$0xff] }
 0x1d7   : > { %8678 = vmatmul.mubr.f32.gmra.mrb[28].mxu0 %v4044_v8  ;;  %7960 = vmatprep.mubr.f32.mxu1 %v1298_v11  ;;  %v4670_v8 = vld [vmem:[#allocation16 + $0x1e0] sm:$0xff]  ;;  %v4671_v11 = vld [vmem:[#allocation16 + $0x1e8] sm:$0xff] }
 0x1d8   : > { %8680 = vmatprep.mubr.f32.mxu0 %v4045_v14  ;;  %v4331_v14 = vld [vmem:[#allocation3 + $0x82] sm:$0xff] }
 0x1da   : > { %7961 = vmatmul.mubr.f32.gmra.mrb[30].mxu1 %v1299_v15  ;;  %v1585_v15 = vld [vmem:[#allocation2 + $0x92] sm:$0xff] }
 0x1db   : > { %8681 = vmatmul.mubr.f32.gmra.mrb[30].mxu0 %v4046_v18  ;;  %7995 = vmatprep.mubr.f32.mxu1 %v1573_v17  ;;  %v4332_v17 = vld [vmem:[#allocation3 + $0x92] sm:$0xff]  ;;  %v9363_v18 = vpack.c.bf16 %v1924_v51, %v1923_v63  ;;  %v1604_v63 = vld [vmem:[#allocation2 + $0x172] sm:$0xff] }
 0x1dc   : > { %8715 = vmatprep.mubr.f32.mxu0 %v4320_v22  ;;  %v9651_v22 = vpack.c.bf16 %v4671_v11, %v4670_v8  ;;  %v4351_v51 = vld [vmem:[#allocation3 + $0x172] sm:$0xff]  ;;  %v2218_v11 = vld [vmem:[#allocation15 + $0x210] sm:$0xff] }
 0x1dd   : > { %v4626_v8 = vld [vmem:[#allocation3 + $0x18] sm:$0xff] }
 0x1de   : > { %7996 = vmatmul.mubr.f32.vlgmr.msra.gmra.mrb[0].mxu1 %v1574_v29  ;;  %v1586_v29 = vld [vmem:[#allocation2 + $0x9a] sm:$0xff] }
 0x1df   : > { %8716 = vmatmul.mubr.f32.vlgmr.msra.gmra.mrb[0].mxu0 %v4321_v35  ;;  %9342 = vmatpush3.bf16.msra.mxu1 %v11811_v48  ;;  %v1579_v48 = vld [vmem:[#allocation2 + $0x4a] sm:$0xff] }
 0x1e0   : > { %7998 = vmatprep.mubr.f32.mxu1 %v1575_v38  ;;  %8718 = vmatprep.mubr.f32.mxu0 %v4322_v46  ;;  %v4333_v35 = vld [vmem:[#allocation3 + $0x9a] sm:$0xff]  ;;  %v4334_v46 = vld [vmem:[#allocation3 + $0xaa] sm:$0xff] }
 0x1e1   : > { %9630 = vmatpush3.bf16.msra.mxu0 %v11813_v40  ;;  %9344 = vmatprep.subr.bf16.mxu1 %v9343_v49  ;;  %v9351_v40 = vpack.c.bf16 %v1918_v28, %v1917_v37  ;;  %v1587_v38 = vld [vmem:[#allocation2 + $0xaa] sm:$0xff]  ;;  %v4337_v28 = vld [vmem:[#allocation3 + $0xca] sm:$0xff] }
 0x1e2   : > { %7999 = vmatmul.mubr.f32.gmra.mrb[2].mxu1 %v1576_v62  ;;  %9632 = vmatprep.subr.bf16.mxu0 %v9631_v52  ;;  %v1588_v62 = vld [vmem:[#allocation2 + $0xb2] sm:$0xff]  ;;  %v1590_v37 = vld [vmem:[#allocation2 + $0xca] sm:$0xff] }
 0x1e3   : > { %8719 = vmatmul.mubr.f32.gmra.mrb[2].mxu0 %v4323_v12  ;;  %8001 = vmatprep.mubr.f32.mxu1 %v1577_v33  ;;  %v4335_v12 = vld [vmem:[#allocation3 + $0xb2] sm:$0xff] }
 0x1e4   : > { %8721 = vmatprep.mubr.f32.mxu0 %v4324_v16  ;;  %9346 = vmatpush3.bf16.msra.mxu1 %v9343_v49  ;;  %v9367_v49 = vpack.c.bf16 %v1926_v26, %v1925_v23  ;;  %v1589_v33 = vld [vmem:[#allocation2 + $0xc2] sm:$0xff]  ;;  %v4336_v16 = vld [vmem:[#allocation3 + $0xc2] sm:$0xff] }
 0x1e5   : > { %9634 = vmatpush3.bf16.msra.mxu0 %v9631_v52  ;;  %9348 = vmatprep.subr.bf16.mxu1 %v9347_v24  ;;  %v9655_v52 = vpack.c.bf16 %v4673_v32, %v4672_v31  ;;  %v1881_v23 = vld [vmem:[#allocation2 + $0x30] sm:$0xff]  ;;  %v4628_v26 = vld [vmem:[#allocation3 + $0x30] sm:$0xff] }
 0x1e6   : > { %8002 = vmatmul.mubr.f32.gmra.mrb[4].mxu1 %v1578_v42  ;;  %9636 = vmatprep.subr.bf16.mxu0 %v9635_v36  ;;  %v1591_v42 = vld [vmem:[#allocation2 + $0xda] sm:$0xff] }
 0x1e7   : > { %8722 = vmatmul.mubr.f32.gmra.mrb[4].mxu0 %v4325_v53  ;;  %8004 = vmatprep.mubr.f32.mxu1 %v1579_v48  ;;  %v4339_v53 = vld [vmem:[#allocation3 + $0xe2] sm:$0xff]  ;;  %v2220_v32 = vld [vmem:[#allocation15 + $0x220] sm:$0xff] }
 0x1e8   : > { %8724 = vmatprep.mubr.f32.mxu0 %v4326_v54  ;;  %9350 = vmatpush3.bf16.msra.mxu1 %v9347_v24  ;;  %v11835_v24 = vpack.c.bf16 %v2217_v60, %v2216_v59  ;;  %v1593_v48 = vld [vmem:[#allocation2 + $0xf2] sm:$0xff]  ;;  %v4340_v54 = vld [vmem:[#allocation3 + $0xf2] sm:$0xff] }
 0x1e9   : > { %9638 = vmatpush3.bf16.msra.mxu0 %v9635_v36  ;;  %9352 = vmatprep.subr.bf16.mxu1 %v9351_v40  ;;  %v11837_v36 = vpack.c.bf16 %v4964_v9, %v4963_v6  ;;  %v1883_v59 = vld [vmem:[#allocation2 + $0x48] sm:$0xff]  ;;  %v4630_v60 = vld [vmem:[#allocation3 + $0x48] sm:$0xff]  ;;  %v2222_v9 = vld [vmem:[#allocation15 + $0x230] sm:$0xff] }
 0x1ea   : > { %8005 = vmatmul.mubr.f32.gmra.mrb[6].mxu1 %v1580_v57  ;;  %9640 = vmatprep.subr.bf16.mxu0 %v9639_v55  ;;  %v1596_v57 = vld [vmem:[#allocation2 + $0x112] sm:$0xff] }
 0x1eb   : > { %8725 = vmatmul.mubr.f32.gmra.mrb[6].mxu0 %v4327_v58  ;;  %8007 = vmatprep.mubr.f32.mxu1 %v1581_v61  ;;  %v4344_v58 = vld [vmem:[#allocation3 + $0x122] sm:$0xff]  ;;  %v1598_v61 = vld [vmem:[#allocation2 + $0x12a] sm:$0xff] }
 0x1ec   : > { %8727 = vmatprep.mubr.f32.mxu0 %v4328_v43  ;;  %9354 = vmatpush3.bf16.msra.mxu1 %v9351_v40  ;;  %v1594_v40 = vld [vmem:[#allocation2 + $0xfa] sm:$0xff] }
 0x1ed   : > { %9642 = vmatpush3.bf16.msra.mxu0 %v9639_v55  ;;  %9356 = vmatprep.subr.bf16.mxu1 %v9355_v0  ;;  %v4341_v55 = vld [vmem:[#allocation3 + $0xfa] sm:$0xff]  ;;  %v4345_v43 = vld [vmem:[#allocation3 + $0x12a] sm:$0xff] }
 0x1ee   : > { %8008 = vmatmul.mubr.f32.gmra.mrb[8].mxu1 %v1582_v39  ;;  %9644 = vmatprep.subr.bf16.mxu0 %v9643_v34  ;;  %v1601_v39 = vld [vmem:[#allocation2 + $0x152] sm:$0xff] }
 0x1ef   : > { %8728 = vmatmul.mubr.f32.gmra.mrb[8].mxu0 %v4329_v4  ;;  %8010 = vmatprep.mubr.f32.mxu1 %v1583_v5  ;;  %v895_v4 = vld [vmem:[%s11443_s27 + $0x10] sm:$0x3]  ;;  %v1602_v5 = vld [vmem:[#allocation2 + $0x15a] sm:$0xff] }
 0x1f0   : > { %8730 = vmatprep.mubr.f32.mxu0 %v4330_v47  ;;  %9358 = vmatpush3.bf16.msra.mxu1 %v9355_v0  ;;  %v1599_v0 = vld [vmem:[#allocation2 + $0x13a] sm:$0xff]  ;;  %950 = vst [vmem:[#allocation3 + $0x190] sm:$0x3] %v895_v4  ;;  %v4349_v47 = vld [vmem:[#allocation3 + $0x15a] sm:$0xff] }
 0x1f1   : > { %9646 = vmatpush3.bf16.msra.mxu0 %v9643_v34  ;;  %9360 = vmatprep.subr.bf16.mxu1 %v9359_v50  ;;  %v4346_v34 = vld [vmem:[#allocation3 + $0x13a] sm:$0xff] }
 0x1f2   : > { %8011 = vmatmul.mubr.f32.gmra.mrb[10].mxu1 %v1584_v20  ;;  %9648 = vmatprep.subr.bf16.mxu0 %v9647_v7  ;;  %v1879_v20 = vld [vmem:[#allocation2 + $0x18] sm:$0xff]  ;;  %v2229_v4 = vld [vmem:[#allocation15 + $0x268] sm:$0xff] }
 0x1f3   : > { %8731 = vmatmul.mubr.f32.gmra.mrb[10].mxu0 %v4331_v14  ;;  %8013 = vmatprep.mubr.f32.mxu1 %v1585_v15  ;;  %v2219_v14 = vld [vmem:[#allocation15 + $0x218] sm:$0xff]  ;;  %v1880_v15 = vld [vmem:[#allocation2 + $0x20] sm:$0xff] }
 0x1f4   : > { %8733 = vmatprep.mubr.f32.mxu0 %v4332_v17  ;;  %9362 = vmatpush3.bf16.msra.mxu1 %v9359_v50  ;;  %v1603_v50 = vld [vmem:[#allocation2 + $0x16a] sm:$0xff] }
 0x1f5   : > { %9650 = vmatpush3.bf16.msra.mxu0 %v9647_v7  ;;  %9364 = vmatprep.subr.bf16.mxu1 %v9363_v18  ;;  %v4350_v7 = vld [vmem:[#allocation3 + $0x16a] sm:$0xff]  ;;  %v4965_v17 = vld [vmem:[#allocation16 + $0x210] sm:$0xff] }
 0x1f6   : > { %8014 = vmatmul.mubr.f32.gmra.mrb[12].mxu1 %v1586_v29  ;;  %9652 = vmatprep.subr.bf16.mxu0 %v9651_v22  ;;  %v9375_v29 = vpack.c.bf16 %v2219_v14, %v2218_v11  ;;  %v2230_v11 = vld [vmem:[#allocation15 + $0x270] sm:$0xff]  ;;  %v2231_v14 = vld [vmem:[#allocation15 + $0x278] sm:$0xff] }
 0x1f7   : > { %8734 = vmatmul.mubr.f32.gmra.mrb[12].mxu0 %v4333_v35  ;;  %8016 = vmatprep.mubr.f32.mxu1 %v1587_v38  ;;  %v2221_v35 = vld [vmem:[#allocation15 + $0x228] sm:$0xff]  ;;  %v1882_v38 = vld [vmem:[#allocation2 + $0x38] sm:$0xff] }
 0x1f8   : > { %8736 = vmatprep.mubr.f32.mxu0 %v4334_v46  ;;  %9366 = vmatpush3.bf16.msra.mxu1 %v9363_v18  ;;  %v4966_v18 = vld [vmem:[#allocation16 + $0x218] sm:$0xff]  ;;  %v4967_v46 = vld [vmem:[#allocation16 + $0x220] sm:$0xff] }
 0x1f9   : > { %9654 = vmatpush3.bf16.msra.mxu0 %v9651_v22  ;;  %9368 = vmatprep.subr.bf16.mxu1 %v9367_v49  ;;  %v4627_v22 = vld [vmem:[#allocation3 + $0x20] sm:$0xff]  ;;  %v9663_v31 = vpack.c.bf16 %v4966_v18, %v4965_v17  ;;  %v4978_v18 = vld [vmem:[#allocation16 + $0x278] sm:$0xff] }
 0x1fa   : > { %8017 = vmatmul.mubr.f32.gmra.mrb[14].mxu1 %v1588_v62  ;;  %9656 = vmatprep.subr.bf16.mxu0 %v9655_v52  ;;  %v9379_v62 = vpack.c.bf16 %v2221_v35, %v2220_v32  ;;  %v4977_v17 = vld [vmem:[#allocation16 + $0x270] sm:$0xff]  ;;  %v2521_v32 = vld [vmem:[#allocation15 + $0x280] sm:$0xff]  ;;  %v2522_v35 = vld [vmem:[#allocation15 + $0x288] sm:$0xff] }
 0x1fb   : > { %8737 = vmatmul.mubr.f32.gmra.mrb[14].mxu0 %v4335_v12  ;;  %8019 = vmatprep.mubr.f32.mxu1 %v1589_v33  ;;  %v2223_v12 = vld [vmem:[#allocation15 + $0x238] sm:$0xff]  ;;  %v1884_v33 = vld [vmem:[#allocation2 + $0x50] sm:$0xff] }
 0x1fc   : > { %8739 = vmatprep.mubr.f32.mxu0 %v4336_v16  ;;  %9370 = vmatpush3.bf16.msra.mxu1 %v9367_v49  ;;  %v4968_v49 = vld [vmem:[#allocation16 + $0x228] sm:$0xff]  ;;  %v4969_v16 = vld [vmem:[#allocation16 + $0x230] sm:$0xff] }
 0x1fd   : > { %9658 = vmatpush3.bf16.msra.mxu0 %v9655_v52  ;;  %9372 = vmatprep.subr.bf16.mxu1 %v11835_v24  ;;  %v4629_v52 = vld [vmem:[#allocation3 + $0x38] sm:$0xff]  ;;  %v9667_v6 = vpack.c.bf16 %v4968_v49, %v4967_v46  ;;  %v5268_v46 = vld [vmem:[#allocation16 + $0x280] sm:$0xff] }
 0x1fe   : > { %8020 = vmatmul.mubr.f32.gmra.mrb[16].mxu1 %v1590_v37  ;;  %9660 = vmatprep.subr.bf16.mxu0 %v11837_v36  ;;  %v4631_v37 = vld [vmem:[#allocation3 + $0x50] sm:$0xff]  ;;  %v5269_v49 = vld [vmem:[#allocation16 + $0x288] sm:$0xff] }
 0x1ff   : > { %8740 = vmatmul.mubr.f32.gmra.mrb[16].mxu0 %v4337_v28  ;;  %8022 = vmatprep.mubr.f32.mxu1 %v1591_v42  ;;  %v1885_v28 = vld [vmem:[#allocation2 + $0x60] sm:$0xff]  ;;  %v4632_v42 = vld [vmem:[#allocation3 + $0x60] sm:$0xff] }
 0x200   : > { %8742 = vmatprep.mubr.f32.mxu0 %v4338_v2 }
 0x202   : > { %8023 = vmatmul.mubr.f32.gmra.mrb[18].mxu1 %v1592_v10  ;;  %v2224_v10 = vld [vmem:[#allocation15 + $0x240] sm:$0xff] }
 0x203   : > { %8743 = vmatmul.mubr.f32.gmra.mrb[18].mxu0 %v4339_v53  ;;  %8025 = vmatprep.mubr.f32.mxu1 %v1593_v48  ;;  %v2225_v53 = vld [vmem:[#allocation15 + $0x248] sm:$0xff] }
 0x204   : > { %8745 = vmatprep.mubr.f32.mxu0 %v4340_v54  ;;  %v1886_v48 = vld [vmem:[#allocation2 + $0x68] sm:$0xff]  ;;  %v4971_v54 = vld [vmem:[#allocation16 + $0x240] sm:$0xff] }
 0x206   : > { %8026 = vmatmul.mubr.f32.gmra.mrb[20].mxu1 %v1594_v40  ;;  %v4972_v40 = vld [vmem:[#allocation16 + $0x248] sm:$0xff] }
 0x207   : > { %8746 = vmatmul.mubr.f32.gmra.mrb[20].mxu0 %v4341_v55  ;;  %8028 = vmatprep.mubr.f32.mxu1 %v1595_v56  ;;  %v4633_v55 = vld [vmem:[#allocation3 + $0x68] sm:$0xff] }
 0x208   : > { %8748 = vmatprep.mubr.f32.mxu0 %v4342_v13  ;;  %v1887_v56 = vld [vmem:[#allocation2 + $0x78] sm:$0xff]  ;;  %v4634_v13 = vld [vmem:[#allocation3 + $0x78] sm:$0xff] }
 0x20a   : > { %8029 = vmatmul.mubr.f32.gmra.mrb[22].mxu1 %v1596_v57  ;;  %v9387_v57 = vpack.c.bf16 %v2225_v53, %v2224_v10  ;;  %v1901_v10 = vld [vmem:[#allocation2 + $0x120] sm:$0xff]  ;;  %v4648_v53 = vld [vmem:[#allocation3 + $0x120] sm:$0xff] }
 0x20b   : > { %8749 = vmatmul.mubr.f32.gmra.mrb[22].mxu0 %v4343_v41  ;;  %8031 = vmatprep.mubr.f32.mxu1 %v1597_v30  ;;  %v9675_v41 = vpack.c.bf16 %v4972_v40, %v4971_v54  ;;  %v2226_v30 = vld [vmem:[#allocation15 + $0x250] sm:$0xff]  ;;  %v4649_v54 = vld [vmem:[#allocation3 + $0x128] sm:$0xff] }
 0x20c   : > { %8751 = vmatprep.mubr.f32.mxu0 %v4344_v58  ;;  %v2227_v58 = vld [vmem:[#allocation15 + $0x258] sm:$0xff] }
 0x20d   : > { %v1903_v40 = vld [vmem:[#allocation2 + $0x138] sm:$0xff] }
 0x20e   : > { %8032 = vmatmul.mubr.f32.gmra.mrb[24].mxu1 %v1598_v61  ;;  %v1888_v61 = vld [vmem:[#allocation2 + $0x80] sm:$0xff] }
 0x20f   : > { %8752 = vmatmul.mubr.f32.gmra.mrb[24].mxu0 %v4345_v43  ;;  %8034 = vmatprep.mubr.f32.mxu1 %v1599_v0  ;;  %v4973_v43 = vld [vmem:[#allocation16 + $0x250] sm:$0xff]  ;;  %v4974_v0 = vld [vmem:[#allocation16 + $0x258] sm:$0xff] }
 0x210   : > { %8754 = vmatprep.mubr.f32.mxu0 %v4346_v34  ;;  %v4635_v34 = vld [vmem:[#allocation3 + $0x80] sm:$0xff] }
 0x212   : > { %8035 = vmatmul.mubr.f32.gmra.mrb[26].mxu1 %v1600_v1  ;;  %v1889_v1 = vld [vmem:[#allocation2 + $0x90] sm:$0xff] }
 0x213   : > { %8755 = vmatmul.mubr.f32.gmra.mrb[26].mxu0 %v4347_v44  ;;  %8037 = vmatprep.mubr.f32.mxu1 %v1601_v39  ;;  %v4636_v44 = vld [vmem:[#allocation3 + $0x90] sm:$0xff]  ;;  %v9391_v39 = vpack.c.bf16 %v2227_v58, %v2226_v30  ;;  %v1906_v30 = vld [vmem:[#allocation2 + $0x158] sm:$0xff]  ;;  %v4653_v58 = vld [vmem:[#allocation3 + $0x158] sm:$0xff] }
 0x214   : > { %8757 = vmatprep.mubr.f32.mxu0 %v4348_v45  ;;  %v9679_v45 = vpack.c.bf16 %v4974_v0, %v4973_v43  ;;  %v4654_v43 = vld [vmem:[#allocation3 + $0x168] sm:$0xff]  ;;  %v1908_v0 = vld [vmem:[#allocation2 + $0x170] sm:$0xff] }
 0x216   : > { %8038 = vmatmul.mubr.f32.gmra.mrb[28].mxu1 %v1602_v5  ;;  %v1890_v5 = vld [vmem:[#allocation2 + $0x98] sm:$0xff] }
 0x217   : > { %8758 = vmatmul.mubr.f32.gmra.mrb[28].mxu0 %v4349_v47  ;;  %8040 = vmatprep.mubr.f32.mxu1 %v1603_v50  ;;  %v4975_v47 = vld [vmem:[#allocation16 + $0x260] sm:$0xff]  ;;  %v4976_v50 = vld [vmem:[#allocation16 + $0x268] sm:$0xff] }
 0x218   : > { %8760 = vmatprep.mubr.f32.mxu0 %v4350_v7  ;;  %v4637_v7 = vld [vmem:[#allocation3 + $0x98] sm:$0xff] }
 0x21a   : > { %8041 = vmatmul.mubr.f32.gmra.mrb[30].mxu1 %v1604_v63  ;;  %v1891_v63 = vld [vmem:[#allocation2 + $0xa8] sm:$0xff] }
 0x21b   : > { %8761 = vmatmul.mubr.f32.gmra.mrb[30].mxu0 %v4351_v51  ;;  %8075 = vmatprep.mubr.f32.mxu1 %v1879_v20  ;;  %v4638_v51 = vld [vmem:[#allocation3 + $0xa8] sm:$0xff]  ;;  %v9395_v20 = vpack.c.bf16 %v2229_v4, %v2228_v3  ;;  %v2185_v3 = vld [vmem:[#allocation2 + $0x21] sm:$0xff]  ;;  %v5270_v4 = vld [vmem:[#allocation16 + $0x290] sm:$0xff] }
 0x21c   : > { %8795 = vmatprep.mubr.f32.mxu0 %v4626_v8  ;;  %v9683_v8 = vpack.c.bf16 %v4976_v50, %v4975_v47  ;;  %v4932_v47 = vld [vmem:[#allocation3 + $0x21] sm:$0xff] }
 0x21d   : > { %v2186_v50 = vld [vmem:[#allocation2 + $0x31] sm:$0xff] }
 0x21e   : > { %8076 = vmatmul.mubr.f32.vlgmr.msra.gmra.mrb[0].mxu1 %v1880_v15  ;;  %v1892_v15 = vld [vmem:[#allocation2 + $0xb0] sm:$0xff] }
 0x21f   : > { %8796 = vmatmul.mubr.f32.vlgmr.msra.gmra.mrb[0].mxu0 %v4627_v22  ;;  %9374 = vmatpush3.bf16.msra.mxu1 %v11835_v24  ;;  %v4970_v24 = vld [vmem:[#allocation16 + $0x238] sm:$0xff]  ;;  %v4639_v22 = vld [vmem:[#allocation3 + $0xb0] sm:$0xff] }
 0x220   : > { %8078 = vmatprep.mubr.f32.mxu1 %v1881_v23  ;;  %8798 = vmatprep.mubr.f32.mxu0 %v4628_v26  ;;  %v9671_v2 = vpack.c.bf16 %v4970_v24, %v4969_v16  ;;  %v1893_v23 = vld [vmem:[#allocation2 + $0xc0] sm:$0xff]  ;;  %v4640_v26 = vld [vmem:[#allocation3 + $0xc0] sm:$0xff]  ;;  %v1898_v24 = vld [vmem:[#allocation2 + $0xf8] sm:$0xff] }
 0x221   : > { %9662 = vmatpush3.bf16.msra.mxu0 %v11837_v36  ;;  %9376 = vmatprep.subr.bf16.mxu1 %v9375_v29  ;;  %v9383_v36 = vpack.c.bf16 %v2223_v12, %v2222_v9  ;;  %v1896_v9 = vld [vmem:[#allocation2 + $0xe0] sm:$0xff]  ;;  %v4643_v12 = vld [vmem:[#allocation3 + $0xe0] sm:$0xff] }
 0x222   : > { %8079 = vmatmul.mubr.f32.gmra.mrb[2].mxu1 %v1882_v38  ;;  %9664 = vmatprep.subr.bf16.mxu0 %v9663_v31  ;;  %v1894_v38 = vld [vmem:[#allocation2 + $0xc8] sm:$0xff]  ;;  %v4644_v16 = vld [vmem:[#allocation3 + $0xf0] sm:$0xff] }
 0x223   : > { %8799 = vmatmul.mubr.f32.gmra.mrb[2].mxu0 %v4629_v52  ;;  %8081 = vmatprep.mubr.f32.mxu1 %v1883_v59  ;;  %v4641_v52 = vld [vmem:[#allocation3 + $0xc8] sm:$0xff] }
 0x224   : > { %8801 = vmatprep.mubr.f32.mxu0 %v4630_v60  ;;  %9378 = vmatpush3.bf16.msra.mxu1 %v9375_v29  ;;  %v9399_v29 = vpack.c.bf16 %v2231_v14, %v2230_v11  ;;  %v1895_v59 = vld [vmem:[#allocation2 + $0xd8] sm:$0xff]  ;;  %v4642_v60 = vld [vmem:[#allocation3 + $0xd8] sm:$0xff] }
 0x225   : > { %9666 = vmatpush3.bf16.msra.mxu0 %v9663_v31  ;;  %9380 = vmatprep.subr.bf16.mxu1 %v9379_v62  ;;  %v9687_v31 = vpack.c.bf16 %v4978_v18, %v4977_v17  ;;  %v2188_v11 = vld [vmem:[#allocation2 + $0x49] sm:$0xff]  ;;  %v4935_v14 = vld [vmem:[#allocation3 + $0x49] sm:$0xff] }
 0x226   : > { %8082 = vmatmul.mubr.f32.gmra.mrb[4].mxu1 %v1884_v33  ;;  %9668 = vmatprep.subr.bf16.mxu0 %v9667_v6  ;;  %v1897_v33 = vld [vmem:[#allocation2 + $0xf0] sm:$0xff] }
 0x227   : > { %8802 = vmatmul.mubr.f32.gmra.mrb[4].mxu0 %v4631_v37  ;;  %8084 = vmatprep.mubr.f32.mxu1 %v1885_v28  ;;  %v4645_v37 = vld [vmem:[#allocation3 + $0xf8] sm:$0xff]  ;;  %v2527_v18 = vld [vmem:[#allocation15 + $0x2b0] sm:$0xff] }
 0x228   : > { %8804 = vmatprep.mubr.f32.mxu0 %v4632_v42  ;;  %9382 = vmatpush3.bf16.msra.mxu1 %v9379_v62  ;;  %v11845_v62 = vpack.c.bf16 %v2522_v35, %v2521_v32  ;;  %v1899_v28 = vld [vmem:[#allocation2 + $0x108] sm:$0xff]  ;;  %v4646_v42 = vld [vmem:[#allocation3 + $0x108] sm:$0xff] }
 0x229   : > { %9670 = vmatpush3.bf16.msra.mxu0 %v9667_v6  ;;  %9384 = vmatprep.subr.bf16.mxu1 %v9383_v36  ;;  %v11847_v6 = vpack.c.bf16 %v5269_v49, %v5268_v46  ;;  %v2190_v32 = vld [vmem:[#allocation2 + $0x61] sm:$0xff]  ;;  %v4937_v35 = vld [vmem:[#allocation3 + $0x61] sm:$0xff] }
 0x22a   : > { %8085 = vmatmul.mubr.f32.gmra.mrb[6].mxu1 %v1886_v48  ;;  %9672 = vmatprep.subr.bf16.mxu0 %v9671_v2  ;;  %v1902_v48 = vld [vmem:[#allocation2 + $0x128] sm:$0xff]  ;;  %v2529_v49 = vld [vmem:[#allocation15 + $0x2c0] sm:$0xff] }
 0x22b   : > { %8805 = vmatmul.mubr.f32.gmra.mrb[6].mxu0 %v4633_v55  ;;  %8087 = vmatprep.mubr.f32.mxu1 %v1887_v56  ;;  %v4650_v55 = vld [vmem:[#allocation3 + $0x138] sm:$0xff]  ;;  %v1904_v56 = vld [vmem:[#allocation2 + $0x140] sm:$0xff] }
 0x22c   : > { %8807 = vmatprep.mubr.f32.mxu0 %v4634_v13  ;;  %9386 = vmatpush3.bf16.msra.mxu1 %v9383_v36  ;;  %v1900_v36 = vld [vmem:[#allocation2 + $0x110] sm:$0xff] }
 0x22d   : > { %9674 = vmatpush3.bf16.msra.mxu0 %v9671_v2  ;;  %9388 = vmatprep.subr.bf16.mxu1 %v9387_v57  ;;  %v4647_v2 = vld [vmem:[#allocation3 + $0x110] sm:$0xff]  ;;  %v4651_v13 = vld [vmem:[#allocation3 + $0x140] sm:$0xff] }
 0x22e   : > { %8088 = vmatmul.mubr.f32.gmra.mrb[8].mxu1 %v1888_v61  ;;  %9676 = vmatprep.subr.bf16.mxu0 %v9675_v41  ;;  %v1907_v61 = vld [vmem:[#allocation2 + $0x168] sm:$0xff] }
 0x22f   : > { %8808 = vmatmul.mubr.f32.gmra.mrb[8].mxu0 %v4635_v34  ;;  %8090 = vmatprep.mubr.f32.mxu1 %v1889_v1  ;;  %v4655_v34 = vld [vmem:[#allocation3 + $0x170] sm:$0xff] }
 0x230   : > { %8810 = vmatprep.mubr.f32.mxu0 %v4636_v44  ;;  %9390 = vmatpush3.bf16.msra.mxu1 %v9387_v57  ;;  %v1905_v57 = vld [vmem:[#allocation2 + $0x150] sm:$0xff]  ;;  %v2184_v1 = vld [vmem:[#allocation2 + $0x19] sm:$0xff] }
 0x231   : > { %9678 = vmatpush3.bf16.msra.mxu0 %v9675_v41  ;;  %9392 = vmatprep.subr.bf16.mxu1 %v9391_v39  ;;  %v4652_v41 = vld [vmem:[#allocation3 + $0x150] sm:$0xff]  ;;  %v4931_v44 = vld [vmem:[#allocation3 + $0x19] sm:$0xff] }
 0x232   : > { %8091 = vmatmul.mubr.f32.gmra.mrb[10].mxu1 %v1890_v5  ;;  %9680 = vmatprep.subr.bf16.mxu0 %v9679_v45  ;;  %v5271_v5 = vld [vmem:[#allocation16 + $0x298] sm:$0xff] }
 0x233   : > { %8811 = vmatmul.mubr.f32.gmra.mrb[10].mxu0 %v4637_v7  ;;  %8093 = vmatprep.mubr.f32.mxu1 %v1891_v63  ;;  %v4933_v7 = vld [vmem:[#allocation3 + $0x31] sm:$0xff] }
 0x234   : > { %8813 = vmatprep.mubr.f32.mxu0 %v4638_v51  ;;  %9394 = vmatpush3.bf16.msra.mxu1 %v9391_v39  ;;  %v2523_v39 = vld [vmem:[#allocation15 + $0x290] sm:$0xff]  ;;  %v2526_v51 = vld [vmem:[#allocation15 + $0x2a8] sm:$0xff] }
 0x235   : > { %9682 = vmatpush3.bf16.msra.mxu0 %v9679_v45  ;;  %9396 = vmatprep.subr.bf16.mxu1 %v9395_v20  ;;  %v2524_v45 = vld [vmem:[#allocation15 + $0x298] sm:$0xff] }
 0x236   : > { %8094 = vmatmul.mubr.f32.gmra.mrb[12].mxu1 %v1892_v15  ;;  %9684 = vmatprep.subr.bf16.mxu0 %v9683_v8  ;;  %v9407_v63 = vpack.c.bf16 %v2524_v45, %v2523_v39  ;;  %v5283_v39 = vld [vmem:[#allocation16 + $0x2f8] sm:$0xff]  ;;  %v4944_v45 = vld [vmem:[#allocation3 + $0xb1] sm:$0xff] }
 0x237   : > { %8814 = vmatmul.mubr.f32.gmra.mrb[12].mxu0 %v4639_v22  ;;  %8096 = vmatprep.mubr.f32.mxu1 %v1893_v23  ;;  %v2528_v22 = vld [vmem:[#allocation15 + $0x2b8] sm:$0xff] }
 0x238   : > { %8816 = vmatprep.mubr.f32.mxu0 %v4640_v26  ;;  %9398 = vmatpush3.bf16.msra.mxu1 %v9395_v20  ;;  %v5272_v20 = vld [vmem:[#allocation16 + $0x2a0] sm:$0xff]  ;;  %v2189_v23 = vld [vmem:[#allocation2 + $0x51] sm:$0xff] }
 0x239   : > { %9686 = vmatpush3.bf16.msra.mxu0 %v9683_v8  ;;  %9400 = vmatprep.subr.bf16.mxu1 %v9399_v29  ;;  %v5273_v8 = vld [vmem:[#allocation16 + $0x2a8] sm:$0xff]  ;;  %v5274_v26 = vld [vmem:[#allocation16 + $0x2b0] sm:$0xff] }
 0x23a   : > { %8097 = vmatmul.mubr.f32.gmra.mrb[14].mxu1 %v1894_v38  ;;  %9688 = vmatprep.subr.bf16.mxu0 %v9687_v31  ;;  %v9699_v17 = vpack.c.bf16 %v5273_v8, %v5272_v20  ;;  %v9415_v38 = vpack.c.bf16 %v2528_v22, %v2527_v18  ;;  %v4947_v20 = vld [vmem:[#allocation3 + $0xd9] sm:$0xff]  ;;  %v2203_v18 = vld [vmem:[#allocation2 + $0xf9] sm:$0xff] }
 0x23b   : > { %8817 = vmatmul.mubr.f32.gmra.mrb[14].mxu0 %v4641_v52  ;;  %8099 = vmatprep.mubr.f32.mxu1 %v1895_v59  ;;  %v2530_v52 = vld [vmem:[#allocation15 + $0x2c8] sm:$0xff] }
 0x23c   : > { %8819 = vmatprep.mubr.f32.mxu0 %v4642_v60  ;;  %9402 = vmatpush3.bf16.msra.mxu1 %v9399_v29  ;;  %v5275_v29 = vld [vmem:[#allocation16 + $0x2b8] sm:$0xff]  ;;  %v2191_v59 = vld [vmem:[#allocation2 + $0x69] sm:$0xff]  ;;  %v5276_v60 = vld [vmem:[#allocation16 + $0x2c0] sm:$0xff] }
 0x23d   : > { %9690 = vmatpush3.bf16.msra.mxu0 %v9687_v31  ;;  %9404 = vmatprep.subr.bf16.mxu1 %v11845_v62  ;;  %v4936_v31 = vld [vmem:[#allocation3 + $0x51] sm:$0xff]  ;;  %v9703_v46 = vpack.c.bf16 %v5275_v29, %v5274_v26  ;;  %v4950_v22 = vld [vmem:[#allocation3 + $0xf9] sm:$0xff]  ;;  %v4951_v26 = vld [vmem:[#allocation3 + $0x109] sm:$0xff] }
 0x23e   : > { %8100 = vmatmul.mubr.f32.gmra.mrb[16].mxu1 %v1896_v9  ;;  %9692 = vmatprep.subr.bf16.mxu0 %v11847_v6  ;;  %v2192_v9 = vld [vmem:[#allocation2 + $0x79] sm:$0xff]  ;;  %v2205_v29 = vld [vmem:[#allocation2 + $0x111] sm:$0xff] }
 0x23f   : > { %8820 = vmatmul.mubr.f32.gmra.mrb[16].mxu0 %v4643_v12  ;;  %8102 = vmatprep.mubr.f32.mxu1 %v1897_v33  ;;  %v4939_v12 = vld [vmem:[#allocation3 + $0x79] sm:$0xff]  ;;  %v9419_v33 = vpack.c.bf16 %v2530_v52, %v2529_v49  ;;  %v2208_v49 = vld [vmem:[#allocation2 + $0x139] sm:$0xff] }
 0x240   : > { %8822 = vmatprep.mubr.f32.mxu0 %v4644_v16  ;;  %v4955_v52 = vld [vmem:[#allocation3 + $0x139] sm:$0xff] }
 0x242   : > { %8103 = vmatmul.mubr.f32.gmra.mrb[18].mxu1 %v1898_v24  ;;  %v2531_v24 = vld [vmem:[#allocation15 + $0x2d0] sm:$0xff] }
 0x243   : > { %8823 = vmatmul.mubr.f32.gmra.mrb[18].mxu0 %v4645_v37  ;;  %8105 = vmatprep.mubr.f32.mxu1 %v1899_v28  ;;  %v2532_v37 = vld [vmem:[#allocation15 + $0x2d8] sm:$0xff]  ;;  %v2193_v28 = vld [vmem:[#allocation2 + $0x81] sm:$0xff] }
 0x244   : > { %8825 = vmatprep.mubr.f32.mxu0 %v4646_v42  ;;  %v5278_v42 = vld [vmem:[#allocation16 + $0x2d0] sm:$0xff] }
 0x246   : > { %8106 = vmatmul.mubr.f32.gmra.mrb[20].mxu1 %v1900_v36  ;;  %v5279_v36 = vld [vmem:[#allocation16 + $0x2d8] sm:$0xff] }
 0x247   : > { %8826 = vmatmul.mubr.f32.gmra.mrb[20].mxu0 %v4647_v2  ;;  %8108 = vmatprep.mubr.f32.mxu1 %v1901_v10  ;;  %v4940_v2 = vld [vmem:[#allocation3 + $0x81] sm:$0xff] }
 0x248   : > { %8828 = vmatprep.mubr.f32.mxu0 %v4648_v53  ;;  %v2194_v10 = vld [vmem:[#allocation2 + $0x91] sm:$0xff]  ;;  %v4941_v53 = vld [vmem:[#allocation3 + $0x91] sm:$0xff] }
 0x24a   : > { %8109 = vmatmul.mubr.f32.gmra.mrb[22].mxu1 %v1902_v48  ;;  %v9423_v48 = vpack.c.bf16 %v2532_v37, %v2531_v24  ;;  %v2213_v24 = vld [vmem:[#allocation2 + $0x171] sm:$0xff]  ;;  %v4960_v37 = vld [vmem:[#allocation3 + $0x171] sm:$0xff] }
 0x24b   : > { %8829 = vmatmul.mubr.f32.gmra.mrb[22].mxu0 %v4649_v54  ;;  %8111 = vmatprep.mubr.f32.mxu1 %v1903_v40  ;;  %v9711_v54 = vpack.c.bf16 %v5279_v36, %v5278_v42  ;;  %v2533_v40 = vld [vmem:[#allocation15 + $0x2e0] sm:$0xff]  ;;  %v4961_v42 = vld [vmem:[#allocation3 + $0x181] sm:$0xff]  ;;  %v2215_v36 = vld [vmem:[#allocation2 + $0x189] sm:$0xff] }
 0x24c   : > { %8831 = vmatprep.mubr.f32.mxu0 %v4650_v55  ;;  %v2534_v55 = vld [vmem:[#allocation15 + $0x2e8] sm:$0xff] }
 0x24e   : > { %8112 = vmatmul.mubr.f32.gmra.mrb[24].mxu1 %v1904_v56  ;;  %v2195_v56 = vld [vmem:[#allocation2 + $0x99] sm:$0xff] }
 0x24f   : > { %8832 = vmatmul.mubr.f32.gmra.mrb[24].mxu0 %v4651_v13  ;;  %8114 = vmatprep.mubr.f32.mxu1 %v1905_v57  ;;  %v5280_v13 = vld [vmem:[#allocation16 + $0x2e0] sm:$0xff]  ;;  %v5281_v57 = vld [vmem:[#allocation16 + $0x2e8] sm:$0xff] }
 0x250   : > { %8834 = vmatprep.mubr.f32.mxu0 %v4652_v41  ;;  %v4942_v41 = vld [vmem:[#allocation3 + $0x99] sm:$0xff] }
 0x252   : > { %8115 = vmatmul.mubr.f32.gmra.mrb[26].mxu1 %v1906_v30  ;;  %v2196_v30 = vld [vmem:[#allocation2 + $0xa9] sm:$0xff] }
 0x253   : > { %8835 = vmatmul.mubr.f32.gmra.mrb[26].mxu0 %v4653_v58  ;;  %8117 = vmatprep.mubr.f32.mxu1 %v1907_v61  ;;  %v4943_v58 = vld [vmem:[#allocation3 + $0xa9] sm:$0xff]  ;;  %v9427_v61 = vpack.c.bf16 %v2534_v55, %v2533_v40  ;;  %v5236_v40 = vld [vmem:[#allocation3 + $0x1a] sm:$0xff] }
 0x254   : > { %8837 = vmatprep.mubr.f32.mxu0 %v4654_v43  ;;  %v9715_v43 = vpack.c.bf16 %v5281_v57, %v5280_v13  ;;  %v2829_v55 = vld [vmem:[#allocation15 + $0x310] sm:$0xff]  ;;  %v2490_v57 = vld [vmem:[#allocation2 + $0x22] sm:$0xff] }
 0x255   : > { %v11876_v13 = vld [vmem:[%s11445_s17 + $0x8] sm:$0xff] }
 0x256   : > { %8118 = vmatmul.mubr.f32.gmra.mrb[28].mxu1 %v1908_v0  ;;  %v2535_v0 = vld [vmem:[#allocation15 + $0x2f0] sm:$0xff]  ;;  %953 = vst [vmem:[#allocation3 + $0x1a0] sm:$0xff] %v11876_v13 }
 0x257   : > { %8838 = vmatmul.mubr.f32.gmra.mrb[28].mxu0 %v4655_v34  ;;  %8120 = vmatprep.mubr.f32.mxu1 %v11818_v25  ;;  %v9695_v25 = vpack.c.bf16 %v5271_v5, %v5270_v4  ;;  %v2536_v34 = vld [vmem:[#allocation15 + $0x2f8] sm:$0xff] }
 0x258   : > { %8840 = vmatprep.mubr.f32.mxu0 %v11822_v19  ;;  %v2525_v19 = vld [vmem:[#allocation15 + $0x2a0] sm:$0xff]  ;;  %v4945_v4 = vld [vmem:[#allocation3 + $0xc1] sm:$0xff]  ;;  %v9431_v5 = vpack.c.bf16 %v2536_v34, %v2535_v0 }
 0x259   : > { %v9411_v15 = vpack.c.bf16 %v2526_v51, %v2525_v19  ;;  %v5575_v19 = vld [vmem:[#allocation16 + $0x308] sm:$0xff]  ;;  %v4946_v51 = vld [vmem:[#allocation3 + $0xc9] sm:$0xff] }
 0x25a   : > { %8121 = vmatmul.mubr.f32.gmra.mrb[30].mxu1 %v11825_v21  ;;  %v2187_v21 = vld [vmem:[#allocation2 + $0x39] sm:$0xff] }
 0x25b   : > { %8841 = vmatmul.mubr.f32.gmra.mrb[30].mxu0 %v11830_v27  ;;  %8155 = vmatprep.mubr.f32.mxu1 %v2184_v1  ;;  %v4934_v27 = vld [vmem:[#allocation3 + $0x39] sm:$0xff]  ;;  %v2197_v1 = vld [vmem:[#allocation2 + $0xb1] sm:$0xff] }
 0x25c   : > { %8875 = vmatprep.mubr.f32.mxu0 %v4931_v44  ;;  %v5282_v44 = vld [vmem:[#allocation16 + $0x2f0] sm:$0xff] }
 0x25e   : > { %8156 = vmatmul.mubr.f32.vlgmr.msra.gmra.mrb[0].mxu1 %v2185_v3  ;;  %v2198_v3 = vld [vmem:[#allocation2 + $0xc1] sm:$0xff] }
 0x25f   : > { %8876 = vmatmul.mubr.f32.vlgmr.msra.gmra.mrb[0].mxu0 %v4932_v47  ;;  %9406 = vmatpush3.bf16.msra.mxu1 %v11845_v62  ;;  %v5277_v62 = vld [vmem:[#allocation16 + $0x2c8] sm:$0xff]  ;;  %v9719_v47 = vpack.c.bf16 %v5283_v39, %v5282_v44  ;;  %v2492_v39 = vld [vmem:[#allocation2 + $0x3a] sm:$0xff] }
 0x260   : > { %8158 = vmatprep.mubr.f32.mxu1 %v2186_v50  ;;  %8878 = vmatprep.mubr.f32.mxu0 %v4933_v7  ;;  %v9707_v16 = vpack.c.bf16 %v5277_v62, %v5276_v60  ;;  %v2827_v50 = vld [vmem:[#allocation15 + $0x300] sm:$0xff]  ;;  %v2828_v7 = vld [vmem:[#allocation15 + $0x308] sm:$0xff]  ;;  %v4956_v60 = vld [vmem:[#allocation3 + $0x141] sm:$0xff] }
 0x261   : > { %9694 = vmatpush3.bf16.msra.mxu0 %v11847_v6  ;;  %9408 = vmatprep.subr.bf16.mxu1 %v9407_v63  ;;  %v4938_v6 = vld [vmem:[#allocation3 + $0x69] sm:$0xff]  ;;  %v11857_v8 = vpack.c.bf16 %v2828_v7, %v2827_v50  ;;  %v2210_v62 = vld [vmem:[#allocation2 + $0x151] sm:$0xff]  ;;  %v2832_v44 = vld [vmem:[#allocation15 + $0x328] sm:$0xff] }
 0x262   : > { %8159 = vmatmul.mubr.f32.gmra.mrb[2].mxu1 %v2187_v21  ;;  %9696 = vmatprep.subr.bf16.mxu0 %v9695_v25  ;;  %v2200_v21 = vld [vmem:[#allocation2 + $0xd9] sm:$0xff] }
 0x263   : > { %8879 = vmatmul.mubr.f32.gmra.mrb[2].mxu0 %v4934_v27  ;;  %8161 = vmatprep.mubr.f32.mxu1 %v2188_v11  ;;  %v2201_v11 = vld [vmem:[#allocation2 + $0xe1] sm:$0xff] }
 0x264   : > { %8881 = vmatprep.mubr.f32.mxu0 %v4935_v14  ;;  %9410 = vmatpush3.bf16.msra.mxu1 %v9407_v63  ;;  %v2199_v63 = vld [vmem:[#allocation2 + $0xc9] sm:$0xff]  ;;  %v4948_v14 = vld [vmem:[#allocation3 + $0xe1] sm:$0xff] }
 0x265   : > { %9698 = vmatpush3.bf16.msra.mxu0 %v9695_v25  ;;  %9412 = vmatprep.subr.bf16.mxu1 %v9411_v15  ;;  %v5574_v25 = vld [vmem:[#allocation16 + $0x300] sm:$0xff] }
 0x266   : > { %8162 = vmatmul.mubr.f32.gmra.mrb[4].mxu1 %v2189_v23  ;;  %9700 = vmatprep.subr.bf16.mxu0 %v9699_v17  ;;  %v11859_v27 = vpack.c.bf16 %v5575_v19, %v5574_v25  ;;  %v2204_v23 = vld [vmem:[#allocation2 + $0x109] sm:$0xff]  ;;  %v2834_v25 = vld [vmem:[#allocation15 + $0x338] sm:$0xff] }
 0x267   : > { %8882 = vmatmul.mubr.f32.gmra.mrb[4].mxu0 %v4936_v31  ;;  %8164 = vmatprep.mubr.f32.mxu1 %v2190_v32  ;;  %v4952_v31 = vld [vmem:[#allocation3 + $0x111] sm:$0xff]  ;;  %v2494_v19 = vld [vmem:[#allocation2 + $0x52] sm:$0xff] }
 0x268   : > { %8884 = vmatprep.mubr.f32.mxu0 %v4937_v35  ;;  %9414 = vmatpush3.bf16.msra.mxu1 %v9411_v15  ;;  %v2202_v15 = vld [vmem:[#allocation2 + $0xf1] sm:$0xff]  ;;  %v2206_v32 = vld [vmem:[#allocation2 + $0x121] sm:$0xff] }
 0x269   : > { %9702 = vmatpush3.bf16.msra.mxu0 %v9699_v17  ;;  %9416 = vmatprep.subr.bf16.mxu1 %v9415_v38  ;;  %v4949_v17 = vld [vmem:[#allocation3 + $0xf1] sm:$0xff]  ;;  %v4953_v35 = vld [vmem:[#allocation3 + $0x121] sm:$0xff] }
 0x26a   : > { %8165 = vmatmul.mubr.f32.gmra.mrb[6].mxu1 %v2191_v59  ;;  %9704 = vmatprep.subr.bf16.mxu0 %v9703_v46  ;;  %v2209_v59 = vld [vmem:[#allocation2 + $0x141] sm:$0xff] }
 0x26b   : > { %8885 = vmatmul.mubr.f32.gmra.mrb[6].mxu0 %v4938_v6  ;;  %8167 = vmatprep.mubr.f32.mxu1 %v2192_v9  ;;  %v4957_v6 = vld [vmem:[#allocation3 + $0x151] sm:$0xff]  ;;  %v2211_v9 = vld [vmem:[#allocation2 + $0x159] sm:$0xff] }
 0x26c   : > { %8887 = vmatprep.mubr.f32.mxu0 %v4939_v12  ;;  %9418 = vmatpush3.bf16.msra.mxu1 %v9415_v38  ;;  %v2207_v38 = vld [vmem:[#allocation2 + $0x129] sm:$0xff] }
 0x26d   : > { %9706 = vmatpush3.bf16.msra.mxu0 %v9703_v46  ;;  %9420 = vmatprep.subr.bf16.mxu1 %v9419_v33  ;;  %v4954_v46 = vld [vmem:[#allocation3 + $0x129] sm:$0xff]  ;;  %v4958_v12 = vld [vmem:[#allocation3 + $0x159] sm:$0xff] }
 0x26e   : > { %8168 = vmatmul.mubr.f32.gmra.mrb[8].mxu1 %v2193_v28  ;;  %9708 = vmatprep.subr.bf16.mxu0 %v9707_v16  ;;  %v2214_v28 = vld [vmem:[#allocation2 + $0x181] sm:$0xff] }
 0x26f   : > { %8888 = vmatmul.mubr.f32.gmra.mrb[8].mxu0 %v4940_v2  ;;  %8170 = vmatprep.mubr.f32.mxu1 %v2194_v10  ;;  %v4962_v2 = vld [vmem:[#allocation3 + $0x189] sm:$0xff]  ;;  %v11864_v10 = vld [vmem:[%s11435_s11] sm:$0xff] }
 0x270   : > { %8890 = vmatprep.mubr.f32.mxu0 %v4941_v53  ;;  %9422 = vmatpush3.bf16.msra.mxu1 %v9419_v33  ;;  %v2212_v33 = vld [vmem:[#allocation2 + $0x169] sm:$0xff]  ;;  %v2489_v53 = vld [vmem:[#allocation2 + $0x1a] sm:$0xff]  ;;  %842 = vst [vmem:[#allocation2 + $0x198] sm:$0xff] %v11864_v10 }
 0x271   : > { %9710 = vmatpush3.bf16.msra.mxu0 %v9707_v16  ;;  %9424 = vmatprep.subr.bf16.mxu1 %v9423_v48  ;;  %v4959_v16 = vld [vmem:[#allocation3 + $0x169] sm:$0xff] }
 0x272   : > { %8171 = vmatmul.mubr.f32.gmra.mrb[10].mxu1 %v2195_v56  ;;  %9712 = vmatprep.subr.bf16.mxu0 %v9711_v54  ;;  %v2830_v56 = vld [vmem:[#allocation15 + $0x318] sm:$0xff] }
 0x273   : > { %8891 = vmatmul.mubr.f32.gmra.mrb[10].mxu0 %v4942_v41  ;;  %8173 = vmatprep.mubr.f32.mxu1 %v2196_v30  ;;  %v5576_v41 = vld [vmem:[#allocation16 + $0x310] sm:$0xff]  ;;  %v5577_v30 = vld [vmem:[#allocation16 + $0x318] sm:$0xff]  ;;  %v9439_v0 = vpack.c.bf16 %v2830_v56, %v2829_v55 }
 0x274   : > { %8893 = vmatprep.mubr.f32.mxu0 %v4943_v58  ;;  %9426 = vmatpush3.bf16.msra.mxu1 %v9423_v48  ;;  %v11868_v48 = vld [vmem:[%s11445_s17] sm:$0xff]  ;;  %v9727_v34 = vpack.c.bf16 %v5577_v30, %v5576_v41  ;;  %v2842_v56 = vld [vmem:[#allocation15 + $0x378] sm:$0xff] }
 0x275   : > { %9714 = vmatpush3.bf16.msra.mxu0 %v9711_v54  ;;  %9428 = vmatprep.subr.bf16.mxu1 %v9427_v61  ;;  %v11871_v54 = vld [vmem:[%s11435_s11 + $0x8] sm:$0xff]  ;;  %952 = vst [vmem:[#allocation3 + $0x198] sm:$0xff] %v11868_v48 }
 0x276   : > { %8174 = vmatmul.mubr.f32.gmra.mrb[12].mxu1 %v2197_v1  ;;  %9716 = vmatprep.subr.bf16.mxu0 %v9715_v43  ;;  %843 = vst [vmem:[#allocation2 + $0x1a0] sm:$0xff] %v11871_v54  ;;  %v5237_v58 = vld [vmem:[#allocation3 + $0x22] sm:$0xff]  ;;  %v2831_v1 = vld [vmem:[#allocation15 + $0x320] sm:$0xff] }
 0x277   : > { %8894 = vmatmul.mubr.f32.gmra.mrb[12].mxu0 %v4944_v45  ;;  %8176 = vmatprep.mubr.f32.mxu1 %v2198_v3  ;;  %v5578_v45 = vld [vmem:[#allocation16 + $0x320] sm:$0xff]  ;;  %v5579_v3 = vld [vmem:[#allocation16 + $0x328] sm:$0xff]  ;;  %v9443_v50 = vpack.c.bf16 %v2832_v44, %v2831_v1  ;;  %v2841_v55 = vld [vmem:[#allocation15 + $0x370] sm:$0xff] }
 0x278   : > { %8896 = vmatprep.mubr.f32.mxu0 %v4945_v4  ;;  %9430 = vmatpush3.bf16.msra.mxu1 %v9427_v61  ;;  %v2491_v61 = vld [vmem:[#allocation2 + $0x32] sm:$0xff]  ;;  %v5239_v4 = vld [vmem:[#allocation3 + $0x3a] sm:$0xff]  ;;  %v9731_v7 = vpack.c.bf16 %v5579_v3, %v5578_v45  ;;  %v3132_v1 = vld [vmem:[#allocation15 + $0x380] sm:$0xff] }
 0x279   : > { %9718 = vmatpush3.bf16.msra.mxu0 %v9715_v43  ;;  %9432 = vmatprep.subr.bf16.mxu1 %v9431_v5  ;;  %v5238_v43 = vld [vmem:[#allocation3 + $0x32] sm:$0xff]  ;;  %v5588_v41 = vld [vmem:[#allocation16 + $0x370] sm:$0xff]  ;;  %v5589_v30 = vld [vmem:[#allocation16 + $0x378] sm:$0xff] }
 0x27a   : > { %8177 = vmatmul.mubr.f32.gmra.mrb[14].mxu1 %v2199_v63  ;;  %9720 = vmatprep.subr.bf16.mxu0 %v9719_v47  ;;  %v2833_v63 = vld [vmem:[#allocation15 + $0x330] sm:$0xff]  ;;  %v3133_v44 = vld [vmem:[#allocation15 + $0x388] sm:$0xff]  ;;  %v5879_v45 = vld [vmem:[#allocation16 + $0x380] sm:$0xff] }
 0x27b   : > { %8897 = vmatmul.mubr.f32.gmra.mrb[14].mxu0 %v4946_v51  ;;  %8179 = vmatprep.mubr.f32.mxu1 %v2200_v21  ;;  %v5580_v51 = vld [vmem:[#allocation16 + $0x330] sm:$0xff]  ;;  %v5581_v21 = vld [vmem:[#allocation16 + $0x338] sm:$0xff]  ;;  %v5880_v3 = vld [vmem:[#allocation16 + $0x388] sm:$0xff] }
 0x27c   : > { %8899 = vmatprep.mubr.f32.mxu0 %v4947_v20  ;;  %9434 = vmatpush3.bf16.msra.mxu1 %v9431_v5  ;;  %v2493_v5 = vld [vmem:[#allocation2 + $0x4a] sm:$0xff]  ;;  %v5241_v20 = vld [vmem:[#allocation3 + $0x52] sm:$0xff] }
 0x27d   : > { %9722 = vmatpush3.bf16.msra.mxu0 %v9719_v47  ;;  %9436 = vmatprep.subr.bf16.mxu1 %v11857_v8  ;;  %v5240_v47 = vld [vmem:[#allocation3 + $0x4a] sm:$0xff] }
 0x27e   : > { %8180 = vmatmul.mubr.f32.gmra.mrb[16].mxu1 %v2201_v11  ;;  %9724 = vmatprep.subr.bf16.mxu0 %v11859_v27  ;;  %v5242_v11 = vld [vmem:[#allocation3 + $0x62] sm:$0xff] }
 0x27f   : > { %8900 = vmatmul.mubr.f32.gmra.mrb[16].mxu0 %v4948_v14  ;;  %8182 = vmatprep.mubr.f32.mxu1 %v2202_v15  ;;  %v9735_v14 = vpack.c.bf16 %v5581_v21, %v5580_v51  ;;  %v2835_v15 = vld [vmem:[#allocation15 + $0x340] sm:$0xff] }
 0x280   : > { %8902 = vmatprep.mubr.f32.mxu0 %v4949_v17  ;;  %v2836_v17 = vld [vmem:[#allocation15 + $0x348] sm:$0xff]  ;;  %v2508_v21 = vld [vmem:[#allocation2 + $0xfa] sm:$0xff] }
 0x281   : > { %v5254_v51 = vld [vmem:[#allocation3 + $0xf2] sm:$0xff] }
 0x282   : > { %8183 = vmatmul.mubr.f32.gmra.mrb[18].mxu1 %v2203_v18  ;;  %v2496_v18 = vld [vmem:[#allocation2 + $0x6a] sm:$0xff] }
 0x283   : > { %8903 = vmatmul.mubr.f32.gmra.mrb[18].mxu0 %v4950_v22  ;;  %8185 = vmatprep.mubr.f32.mxu1 %v2204_v23  ;;  %v5582_v22 = vld [vmem:[#allocation16 + $0x340] sm:$0xff]  ;;  %v5583_v23 = vld [vmem:[#allocation16 + $0x348] sm:$0xff] }
 0x284   : > { %8905 = vmatprep.mubr.f32.mxu0 %v4951_v26  ;;  %v5243_v26 = vld [vmem:[#allocation3 + $0x6a] sm:$0xff] }
 0x286   : > { %8186 = vmatmul.mubr.f32.gmra.mrb[20].mxu1 %v2205_v29  ;;  %v2497_v29 = vld [vmem:[#allocation2 + $0x7a] sm:$0xff] }
 0x287   : > { %8906 = vmatmul.mubr.f32.gmra.mrb[20].mxu0 %v4952_v31  ;;  %8188 = vmatprep.mubr.f32.mxu1 %v2206_v32  ;;  %v5244_v31 = vld [vmem:[#allocation3 + $0x7a] sm:$0xff]  ;;  %v9451_v32 = vpack.c.bf16 %v2836_v17, %v2835_v15  ;;  %v2511_v15 = vld [vmem:[#allocation2 + $0x122] sm:$0xff]  ;;  %v5258_v17 = vld [vmem:[#allocation3 + $0x122] sm:$0xff] }
 0x288   : > { %8908 = vmatprep.mubr.f32.mxu0 %v4953_v35  ;;  %v9739_v35 = vpack.c.bf16 %v5583_v23, %v5582_v22  ;;  %v5259_v22 = vld [vmem:[#allocation3 + $0x12a] sm:$0xff] }
 0x289   : > { %v2513_v23 = vld [vmem:[#allocation2 + $0x13a] sm:$0xff] }
 0x28a   : > { %8189 = vmatmul.mubr.f32.gmra.mrb[22].mxu1 %v2207_v38  ;;  %v2837_v38 = vld [vmem:[#allocation15 + $0x350] sm:$0xff] }
 0x28b   : > { %8909 = vmatmul.mubr.f32.gmra.mrb[22].mxu0 %v4954_v46  ;;  %8191 = vmatprep.mubr.f32.mxu1 %v2208_v49  ;;  %v2838_v46 = vld [vmem:[#allocation15 + $0x358] sm:$0xff]  ;;  %v2498_v49 = vld [vmem:[#allocation2 + $0x82] sm:$0xff] }
 0x28c   : > { %8911 = vmatprep.mubr.f32.mxu0 %v4955_v52  ;;  %v5584_v52 = vld [vmem:[#allocation16 + $0x350] sm:$0xff] }
 0x28e   : > { %8192 = vmatmul.mubr.f32.gmra.mrb[24].mxu1 %v2209_v59  ;;  %v5585_v59 = vld [vmem:[#allocation16 + $0x358] sm:$0xff] }
 0x28f   : > { %8912 = vmatmul.mubr.f32.gmra.mrb[24].mxu0 %v4956_v60  ;;  %8194 = vmatprep.mubr.f32.mxu1 %v2210_v62  ;;  %v5245_v60 = vld [vmem:[#allocation3 + $0x82] sm:$0xff] }
 0x290   : > { %8914 = vmatprep.mubr.f32.mxu0 %v4957_v6  ;;  %v2499_v62 = vld [vmem:[#allocation2 + $0x92] sm:$0xff]  ;;  %v5246_v6 = vld [vmem:[#allocation3 + $0x92] sm:$0xff] }
 0x292   : > { %8195 = vmatmul.mubr.f32.gmra.mrb[26].mxu1 %v2211_v9  ;;  %v9455_v9 = vpack.c.bf16 %v2838_v46, %v2837_v38  ;;  %v2516_v38 = vld [vmem:[#allocation2 + $0x15a] sm:$0xff]  ;;  %v5263_v46 = vld [vmem:[#allocation3 + $0x15a] sm:$0xff] }
 0x293   : > { %8915 = vmatmul.mubr.f32.gmra.mrb[26].mxu0 %v4958_v12  ;;  %8197 = vmatprep.mubr.f32.mxu1 %v2212_v33  ;;  %v9743_v12 = vpack.c.bf16 %v5585_v59, %v5584_v52  ;;  %v2839_v33 = vld [vmem:[#allocation15 + $0x360] sm:$0xff] }
 0x294   : > { %8917 = vmatprep.mubr.f32.mxu0 %v4959_v16  ;;  %v2840_v16 = vld [vmem:[#allocation15 + $0x368] sm:$0xff]  ;;  %v5264_v52 = vld [vmem:[#allocation3 + $0x16a] sm:$0xff] }
 0x295   : > { %v788_v59 = vld [vmem:[%s11435_s11 + $0x10] sm:$0x3] }
 0x296   : > { %8198 = vmatmul.mubr.f32.gmra.mrb[28].mxu1 %v2213_v24  ;;  %v2500_v24 = vld [vmem:[#allocation2 + $0x9a] sm:$0xff]  ;;  %844 = vst [vmem:[#allocation2 + $0x1a8] sm:$0x3] %v788_v59 }
 0x297   : > { %8918 = vmatmul.mubr.f32.gmra.mrb[28].mxu0 %v4960_v37  ;;  %8200 = vmatprep.mubr.f32.mxu1 %v2214_v28  ;;  %v5586_v37 = vld [vmem:[#allocation16 + $0x360] sm:$0xff]  ;;  %v5587_v28 = vld [vmem:[#allocation16 + $0x368] sm:$0xff] }
 0x298   : > { %8920 = vmatprep.mubr.f32.mxu0 %v4961_v42  ;;  %v5247_v42 = vld [vmem:[#allocation3 + $0x9a] sm:$0xff]  ;;  %v3144_v59 = vld [vmem:[#allocation15 + $0x3e0] sm:$0xff] }
 0x29a   : > { %8201 = vmatmul.mubr.f32.gmra.mrb[30].mxu1 %v2215_v36  ;;  %v2501_v36 = vld [vmem:[#allocation2 + $0xaa] sm:$0xff] }
 0x29b   : > { %8921 = vmatmul.mubr.f32.gmra.mrb[30].mxu0 %v4962_v2  ;;  %8235 = vmatprep.mubr.f32.mxu1 %v2489_v53  ;;  %v5248_v2 = vld [vmem:[#allocation3 + $0xaa] sm:$0xff]  ;;  %v9459_v53 = vpack.c.bf16 %v2840_v16, %v2839_v33  ;;  %v2520_v33 = vld [vmem:[#allocation2 + $0x18a] sm:$0xff] }
 0x29c   : > { %8955 = vmatprep.mubr.f32.mxu0 %v5236_v40  ;;  %v9747_v40 = vpack.c.bf16 %v5587_v28, %v5586_v37  ;;  %v5267_v16 = vld [vmem:[#allocation3 + $0x18a] sm:$0xff]  ;;  %v3134_v28 = vld [vmem:[#allocation15 + $0x390] sm:$0xff] }
 0x29d   : > { %v5542_v37 = vld [vmem:[#allocation3 + $0x30] sm:$0xff] }
 0x29e   : > { %8236 = vmatmul.mubr.f32.vlgmr.msra.gmra.mrb[0].mxu1 %v2490_v57  ;;  %v2502_v57 = vld [vmem:[#allocation2 + $0xb2] sm:$0xff] }
 0x29f   : > { %8956 = vmatmul.mubr.f32.vlgmr.msra.gmra.mrb[0].mxu0 %v5237_v58  ;;  %9438 = vmatpush3.bf16.msra.mxu1 %v11857_v8  ;;  %v2495_v8 = vld [vmem:[#allocation2 + $0x62] sm:$0xff] }
 0x2a0   : > { %8238 = vmatprep.mubr.f32.mxu1 %v2491_v61  ;;  %8958 = vmatprep.mubr.f32.mxu0 %v5238_v43  ;;  %v5249_v58 = vld [vmem:[#allocation3 + $0xb2] sm:$0xff]  ;;  %v5250_v43 = vld [vmem:[#allocation3 + $0xc2] sm:$0xff] }
 0x2a1   : > { %9726 = vmatpush3.bf16.msra.mxu0 %v11859_v27  ;;  %9440 = vmatprep.subr.bf16.mxu1 %v9439_v0  ;;  %v9447_v27 = vpack.c.bf16 %v2834_v25, %v2833_v63  ;;  %v2503_v61 = vld [vmem:[#allocation2 + $0xc2] sm:$0xff]  ;;  %v5253_v25 = vld [vmem:[#allocation3 + $0xe2] sm:$0xff] }
 0x2a2   : > { %8239 = vmatmul.mubr.f32.gmra.mrb[2].mxu1 %v2492_v39  ;;  %9728 = vmatprep.subr.bf16.mxu0 %v9727_v34  ;;  %v2504_v39 = vld [vmem:[#allocation2 + $0xca] sm:$0xff]  ;;  %v2506_v63 = vld [vmem:[#allocation2 + $0xe2] sm:$0xff] }
 0x2a3   : > { %8959 = vmatmul.mubr.f32.gmra.mrb[2].mxu0 %v5239_v4  ;;  %8241 = vmatprep.mubr.f32.mxu1 %v2493_v5  ;;  %v5251_v4 = vld [vmem:[#allocation3 + $0xca] sm:$0xff] }
 0x2a4   : > { %8961 = vmatprep.mubr.f32.mxu0 %v5240_v47  ;;  %9442 = vmatpush3.bf16.msra.mxu1 %v9439_v0  ;;  %v9463_v0 = vpack.c.bf16 %v2842_v56, %v2841_v55  ;;  %v2505_v5 = vld [vmem:[#allocation2 + $0xda] sm:$0xff]  ;;  %v5252_v47 = vld [vmem:[#allocation3 + $0xda] sm:$0xff] }
 0x2a5   : > { %9730 = vmatpush3.bf16.msra.mxu0 %v9727_v34  ;;  %9444 = vmatprep.subr.bf16.mxu1 %v9443_v50  ;;  %v9751_v34 = vpack.c.bf16 %v5589_v30, %v5588_v41  ;;  %v2797_v55 = vld [vmem:[#allocation2 + $0x48] sm:$0xff]  ;;  %v5544_v56 = vld [vmem:[#allocation3 + $0x48] sm:$0xff]  ;;  %v3136_v30 = vld [vmem:[#allocation15 + $0x3a0] sm:$0xff] }
 0x2a6   : > { %8242 = vmatmul.mubr.f32.gmra.mrb[4].mxu1 %v2494_v19  ;;  %9732 = vmatprep.subr.bf16.mxu0 %v9731_v7  ;;  %v2507_v19 = vld [vmem:[#allocation2 + $0xf2] sm:$0xff] }
 0x2a7   : > { %8962 = vmatmul.mubr.f32.gmra.mrb[4].mxu0 %v5241_v20  ;;  %8244 = vmatprep.mubr.f32.mxu1 %v2495_v8  ;;  %v5255_v20 = vld [vmem:[#allocation3 + $0xfa] sm:$0xff] }
 0x2a8   : > { %8964 = vmatprep.mubr.f32.mxu0 %v5242_v11  ;;  %9446 = vmatpush3.bf16.msra.mxu1 %v9443_v50  ;;  %v11881_v50 = vpack.c.bf16 %v3133_v44, %v3132_v1  ;;  %v2509_v8 = vld [vmem:[#allocation2 + $0x10a] sm:$0xff]  ;;  %v5256_v11 = vld [vmem:[#allocation3 + $0x10a] sm:$0xff] }
 0x2a9   : > { %9734 = vmatpush3.bf16.msra.mxu0 %v9731_v7  ;;  %9448 = vmatprep.subr.bf16.mxu1 %v9447_v27  ;;  %v11883_v7 = vpack.c.bf16 %v5880_v3, %v5879_v45  ;;  %v2799_v1 = vld [vmem:[#allocation2 + $0x60] sm:$0xff]  ;;  %v5546_v44 = vld [vmem:[#allocation3 + $0x60] sm:$0xff] }
 0x2aa   : > { %8245 = vmatmul.mubr.f32.gmra.mrb[6].mxu1 %v2496_v18  ;;  %9736 = vmatprep.subr.bf16.mxu0 %v9735_v14  ;;  %v2512_v18 = vld [vmem:[#allocation2 + $0x12a] sm:$0xff] }
 0x2ab   : > { %8965 = vmatmul.mubr.f32.gmra.mrb[6].mxu0 %v5243_v26  ;;  %8247 = vmatprep.mubr.f32.mxu1 %v2497_v29  ;;  %v5260_v26 = vld [vmem:[#allocation3 + $0x13a] sm:$0xff]  ;;  %v2514_v29 = vld [vmem:[#allocation2 + $0x142] sm:$0xff] }
 0x2ac   : > { %8967 = vmatprep.mubr.f32.mxu0 %v5244_v31  ;;  %9450 = vmatpush3.bf16.msra.mxu1 %v9447_v27  ;;  %v2510_v27 = vld [vmem:[#allocation2 + $0x112] sm:$0xff] }
 0x2ad   : > { %9738 = vmatpush3.bf16.msra.mxu0 %v9735_v14  ;;  %9452 = vmatprep.subr.bf16.mxu1 %v9451_v32  ;;  %v5257_v14 = vld [vmem:[#allocation3 + $0x112] sm:$0xff]  ;;  %v5261_v31 = vld [vmem:[#allocation3 + $0x142] sm:$0xff] }
 0x2ae   : > { %8248 = vmatmul.mubr.f32.gmra.mrb[8].mxu1 %v2498_v49  ;;  %9740 = vmatprep.subr.bf16.mxu0 %v9739_v35  ;;  %v2517_v49 = vld [vmem:[#allocation2 + $0x16a] sm:$0xff] }
 0x2af   : > { %8968 = vmatmul.mubr.f32.gmra.mrb[8].mxu0 %v5245_v60  ;;  %8250 = vmatprep.mubr.f32.mxu1 %v2499_v62  ;;  %v898_v60 = vld [vmem:[%s11445_s17 + $0x10] sm:$0x3]  ;;  %v3138_v3 = vld [vmem:[#allocation15 + $0x3b0] sm:$0xff] }
 0x2b0   : > { %8970 = vmatprep.mubr.f32.mxu0 %v5246_v6  ;;  %9454 = vmatpush3.bf16.msra.mxu1 %v9451_v32  ;;  %v2515_v32 = vld [vmem:[#allocation2 + $0x152] sm:$0xff]  ;;  %954 = vst [vmem:[#allocation3 + $0x1a8] sm:$0x3] %v898_v60  ;;  %v5265_v6 = vld [vmem:[#allocation3 + $0x172] sm:$0xff] }
 0x2b1   : > { %9742 = vmatpush3.bf16.msra.mxu0 %v9739_v35  ;;  %9456 = vmatprep.subr.bf16.mxu1 %v9455_v9  ;;  %v5262_v35 = vld [vmem:[#allocation3 + $0x152] sm:$0xff]  ;;  %v2518_v62 = vld [vmem:[#allocation2 + $0x172] sm:$0xff] }
 0x2b2   : > { %8251 = vmatmul.mubr.f32.gmra.mrb[10].mxu1 %v2500_v24  ;;  %9744 = vmatprep.subr.bf16.mxu0 %v9743_v12  ;;  %v2795_v24 = vld [vmem:[#allocation2 + $0x30] sm:$0xff]  ;;  %v3145_v60 = vld [vmem:[#allocation15 + $0x3e8] sm:$0xff] }
 0x2b3   : > { %8971 = vmatmul.mubr.f32.gmra.mrb[10].mxu0 %v5247_v42  ;;  %8253 = vmatprep.mubr.f32.mxu1 %v2501_v36  ;;  %v3135_v42 = vld [vmem:[#allocation15 + $0x398] sm:$0xff] }
 0x2b4   : > { %8973 = vmatprep.mubr.f32.mxu0 %v5248_v2  ;;  %9458 = vmatpush3.bf16.msra.mxu1 %v9455_v9  ;;  %v2519_v9 = vld [vmem:[#allocation2 + $0x182] sm:$0xff]  ;;  %v2796_v36 = vld [vmem:[#allocation2 + $0x38] sm:$0xff]  ;;  %v5881_v2 = vld [vmem:[#allocation16 + $0x390] sm:$0xff] }
 0x2b5   : > { %9746 = vmatpush3.bf16.msra.mxu0 %v9743_v12  ;;  %9460 = vmatprep.subr.bf16.mxu1 %v9459_v53  ;;  %v5266_v12 = vld [vmem:[#allocation3 + $0x182] sm:$0xff] }
 0x2b6   : > { %8254 = vmatmul.mubr.f32.gmra.mrb[12].mxu1 %v2502_v57  ;;  %9748 = vmatprep.subr.bf16.mxu0 %v9747_v40  ;;  %v9471_v57 = vpack.c.bf16 %v3135_v42, %v3134_v28  ;;  %v3146_v28 = vld [vmem:[#allocation15 + $0x3f0] sm:$0xff]  ;;  %v3147_v42 = vld [vmem:[#allocation15 + $0x3f8] sm:$0xff] }
 0x2b7   : > { %8974 = vmatmul.mubr.f32.gmra.mrb[12].mxu0 %v5249_v58  ;;  %8256 = vmatprep.mubr.f32.mxu1 %v2503_v61  ;;  %v3137_v58 = vld [vmem:[#allocation15 + $0x3a8] sm:$0xff]  ;;  %v2798_v61 = vld [vmem:[#allocation2 + $0x50] sm:$0xff] }
 0x2b8   : > { %8976 = vmatprep.mubr.f32.mxu0 %v5250_v43  ;;  %9462 = vmatpush3.bf16.msra.mxu1 %v9459_v53  ;;  %v5882_v53 = vld [vmem:[#allocation16 + $0x398] sm:$0xff]  ;;  %v5883_v43 = vld [vmem:[#allocation16 + $0x3a0] sm:$0xff] }
 0x2b9   : > { %9750 = vmatpush3.bf16.msra.mxu0 %v9747_v40  ;;  %9464 = vmatprep.subr.bf16.mxu1 %v9463_v0  ;;  %v5543_v40 = vld [vmem:[#allocation3 + $0x38] sm:$0xff]  ;;  %v9759_v41 = vpack.c.bf16 %v5882_v53, %v5881_v2  ;;  %v5893_v2 = vld [vmem:[#allocation16 + $0x3f0] sm:$0xff]  ;;  %v5894_v53 = vld [vmem:[#allocation16 + $0x3f8] sm:$0xff] }
 0x2ba   : > { %8257 = vmatmul.mubr.f32.gmra.mrb[14].mxu1 %v2504_v39  ;;  %9752 = vmatprep.subr.bf16.mxu0 %v9751_v34  ;;  %v9475_v39 = vpack.c.bf16 %v3137_v58, %v3136_v30  ;;  %v3437_v30 = vld [vmem:[#allocation15 + $0x400] sm:$0xff]  ;;  %v3438_v58 = vld [vmem:[#allocation15 + $0x408] sm:$0xff] }
 0x2bb   : > { %8977 = vmatmul.mubr.f32.gmra.mrb[14].mxu0 %v5251_v4  ;;  %8259 = vmatprep.mubr.f32.mxu1 %v2505_v5  ;;  %v3139_v4 = vld [vmem:[#allocation15 + $0x3b8] sm:$0xff]  ;;  %v2800_v5 = vld [vmem:[#allocation2 + $0x68] sm:$0xff] }
 0x2bc   : > { %8979 = vmatprep.mubr.f32.mxu0 %v5252_v47  ;;  %9466 = vmatpush3.bf16.msra.mxu1 %v9463_v0  ;;  %v5884_v0 = vld [vmem:[#allocation16 + $0x3a8] sm:$0xff]  ;;  %v5885_v47 = vld [vmem:[#allocation16 + $0x3b0] sm:$0xff] }
 0x2bd   : > { %9754 = vmatpush3.bf16.msra.mxu0 %v9751_v34  ;;  %9468 = vmatprep.subr.bf16.mxu1 %v11881_v50  ;;  %v5545_v34 = vld [vmem:[#allocation3 + $0x50] sm:$0xff]  ;;  %v9763_v45 = vpack.c.bf16 %v5884_v0, %v5883_v43  ;;  %v6185_v0 = vld [vmem:[#allocation16 + $0x408] sm:$0xff] }
 0x2be   : > { %8260 = vmatmul.mubr.f32.gmra.mrb[16].mxu1 %v2506_v63  ;;  %9756 = vmatprep.subr.bf16.mxu0 %v11883_v7  ;;  %v5547_v63 = vld [vmem:[#allocation3 + $0x68] sm:$0xff]  ;;  %v6184_v43 = vld [vmem:[#allocation16 + $0x400] sm:$0xff] }
 0x2bf   : > { %8980 = vmatmul.mubr.f32.gmra.mrb[16].mxu0 %v5253_v25  ;;  %8262 = vmatprep.mubr.f32.mxu1 %v2507_v19  ;;  %v2801_v25 = vld [vmem:[#allocation2 + $0x78] sm:$0xff]  ;;  %v5548_v19 = vld [vmem:[#allocation3 + $0x78] sm:$0xff] }
 0x2c0   : > { %8982 = vmatprep.mubr.f32.mxu0 %v5254_v51 }
 0x2c2   : > { %8263 = vmatmul.mubr.f32.gmra.mrb[18].mxu1 %v2508_v21  ;;  %v3140_v21 = vld [vmem:[#allocation15 + $0x3c0] sm:$0xff] }
 0x2c3   : > { %8983 = vmatmul.mubr.f32.gmra.mrb[18].mxu0 %v5255_v20  ;;  %8265 = vmatprep.mubr.f32.mxu1 %v2509_v8  ;;  %v3141_v20 = vld [vmem:[#allocation15 + $0x3c8] sm:$0xff]  ;;  %v2802_v8 = vld [vmem:[#allocation2 + $0x80] sm:$0xff] }
 0x2c4   : > { %8985 = vmatprep.mubr.f32.mxu0 %v5256_v11  ;;  %v5887_v11 = vld [vmem:[#allocation16 + $0x3c0] sm:$0xff] }
 0x2c6   : > { %8266 = vmatmul.mubr.f32.gmra.mrb[20].mxu1 %v2510_v27  ;;  %v5888_v27 = vld [vmem:[#allocation16 + $0x3c8] sm:$0xff] }
 0x2c7   : > { %8986 = vmatmul.mubr.f32.gmra.mrb[20].mxu0 %v5257_v14  ;;  %8268 = vmatprep.mubr.f32.mxu1 %v2511_v15  ;;  %v5549_v14 = vld [vmem:[#allocation3 + $0x80] sm:$0xff] }
 0x2c8   : > { %8988 = vmatprep.mubr.f32.mxu0 %v5258_v17  ;;  %v2803_v15 = vld [vmem:[#allocation2 + $0x90] sm:$0xff]  ;;  %v5550_v17 = vld [vmem:[#allocation3 + $0x90] sm:$0xff] }
 0x2ca   : > { %8269 = vmatmul.mubr.f32.gmra.mrb[22].mxu1 %v2512_v18  ;;  %v9483_v18 = vpack.c.bf16 %v3141_v20, %v3140_v21  ;;  %v2817_v21 = vld [vmem:[#allocation2 + $0x138] sm:$0xff]  ;;  %v5564_v20 = vld [vmem:[#allocation3 + $0x138] sm:$0xff] }
 0x2cb   : > { %8989 = vmatmul.mubr.f32.gmra.mrb[22].mxu0 %v5259_v22  ;;  %8271 = vmatprep.mubr.f32.mxu1 %v2513_v23  ;;  %v9771_v22 = vpack.c.bf16 %v5888_v27, %v5887_v11  ;;  %v3142_v23 = vld [vmem:[#allocation15 + $0x3d0] sm:$0xff] }
 0x2cc   : > { %8991 = vmatprep.mubr.f32.mxu0 %v5260_v26  ;;  %v3143_v26 = vld [vmem:[#allocation15 + $0x3d8] sm:$0xff]  ;;  %v5565_v11 = vld [vmem:[#allocation3 + $0x140] sm:$0xff] }
 0x2cd   : > { %v2819_v27 = vld [vmem:[#allocation2 + $0x150] sm:$0xff] }
 0x2ce   : > { %8272 = vmatmul.mubr.f32.gmra.mrb[24].mxu1 %v2514_v29  ;;  %v2804_v29 = vld [vmem:[#allocation2 + $0x98] sm:$0xff] }
 0x2cf   : > { %8992 = vmatmul.mubr.f32.gmra.mrb[24].mxu0 %v5261_v31  ;;  %8274 = vmatprep.mubr.f32.mxu1 %v2515_v32  ;;  %v5889_v31 = vld [vmem:[#allocation16 + $0x3d0] sm:$0xff]  ;;  %v5890_v32 = vld [vmem:[#allocation16 + $0x3d8] sm:$0xff] }
 0x2d0   : > { %8994 = vmatprep.mubr.f32.mxu0 %v5262_v35  ;;  %v5551_v35 = vld [vmem:[#allocation3 + $0x98] sm:$0xff] }
 0x2d2   : > { %8275 = vmatmul.mubr.f32.gmra.mrb[26].mxu1 %v2516_v38  ;;  %v2805_v38 = vld [vmem:[#allocation2 + $0xa8] sm:$0xff] }
 0x2d3   : > { %8995 = vmatmul.mubr.f32.gmra.mrb[26].mxu0 %v5263_v46  ;;  %8277 = vmatprep.mubr.f32.mxu1 %v2517_v49  ;;  %v5552_v46 = vld [vmem:[#allocation3 + $0xa8] sm:$0xff]  ;;  %v9487_v49 = vpack.c.bf16 %v3143_v26, %v3142_v23  ;;  %v2822_v23 = vld [vmem:[#allocation2 + $0x170] sm:$0xff]  ;;  %v5569_v26 = vld [vmem:[#allocation3 + $0x170] sm:$0xff] }
 0x2d4   : > { %8997 = vmatprep.mubr.f32.mxu0 %v5264_v52  ;;  %v9775_v52 = vpack.c.bf16 %v5890_v32, %v5889_v31  ;;  %v5570_v31 = vld [vmem:[#allocation3 + $0x180] sm:$0xff]  ;;  %v2824_v32 = vld [vmem:[#allocation2 + $0x188] sm:$0xff] }
 0x2d6   : > { %8278 = vmatmul.mubr.f32.gmra.mrb[28].mxu1 %v2518_v62  ;;  %v2806_v62 = vld [vmem:[#allocation2 + $0xb0] sm:$0xff] }
 0x2d7   : > { %8998 = vmatmul.mubr.f32.gmra.mrb[28].mxu0 %v5265_v6  ;;  %8280 = vmatprep.mubr.f32.mxu1 %v2519_v9  ;;  %v5891_v6 = vld [vmem:[#allocation16 + $0x3e0] sm:$0xff]  ;;  %v5892_v9 = vld [vmem:[#allocation16 + $0x3e8] sm:$0xff] }
 0x2d8   : > { %9000 = vmatprep.mubr.f32.mxu0 %v5266_v12  ;;  %v5553_v12 = vld [vmem:[#allocation3 + $0xb0] sm:$0xff] }
 0x2da   : > { %8281 = vmatmul.mubr.f32.gmra.mrb[30].mxu1 %v2520_v33  ;;  %v2807_v33 = vld [vmem:[#allocation2 + $0xc0] sm:$0xff] }
 0x2db   : > { %9001 = vmatmul.mubr.f32.gmra.mrb[30].mxu0 %v5267_v16  ;;  %8315 = vmatprep.mubr.f32.mxu1 %v2795_v24  ;;  %v5554_v16 = vld [vmem:[#allocation3 + $0xc0] sm:$0xff]  ;;  %v9491_v24 = vpack.c.bf16 %v3145_v60, %v3144_v59  ;;  %v3101_v59 = vld [vmem:[#allocation2 + $0x39] sm:$0xff] }
 0x2dc   : > { %9035 = vmatprep.mubr.f32.mxu0 %v5542_v37  ;;  %v9779_v37 = vpack.c.bf16 %v5892_v9, %v5891_v6  ;;  %v6186_v60 = vld [vmem:[#allocation16 + $0x410] sm:$0xff] }
 0x2dd   : > { %v5848_v6 = vld [vmem:[#allocation3 + $0x39] sm:$0xff] }
 0x2de   : > { %8316 = vmatmul.mubr.f32.vlgmr.msra.gmra.mrb[0].mxu1 %v2796_v36  ;;  %v2808_v36 = vld [vmem:[#allocation2 + $0xc8] sm:$0xff] }
 0x2df   : > { %9036 = vmatmul.mubr.f32.vlgmr.msra.gmra.mrb[0].mxu0 %v5543_v40  ;;  %9470 = vmatpush3.bf16.msra.mxu1 %v11881_v50  ;;  %v5886_v50 = vld [vmem:[#allocation16 + $0x3b8] sm:$0xff]  ;;  %v3102_v9 = vld [vmem:[#allocation2 + $0x49] sm:$0xff] }
 0x2e0   : > { %8318 = vmatprep.mubr.f32.mxu1 %v2797_v55  ;;  %9038 = vmatprep.mubr.f32.mxu0 %v5544_v56  ;;  %v9767_v51 = vpack.c.bf16 %v5886_v50, %v5885_v47  ;;  %v5555_v40 = vld [vmem:[#allocation3 + $0xc8] sm:$0xff]  ;;  %v5556_v56 = vld [vmem:[#allocation3 + $0xd8] sm:$0xff]  ;;  %v2814_v50 = vld [vmem:[#allocation2 + $0x110] sm:$0xff] }
 0x2e1   : > { %9758 = vmatpush3.bf16.msra.mxu0 %v11883_v7  ;;  %9472 = vmatprep.subr.bf16.mxu1 %v9471_v57  ;;  %v9479_v7 = vpack.c.bf16 %v3139_v4, %v3138_v3  ;;  %v2809_v55 = vld [vmem:[#allocation2 + $0xd8] sm:$0xff]  ;;  %v5559_v4 = vld [vmem:[#allocation3 + $0xf8] sm:$0xff] }
 0x2e2   : > { %8319 = vmatmul.mubr.f32.gmra.mrb[2].mxu1 %v2798_v61  ;;  %9760 = vmatprep.subr.bf16.mxu0 %v9759_v41  ;;  %v2810_v61 = vld [vmem:[#allocation2 + $0xe0] sm:$0xff]  ;;  %v2812_v3 = vld [vmem:[#allocation2 + $0xf8] sm:$0xff] }
 0x2e3   : > { %9039 = vmatmul.mubr.f32.gmra.mrb[2].mxu0 %v5545_v34  ;;  %8321 = vmatprep.mubr.f32.mxu1 %v2799_v1  ;;  %v5557_v34 = vld [vmem:[#allocation3 + $0xe0] sm:$0xff]  ;;  %v5560_v47 = vld [vmem:[#allocation3 + $0x108] sm:$0xff] }
 0x2e4   : > { %9041 = vmatprep.mubr.f32.mxu0 %v5546_v44  ;;  %9474 = vmatpush3.bf16.msra.mxu1 %v9471_v57  ;;  %v9495_v57 = vpack.c.bf16 %v3147_v42, %v3146_v28  ;;  %v2811_v1 = vld [vmem:[#allocation2 + $0xf0] sm:$0xff]  ;;  %v5558_v44 = vld [vmem:[#allocation3 + $0xf0] sm:$0xff] }
 0x2e5   : > { %9762 = vmatpush3.bf16.msra.mxu0 %v9759_v41  ;;  %9476 = vmatprep.subr.bf16.mxu1 %v9475_v39  ;;  %v9783_v41 = vpack.c.bf16 %v5894_v53, %v5893_v2  ;;  %v3104_v28 = vld [vmem:[#allocation2 + $0x61] sm:$0xff]  ;;  %v5851_v42 = vld [vmem:[#allocation3 + $0x61] sm:$0xff] }
 0x2e6   : > { %8322 = vmatmul.mubr.f32.gmra.mrb[4].mxu1 %v2800_v5  ;;  %9764 = vmatprep.subr.bf16.mxu0 %v9763_v45  ;;  %v2813_v5 = vld [vmem:[#allocation2 + $0x108] sm:$0xff]  ;;  %v3443_v53 = vld [vmem:[#allocation15 + $0x430] sm:$0xff] }
 0x2e7   : > { %9042 = vmatmul.mubr.f32.gmra.mrb[4].mxu0 %v5547_v63  ;;  %8324 = vmatprep.mubr.f32.mxu1 %v2801_v25  ;;  %v5561_v63 = vld [vmem:[#allocation3 + $0x110] sm:$0xff] }
 0x2e8   : > { %9044 = vmatprep.mubr.f32.mxu0 %v5548_v19  ;;  %9478 = vmatpush3.bf16.msra.mxu1 %v9475_v39  ;;  %v11891_v39 = vpack.c.bf16 %v3438_v58, %v3437_v30  ;;  %v2815_v25 = vld [vmem:[#allocation2 + $0x120] sm:$0xff]  ;;  %v5562_v19 = vld [vmem:[#allocation3 + $0x120] sm:$0xff] }
 0x2e9   : > { %9766 = vmatpush3.bf16.msra.mxu0 %v9763_v45  ;;  %9480 = vmatprep.subr.bf16.mxu1 %v9479_v7  ;;  %v11893_v45 = vpack.c.bf16 %v6185_v0, %v6184_v43  ;;  %v3106_v30 = vld [vmem:[#allocation2 + $0x79] sm:$0xff]  ;;  %v5853_v58 = vld [vmem:[#allocation3 + $0x79] sm:$0xff] }
 0x2ea   : > { %8325 = vmatmul.mubr.f32.gmra.mrb[6].mxu1 %v2802_v8  ;;  %9768 = vmatprep.subr.bf16.mxu0 %v9767_v51  ;;  %v2818_v8 = vld [vmem:[#allocation2 + $0x140] sm:$0xff] }
 0x2eb   : > { %9045 = vmatmul.mubr.f32.gmra.mrb[6].mxu0 %v5549_v14  ;;  %8327 = vmatprep.mubr.f32.mxu1 %v2803_v15  ;;  %v5566_v14 = vld [vmem:[#allocation3 + $0x150] sm:$0xff]  ;;  %v2820_v15 = vld [vmem:[#allocation2 + $0x158] sm:$0xff] }
 0x2ec   : > { %9047 = vmatprep.mubr.f32.mxu0 %v5550_v17  ;;  %9482 = vmatpush3.bf16.msra.mxu1 %v9479_v7  ;;  %v2816_v7 = vld [vmem:[#allocation2 + $0x128] sm:$0xff]  ;;  %v3445_v0 = vld [vmem:[#allocation15 + $0x440] sm:$0xff] }
 0x2ed   : > { %9770 = vmatpush3.bf16.msra.mxu0 %v9767_v51  ;;  %9484 = vmatprep.subr.bf16.mxu1 %v9483_v18  ;;  %v5563_v51 = vld [vmem:[#allocation3 + $0x128] sm:$0xff]  ;;  %v5567_v17 = vld [vmem:[#allocation3 + $0x158] sm:$0xff] }
 0x2ee   : > { %8328 = vmatmul.mubr.f32.gmra.mrb[8].mxu1 %v2804_v29  ;;  %9772 = vmatprep.subr.bf16.mxu0 %v9771_v22  ;;  %v2823_v29 = vld [vmem:[#allocation2 + $0x180] sm:$0xff] }
 0x2ef   : > { %9048 = vmatmul.mubr.f32.gmra.mrb[8].mxu0 %v5551_v35  ;;  %8330 = vmatprep.mubr.f32.mxu1 %v2805_v38  ;;  %v5571_v35 = vld [vmem:[#allocation3 + $0x188] sm:$0xff] }
 0x2f0   : > { %9050 = vmatprep.mubr.f32.mxu0 %v5552_v46  ;;  %9486 = vmatpush3.bf16.msra.mxu1 %v9483_v18  ;;  %v2821_v18 = vld [vmem:[#allocation2 + $0x168] sm:$0xff]  ;;  %v3100_v38 = vld [vmem:[#allocation2 + $0x31] sm:$0xff] }
 0x2f1   : > { %9774 = vmatpush3.bf16.msra.mxu0 %v9771_v22  ;;  %9488 = vmatprep.subr.bf16.mxu1 %v9487_v49  ;;  %v5568_v22 = vld [vmem:[#allocation3 + $0x168] sm:$0xff]  ;;  %v5847_v46 = vld [vmem:[#allocation3 + $0x31] sm:$0xff] }
 0x2f2   : > { %8331 = vmatmul.mubr.f32.gmra.mrb[10].mxu1 %v2806_v62  ;;  %9776 = vmatprep.subr.bf16.mxu0 %v9775_v52  ;;  %v6187_v62 = vld [vmem:[#allocation16 + $0x418] sm:$0xff] }
 0x2f3   : > { %9051 = vmatmul.mubr.f32.gmra.mrb[10].mxu0 %v5553_v12  ;;  %8333 = vmatprep.mubr.f32.mxu1 %v2807_v33  ;;  %v5849_v12 = vld [vmem:[#allocation3 + $0x49] sm:$0xff] }
 0x2f4   : > { %9053 = vmatprep.mubr.f32.mxu0 %v5554_v16  ;;  %9490 = vmatpush3.bf16.msra.mxu1 %v9487_v49  ;;  %v3439_v49 = vld [vmem:[#allocation15 + $0x410] sm:$0xff]  ;;  %v3442_v16 = vld [vmem:[#allocation15 + $0x428] sm:$0xff] }
 0x2f5   : > { %9778 = vmatpush3.bf16.msra.mxu0 %v9775_v52  ;;  %9492 = vmatprep.subr.bf16.mxu1 %v9491_v24  ;;  %v3440_v52 = vld [vmem:[#allocation15 + $0x418] sm:$0xff] }
 0x2f6   : > { %8334 = vmatmul.mubr.f32.gmra.mrb[12].mxu1 %v2808_v36  ;;  %9780 = vmatprep.subr.bf16.mxu0 %v9779_v37  ;;  %v9503_v33 = vpack.c.bf16 %v3440_v52, %v3439_v49  ;;  %v6199_v49 = vld [vmem:[#allocation16 + $0x478] sm:$0xff] }
 0x2f7   : > { %9054 = vmatmul.mubr.f32.gmra.mrb[12].mxu0 %v5555_v40  ;;  %8336 = vmatprep.mubr.f32.mxu1 %v2809_v55  ;;  %v3444_v40 = vld [vmem:[#allocation15 + $0x438] sm:$0xff]  ;;  %v3105_v55 = vld [vmem:[#allocation2 + $0x69] sm:$0xff] }
 0x2f8   : > { %9056 = vmatprep.mubr.f32.mxu0 %v5556_v56  ;;  %9494 = vmatpush3.bf16.msra.mxu1 %v9491_v24  ;;  %v6188_v24 = vld [vmem:[#allocation16 + $0x420] sm:$0xff]  ;;  %v6190_v56 = vld [vmem:[#allocation16 + $0x430] sm:$0xff] }
 0x2f9   : > { %9782 = vmatpush3.bf16.msra.mxu0 %v9779_v37  ;;  %9496 = vmatprep.subr.bf16.mxu1 %v9495_v57  ;;  %v6189_v37 = vld [vmem:[#allocation16 + $0x428] sm:$0xff]  ;;  %v5860_v52 = vld [vmem:[#allocation3 + $0xc9] sm:$0xff] }
 0x2fa   : > { %8337 = vmatmul.mubr.f32.gmra.mrb[14].mxu1 %v2810_v61  ;;  %9784 = vmatprep.subr.bf16.mxu0 %v9783_v41  ;;  %v9795_v2 = vpack.c.bf16 %v6189_v37, %v6188_v24  ;;  %v9511_v61 = vpack.c.bf16 %v3444_v40, %v3443_v53  ;;  %v5865_v24 = vld [vmem:[#allocation3 + $0x109] sm:$0xff]  ;;  %v3119_v37 = vld [vmem:[#allocation2 + $0x111] sm:$0xff]  ;;  %v5869_v40 = vld [vmem:[#allocation3 + $0x139] sm:$0xff] }
 0x2fb   : > { %9057 = vmatmul.mubr.f32.gmra.mrb[14].mxu0 %v5557_v34  ;;  %8339 = vmatprep.mubr.f32.mxu1 %v2811_v1  ;;  %v3446_v34 = vld [vmem:[#allocation15 + $0x448] sm:$0xff]  ;;  %v3122_v53 = vld [vmem:[#allocation2 + $0x139] sm:$0xff] }
 0x2fc   : > { %9059 = vmatprep.mubr.f32.mxu0 %v5558_v44  ;;  %9498 = vmatpush3.bf16.msra.mxu1 %v9495_v57  ;;  %v6191_v57 = vld [vmem:[#allocation16 + $0x438] sm:$0xff]  ;;  %v3107_v1 = vld [vmem:[#allocation2 + $0x81] sm:$0xff] }
 0x2fd   : > { %9786 = vmatpush3.bf16.msra.mxu0 %v9783_v41  ;;  %9500 = vmatprep.subr.bf16.mxu1 %v11891_v39  ;;  %v5852_v41 = vld [vmem:[#allocation3 + $0x69] sm:$0xff]  ;;  %v9799_v43 = vpack.c.bf16 %v6191_v57, %v6190_v56  ;;  %v5870_v56 = vld [vmem:[#allocation3 + $0x141] sm:$0xff] }
 0x2fe   : > { %8340 = vmatmul.mubr.f32.gmra.mrb[16].mxu1 %v2812_v3  ;;  %9788 = vmatprep.subr.bf16.mxu0 %v11893_v45  ;;  %v6192_v44 = vld [vmem:[#allocation16 + $0x440] sm:$0xff]  ;;  %v3108_v3 = vld [vmem:[#allocation2 + $0x91] sm:$0xff] }
 0x2ff   : > { %9060 = vmatmul.mubr.f32.gmra.mrb[16].mxu0 %v5559_v4  ;;  %8342 = vmatprep.mubr.f32.mxu1 %v2813_v5  ;;  %v5855_v4 = vld [vmem:[#allocation3 + $0x91] sm:$0xff]  ;;  %v9515_v5 = vpack.c.bf16 %v3446_v34, %v3445_v0  ;;  %v3124_v57 = vld [vmem:[#allocation2 + $0x151] sm:$0xff] }
 0x300   : > { %9062 = vmatprep.mubr.f32.mxu0 %v5560_v47  ;;  %v3127_v0 = vld [vmem:[#allocation2 + $0x171] sm:$0xff]  ;;  %v5874_v34 = vld [vmem:[#allocation3 + $0x171] sm:$0xff] }
 0x302   : > { %8343 = vmatmul.mubr.f32.gmra.mrb[18].mxu1 %v2814_v50  ;;  %v3447_v50 = vld [vmem:[#allocation15 + $0x450] sm:$0xff] }
 0x303   : > { %9063 = vmatmul.mubr.f32.gmra.mrb[18].mxu0 %v5561_v63  ;;  %8345 = vmatprep.mubr.f32.mxu1 %v2815_v25  ;;  %v3448_v63 = vld [vmem:[#allocation15 + $0x458] sm:$0xff] }
 0x304   : > { %9065 = vmatprep.mubr.f32.mxu0 %v5562_v19  ;;  %v3109_v25 = vld [vmem:[#allocation2 + $0x99] sm:$0xff]  ;;  %v6194_v19 = vld [vmem:[#allocation16 + $0x450] sm:$0xff] }
 0x306   : > { %8346 = vmatmul.mubr.f32.gmra.mrb[20].mxu1 %v2816_v7  ;;  %v6195_v7 = vld [vmem:[#allocation16 + $0x458] sm:$0xff] }
 0x307   : > { %9066 = vmatmul.mubr.f32.gmra.mrb[20].mxu0 %v5563_v51  ;;  %8348 = vmatprep.mubr.f32.mxu1 %v2817_v21  ;;  %v5856_v51 = vld [vmem:[#allocation3 + $0x99] sm:$0xff] }
 0x308   : > { %9068 = vmatprep.mubr.f32.mxu0 %v5564_v20  ;;  %v3110_v21 = vld [vmem:[#allocation2 + $0xa9] sm:$0xff]  ;;  %v5857_v20 = vld [vmem:[#allocation3 + $0xa9] sm:$0xff] }
 0x30a   : > { %8349 = vmatmul.mubr.f32.gmra.mrb[22].mxu1 %v2818_v8  ;;  %v9519_v8 = vpack.c.bf16 %v3448_v63, %v3447_v50  ;;  %v3405_v50 = vld [vmem:[#allocation2 + $0x32] sm:$0xff]  ;;  %v6152_v63 = vld [vmem:[#allocation3 + $0x32] sm:$0xff] }
 0x30b   : > { %9069 = vmatmul.mubr.f32.gmra.mrb[22].mxu0 %v5565_v11  ;;  %8351 = vmatprep.mubr.f32.mxu1 %v2819_v27  ;;  %v9807_v11 = vpack.c.bf16 %v6195_v7, %v6194_v19  ;;  %v3449_v27 = vld [vmem:[#allocation15 + $0x460] sm:$0xff]  ;;  %v6153_v19 = vld [vmem:[#allocation3 + $0x3a] sm:$0xff] }
 0x30c   : > { %9071 = vmatprep.mubr.f32.mxu0 %v5566_v14  ;;  %v3450_v14 = vld [vmem:[#allocation15 + $0x468] sm:$0xff] }
 0x30d   : > { %v3407_v7 = vld [vmem:[#allocation2 + $0x4a] sm:$0xff] }
 0x30e   : > { %8352 = vmatmul.mubr.f32.gmra.mrb[24].mxu1 %v2820_v15  ;;  %v3111_v15 = vld [vmem:[#allocation2 + $0xb1] sm:$0xff] }
 0x30f   : > { %9072 = vmatmul.mubr.f32.gmra.mrb[24].mxu0 %v5567_v17  ;;  %8354 = vmatprep.mubr.f32.mxu1 %v2821_v18  ;;  %v6196_v17 = vld [vmem:[#allocation16 + $0x460] sm:$0xff]  ;;  %v6197_v18 = vld [vmem:[#allocation16 + $0x468] sm:$0xff] }
 0x310   : > { %9074 = vmatprep.mubr.f32.mxu0 %v5568_v22  ;;  %v5858_v22 = vld [vmem:[#allocation3 + $0xb1] sm:$0xff] }
 0x312   : > { %8355 = vmatmul.mubr.f32.gmra.mrb[26].mxu1 %v2822_v23  ;;  %v3112_v23 = vld [vmem:[#allocation2 + $0xc1] sm:$0xff] }
 0x313   : > { %9075 = vmatmul.mubr.f32.gmra.mrb[26].mxu0 %v5569_v26  ;;  %8357 = vmatprep.mubr.f32.mxu1 %v2823_v29  ;;  %v5859_v26 = vld [vmem:[#allocation3 + $0xc1] sm:$0xff]  ;;  %v9523_v29 = vpack.c.bf16 %v3450_v14, %v3449_v27  ;;  %v6157_v14 = vld [vmem:[#allocation3 + $0x6a] sm:$0xff] }
 0x314   : > { %9077 = vmatprep.mubr.f32.mxu0 %v5570_v31  ;;  %v9811_v31 = vpack.c.bf16 %v6197_v18, %v6196_v17  ;;  %v3410_v27 = vld [vmem:[#allocation2 + $0x6a] sm:$0xff]  ;;  %v3412_v18 = vld [vmem:[#allocation2 + $0x82] sm:$0xff] }
 0x315   : > { %v6158_v17 = vld [vmem:[#allocation3 + $0x7a] sm:$0xff] }
 0x316   : > { %8358 = vmatmul.mubr.f32.gmra.mrb[28].mxu1 %v2824_v32  ;;  %v3451_v32 = vld [vmem:[#allocation15 + $0x470] sm:$0xff] }
 0x317   : > { %9078 = vmatmul.mubr.f32.gmra.mrb[28].mxu0 %v5571_v35  ;;  %8360 = vmatprep.mubr.f32.mxu1 %v11864_v10  ;;  %v9791_v10 = vpack.c.bf16 %v6187_v62, %v6186_v60  ;;  %v3452_v35 = vld [vmem:[#allocation15 + $0x478] sm:$0xff]  ;;  %v5861_v60 = vld [vmem:[#allocation3 + $0xd9] sm:$0xff] }
 0x318   : > { %9080 = vmatprep.mubr.f32.mxu0 %v11868_v48  ;;  %v3441_v48 = vld [vmem:[#allocation15 + $0x420] sm:$0xff]  ;;  %v9527_v62 = vpack.c.bf16 %v3452_v35, %v3451_v32  ;;  %v3415_v32 = vld [vmem:[#allocation2 + $0xaa] sm:$0xff] }
 0x319   : > { %v9507_v36 = vpack.c.bf16 %v3442_v16, %v3441_v48  ;;  %v3117_v48 = vld [vmem:[#allocation2 + $0xf9] sm:$0xff]  ;;  %v5864_v16 = vld [vmem:[#allocation3 + $0xf9] sm:$0xff] }
 0x31a   : > { %8361 = vmatmul.mubr.f32.gmra.mrb[30].mxu1 %v11871_v54  ;;  %v3103_v54 = vld [vmem:[#allocation2 + $0x51] sm:$0xff]  ;;  %v6162_v35 = vld [vmem:[#allocation3 + $0xaa] sm:$0xff] }
 0x31b   : > { %9081 = vmatmul.mubr.f32.gmra.mrb[30].mxu0 %v11876_v13  ;;  %8395 = vmatprep.mubr.f32.mxu1 %v3100_v38  ;;  %v5850_v13 = vld [vmem:[#allocation3 + $0x51] sm:$0xff]  ;;  %v3113_v38 = vld [vmem:[#allocation2 + $0xc9] sm:$0xff] }
 0x31c   : > { %9115 = vmatprep.mubr.f32.mxu0 %v5847_v46  ;;  %v6198_v46 = vld [vmem:[#allocation16 + $0x470] sm:$0xff] }
 0x31e   : > { %8396 = vmatmul.mubr.f32.vlgmr.msra.gmra.mrb[0].mxu1 %v3101_v59  ;;  %v3114_v59 = vld [vmem:[#allocation2 + $0xd9] sm:$0xff] }
 0x31f   : > { %9116 = vmatmul.mubr.f32.vlgmr.msra.gmra.mrb[0].mxu0 %v5848_v6  ;;  %9502 = vmatpush3.bf16.msra.mxu1 %v11891_v39  ;;  %v6193_v39 = vld [vmem:[#allocation16 + $0x448] sm:$0xff]  ;;  %v9815_v6 = vpack.c.bf16 %v6199_v49, %v6198_v46 }
 0x320   : > { %8398 = vmatprep.mubr.f32.mxu1 %v3102_v9  ;;  %9118 = vmatprep.mubr.f32.mxu0 %v5849_v12  ;;  %v9803_v47 = vpack.c.bf16 %v6193_v39, %v6192_v44  ;;  %v3115_v9 = vld [vmem:[#allocation2 + $0xe1] sm:$0xff]  ;;  %v5862_v12 = vld [vmem:[#allocation3 + $0xe1] sm:$0xff]  ;;  %v3129_v39 = vld [vmem:[#allocation2 + $0x189] sm:$0xff] }
 0x321   : > { %9790 = vmatpush3.bf16.msra.mxu0 %v11893_v45  ;;  %9504 = vmatprep.subr.bf16.mxu1 %v9503_v33  ;;  %v5854_v45 = vld [vmem:[#allocation3 + $0x81] sm:$0xff]  ;;  %v6163_v46 = vld [vmem:[#allocation3 + $0xb2] sm:$0xff] }
 0x322   : > { %8399 = vmatmul.mubr.f32.gmra.mrb[2].mxu1 %v3103_v54  ;;  %9792 = vmatprep.subr.bf16.mxu0 %v9791_v10  ;;  %v3118_v54 = vld [vmem:[#allocation2 + $0x109] sm:$0xff]  ;;  %v5875_v44 = vld [vmem:[#allocation3 + $0x181] sm:$0xff] }
 0x323   : > { %9119 = vmatmul.mubr.f32.gmra.mrb[2].mxu0 %v5850_v13  ;;  %8401 = vmatprep.mubr.f32.mxu1 %v3104_v28  ;;  %v5866_v13 = vld [vmem:[#allocation3 + $0x111] sm:$0xff] }
 0x324   : > { %9121 = vmatprep.mubr.f32.mxu0 %v5851_v42  ;;  %9506 = vmatpush3.bf16.msra.mxu1 %v9503_v33  ;;  %v3116_v33 = vld [vmem:[#allocation2 + $0xf1] sm:$0xff]  ;;  %v3120_v28 = vld [vmem:[#allocation2 + $0x121] sm:$0xff] }
 0x325   : > { %9794 = vmatpush3.bf16.msra.mxu0 %v9791_v10  ;;  %9508 = vmatprep.subr.bf16.mxu1 %v9507_v36  ;;  %v5863_v10 = vld [vmem:[#allocation3 + $0xf1] sm:$0xff]  ;;  %v5867_v42 = vld [vmem:[#allocation3 + $0x121] sm:$0xff] }
 0x326   : > { %8402 = vmatmul.mubr.f32.gmra.mrb[4].mxu1 %v3105_v55  ;;  %9796 = vmatprep.subr.bf16.mxu0 %v9795_v2  ;;  %v3123_v55 = vld [vmem:[#allocation2 + $0x141] sm:$0xff] }
 0x327   : > { %9122 = vmatmul.mubr.f32.gmra.mrb[4].mxu0 %v5852_v41  ;;  %8404 = vmatprep.mubr.f32.mxu1 %v3106_v30  ;;  %v5871_v41 = vld [vmem:[#allocation3 + $0x151] sm:$0xff]  ;;  %v3125_v30 = vld [vmem:[#allocation2 + $0x159] sm:$0xff] }
 0x328   : > { %9124 = vmatprep.mubr.f32.mxu0 %v5853_v58  ;;  %9510 = vmatpush3.bf16.msra.mxu1 %v9507_v36  ;;  %v3121_v36 = vld [vmem:[#allocation2 + $0x129] sm:$0xff] }
 0x329   : > { %9798 = vmatpush3.bf16.msra.mxu0 %v9795_v2  ;;  %9512 = vmatprep.subr.bf16.mxu1 %v9511_v61  ;;  %v5868_v2 = vld [vmem:[#allocation3 + $0x129] sm:$0xff]  ;;  %v5872_v58 = vld [vmem:[#allocation3 + $0x159] sm:$0xff] }
 0x32a   : > { %8405 = vmatmul.mubr.f32.gmra.mrb[6].mxu1 %v3107_v1  ;;  %9800 = vmatprep.subr.bf16.mxu0 %v9799_v43  ;;  %v3128_v1 = vld [vmem:[#allocation2 + $0x181] sm:$0xff] }
 0x32b   : > { %9125 = vmatmul.mubr.f32.gmra.mrb[6].mxu0 %v5854_v45  ;;  %8407 = vmatprep.mubr.f32.mxu1 %v3108_v3  ;;  %v5876_v45 = vld [vmem:[#allocation3 + $0x189] sm:$0xff]  ;;  %v3417_v49 = vld [vmem:[#allocation2 + $0xc2] sm:$0xff] }
 0x32c   : > { %9127 = vmatprep.mubr.f32.mxu0 %v5855_v4  ;;  %9514 = vmatpush3.bf16.msra.mxu1 %v9511_v61  ;;  %v3126_v61 = vld [vmem:[#allocation2 + $0x169] sm:$0xff]  ;;  %v3130_v3 = vld [vmem:[#allocation2 + $0x199] sm:$0xff] }
 0x32d   : > { %9802 = vmatpush3.bf16.msra.mxu0 %v9799_v43  ;;  %9516 = vmatprep.subr.bf16.mxu1 %v9515_v5  ;;  %v5873_v43 = vld [vmem:[#allocation3 + $0x169] sm:$0xff]  ;;  %v5877_v4 = vld [vmem:[#allocation3 + $0x199] sm:$0xff] }
 0x32e   : > { %8408 = vmatmul.mubr.f32.gmra.mrb[8].mxu1 %v3109_v25  ;;  %9804 = vmatprep.subr.bf16.mxu0 %v9803_v47  ;;  %v3406_v25 = vld [vmem:[#allocation2 + $0x3a] sm:$0xff] }
 0x32f   : > { %9128 = vmatmul.mubr.f32.gmra.mrb[8].mxu0 %v5856_v51  ;;  %8410 = vmatprep.mubr.f32.mxu1 %v3110_v21  ;;  %v6154_v51 = vld [vmem:[#allocation3 + $0x4a] sm:$0xff]  ;;  %v3408_v21 = vld [vmem:[#allocation2 + $0x52] sm:$0xff] }
 0x330   : > { %9130 = vmatprep.mubr.f32.mxu0 %v5857_v20  ;;  %9518 = vmatpush3.bf16.msra.mxu1 %v9515_v5  ;;  %v3131_v5 = vld [vmem:[#allocation2 + $0x1a1] sm:$0xff] }
 0x331   : > { %9806 = vmatpush3.bf16.msra.mxu0 %v9803_v47  ;;  %9520 = vmatprep.subr.bf16.mxu1 %v9519_v8  ;;  %v5878_v47 = vld [vmem:[#allocation3 + $0x1a1] sm:$0xff]  ;;  %v6155_v20 = vld [vmem:[#allocation3 + $0x52] sm:$0xff] }
 0x332   : > { %8411 = vmatmul.mubr.f32.gmra.mrb[10].mxu1 %v3111_v15  ;;  %9808 = vmatprep.subr.bf16.mxu0 %v9807_v11  ;;  %v3411_v15 = vld [vmem:[#allocation2 + $0x7a] sm:$0xff] }
 0x333   : > { %9131 = vmatmul.mubr.f32.gmra.mrb[10].mxu0 %v5858_v22  ;;  %8413 = vmatprep.mubr.f32.mxu1 %v3112_v23  ;;  %v6159_v22 = vld [vmem:[#allocation3 + $0x82] sm:$0xff] }
 0x334   : > { %9133 = vmatprep.mubr.f32.mxu0 %v5859_v26  ;;  %9522 = vmatpush3.bf16.msra.mxu1 %v9519_v8  ;;  %v3409_v8 = vld [vmem:[#allocation2 + $0x62] sm:$0xff]  ;;  %v3413_v23 = vld [vmem:[#allocation2 + $0x92] sm:$0xff] }
 0x335   : > { %9810 = vmatpush3.bf16.msra.mxu0 %v9807_v11  ;;  %9524 = vmatprep.subr.bf16.mxu1 %v9523_v29  ;;  %v6156_v11 = vld [vmem:[#allocation3 + $0x62] sm:$0xff]  ;;  %v6160_v26 = vld [vmem:[#allocation3 + $0x92] sm:$0xff] }
 0x336   : > { %8414 = vmatmul.mubr.f32.gmra.mrb[12].mxu1 %v3113_v38  ;;  %9812 = vmatprep.subr.bf16.mxu0 %v9811_v31  ;;  %v3416_v38 = vld [vmem:[#allocation2 + $0xb2] sm:$0xff] }
 0x337   : > { %9134 = vmatmul.mubr.f32.gmra.mrb[12].mxu0 %v5860_v52  ;;  %8416 = vmatprep.mubr.f32.mxu1 %v3114_v59  ;;  %v6164_v52 = vld [vmem:[#allocation3 + $0xc2] sm:$0xff]  ;;  %v3418_v59 = vld [vmem:[#allocation2 + $0xca] sm:$0xff] }
 0x338   : > { %9136 = vmatprep.mubr.f32.mxu0 %v5861_v60  ;;  %9526 = vmatpush3.bf16.msra.mxu1 %v9523_v29  ;;  %v3414_v29 = vld [vmem:[#allocation2 + $0x9a] sm:$0xff] }
 0x339   : > { %9814 = vmatpush3.bf16.msra.mxu0 %v9811_v31  ;;  %9528 = vmatprep.subr.bf16.mxu1 %v9527_v62  ;;  %v6161_v31 = vld [vmem:[#allocation3 + $0x9a] sm:$0xff]  ;;  %v6165_v60 = vld [vmem:[#allocation3 + $0xca] sm:$0xff] }
 0x33a   : > { %8417 = vmatmul.mubr.f32.gmra.mrb[14].mxu1 %v3115_v9  ;;  %9816 = vmatprep.subr.bf16.mxu0 %v9815_v6  ;;  %v3420_v9 = vld [vmem:[#allocation2 + $0xe2] sm:$0xff] }
 0x33b   : > { %9137 = vmatmul.mubr.f32.gmra.mrb[14].mxu0 %v5862_v12  ;;  %8419 = vmatprep.mubr.f32.mxu1 %v3116_v33  ;;  %v6167_v12 = vld [vmem:[#allocation3 + $0xe2] sm:$0xff] }
 0x33c   : > { %9139 = vmatprep.mubr.f32.mxu0 %v5863_v10  ;;  %9530 = vmatpush3.bf16.msra.mxu1 %v9527_v62  ;;  %v3419_v62 = vld [vmem:[#allocation2 + $0xda] sm:$0xff]  ;;  %v3421_v33 = vld [vmem:[#allocation2 + $0xf2] sm:$0xff]  ;;  %v6168_v10 = vld [vmem:[#allocation3 + $0xf2] sm:$0xff] }
 0x33d   : > { %9818 = vmatpush3.bf16.msra.mxu0 %v9815_v6  ;;  %v6166_v6 = vld [vmem:[#allocation3 + $0xda] sm:$0xff] }
 0x33e   : > { %8420 = vmatmul.mubr.f32.gmra.mrb[16].mxu1 %v3117_v48  ;;  %v3422_v48 = vld [vmem:[#allocation2 + $0xfa] sm:$0xff] }
 0x33f   : > { %9140 = vmatmul.mubr.f32.gmra.mrb[16].mxu0 %v5864_v16  ;;  %8422 = vmatprep.mubr.f32.mxu1 %v3118_v54  ;;  %v6169_v16 = vld [vmem:[#allocation3 + $0xfa] sm:$0xff] }
 0x340   : > { %9142 = vmatprep.mubr.f32.mxu0 %v5865_v24  ;;  %v3423_v54 = vld [vmem:[#allocation2 + $0x10a] sm:$0xff]  ;;  %v6170_v24 = vld [vmem:[#allocation3 + $0x10a] sm:$0xff] }
 0x342   : > { %8423 = vmatmul.mubr.f32.gmra.mrb[18].mxu1 %v3119_v37  ;;  %v3424_v37 = vld [vmem:[#allocation2 + $0x112] sm:$0xff] }
 0x343   : > { %9143 = vmatmul.mubr.f32.gmra.mrb[18].mxu0 %v5866_v13  ;;  %8425 = vmatprep.mubr.f32.mxu1 %v3120_v28  ;;  %v6171_v13 = vld [vmem:[#allocation3 + $0x112] sm:$0xff] }
 0x344   : > { %9145 = vmatprep.mubr.f32.mxu0 %v5867_v42  ;;  %v3425_v28 = vld [vmem:[#allocation2 + $0x122] sm:$0xff]  ;;  %v6172_v42 = vld [vmem:[#allocation3 + $0x122] sm:$0xff] }
 0x346   : > { %8426 = vmatmul.mubr.f32.gmra.mrb[20].mxu1 %v3121_v36  ;;  %v3426_v36 = vld [vmem:[#allocation2 + $0x12a] sm:$0xff] }
 0x347   : > { %9146 = vmatmul.mubr.f32.gmra.mrb[20].mxu0 %v5868_v2  ;;  %8428 = vmatprep.mubr.f32.mxu1 %v3122_v53  ;;  %v6173_v2 = vld [vmem:[#allocation3 + $0x12a] sm:$0xff] }
 0x348   : > { %9148 = vmatprep.mubr.f32.mxu0 %v5869_v40  ;;  %v3427_v53 = vld [vmem:[#allocation2 + $0x13a] sm:$0xff]  ;;  %v6174_v40 = vld [vmem:[#allocation3 + $0x13a] sm:$0xff] }
 0x34a   : > { %8429 = vmatmul.mubr.f32.gmra.mrb[22].mxu1 %v3123_v55  ;;  %v3428_v55 = vld [vmem:[#allocation2 + $0x142] sm:$0xff] }
 0x34b   : > { %9149 = vmatmul.mubr.f32.gmra.mrb[22].mxu0 %v5870_v56  ;;  %8431 = vmatprep.mubr.f32.mxu1 %v3124_v57  ;;  %v6175_v56 = vld [vmem:[#allocation3 + $0x142] sm:$0xff] }
 0x34c   : > { %9151 = vmatprep.mubr.f32.mxu0 %v5871_v41  ;;  %v3429_v57 = vld [vmem:[#allocation2 + $0x152] sm:$0xff]  ;;  %v6176_v41 = vld [vmem:[#allocation3 + $0x152] sm:$0xff] }
 0x34e   : > { %8432 = vmatmul.mubr.f32.gmra.mrb[24].mxu1 %v3125_v30  ;;  %v3430_v30 = vld [vmem:[#allocation2 + $0x15a] sm:$0xff] }
 0x34f   : > { %9152 = vmatmul.mubr.f32.gmra.mrb[24].mxu0 %v5872_v58  ;;  %8434 = vmatprep.mubr.f32.mxu1 %v3126_v61  ;;  %v6177_v58 = vld [vmem:[#allocation3 + $0x15a] sm:$0xff] }
 0x350   : > { %9154 = vmatprep.mubr.f32.mxu0 %v5873_v43  ;;  %v3431_v61 = vld [vmem:[#allocation2 + $0x16a] sm:$0xff]  ;;  %v6178_v43 = vld [vmem:[#allocation3 + $0x16a] sm:$0xff] }
 0x352   : > { %8435 = vmatmul.mubr.f32.gmra.mrb[26].mxu1 %v3127_v0  ;;  %v3432_v0 = vld [vmem:[#allocation2 + $0x172] sm:$0xff] }
 0x353   : > { %9155 = vmatmul.mubr.f32.gmra.mrb[26].mxu0 %v5874_v34  ;;  %8437 = vmatprep.mubr.f32.mxu1 %v3128_v1  ;;  %v6179_v34 = vld [vmem:[#allocation3 + $0x172] sm:$0xff] }
 0x354   : > { %9157 = vmatprep.mubr.f32.mxu0 %v5875_v44  ;;  %v3433_v1 = vld [vmem:[#allocation2 + $0x182] sm:$0xff]  ;;  %v6180_v44 = vld [vmem:[#allocation3 + $0x182] sm:$0xff] }
 0x356   : > { %8438 = vmatmul.mubr.f32.gmra.mrb[28].mxu1 %v3129_v39  ;;  %v3434_v39 = vld [vmem:[#allocation2 + $0x18a] sm:$0xff] }
 0x357   : > { %9158 = vmatmul.mubr.f32.gmra.mrb[28].mxu0 %v5876_v45  ;;  %8440 = vmatprep.mubr.f32.mxu1 %v3130_v3  ;;  %v6181_v45 = vld [vmem:[#allocation3 + $0x18a] sm:$0xff] }
 0x358   : > { %9160 = vmatprep.mubr.f32.mxu0 %v5877_v4  ;;  %v3435_v3 = vld [vmem:[#allocation2 + $0x19a] sm:$0xff]  ;;  %v6182_v4 = vld [vmem:[#allocation3 + $0x19a] sm:$0xff] }
 0x35a   : > { %8441 = vmatmul.mubr.f32.gmra.mrb[30].mxu1 %v3131_v5  ;;  %v3436_v5 = vld [vmem:[#allocation2 + $0x1a2] sm:$0xff] }
 0x35b   : > { %9161 = vmatmul.mubr.f32.gmra.mrb[30].mxu0 %v5878_v47  ;;  %8475 = vmatprep.mubr.f32.mxu1 %v3405_v50  ;;  %v6183_v47 = vld [vmem:[#allocation3 + $0x1a2] sm:$0xff]  ;;  %v11903_v50 = vld [vmem:[#allocation18] ss:$0 sm:$0xff] }
 0x35c   : > { %9195 = vmatprep.mubr.f32.mxu0 %v6152_v63 }
 0x35e   : > { %8476 = vmatmul.mubr.f32.vlgmr.msra.gmra.mrb[0].mxu1 %v3406_v25 }
 0x35f   : > { %9196 = vmatmul.mubr.f32.vlgmr.msra.gmra.mrb[0].mxu0 %v6153_v19  ;;  %8478 = vmatprep.mubr.f32.mxu1 %v3407_v7 }
 0x360   : > { %9198 = vmatprep.mubr.f32.mxu0 %v6154_v51 }
 0x362   : > { %8479 = vmatmul.mubr.f32.gmra.mrb[2].mxu1 %v3408_v21 }
 0x363   : > { %9199 = vmatmul.mubr.f32.gmra.mrb[2].mxu0 %v6155_v20  ;;  %8481 = vmatprep.mubr.f32.mxu1 %v3409_v8 }
 0x364   : > { %9201 = vmatprep.mubr.f32.mxu0 %v6156_v11 }
 0x366   : > { %8482 = vmatmul.mubr.f32.gmra.mrb[4].mxu1 %v3410_v27 }
 0x367   : > { %9202 = vmatmul.mubr.f32.gmra.mrb[4].mxu0 %v6157_v14  ;;  %8484 = vmatprep.mubr.f32.mxu1 %v3411_v15 }
 0x368   : > { %9204 = vmatprep.mubr.f32.mxu0 %v6158_v17 }
 0x36a   : > { %8485 = vmatmul.mubr.f32.gmra.mrb[6].mxu1 %v3412_v18 }
 0x36b   : > { %9205 = vmatmul.mubr.f32.gmra.mrb[6].mxu0 %v6159_v22  ;;  %8487 = vmatprep.mubr.f32.mxu1 %v3413_v23 }
 0x36c   : > { %9207 = vmatprep.mubr.f32.mxu0 %v6160_v26 }
 0x36e   : > { %8488 = vmatmul.mubr.f32.gmra.mrb[8].mxu1 %v3414_v29 }
 0x36f   : > { %9208 = vmatmul.mubr.f32.gmra.mrb[8].mxu0 %v6161_v31  ;;  %8490 = vmatprep.mubr.f32.mxu1 %v3415_v32 }
 0x370   : > { %9210 = vmatprep.mubr.f32.mxu0 %v6162_v35 }
 0x372   : > { %8491 = vmatmul.mubr.f32.gmra.mrb[10].mxu1 %v3416_v38 }
 0x373   : > { %9211 = vmatmul.mubr.f32.gmra.mrb[10].mxu0 %v6163_v46  ;;  %8493 = vmatprep.mubr.f32.mxu1 %v3417_v49 }
 0x374   : > { %9213 = vmatprep.mubr.f32.mxu0 %v6164_v52 }
 0x376   : > { %8494 = vmatmul.mubr.f32.gmra.mrb[12].mxu1 %v3418_v59 }
 0x377   : > { %9214 = vmatmul.mubr.f32.gmra.mrb[12].mxu0 %v6165_v60  ;;  %8496 = vmatprep.mubr.f32.mxu1 %v3419_v62 }
 0x378   : > { %9216 = vmatprep.mubr.f32.mxu0 %v6166_v6 }
 0x37a   : > { %8497 = vmatmul.mubr.f32.gmra.mrb[14].mxu1 %v3420_v9 }
 0x37b   : > { %9217 = vmatmul.mubr.f32.gmra.mrb[14].mxu0 %v6167_v12  ;;  %8499 = vmatprep.mubr.f32.mxu1 %v3421_v33 }
 0x37c   : > { %9219 = vmatprep.mubr.f32.mxu0 %v6168_v10 }
 0x37e   : > { %8500 = vmatmul.mubr.f32.gmra.mrb[16].mxu1 %v3422_v48 }
 0x37f   : > { %9220 = vmatmul.mubr.f32.gmra.mrb[16].mxu0 %v6169_v16  ;;  %8502 = vmatprep.mubr.f32.mxu1 %v3423_v54 }
 0x380   : > { %9222 = vmatprep.mubr.f32.mxu0 %v6170_v24 }
 0x382   : > { %8503 = vmatmul.mubr.f32.gmra.mrb[18].mxu1 %v3424_v37 }
 0x383   : > { %9223 = vmatmul.mubr.f32.gmra.mrb[18].mxu0 %v6171_v13  ;;  %8505 = vmatprep.mubr.f32.mxu1 %v3425_v28 }
 0x384   : > { %9225 = vmatprep.mubr.f32.mxu0 %v6172_v42 }
 0x386   : > { %8506 = vmatmul.mubr.f32.gmra.mrb[20].mxu1 %v3426_v36 }
 0x387   : > { %9226 = vmatmul.mubr.f32.gmra.mrb[20].mxu0 %v6173_v2  ;;  %8508 = vmatprep.mubr.f32.mxu1 %v3427_v53 }
 0x388   : > { %9228 = vmatprep.mubr.f32.mxu0 %v6174_v40 }
 0x38a   : > { %8509 = vmatmul.mubr.f32.gmra.mrb[22].mxu1 %v3428_v55 }
 0x38b   : > { %9229 = vmatmul.mubr.f32.gmra.mrb[22].mxu0 %v6175_v56  ;;  %8511 = vmatprep.mubr.f32.mxu1 %v3429_v57 }
 0x38c   : > { %9231 = vmatprep.mubr.f32.mxu0 %v6176_v41 }
 0x38e   : > { %8512 = vmatmul.mubr.f32.gmra.mrb[24].mxu1 %v3430_v30 }
 0x38f   : > { %9232 = vmatmul.mubr.f32.gmra.mrb[24].mxu0 %v6177_v58  ;;  %8514 = vmatprep.mubr.f32.mxu1 %v3431_v61 }
 0x390   : > { %9234 = vmatprep.mubr.f32.mxu0 %v6178_v43 }
 0x392   : > { %8515 = vmatmul.mubr.f32.gmra.mrb[26].mxu1 %v3432_v0 }
 0x393   : > { %9235 = vmatmul.mubr.f32.gmra.mrb[26].mxu0 %v6179_v34  ;;  %8517 = vmatprep.mubr.f32.mxu1 %v3433_v1 }
 0x394   : > { %9237 = vmatprep.mubr.f32.mxu0 %v6180_v44 }
 0x396   : > { %8518 = vmatmul.mubr.f32.gmra.mrb[28].mxu1 %v3434_v39 }
 0x397   : > { %9238 = vmatmul.mubr.f32.gmra.mrb[28].mxu0 %v6181_v45  ;;  %8520 = vmatprep.mubr.f32.mxu1 %v3435_v3 }
 0x398   : > { %9240 = vmatprep.mubr.f32.mxu0 %v6182_v4 }
 0x39a   : > { %8521 = vmatmul.mubr.f32.gmra.mrb[30].mxu1 %v3436_v5 }
 0x39b   : > { %9241 = vmatmul.mubr.f32.gmra.mrb[30].mxu0 %v6183_v47 }
 0x431   : > { %v8477_v63 = vpop.f32.mrb[0].mxu1 }
 0x432   : > { %v9819_v25 = vadd.f32 %v8477_v63, %v11903_v50  ;;  %v9197_v19 = vpop.f32.mrb[0].mxu0  ;;  %v3519_v7 = vpop.f32.mrb[1].mxu1 }
 0x433   : > { %v9821_v51 = vadd.f32 %v11903_v50, %v3519_v7  ;;  %v6266_v21 = vpop.f32.mrb[1].mxu0 }
 0x434   : > { %v9820_v20 = vadd.f32 %v9819_v25, %v9197_v19 }
 0x435   : > { %v9822_v8 = vadd.f32 %v9821_v51, %v6266_v21  ;;  %v8480_v11 = vpop.f32.mrb[2].mxu1 }
 0x436   : > { %6458 = vst [vmem:[%s11908_s18 + $0x8] sm:$0xff] %v9820_v20  ;;  %v6528_v27 = vmul.f32 %v9820_v20, %v9820_v20  ;;  %v9823_v14 = vadd.f32 %v8480_v11, %v11903_v50  ;;  %v9200_v15 = vpop.f32.mrb[2].mxu0  ;;  %v3529_v17 = vpop.f32.mrb[3].mxu1 }
 0x437   : > { %6457 = vst [vmem:[%s11908_s18] sm:$0xff] %v9822_v8  ;;  %v6489_v18 = vadd.f32 %v9822_v8, %v9820_v20  ;;  %v6527_v22 = vmul.f32 %v9822_v8, %v9822_v8  ;;  %v9825_v23 = vadd.f32 %v11903_v50, %v3529_v17  ;;  %v6276_v26 = vpop.f32.mrb[3].mxu0 }
 0x438   : > { %v9824_v29 = vadd.f32 %v9823_v14, %v9200_v15 }
 0x439   : > { %v6559_v31 = vadd.f32 %v6528_v27, %v6527_v22  ;;  %v9826_v32 = vadd.f32 %v9825_v23, %v6276_v26  ;;  %v8483_v35 = vpop.f32.mrb[4].mxu1 }
 0x43a   : > { %6460 = vst [vmem:[%s11908_s18 + $0x18] sm:$0xff] %v9824_v29  ;;  %v9827_v38 = vadd.f32 %v8483_v35, %v11903_v50  ;;  %v9203_v46 = vpop.f32.mrb[4].mxu0  ;;  %v3539_v49 = vpop.f32.mrb[5].mxu1  ;;  %v6530_v9 = vmul.f32 %v9824_v29, %v9824_v29 }
 0x43b   : > { %6459 = vst [vmem:[%s11908_s18 + $0x10] sm:$0xff] %v9826_v32  ;;  %v6490_v52 = vadd.f32 %v9826_v32, %v6489_v18  ;;  %v6529_v59 = vmul.f32 %v9826_v32, %v9826_v32  ;;  %v9829_v60 = vadd.f32 %v11903_v50, %v3539_v49  ;;  %v6286_v62 = vpop.f32.mrb[5].mxu0 }
 0x43c   : > { %v9828_v6 = vadd.f32 %v9827_v38, %v9203_v46 }
 0x43d   : > { %v6560_v12 = vadd.f32 %v6559_v31, %v6529_v59  ;;  %v9830_v33 = vadd.f32 %v9829_v60, %v6286_v62  ;;  %v6491_v10 = vadd.f32 %v9824_v29, %v6490_v52  ;;  %v8486_v48 = vpop.f32.mrb[6].mxu1 }
 0x43e   : > { %6462 = vst [vmem:[%s11908_s18 + $0x28] sm:$0xff] %v9828_v6  ;;  %v9831_v16 = vadd.f32 %v8486_v48, %v11903_v50  ;;  %v9206_v54 = vpop.f32.mrb[6].mxu0  ;;  %v3549_v24 = vpop.f32.mrb[7].mxu1  ;;  %v6532_v53 = vmul.f32 %v9828_v6, %v9828_v6 }
 0x43f   : > { %6461 = vst [vmem:[%s11908_s18 + $0x20] sm:$0xff] %v9830_v33  ;;  %v6492_v37 = vadd.f32 %v9830_v33, %v6491_v10  ;;  %v6531_v13 = vmul.f32 %v9830_v33, %v9830_v33  ;;  %v6561_v28 = vadd.f32 %v6560_v12, %v6530_v9  ;;  %v9833_v42 = vadd.f32 %v11903_v50, %v3549_v24  ;;  %v6296_v36 = vpop.f32.mrb[7].mxu0 }
 0x440   : > { %v9832_v2 = vadd.f32 %v9831_v16, %v9206_v54 }
 0x441   : > { %v6562_v40 = vadd.f32 %v6561_v28, %v6531_v13  ;;  %v9834_v55 = vadd.f32 %v9833_v42, %v6296_v36  ;;  %v6493_v56 = vadd.f32 %v9828_v6, %v6492_v37  ;;  %v8489_v57 = vpop.f32.mrb[8].mxu1 }
 0x442   : > { %6464 = vst [vmem:[%s11908_s18 + $0x38] sm:$0xff] %v9832_v2  ;;  %v9835_v41 = vadd.f32 %v8489_v57, %v11903_v50  ;;  %v9209_v30 = vpop.f32.mrb[8].mxu0  ;;  %v3559_v58 = vpop.f32.mrb[9].mxu1  ;;  %v6534_v39 = vmul.f32 %v9832_v2, %v9832_v2 }
 0x443   : > { %6463 = vst [vmem:[%s11908_s18 + $0x30] sm:$0xff] %v9834_v55  ;;  %v6494_v61 = vadd.f32 %v9834_v55, %v6493_v56  ;;  %v6533_v43 = vmul.f32 %v9834_v55, %v9834_v55  ;;  %v6563_v0 = vadd.f32 %v6562_v40, %v6532_v53  ;;  %v9837_v34 = vadd.f32 %v11903_v50, %v3559_v58  ;;  %v6306_v1 = vpop.f32.mrb[9].mxu0 }
 0x444   : > { %v9836_v44 = vadd.f32 %v9835_v41, %v9209_v30 }
 0x445   : > { %v6564_v45 = vadd.f32 %v6563_v0, %v6533_v43  ;;  %v9838_v3 = vadd.f32 %v9837_v34, %v6306_v1  ;;  %v6495_v4 = vadd.f32 %v9832_v2, %v6494_v61  ;;  %v8492_v5 = vpop.f32.mrb[10].mxu1 }
 0x446   : > { %6466 = vst [vmem:[%s11908_s18 + $0x48] sm:$0xff] %v9836_v44  ;;  %v9839_v47 = vadd.f32 %v8492_v5, %v11903_v50  ;;  %v9212_v63 = vpop.f32.mrb[10].mxu0  ;;  %v3569_v25 = vpop.f32.mrb[11].mxu1  ;;  %v6536_v11 = vmul.f32 %v9836_v44, %v9836_v44 }
 0x447   : > { %6465 = vst [vmem:[%s11908_s18 + $0x40] sm:$0xff] %v9838_v3  ;;  %v6496_v19 = vadd.f32 %v9838_v3, %v6495_v4  ;;  %v6535_v7 = vmul.f32 %v9838_v3, %v9838_v3  ;;  %v6565_v51 = vadd.f32 %v6564_v45, %v6534_v39  ;;  %v9841_v21 = vadd.f32 %v11903_v50, %v3569_v25  ;;  %v6316_v20 = vpop.f32.mrb[11].mxu0 }
 0x448   : > { %v9840_v8 = vadd.f32 %v9839_v47, %v9212_v63 }
 0x449   : > { %v6566_v27 = vadd.f32 %v6565_v51, %v6535_v7  ;;  %v9842_v14 = vadd.f32 %v9841_v21, %v6316_v20  ;;  %v6497_v15 = vadd.f32 %v9836_v44, %v6496_v19  ;;  %v8495_v17 = vpop.f32.mrb[12].mxu1 }
 0x44a   : > { %6468 = vst [vmem:[%s11908_s18 + $0x58] sm:$0xff] %v9840_v8  ;;  %v9843_v18 = vadd.f32 %v8495_v17, %v11903_v50  ;;  %v9215_v22 = vpop.f32.mrb[12].mxu0  ;;  %v3579_v23 = vpop.f32.mrb[13].mxu1  ;;  %v6538_v46 = vmul.f32 %v9840_v8, %v9840_v8 }
 0x44b   : > { %6467 = vst [vmem:[%s11908_s18 + $0x50] sm:$0xff] %v9842_v14  ;;  %v6498_v26 = vadd.f32 %v9842_v14, %v6497_v15  ;;  %v6537_v29 = vmul.f32 %v9842_v14, %v9842_v14  ;;  %v6567_v31 = vadd.f32 %v6566_v27, %v6536_v11  ;;  %v9845_v32 = vadd.f32 %v11903_v50, %v3579_v23  ;;  %v6326_v35 = vpop.f32.mrb[13].mxu0 }
 0x44c   : > { %v9844_v38 = vadd.f32 %v9843_v18, %v9215_v22 }
 0x44d   : > { %v6568_v49 = vadd.f32 %v6567_v31, %v6537_v29  ;;  %v9846_v52 = vadd.f32 %v9845_v32, %v6326_v35  ;;  %v6499_v59 = vadd.f32 %v9840_v8, %v6498_v26  ;;  %v8498_v60 = vpop.f32.mrb[14].mxu1 }
 0x44e   : > { %6470 = vst [vmem:[%s11908_s18 + $0x68] sm:$0xff] %v9844_v38  ;;  %v9847_v62 = vadd.f32 %v8498_v60, %v11903_v50  ;;  %v9218_v6 = vpop.f32.mrb[14].mxu0  ;;  %v3589_v9 = vpop.f32.mrb[15].mxu1  ;;  %v6540_v24 = vmul.f32 %v9844_v38, %v9844_v38 }
 0x44f   : > { %6469 = vst [vmem:[%s11908_s18 + $0x60] sm:$0xff] %v9846_v52  ;;  %v6500_v12 = vadd.f32 %v9846_v52, %v6499_v59  ;;  %v6539_v33 = vmul.f32 %v9846_v52, %v9846_v52  ;;  %v6569_v10 = vadd.f32 %v6568_v49, %v6538_v46  ;;  %v9849_v48 = vadd.f32 %v11903_v50, %v3589_v9  ;;  %v6336_v16 = vpop.f32.mrb[15].mxu0 }
 0x450   : > { %v9848_v54 = vadd.f32 %v9847_v62, %v9218_v6 }
 0x451   : > { %v6570_v37 = vadd.f32 %v6569_v10, %v6539_v33  ;;  %v9850_v13 = vadd.f32 %v9849_v48, %v6336_v16  ;;  %v6501_v28 = vadd.f32 %v9844_v38, %v6500_v12  ;;  %v8501_v42 = vpop.f32.mrb[16].mxu1 }
 0x452   : > { %6472 = vst [vmem:[%s11908_s18 + $0x78] sm:$0xff] %v9848_v54  ;;  %v9851_v36 = vadd.f32 %v8501_v42, %v11903_v50  ;;  %v9221_v2 = vpop.f32.mrb[16].mxu0  ;;  %v3599_v53 = vpop.f32.mrb[17].mxu1  ;;  %v6542_v58 = vmul.f32 %v9848_v54, %v9848_v54 }
 0x453   : > { %6471 = vst [vmem:[%s11908_s18 + $0x70] sm:$0xff] %v9850_v13  ;;  %v6502_v40 = vadd.f32 %v9850_v13, %v6501_v28  ;;  %v6541_v55 = vmul.f32 %v9850_v13, %v9850_v13  ;;  %v6571_v56 = vadd.f32 %v6570_v37, %v6540_v24  ;;  %v9853_v57 = vadd.f32 %v11903_v50, %v3599_v53  ;;  %v6346_v41 = vpop.f32.mrb[17].mxu0 }
 0x454   : > { %v9852_v30 = vadd.f32 %v9851_v36, %v9221_v2 }
 0x455   : > { %v6572_v61 = vadd.f32 %v6571_v56, %v6541_v55  ;;  %v9854_v43 = vadd.f32 %v9853_v57, %v6346_v41  ;;  %v6503_v0 = vadd.f32 %v9848_v54, %v6502_v40  ;;  %v8504_v34 = vpop.f32.mrb[18].mxu1 }
 0x456   : > { %6474 = vst [vmem:[%s11908_s18 + $0x88] sm:$0xff] %v9852_v30  ;;  %v9855_v1 = vadd.f32 %v8504_v34, %v11903_v50  ;;  %v9224_v44 = vpop.f32.mrb[18].mxu0  ;;  %v3609_v39 = vpop.f32.mrb[19].mxu1  ;;  %v6544_v25 = vmul.f32 %v9852_v30, %v9852_v30 }
 0x457   : > { %6473 = vst [vmem:[%s11908_s18 + $0x80] sm:$0xff] %v9854_v43  ;;  %v6504_v45 = vadd.f32 %v9854_v43, %v6503_v0  ;;  %v6543_v3 = vmul.f32 %v9854_v43, %v9854_v43  ;;  %v6573_v4 = vadd.f32 %v6572_v61, %v6542_v58  ;;  %v9857_v5 = vadd.f32 %v11903_v50, %v3609_v39  ;;  %v6356_v47 = vpop.f32.mrb[19].mxu0 }
 0x458   : > { %v9856_v63 = vadd.f32 %v9855_v1, %v9224_v44 }
 0x459   : > { %v6574_v19 = vadd.f32 %v6573_v4, %v6543_v3  ;;  %v9858_v7 = vadd.f32 %v9857_v5, %v6356_v47  ;;  %v6505_v51 = vadd.f32 %v9852_v30, %v6504_v45  ;;  %v8507_v21 = vpop.f32.mrb[20].mxu1 }
 0x45a   : > { %6476 = vst [vmem:[%s11908_s18 + $0x98] sm:$0xff] %v9856_v63  ;;  %v9859_v20 = vadd.f32 %v8507_v21, %v11903_v50  ;;  %v9227_v8 = vpop.f32.mrb[20].mxu0  ;;  %v3619_v11 = vpop.f32.mrb[21].mxu1  ;;  %v6546_v23 = vmul.f32 %v9856_v63, %v9856_v63 }
 0x45b   : > { %6475 = vst [vmem:[%s11908_s18 + $0x90] sm:$0xff] %v9858_v7  ;;  %v6506_v27 = vadd.f32 %v9858_v7, %v6505_v51  ;;  %v6545_v14 = vmul.f32 %v9858_v7, %v9858_v7  ;;  %v6575_v15 = vadd.f32 %v6574_v19, %v6544_v25  ;;  %v9861_v17 = vadd.f32 %v11903_v50, %v3619_v11  ;;  %v6366_v18 = vpop.f32.mrb[21].mxu0 }
 0x45c   : > { %v9860_v22 = vadd.f32 %v9859_v20, %v9227_v8 }
 0x45d   : > { %v6576_v26 = vadd.f32 %v6575_v15, %v6545_v14  ;;  %v9862_v29 = vadd.f32 %v9861_v17, %v6366_v18  ;;  %v6507_v31 = vadd.f32 %v9856_v63, %v6506_v27  ;;  %v8510_v32 = vpop.f32.mrb[22].mxu1 }
 0x45e   : > { %6478 = vst [vmem:[%s11908_s18 + $0xa8] sm:$0xff] %v9860_v22  ;;  %v9863_v35 = vadd.f32 %v8510_v32, %v11903_v50  ;;  %v9230_v38 = vpop.f32.mrb[22].mxu0  ;;  %v3629_v46 = vpop.f32.mrb[23].mxu1  ;;  %v6548_v9 = vmul.f32 %v9860_v22, %v9860_v22 }
 0x45f   : > { %6477 = vst [vmem:[%s11908_s18 + $0xa0] sm:$0xff] %v9862_v29  ;;  %v6508_v49 = vadd.f32 %v9862_v29, %v6507_v31  ;;  %v6547_v52 = vmul.f32 %v9862_v29, %v9862_v29  ;;  %v6577_v59 = vadd.f32 %v6576_v26, %v6546_v23  ;;  %v9865_v60 = vadd.f32 %v11903_v50, %v3629_v46  ;;  %v6376_v62 = vpop.f32.mrb[23].mxu0 }
 0x460   : > { %v9864_v6 = vadd.f32 %v9863_v35, %v9230_v38 }
 0x461   : > { %v6578_v12 = vadd.f32 %v6577_v59, %v6547_v52  ;;  %v9866_v33 = vadd.f32 %v9865_v60, %v6376_v62  ;;  %v6509_v10 = vadd.f32 %v9860_v22, %v6508_v49  ;;  %v8513_v48 = vpop.f32.mrb[24].mxu1 }
 0x462   : > { %6480 = vst [vmem:[%s11908_s18 + $0xb8] sm:$0xff] %v9864_v6  ;;  %v9867_v16 = vadd.f32 %v8513_v48, %v11903_v50  ;;  %v9233_v54 = vpop.f32.mrb[24].mxu0  ;;  %v3639_v24 = vpop.f32.mrb[25].mxu1  ;;  %v6550_v53 = vmul.f32 %v9864_v6, %v9864_v6 }
 0x463   : > { %6479 = vst [vmem:[%s11908_s18 + $0xb0] sm:$0xff] %v9866_v33  ;;  %v6510_v37 = vadd.f32 %v9866_v33, %v6509_v10  ;;  %v6549_v13 = vmul.f32 %v9866_v33, %v9866_v33  ;;  %v6579_v28 = vadd.f32 %v6578_v12, %v6548_v9  ;;  %v9869_v42 = vadd.f32 %v11903_v50, %v3639_v24  ;;  %v6386_v36 = vpop.f32.mrb[25].mxu0 }
 0x464   : > { %v9868_v2 = vadd.f32 %v9867_v16, %v9233_v54 }
 0x465   : > { %v6580_v40 = vadd.f32 %v6579_v28, %v6549_v13  ;;  %v9870_v55 = vadd.f32 %v9869_v42, %v6386_v36  ;;  %v6511_v56 = vadd.f32 %v9864_v6, %v6510_v37  ;;  %v8516_v57 = vpop.f32.mrb[26].mxu1 }
 0x466   : > { %6482 = vst [vmem:[%s11908_s18 + $0xc8] sm:$0xff] %v9868_v2  ;;  %v9871_v41 = vadd.f32 %v8516_v57, %v11903_v50  ;;  %v9236_v30 = vpop.f32.mrb[26].mxu0  ;;  %v3649_v58 = vpop.f32.mrb[27].mxu1  ;;  %v6552_v39 = vmul.f32 %v9868_v2, %v9868_v2 }
 0x467   : > { %6481 = vst [vmem:[%s11908_s18 + $0xc0] sm:$0xff] %v9870_v55  ;;  %v6512_v61 = vadd.f32 %v9870_v55, %v6511_v56  ;;  %v6551_v43 = vmul.f32 %v9870_v55, %v9870_v55  ;;  %v6581_v0 = vadd.f32 %v6580_v40, %v6550_v53  ;;  %v9873_v34 = vadd.f32 %v11903_v50, %v3649_v58  ;;  %v6396_v1 = vpop.f32.mrb[27].mxu0 }
 0x468   : > { %v9872_v44 = vadd.f32 %v9871_v41, %v9236_v30 }
 0x469   : > { %v6582_v45 = vadd.f32 %v6581_v0, %v6551_v43  ;;  %v9874_v3 = vadd.f32 %v9873_v34, %v6396_v1  ;;  %v6513_v4 = vadd.f32 %v9868_v2, %v6512_v61  ;;  %v8519_v5 = vpop.f32.mrb[28].mxu1 }
 0x46a   : > { %6484 = vst [vmem:[%s11908_s18 + $0xd8] sm:$0xff] %v9872_v44  ;;  %v9875_v47 = vadd.f32 %v8519_v5, %v11903_v50  ;;  %v9239_v63 = vpop.f32.mrb[28].mxu0  ;;  %v3659_v25 = vpop.f32.mrb[29].mxu1  ;;  %v6554_v11 = vmul.f32 %v9872_v44, %v9872_v44 }
 0x46b   : > { %6483 = vst [vmem:[%s11908_s18 + $0xd0] sm:$0xff] %v9874_v3  ;;  %v6514_v19 = vadd.f32 %v9874_v3, %v6513_v4  ;;  %v6553_v7 = vmul.f32 %v9874_v3, %v9874_v3  ;;  %v6583_v51 = vadd.f32 %v6582_v45, %v6552_v39  ;;  %v9877_v21 = vadd.f32 %v11903_v50, %v3659_v25  ;;  %v6406_v20 = vpop.f32.mrb[29].mxu0 }
 0x46c   : > { %v9876_v8 = vadd.f32 %v9875_v47, %v9239_v63 }
 0x46d   : > { %v6584_v27 = vadd.f32 %v6583_v51, %v6553_v7  ;;  %v9878_v14 = vadd.f32 %v9877_v21, %v6406_v20  ;;  %v6515_v15 = vadd.f32 %v9872_v44, %v6514_v19  ;;  %v8522_v17 = vpop.f32.mrb[30].mxu1 }
 0x46e   : > { %6486 = vst [vmem:[%s11908_s18 + $0xe8] sm:$0xff] %v9876_v8  ;;  %v9879_v18 = vadd.f32 %v8522_v17, %v11903_v50  ;;  %v9242_v22 = vpop.f32.mrb[30].mxu0  ;;  %v3669_v23 = vpop.f32.mrb[31].mxu1  ;;  %v6556_v46 = vmul.f32 %v9876_v8, %v9876_v8 }
 0x46f   : > { %6485 = vst [vmem:[%s11908_s18 + $0xe0] sm:$0xff] %v9878_v14  ;;  %v6516_v26 = vadd.f32 %v9878_v14, %v6515_v15  ;;  %v6555_v29 = vmul.f32 %v9878_v14, %v9878_v14  ;;  %v6585_v31 = vadd.f32 %v6584_v27, %v6554_v11  ;;  %v9881_v32 = vadd.f32 %v11903_v50, %v3669_v23  ;;  %v6416_v35 = vpop.f32.mrb[31].mxu0 }
 0x470   : > { %v9880_v38 = vadd.f32 %v9879_v18, %v9242_v22 }
 0x471   : > { %v6586_v49 = vadd.f32 %v6585_v31, %v6555_v29  ;;  %v9882_v52 = vadd.f32 %v9881_v32, %v6416_v35  ;;  %v6517_v59 = vadd.f32 %v9876_v8, %v6516_v26 }
 0x472   : > { %6488 = vst [vmem:[%s11908_s18 + $0xf8] sm:$0xff] %v9880_v38 }
 0x473   : > { %6487 = vst [vmem:[%s11908_s18 + $0xf0] sm:$0xff] %v9882_v52  ;;  %v6518_v50 = vadd.f32 %v9882_v52, %v6517_v59  ;;  %v6557_v60 = vmul.f32 %v9882_v52, %v9882_v52  ;;  %v6587_v62 = vadd.f32 %v6586_v49, %v6556_v46 }
 0x474   : > { %10813 = shalt.err (!%p10810_p9)
}
 0x475   : > { %s10814_s30 = scalar_lea.hbm %s11975_s22, 4096  ;;  %s10818_s9 = scalar_lea.hbm %s12156_s1, 8192 }
 0x476   : > { %p10815_p11 = scmp.ne.s32.totalorder %s11975_s22, %s10814_s30  ;;  %p10819_p2 = scmp.lt.u32.totalorder %s11975_s22, %s12156_s1 }
 0x477   : > { %p10820_p6 = scmp.lt.u32.totalorder %s10818_s9, %s10814_s30  ;;  %p10822_p1 = scmp.lt.u32.totalorder %s10814_s30, %s11975_s22 }
 0x478   : > { %p10816_p4 = pnand %p10815_p11, %p12157_p3 }
 0x479   : > { %p10821_p0 = por %p10820_p6, %p10819_p2 }
 0x47a   : > { %p10817_p5 = pneg %p10816_p4 }
 0x47b   : > { %p10823_p10 = por %p10822_p1, %p10821_p0 }
 0x47d   : > { %p10824_p12 = pnand %p10823_p10, %p10817_p5 }
 0x47f   : > { %10827 = shalt.err (!%p10824_p12)
}
 0x480   : > { %s10948_s17 = smov 128   ;;  %s10949_s20 = smov 8   ;;  %v6558_v6 = vmul.f32 %v9880_v38, %v9880_v38  ;;  %v6519_v9 = vadd.f32 %v9880_v38, %v6518_v50  ;;  %v6588_v12 = vadd.f32 %v6587_v62, %v6557_v60 }
 0x481   : > { %10429 = dma.vmem_to_hbm [thread:$0]  (%p12157_p3), %s11977_s21, 4096, %s11975_s22, %s6598_s24, %s10948_s17, %s10948_s17, %s10949_s20  }
 0x482   : > { %v6520_v33 = vrot.slane %v6519_v9, 4  ;;  %v6589_v10 = vadd.f32 %v6588_v12, %v6558_v6  ;;  %s6929_s18 = sshll.u32 %s11417_s6, 1  ;;  %s6935_s25 = sshll.u32 %s12153_s28, 5 }
 0x483   : > { %s711_s12 = scalar_lea.vmem [#allocation20], %s6929_s18  ;;  %s12158_s22 = sld [smem:[#allocation48_spill]] }
 0x484   : > { %v6521_v48 = vadd.f32 %v6520_v33, %v6519_v9  ;;  %v6590_v16 = vrot.slane %v6589_v10, 4  ;;  %s6636_s26 = sshll.u32 %s711_s12, 4  ;;  %s6603_s19 = scalar_lea.sflag [#allocation21], %s11417_s6  ;;  %s12012_s26 = int_to_ptr.vmem [resolvable:$true] %s6636_s26 }
 0x485   : > { %s10828_s29 = scalar_lea.vmem %s12012_s26, 32  ;;  %s10950_s28 = smov [#allocation20]  }
 0x486   : > { %v6522_v54 = vrot.slane %v6521_v48, 2  ;;  %v6591_v24 = vadd.f32 %v6590_v16, %v6589_v10  ;;  %p10829_p13 = scmp.ne.s32.totalorder %s12012_s26, %s10828_s29  ;;  %s10832_s15 = sshll.u32 %s10950_s28, 4  ;;  %s10833_s15 = int_to_ptr.vmem [resolvable:$false] %s10832_s15 }
 0x487   : > { %s10834_s16 = scalar_lea.vmem %s10833_s15, 64  ;;  %p10835_p9 = scmp.lt.s32.totalorder %s12012_s26, %s10833_s15 }
 0x488   : > { %v6523_v37 = vadd.f32 %v6522_v54, %v6521_v48  ;;  %v6592_v13 = vrot.slane %v6591_v24, 2  ;;  %p10830_p7 = pnand %p10829_p13, %p12157_p3  ;;  %p10836_p11 = scmp.lt.s32.totalorder %s10834_s16, %s10828_s29 }
 0x489   : > { %s12010_s24 = scalar_lea.hbm %s12158_s22, %s6935_s25 }
 0x48a   : > { %v6524_v28 = vrot.slane %v6523_v37, 1  ;;  %v6593_v42 = vadd.f32 %v6592_v13, %v6591_v24  ;;  %p10831_p8 = pneg %p10830_p7  ;;  %p10837_p4 = por %p10836_p11, %p10835_p9 }
 0x48c   : > { %v6525_v36 = vadd.f32 %v6524_v28, %v6523_v37  ;;  %v6594_v2 = vrot.slane %v6593_v42, 1  ;;  %p10838_p5 = pnand %p10837_p4, %p10831_p8 }
 0x48e   : > { %6526 = vst [vmem:[%s711_s12] sm:$0x1] %v6525_v36  ;;  %v6595_v53 = vadd.f32 %v6594_v2, %v6593_v42 }
 0x490   : > { %6596 = vst [vmem:[%s711_s12 + $0x1] sm:$0x1] %v6595_v53 }
 0x491   : > { %10841 = shalt.err (!%p10838_p5)
}
 0x492   : > { %s10842_s6 = scalar_lea.hbm %s12010_s24, 32  ;;  %s10846_s23 = scalar_lea.hbm %s12158_s22, 64 }
 0x493   : > { %p10843_p2 = scmp.ne.s32.totalorder %s12010_s24, %s10842_s6  ;;  %p10847_p1 = scmp.lt.u32.totalorder %s12010_s24, %s12158_s22 }
 0x494   : > { %p10848_p10 = scmp.lt.u32.totalorder %s10846_s23, %s10842_s6  ;;  %p10850_p13 = scmp.lt.u32.totalorder %s10842_s6, %s12010_s24 }
 0x495   : > { %p10844_p6 = pnand %p10843_p2, %p12157_p3 }
 0x496   : > { %p10849_p12 = por %p10848_p10, %p10847_p1 }
 0x497   : > { %p10845_p0 = pneg %p10844_p6 }
 0x498   : > { %p10851_p7 = por %p10850_p13, %p10849_p12 }
 0x49a   : > { %p10852_p8 = pnand %p10851_p7, %p10845_p0 }
 0x49c   : > { %10855 = shalt.err (!%p10852_p8)
}
 0x49d   : > { %10430 = dma.vmem_to_hbm [thread:$0]  (%p12157_p3), %s12012_s26, 32, %s12010_s24, %s6603_s19  }
 0x49e PF: > { %s12159_s10 = sld [smem:[#allocation30_spill]]  ;;  %s12160_s17 = sld [smem:[#allocation40_spill]] }
 0x49f   : > { %s12161_s20 = sld [smem:[#allocation34_spill]] }
 0x4a4   : > { %s6648_s18 = sand.u32 1, %s12159_s10   ;;  %p12162_p9 = scmp.ne.s32.totalorder %s12160_s17, 0 }
 0x4a5   : > { %p12163_p11 = scmp.ge.s32.totalorder %s12161_s20, 2  ;;  %s6649_s25 = scalar_lea.sflag [#allocation6], %s6648_s18 }
 0x4a7   : > { %p10463_p4 = pnand %p12163_p11, %p12162_p9 }
 0x4a9   : > { %10905 = dma.done.wait (!%p10463_p4), %s6649_s25, 4096  }
 0x4aa   : > { %10907 = vsyncadd (!%p10463_p4), %s6649_s25, 4294963200  ;;  %s6658_s12 = scalar_lea.sflag [#allocation21], %s6648_s18 }
 0x4ab   : > { %10909 = dma.done.wait (!%p10463_p4), %s6658_s12, 32  }
 0x4ac   : > { %10911 = vsyncadd (!%p10463_p4), %s6658_s12, 4294967264  ;;  %s40_s18 = sadd.s32 1, %s12161_s20   ;;  %s12164_s7 = sld [smem:[#allocation31_spill]] }
 0x4ad   : > { %p37_p5 = scmp.ge.s32.totalorder %s40_s18, 4   ;;  %s12165_s15 = sld [smem:[#allocation39_spill]] }
 0x4ae   : > { %s12166_s16 = sld [smem:[#allocation33_spill]]  ;;  %s12167_s17 = sld [smem:[#allocation36_spill]] }
 0x4af   : > { %s12168_s13 = smov %s10918_s14  ;;  %39 = sbr.rel (!%p37_p5) target bundleno = 21 (0x15), region = 199 }
 0x4b2   : > { %s12169_s14 = smov %s12164_s7 }
 0x4b6   :  { %6663 = vsyncpa [#allocation5], 1 }
 0x4b7   :  { %6665 = vsyncpa [#allocation5 + $0x1], 1 }
 0x4b8   :  { %6666 = vsyncpa [#allocation8], 1 }
 0x4b9   :  { %6668 = vsyncpa [#allocation8 + $0x1], 1 }
 0x4ba   :  { %6669 = vsyncpa [#allocation11], 1 }
 0x4bb   :  { %6671 = vsyncpa [#allocation11 + $0x1], 1 }
 0x4bc   :  { %6672 = vsyncpa [#allocation14], 1 }
 0x4bd   :  { %6674 = vsyncpa [#allocation14 + $0x1], 1 }
 0x4be   :  { %6675 = vsyncpa [#allocation17], 1 }
 0x4bf   :  { %6676 = vsyncpa [#allocation6], 1 }
 0x4c0   :  { %6678 = vsyncpa [#allocation6 + $0x1], 1 }
 0x4c1   :  { %6679 = vsyncpa [#allocation21], 1 }
 0x4c2   :  { %6681 = vsyncpa [#allocation21 + $0x1], 1 }

</bundles_post_ra>
